<compile_context>
chip_gen: v6e
topology: v6e:2x2x1
jax: 0.10.0
libtpu: 0.0.40
codegen_flags: <defaults>
</compile_context>

<pallas_src>
import jax
import jax.numpy as jnp
from jax import lax
from jax.experimental import pallas as pl
from jax.experimental.pallas import tpu as pltpu


def _dmcnn_kernel(ids_ref,   # (b_blk, S, 3) int32: [prev, cur, next] token id
                  msk_ref,   # (b_blk, S, 2) f32:   [maskL, maskR]
                  t0_ref, t1_ref, t2_ref,   # (Vp, H) fused emb@conv tap tables
                  wh_ref,    # (2H, TP) fused fc1@fc2 weight (T padded to 128)
                  bh_ref,    # (1, TP)  fused head bias
                  out_ref):  # (b_blk, TP) f32 logits
    b_blk, S, _ = ids_ref.shape
    Vp, H = t0_ref.shape
    M = b_blk * S
    dt = t0_ref.dtype

    ids = ids_ref[...]                                         # (b_blk, S, 3)
    vcols = lax.broadcasted_iota(jnp.int32, (b_blk, S, Vp), 2)  # hoisted iota

    def tap(k, t_ref):
        # one-hot of the k-th id plane, then a single MXU dot per tap
        oh = (ids[:, :, k:k + 1] == vcols).astype(dt)          # (b_blk, S, Vp)
        return jnp.dot(oh.reshape(M, Vp), t_ref[...],          # free reshape
                       preferred_element_type=jnp.float32)     # (M, H) f32

    # Embedding gather + Conv1d(H->H, k=3, pad=1): three shifted one-hot dots.
    y = tap(0, t0_ref) + tap(1, t1_ref) + tap(2, t2_ref)       # (M, H) f32
    y3 = y.reshape(b_blk, S, H)                                 # free (S % 8 == 0)

    # Dynamic multi-pooling with the true float masks: max_s(conv * mask).
    # (The torch +1 before / -1 after the max cancel exactly.)
    msk = msk_ref[...]                                          # (b_blk, S, 2)
    pL = jnp.max(y3 * msk[:, :, 0:1], axis=1)                   # (b_blk, H)
    pR = jnp.max(y3 * msk[:, :, 1:2], axis=1)                   # (b_blk, H)
    pooled = jnp.concatenate([pL, pR], axis=1).astype(wh_ref.dtype)  # (b_blk, 2H)

    # Fused fc1@fc2 head (dropout = identity at inference): one MXU dot.
    out_ref[...] = (jnp.dot(pooled, wh_ref[...],
                            preferred_element_type=jnp.float32) + bh_ref[...])


def dmcnn_forward(context, maskL, maskR, label, sent_ids, params,
                  block_b=32, mxu_dtype=jnp.bfloat16):
    """Mirrors Model.forward (eval mode): returns (logits, trigger_hat, label, sent_ids)."""
    HI = lax.Precision.HIGHEST
    emb_table = params["emb"].astype(jnp.float32)      # (V, H)
    conv_w = params["conv_w"].astype(jnp.float32)      # (H_out, H_in, 3) torch layout
    conv_b = params["conv_b"].astype(jnp.float32)      # (H,)
    fc1_w = params["fc1_w"].astype(jnp.float32)        # (2H, F1)
    fc1_b = params["fc1_b"].astype(jnp.float32)        # (F1,)
    fc2_w = params["fc2_w"].astype(jnp.float32)        # (F1, T)
    fc2_b = params["fc2_b"].astype(jnp.float32)        # (T,)

    B, S = context.shape
    V, H = emb_table.shape
    T = fc2_w.shape[-1]

    # ---- constant folding (plain XLA, once per call) -----------------------
    # Fused gather+conv tables: T_k = emb_table @ conv_w[:,:,k].T, zero-padded
    # to Vp rows so pad_id (= V) embeds to zero (the conv's zero padding).
    # TODO(synk): for very large vocabularies the one-hot-matmul gather is the
    # wrong tool; switch to a DMA row-gather of embedding rows instead.
    Vp = ((V + 1 + 127) // 128) * 128
    pad_id = V
    table_p = jnp.zeros((Vp, H), jnp.float32).at[:V].set(emb_table)
    taps = []
    for k in range(3):
        tk = jnp.dot(table_p, conv_w[:, :, k].T, precision=HI)   # (Vp, H)
        if k == 1:
            # Conv bias folds into the centre tap: its one-hot row sums to 1.
            tk = tk.at[:V].add(conv_b[None, :])
        taps.append(tk.astype(mxu_dtype))

    # fc1 -> Dropout(identity) -> fc2 has no nonlinearity -> single affine map.
    TP = ((T + 127) // 128) * 128
    w_head = jnp.dot(fc1_w, fc2_w, precision=HI)                 # (2H, T)
    b_head = jnp.dot(fc1_b, fc2_w, precision=HI) + fc2_b         # (T,)
    w_head_p = jnp.zeros((2 * H, TP), mxu_dtype).at[:, :T].set(
        w_head.astype(mxu_dtype))
    b_head_p = jnp.zeros((1, TP), jnp.float32).at[:, :T].set(b_head[None, :])

    # ---- token-id "im2col": prev / cur / next id planes (12 B/token) -------
    ids = context.astype(jnp.int32)
    padcol = jnp.full((B, 1), pad_id, jnp.int32)
    ids3 = jnp.stack(
        [jnp.concatenate([padcol, ids[:, :S - 1]], axis=1),      # left tap
         ids,                                                    # centre tap
         jnp.concatenate([ids[:, 1:], padcol], axis=1)],         # right tap
        axis=-1)                                                 # (B, S, 3)
    msk2 = jnp.stack([maskL.astype(jnp.float32),
                      maskR.astype(jnp.float32)], axis=-1)       # (B, S, 2)

    # ---- batch blocking -----------------------------------------------------
    # No forced >=2-step split: on single-TC parts (v5e/v6e) the grid is a
    # serial loop, so splitting a small batch only adds per-step overhead.
    b_blk = max(8, (min(block_b, max(B, 1)) + 7) // 8 * 8)       # multiple of 8
    b_blk = min(b_blk, 64)   # double-buffered id/mask blocks stay well under
                             # the 32 MiB scoped-VMEM budget (v7x-safe)
    Bp = pl.cdiv(B, b_blk) * b_blk
    if Bp != B:
        pad = Bp - B
        ids3 = jnp.pad(ids3, ((0, pad), (0, 0), (0, 0)), constant_values=pad_id)
        msk2 = jnp.pad(msk2, ((0, pad), (0, 0), (0, 0)))
    n_steps = Bp // b_blk

    logits_p = pl.pallas_call(
        _dmcnn_kernel,
        out_shape=jax.ShapeDtypeStruct((Bp, TP), jnp.float32),
        grid_spec=pltpu.PrefetchScalarGridSpec(
            num_scalar_prefetch=0,
            grid=(n_steps,),
            in_specs=[
                pl.BlockSpec((b_blk, S, 3), lambda i: (i, 0, 0)),
                pl.BlockSpec((b_blk, S, 2), lambda i: (i, 0, 0)),
                pl.BlockSpec((Vp, H),       lambda i: (0, 0)),
                pl.BlockSpec((Vp, H),       lambda i: (0, 0)),
                pl.BlockSpec((Vp, H),       lambda i: (0, 0)),
                pl.BlockSpec((2 * H, TP),   lambda i: (0, 0)),
                pl.BlockSpec((1, TP),       lambda i: (0, 0)),
            ],
            out_specs=pl.BlockSpec((b_blk, TP), lambda i: (i, 0)),
        ),
        compiler_params=pltpu.CompilerParams(
            dimension_semantics=("parallel",),
            vmem_limit_bytes=32 * 1024 * 1024),
    )(ids3, msk2, *taps, w_head_p, b_head_p)

    logits = logits_p[:B, :T]                                    # lane-dense -> slice
    trigger_hat = jnp.argmax(logits, axis=-1)
    # TODO(synk): dropout layers are identity here (inference semantics);
    # training-mode stochastic dropout is not reproduced.
    return logits, trigger_hat, label, sent_ids


if __name__ == "__main__":
    # Small shapes; S = 128 matches the hard-coded nn.MaxPool1d(128).
    B, S, H, V, F1, T = 8, 128, 32, 100, 256, 8
    key = jax.random.PRNGKey(0)
    keys = jax.random.split(key, 10)

    # Deterministic synthetic parameters (shapes from Model.__init__).
    emb_table = jax.random.normal(keys[0], (V, H), jnp.float32) * 0.1
    conv_w_pt = jax.random.normal(keys[1], (H, H, 3), jnp.float32) * 0.05  # (out,in,k)
    conv_b = jax.random.normal(keys[2], (H,), jnp.float32) * 0.05
    fc1_w = jax.random.normal(keys[3], (2 * H, F1), jnp.float32) * 0.05
    fc1_b = jax.random.normal(keys[4], (F1,), jnp.float32) * 0.05
    fc2_w = jax.random.normal(keys[5], (F1, T), jnp.float32) * 0.05
    fc2_b = jax.random.normal(keys[6], (T,), jnp.float32) * 0.05
    params = dict(emb=emb_table, conv_w=conv_w_pt, conv_b=conv_b,
                  fc1_w=fc1_w, fc1_b=fc1_b, fc2_w=fc2_w, fc2_b=fc2_b)

    # Deterministic example inputs (the x[...] tuple of the torch forward).
    context = jax.random.randint(keys[7], (B, S), 0, V)
    anchors = jax.random.randint(keys[8], (B,), 0, S)
    pos = jnp.arange(S)[None, :]
    maskL = (pos <= anchors[:, None]).astype(jnp.float32)
    maskR = (pos >= anchors[:, None]).astype(jnp.float32)
    label = jax.random.randint(keys[9], (B,), 0, T)
    sent_ids = jnp.arange(B, dtype=jnp.int32)

    # Pure-JAX reference (literal torch semantics: conv, *mask, +1, maxpool,
    # -1, fc1 -> dropout(identity) -> fc2).
    with jax.default_matmul_precision("highest"):
        emb = jnp.take(emb_table, context, axis=0)
        y_ref = lax.conv_general_dilated(
            jnp.transpose(emb, (0, 2, 1)), conv_w_pt,
            window_strides=(1,), padding=((1, 1),),
            dimension_numbers=("NCH", "OIH", "NCH"))
        y_ref = jnp.transpose(y_ref, (0, 2, 1)) + conv_b[None, None, :]
        L_ref = y_ref * maskL[:, :, None] + 1.0
        R_ref = y_ref * maskR[:, :, None] + 1.0
        pooled_ref = jnp.concatenate(
            [jnp.max(L_ref, axis=1), jnp.max(R_ref, axis=1)], axis=1) - 1.0
        logits_ref = (pooled_ref @ fc1_w + fc1_b) @ fc2_w + fc2_b

    # Default path (bf16 MXU operands, f32 accumulation): loose tolerance.
    logits, trigger_hat, label_out, sids_out = dmcnn_forward(
        context, maskL, maskR, label, sent_ids, params)
    jax.block_until_ready((logits, trigger_hat))
    assert logits.shape == (B, T)
    assert jnp.allclose(logits, logits_ref, atol=3e-2, rtol=3e-2), \
        "bf16 path mismatch vs reference"

    # Full-f32 path: tight tolerance.
    logits32, _, _, _ = dmcnn_forward(
        context, maskL, maskR, label, sent_ids, params, mxu_dtype=jnp.float32)
    jax.block_until_ready(logits32)
    assert jnp.allclose(logits32, logits_ref, atol=1e-3, rtol=1e-3), \
        "f32 path mismatch vs reference"

    print("KERNEL_OK")
</pallas_src>

<mosaic_0001>
module attributes {stable_mosaic.version = 11 : i64} {
  func.func @_dmcnn_kernel(%arg0: i32, %arg1: memref<8x128x3xi32, #tpu.memory_space<vmem>>, %arg2: memref<8x128x2xf32, #tpu.memory_space<vmem>>, %arg3: memref<128x32xbf16, #tpu.memory_space<vmem>>, %arg4: memref<128x32xbf16, #tpu.memory_space<vmem>>, %arg5: memref<128x32xbf16, #tpu.memory_space<vmem>>, %arg6: memref<64x128xbf16, #tpu.memory_space<vmem>>, %arg7: memref<1x128xf32, #tpu.memory_space<vmem>>, %arg8: memref<8x128xf32, #tpu.memory_space<vmem>>) attributes {dimension_semantics = [#tpu.dimension_semantics<parallel>], iteration_bounds = array<i64: 1>, scalar_prefetch = 0 : i64, scratch_operands = 0 : i64, tpu.core_type = #tpu.core_type<tc>, window_params = [{transform_indices = @transform_0, window_bounds = array<i64: 8, 128, 3>}, {transform_indices = @transform_1, window_bounds = array<i64: 8, 128, 2>}, {pipeline_mode = #tpu.pipeline_mode<synchronous>, transform_indices = @transform_2, window_bounds = array<i64: 128, 32>}, {pipeline_mode = #tpu.pipeline_mode<synchronous>, transform_indices = @transform_3, window_bounds = array<i64: 128, 32>}, {pipeline_mode = #tpu.pipeline_mode<synchronous>, transform_indices = @transform_4, window_bounds = array<i64: 128, 32>}, {pipeline_mode = #tpu.pipeline_mode<synchronous>, transform_indices = @transform_5, window_bounds = array<i64: 64, 128>}, {pipeline_mode = #tpu.pipeline_mode<synchronous>, transform_indices = @transform_6, window_bounds = array<i64: 1, 128>}, {transform_indices = @transform_7, window_bounds = array<i64: 8, 128>}]} {
    %c0 = arith.constant 0 : index
    %c0_0 = arith.constant 0 : index
    %c0_1 = arith.constant 0 : index
    %0 = vector.load %arg1[%c0, %c0_0, %c0_1] : memref<8x128x3xi32, #tpu.memory_space<vmem>>, vector<8x128x3xi32>
    %1 = tpu.iota {dimensions = array<i32: 2>} : vector<8x128x128xi32>
    %2 = vector.extract_strided_slice %0 {offsets = [0, 0, 0], sizes = [8, 128, 1], strides = [1, 1, 1]} : vector<8x128x3xi32> to vector<8x128x1xi32>
    %3 = vector.broadcast %2 : vector<8x128x1xi32> to vector<8x128x128xi32>
    %4 = arith.cmpi eq, %3, %1 : vector<8x128x128xi32>
    %5 = arith.extui %4 : vector<8x128x128xi1> to vector<8x128x128xi32>
    %6 = arith.sitofp %5 : vector<8x128x128xi32> to vector<8x128x128xf32>
    %7 = arith.truncf %6 : vector<8x128x128xf32> to vector<8x128x128xbf16>
    %8 = vector.shape_cast %7 : vector<8x128x128xbf16> to vector<1024x128xbf16>
    %c0_2 = arith.constant 0 : index
    %c0_3 = arith.constant 0 : index
    %9 = vector.load %arg3[%c0_2, %c0_3] : memref<128x32xbf16, #tpu.memory_space<vmem>>, vector<128x32xbf16>
    %cst = arith.constant dense<0.000000e+00> : vector<1024x32xf32>
    %10 = tpu.matmul %8, %9, %cst {dimension_numbers = #tpu.dot_dimension_numbers<[1], [0], [0], [1], [0, 0, 1, 1], [], []>} : vector<1024x128xbf16>, vector<128x32xbf16>, vector<1024x32xf32> -> vector<1024x32xf32>
    %11 = vector.extract_strided_slice %0 {offsets = [0, 0, 1], sizes = [8, 128, 1], strides = [1, 1, 1]} : vector<8x128x3xi32> to vector<8x128x1xi32>
    %12 = vector.broadcast %11 : vector<8x128x1xi32> to vector<8x128x128xi32>
    %13 = arith.cmpi eq, %12, %1 : vector<8x128x128xi32>
    %14 = arith.extui %13 : vector<8x128x128xi1> to vector<8x128x128xi32>
    %15 = arith.sitofp %14 : vector<8x128x128xi32> to vector<8x128x128xf32>
    %16 = arith.truncf %15 : vector<8x128x128xf32> to vector<8x128x128xbf16>
    %17 = vector.shape_cast %16 : vector<8x128x128xbf16> to vector<1024x128xbf16>
    %c0_4 = arith.constant 0 : index
    %c0_5 = arith.constant 0 : index
    %18 = vector.load %arg4[%c0_4, %c0_5] : memref<128x32xbf16, #tpu.memory_space<vmem>>, vector<128x32xbf16>
    %cst_6 = arith.constant dense<0.000000e+00> : vector<1024x32xf32>
    %19 = tpu.matmul %17, %18, %cst_6 {dimension_numbers = #tpu.dot_dimension_numbers<[1], [0], [0], [1], [0, 0, 1, 1], [], []>} : vector<1024x128xbf16>, vector<128x32xbf16>, vector<1024x32xf32> -> vector<1024x32xf32>
    %20 = arith.addf %10, %19 : vector<1024x32xf32>
    %21 = vector.extract_strided_slice %0 {offsets = [0, 0, 2], sizes = [8, 128, 1], strides = [1, 1, 1]} : vector<8x128x3xi32> to vector<8x128x1xi32>
    %22 = vector.broadcast %21 : vector<8x128x1xi32> to vector<8x128x128xi32>
    %23 = arith.cmpi eq, %22, %1 : vector<8x128x128xi32>
    %24 = arith.extui %23 : vector<8x128x128xi1> to vector<8x128x128xi32>
    %25 = arith.sitofp %24 : vector<8x128x128xi32> to vector<8x128x128xf32>
    %26 = arith.truncf %25 : vector<8x128x128xf32> to vector<8x128x128xbf16>
    %27 = vector.shape_cast %26 : vector<8x128x128xbf16> to vector<1024x128xbf16>
    %c0_7 = arith.constant 0 : index
    %c0_8 = arith.constant 0 : index
    %28 = vector.load %arg5[%c0_7, %c0_8] : memref<128x32xbf16, #tpu.memory_space<vmem>>, vector<128x32xbf16>
    %cst_9 = arith.constant dense<0.000000e+00> : vector<1024x32xf32>
    %29 = tpu.matmul %27, %28, %cst_9 {dimension_numbers = #tpu.dot_dimension_numbers<[1], [0], [0], [1], [0, 0, 1, 1], [], []>} : vector<1024x128xbf16>, vector<128x32xbf16>, vector<1024x32xf32> -> vector<1024x32xf32>
    %30 = arith.addf %20, %29 : vector<1024x32xf32>
    %31 = vector.shape_cast %30 : vector<1024x32xf32> to vector<8x128x32xf32>
    %c0_10 = arith.constant 0 : index
    %c0_11 = arith.constant 0 : index
    %c0_12 = arith.constant 0 : index
    %32 = vector.load %arg2[%c0_10, %c0_11, %c0_12] : memref<8x128x2xf32, #tpu.memory_space<vmem>>, vector<8x128x2xf32>
    %33 = vector.extract_strided_slice %32 {offsets = [0, 0, 0], sizes = [8, 128, 1], strides = [1, 1, 1]} : vector<8x128x2xf32> to vector<8x128x1xf32>
    %34 = vector.broadcast %33 : vector<8x128x1xf32> to vector<8x128x32xf32>
    %35 = arith.mulf %31, %34 : vector<8x128x32xf32>
    %cst_13 = arith.constant dense<0xFF800000> : vector<8x32xf32>
    %36 = vector.multi_reduction <maximumf>, %35, %cst_13 [1] : vector<8x128x32xf32> to vector<8x32xf32>
    %37 = vector.extract_strided_slice %32 {offsets = [0, 0, 1], sizes = [8, 128, 1], strides = [1, 1, 1]} : vector<8x128x2xf32> to vector<8x128x1xf32>
    %38 = vector.broadcast %37 : vector<8x128x1xf32> to vector<8x128x32xf32>
    %39 = arith.mulf %31, %38 : vector<8x128x32xf32>
    %cst_14 = arith.constant dense<0xFF800000> : vector<8x32xf32>
    %40 = vector.multi_reduction <maximumf>, %39, %cst_14 [1] : vector<8x128x32xf32> to vector<8x32xf32>
    %41 = tpu.concatenate %36, %40 in 1 : vector<8x32xf32>, vector<8x32xf32> -> vector<8x64xf32>
    %42 = arith.truncf %41 : vector<8x64xf32> to vector<8x64xbf16>
    %c0_15 = arith.constant 0 : index
    %c0_16 = arith.constant 0 : index
    %43 = vector.load %arg6[%c0_15, %c0_16] : memref<64x128xbf16, #tpu.memory_space<vmem>>, vector<64x128xbf16>
    %cst_17 = arith.constant dense<0.000000e+00> : vector<8x128xf32>
    %44 = tpu.matmul %42, %43, %cst_17 {dimension_numbers = #tpu.dot_dimension_numbers<[1], [0], [0], [1], [0, 0, 1, 1], [], []>} : vector<8x64xbf16>, vector<64x128xbf16>, vector<8x128xf32> -> vector<8x128xf32>
    %c0_18 = arith.constant 0 : index
    %c0_19 = arith.constant 0 : index
    %45 = vector.load %arg7[%c0_18, %c0_19] : memref<1x128xf32, #tpu.memory_space<vmem>>, vector<1x128xf32>
    %46 = vector.broadcast %45 : vector<1x128xf32> to vector<8x128xf32>
    %47 = arith.addf %44, %46 : vector<8x128xf32>
    %c0_20 = arith.constant 0 : index
    %c0_21 = arith.constant 0 : index
    %48 = vector.load %arg8[%c0_20, %c0_21] : memref<8x128xf32, #tpu.memory_space<vmem>>, vector<8x128xf32>
    tpu.vector_store %arg8[%c0_20, %c0_21], %47 {strides = array<i32>} : memref<8x128xf32, #tpu.memory_space<vmem>>, vector<8x128xf32>,
    return
  }
  func.func @transform_0(%arg0: i32) -> (i32, i32, i32) {
    %c0_i32 = arith.constant 0 : i32
    %c0_i32_0 = arith.constant 0 : i32
    %c0_i32_1 = arith.constant 0 : i32
    return %arg0, %c0_i32, %c0_i32_0 : i32, i32, i32
  }
  func.func @transform_1(%arg0: i32) -> (i32, i32, i32) {
    %c0_i32 = arith.constant 0 : i32
    %c0_i32_0 = arith.constant 0 : i32
    %c0_i32_1 = arith.constant 0 : i32
    return %arg0, %c0_i32, %c0_i32_0 : i32, i32, i32
  }
  func.func @transform_2(%arg0: i32) -> (i32, i32) {
    %c0_i32 = arith.constant 0 : i32
    %c0_i32_0 = arith.constant 0 : i32
    %c0_i32_1 = arith.constant 0 : i32
    return %c0_i32, %c0_i32_0 : i32, i32
  }
  func.func @transform_3(%arg0: i32) -> (i32, i32) {
    %c0_i32 = arith.constant 0 : i32
    %c0_i32_0 = arith.constant 0 : i32
    %c0_i32_1 = arith.constant 0 : i32
    return %c0_i32, %c0_i32_0 : i32, i32
  }
  func.func @transform_4(%arg0: i32) -> (i32, i32) {
    %c0_i32 = arith.constant 0 : i32
    %c0_i32_0 = arith.constant 0 : i32
    %c0_i32_1 = arith.constant 0 : i32
    return %c0_i32, %c0_i32_0 : i32, i32
  }
  func.func @transform_5(%arg0: i32) -> (i32, i32) {
    %c0_i32 = arith.constant 0 : i32
    %c0_i32_0 = arith.constant 0 : i32
    %c0_i32_1 = arith.constant 0 : i32
    return %c0_i32, %c0_i32_0 : i32, i32
  }
  func.func @transform_6(%arg0: i32) -> (i32, i32) {
    %c0_i32 = arith.constant 0 : i32
    %c0_i32_0 = arith.constant 0 : i32
    %c0_i32_1 = arith.constant 0 : i32
    return %c0_i32, %c0_i32_0 : i32, i32
  }
  func.func @transform_7(%arg0: i32) -> (i32, i32) {
    %c0_i32 = arith.constant 0 : i32
    %c0_i32_0 = arith.constant 0 : i32
    return %arg0, %c0_i32 : i32, i32
  }
}

</mosaic_0001>

<bundles_post_ra>
// kernel: tpu_custom_call.1
= control target key start
LH: loop header
LB: loop body
LE: loop exit
PB: predicated region body
PF: predicated region fallthrough
CT: control target
= control target key end

     0   :  { %v13648_v2 = vmov 1   ;;  %v13646_v3 = vmov 0   ;;  %s13638_s0 = inlined_call_operand.vmem [shape: s32[8,128,3], index: 0, kind: input, shape index: {}]   ;;  %s13639_s1 = inlined_call_operand.vmem [shape: f32[8,128,2], index: 1, kind: input, shape index: {}]   ;;  %s13640_s2 = inlined_call_operand.vmem [shape: bf16[128,32], index: 2, kind: input, shape index: {}]   ;;  %s13641_s3 = inlined_call_operand.vmem [shape: bf16[128,32], index: 3, kind: input, shape index: {}]   ;;  %s13642_s4 = inlined_call_operand.vmem [shape: bf16[128,32], index: 4, kind: input, shape index: {}]   ;;  %s13643_s5 = inlined_call_operand.vmem [shape: bf16[64,128], index: 5, kind: input, shape index: {}]   ;;  %s13644_s6 = inlined_call_operand.vmem [shape: f32[1,128], index: 6, kind: input, shape index: {}]   ;;  %s13645_s7 = inlined_call_operand.hbm [shape: f32[8,128], index: 7, kind: output, shape index: {}]  }
   0x1   :  { %v8685_v0 = vld [vmem:[%s13638_s0 + $0x10] sm:$0xff]  ;;  %v28_v1 = vld [vmem:[%s13638_s0] sm:$0xff]  ;;  %8367 = vset.pattern.permute.xlu0 %v13648_v2  ;;  %8366 = vset.pattern.permute.xlu1 %v13646_v3  ;;  %v31_v4 = vld [vmem:[%s13638_s0 + $0x18] sm:$0xff] }
   0x2   :  { %165 = vperm.xlu1 %8366, %v8685_v0   ;;  %1007 = vperm.xlu0 %8367, %v28_v1   ;;  %v33_v5 = vld [vmem:[%s13638_s0 + $0x28] sm:$0xff]  ;;  %v35_v6 = vld [vmem:[%s13638_s0 + $0x38] sm:$0xff] }
   0x3   :  { %v37_v7 = vld [vmem:[%s13638_s0 + $0x48] sm:$0xff]  ;;  %v39_v8 = vld [vmem:[%s13638_s0 + $0x58] sm:$0xff] }
   0x4   :  { %v41_v9 = vld [vmem:[%s13638_s0 + $0x68] sm:$0xff]  ;;  %v43_v10 = vld [vmem:[%s13638_s0 + $0x78] sm:$0xff] }
   0x5   :  { %v45_v11 = vld [vmem:[%s13638_s0 + $0x88] sm:$0xff] }
   0x6   :  { %168 = vperm.xlu1 %8366, %v31_v4   ;;  %1016 = vperm.xlu0 %8367, %v31_v4  }
   0xa   :  { %174 = vperm.xlu1 %8366, %v33_v5   ;;  %1022 = vperm.xlu0 %8367, %v33_v5  }
   0xe   :  { %180 = vperm.xlu1 %8366, %v35_v6   ;;  %1028 = vperm.xlu0 %8367, %v35_v6  }
  0x12   :  { %186 = vperm.xlu1 %8366, %v37_v7   ;;  %1034 = vperm.xlu0 %8367, %v37_v7  }
  0x16   :  { %192 = vperm.xlu1 %8366, %v39_v8   ;;  %1040 = vperm.xlu0 %8367, %v39_v8  }
  0x1a   :  { %198 = vperm.xlu1 %8366, %v41_v9   ;;  %1046 = vperm.xlu0 %8367, %v41_v9  }
  0x1e   :  { %204 = vperm.xlu1 %8366, %v43_v10   ;;  %1052 = vperm.xlu0 %8367, %v43_v10  }
  0x1f   :  { %12 = vsyncpa [#allocation3], 0  ;;  %v47_v12 = vld [vmem:[%s13638_s0 + $0x98] sm:$0xff]  ;;  %v49_v13 = vld [vmem:[%s13638_s0 + $0xa8] sm:$0xff]  ;;  %s8641_s13 = smov [#allocation2]  }
  0x20   :  { %v51_v14 = vld [vmem:[%s13638_s0 + $0xb8] sm:$0xff]  ;;  %v53_v15 = vld [vmem:[%s13638_s0 + $0xc8] sm:$0xff]  ;;  %v8378_v2 = vld [vmem:[%s13641_s3 + $0x20] sm:$0xff]  }
  0x21   :  { %v55_v16 = vld [vmem:[%s13638_s0 + $0xd8] sm:$0xff]  ;;  %v57_v17 = vld [vmem:[%s13638_s0 + $0xe8] sm:$0xff] }
  0x22   :  { %210 = vperm.xlu1 %8366, %v45_v11   ;;  %1058 = vperm.xlu0 %8367, %v45_v11   ;;  %v59_v18 = vld [vmem:[%s13638_s0 + $0xf8] sm:$0xff]  ;;  %v61_v19 = vld [vmem:[%s13638_s0 + $0x108] sm:$0xff] }
  0x23   :  { %v63_v20 = vld [vmem:[%s13638_s0 + $0x118] sm:$0xff]  ;;  %v65_v21 = vld [vmem:[%s13638_s0 + $0x128] sm:$0xff] }
  0x24   :  { %v67_v22 = vld [vmem:[%s13638_s0 + $0x138] sm:$0xff]  ;;  %v69_v23 = vld [vmem:[%s13638_s0 + $0x148] sm:$0xff] }
  0x25   :  { %v71_v24 = vld [vmem:[%s13638_s0 + $0x158] sm:$0xff]  ;;  %v73_v25 = vld [vmem:[%s13638_s0 + $0x168] sm:$0xff] }
  0x26   :  { %216 = vperm.xlu1 %8366, %v47_v12   ;;  %1064 = vperm.xlu0 %8367, %v47_v12   ;;  %v75_v26 = vld [vmem:[%s13638_s0 + $0x178] sm:$0xff]  ;;  %v77_v27 = vld [vmem:[%s13638_s0 + $0x188] sm:$0xff] }
  0x27   :  { %v79_v28 = vld [vmem:[%s13638_s0 + $0x198] sm:$0xff]  ;;  %v81_v29 = vld [vmem:[%s13638_s0 + $0x1a8] sm:$0xff] }
  0x28   :  { %v83_v30 = vld [vmem:[%s13638_s0 + $0x1b8] sm:$0xff]  ;;  %v85_v31 = vld [vmem:[%s13638_s0 + $0x1c8] sm:$0xff] }
  0x29   :  { %v87_v32 = vld [vmem:[%s13638_s0 + $0x1d8] sm:$0xff]  ;;  %v89_v33 = vld [vmem:[%s13638_s0 + $0x1e8] sm:$0xff] }
  0x2a   :  { %222 = vperm.xlu1 %8366, %v49_v13   ;;  %1070 = vperm.xlu0 %8367, %v49_v13   ;;  %v91_v34 = vld [vmem:[%s13638_s0 + $0x1f8] sm:$0xff]  ;;  %v93_v37 = vld [vmem:[%s13638_s0 + $0x208] sm:$0xff] }
  0x2b   :  { %v95_v40 = vld [vmem:[%s13638_s0 + $0x218] sm:$0xff]  ;;  %v97_v43 = vld [vmem:[%s13638_s0 + $0x228] sm:$0xff] }
  0x2c   :  { %v99_v46 = vld [vmem:[%s13638_s0 + $0x238] sm:$0xff]  ;;  %v101_v49 = vld [vmem:[%s13638_s0 + $0x248] sm:$0xff] }
  0x2d   :  { %v103_v52 = vld [vmem:[%s13638_s0 + $0x258] sm:$0xff]  ;;  %v105_v55 = vld [vmem:[%s13638_s0 + $0x268] sm:$0xff] }
  0x2e   :  { %228 = vperm.xlu1 %8366, %v51_v14   ;;  %1076 = vperm.xlu0 %8367, %v51_v14   ;;  %v107_v58 = vld [vmem:[%s13638_s0 + $0x278] sm:$0xff]  ;;  %v109_v61 = vld [vmem:[%s13638_s0 + $0x288] sm:$0xff] }
  0x2f   :  { %v111_v1 = vld [vmem:[%s13638_s0 + $0x298] sm:$0xff]  ;;  %v113_v6 = vld [vmem:[%s13638_s0 + $0x2a8] sm:$0xff] }
  0x30   :  { %v115_v9 = vld [vmem:[%s13638_s0 + $0x2b8] sm:$0xff]  ;;  %v117_v12 = vld [vmem:[%s13638_s0 + $0x2c8] sm:$0xff] }
  0x32   :  { %234 = vperm.xlu1 %8366, %v53_v15   ;;  %1082 = vperm.xlu0 %8367, %v53_v15   ;;  %v119_v15 = vld [vmem:[%s13638_s0 + $0x2d8] sm:$0xff] }
  0x36   :  { %240 = vperm.xlu1 %8366, %v55_v16   ;;  %1088 = vperm.xlu0 %8367, %v55_v16  }
  0x3a   :  { %246 = vperm.xlu1 %8366, %v57_v17   ;;  %1094 = vperm.xlu0 %8367, %v57_v17  }
  0x3e   :  { %252 = vperm.xlu1 %8366, %v59_v18   ;;  %1100 = vperm.xlu0 %8367, %v59_v18   ;;  %v121_v18 = vld [vmem:[%s13638_s0 + $0x2e8] sm:$0xff] }
  0x42   :  { %258 = vperm.xlu1 %8366, %v61_v19   ;;  %1106 = vperm.xlu0 %8367, %v61_v19  }
  0x46   :  { %264 = vperm.xlu1 %8366, %v63_v20   ;;  %1112 = vperm.xlu0 %8367, %v63_v20  }
  0x4a   :  { %270 = vperm.xlu1 %8366, %v65_v21   ;;  %1118 = vperm.xlu0 %8367, %v65_v21   ;;  %v123_v21 = vld [vmem:[%s13638_s0 + $0x2f8] sm:$0xff] }
  0x4e   :  { %276 = vperm.xlu1 %8366, %v67_v22   ;;  %1124 = vperm.xlu0 %8367, %v67_v22  }
  0x52   :  { %282 = vperm.xlu1 %8366, %v69_v23   ;;  %1130 = vperm.xlu0 %8367, %v69_v23  }
  0x56   :  { %288 = vperm.xlu1 %8366, %v71_v24   ;;  %1136 = vperm.xlu0 %8367, %v71_v24   ;;  %v125_v24 = vld [vmem:[%s13638_s0 + $0x308] sm:$0xff] }
  0x5a   :  { %294 = vperm.xlu1 %8366, %v73_v25   ;;  %1142 = vperm.xlu0 %8367, %v73_v25  }
  0x5e   :  { %300 = vperm.xlu1 %8366, %v75_v26   ;;  %1148 = vperm.xlu0 %8367, %v75_v26  }
  0x62   :  { %306 = vperm.xlu1 %8366, %v77_v27   ;;  %1154 = vperm.xlu0 %8367, %v77_v27   ;;  %v127_v27 = vld [vmem:[%s13638_s0 + $0x318] sm:$0xff] }
  0x66   :  { %312 = vperm.xlu1 %8366, %v79_v28   ;;  %1160 = vperm.xlu0 %8367, %v79_v28  }
  0x6a   :  { %318 = vperm.xlu1 %8366, %v81_v29   ;;  %1166 = vperm.xlu0 %8367, %v81_v29  }
  0x6e   :  { %324 = vperm.xlu1 %8366, %v83_v30   ;;  %1172 = vperm.xlu0 %8367, %v83_v30   ;;  %v129_v30 = vld [vmem:[%s13638_s0 + $0x328] sm:$0xff] }
  0x72   :  { %330 = vperm.xlu1 %8366, %v85_v31   ;;  %1178 = vperm.xlu0 %8367, %v85_v31  }
  0x76   :  { %336 = vperm.xlu1 %8366, %v87_v32   ;;  %1184 = vperm.xlu0 %8367, %v87_v32  }
  0x7a   :  { %342 = vperm.xlu1 %8366, %v89_v33   ;;  %1190 = vperm.xlu0 %8367, %v89_v33   ;;  %v131_v33 = vld [vmem:[%s13638_s0 + $0x338] sm:$0xff] }
  0x7d   :  { %v8786_v35 = vpop.permute.xlu1 %165  ;;  %v8788_v36 = vpop.permute.xlu0 %1007 }
  0x7e   :  { %13790 = vst [vmem:[#allocation5_spill] sm:$0xff] %v8786_v35  ;;  %348 = vperm.xlu1 %8366, %v91_v34   ;;  %1196 = vperm.xlu0 %8367, %v91_v34  }
  0x81   :  { %v8793_v38 = vpop.permute.xlu1 %168  ;;  %v8795_v39 = vpop.permute.xlu0 %1016 }
  0x82   :  { %13791 = vst [vmem:[#allocation6_spill] sm:$0xff] %v8793_v38  ;;  %354 = vperm.xlu1 %8366, %v93_v37   ;;  %1202 = vperm.xlu0 %8367, %v93_v37  }
  0x85   :  { %v8800_v41 = vpop.permute.xlu1 %174  ;;  %v8802_v42 = vpop.permute.xlu0 %1022 }
  0x86   :  { %13792 = vst [vmem:[#allocation7_spill] sm:$0xff] %v8800_v41  ;;  %360 = vperm.xlu1 %8366, %v95_v40   ;;  %1208 = vperm.xlu0 %8367, %v95_v40   ;;  %v133_v40 = vld [vmem:[%s13638_s0 + $0x348] sm:$0xff] }
  0x89   :  { %v8807_v44 = vpop.permute.xlu1 %180  ;;  %v8809_v45 = vpop.permute.xlu0 %1028 }
  0x8a   :  { %13793 = vst [vmem:[#allocation8_spill] sm:$0xff] %v8807_v44  ;;  %366 = vperm.xlu1 %8366, %v97_v43   ;;  %1214 = vperm.xlu0 %8367, %v97_v43  }
  0x8d   :  { %v8814_v47 = vpop.permute.xlu1 %186  ;;  %v8816_v48 = vpop.permute.xlu0 %1034 }
  0x8e   :  { %13794 = vst [vmem:[#allocation9_spill] sm:$0xff] %v8814_v47  ;;  %372 = vperm.xlu1 %8366, %v99_v46   ;;  %1220 = vperm.xlu0 %8367, %v99_v46  }
  0x91   :  { %v8821_v50 = vpop.permute.xlu1 %192  ;;  %v8823_v51 = vpop.permute.xlu0 %1040 }
  0x92   :  { %13795 = vst [vmem:[#allocation10_spill] sm:$0xff] %v8821_v50  ;;  %378 = vperm.xlu1 %8366, %v101_v49   ;;  %1226 = vperm.xlu0 %8367, %v101_v49   ;;  %v135_v49 = vld [vmem:[%s13638_s0 + $0x358] sm:$0xff] }
  0x95   :  { %v8828_v53 = vpop.permute.xlu1 %198  ;;  %v8830_v54 = vpop.permute.xlu0 %1046 }
  0x96   :  { %13796 = vst [vmem:[#allocation11_spill] sm:$0xff] %v8828_v53  ;;  %384 = vperm.xlu1 %8366, %v103_v52   ;;  %1232 = vperm.xlu0 %8367, %v103_v52  }
  0x99   :  { %v8835_v56 = vpop.permute.xlu1 %204  ;;  %v8837_v57 = vpop.permute.xlu0 %1052 }
  0x9a   :  { %13797 = vst [vmem:[#allocation12_spill] sm:$0xff] %v8835_v56  ;;  %390 = vperm.xlu1 %8366, %v105_v55   ;;  %1238 = vperm.xlu0 %8367, %v105_v55  }
  0x9d   :  { %v8842_v59 = vpop.permute.xlu1 %210  ;;  %v8844_v60 = vpop.permute.xlu0 %1058 }
  0x9e   :  { %13798 = vst [vmem:[#allocation13_spill] sm:$0xff] %v8842_v59  ;;  %396 = vperm.xlu1 %8366, %v107_v58   ;;  %1244 = vperm.xlu0 %8367, %v107_v58   ;;  %v137_v58 = vld [vmem:[%s13638_s0 + $0x368] sm:$0xff] }
  0xa1   :  { %v8849_v62 = vpop.permute.xlu1 %216  ;;  %v8851_v63 = vpop.permute.xlu0 %1064 }
  0xa2   :  { %13799 = vst [vmem:[#allocation14_spill] sm:$0xff] %v8849_v62  ;;  %402 = vperm.xlu1 %8366, %v109_v61   ;;  %1250 = vperm.xlu0 %8367, %v109_v61  }
  0xa5   :  { %v8856_v4 = vpop.permute.xlu1 %222  ;;  %v8858_v5 = vpop.permute.xlu0 %1070 }
  0xa6   :  { %13800 = vst [vmem:[#allocation15_spill] sm:$0xff] %v8856_v4  ;;  %408 = vperm.xlu1 %8366, %v111_v1   ;;  %1256 = vperm.xlu0 %8367, %v111_v1  }
  0xa9   :  { %v8863_v7 = vpop.permute.xlu1 %228  ;;  %v8865_v8 = vpop.permute.xlu0 %1076 }
  0xaa   :  { %13801 = vst [vmem:[#allocation16_spill] sm:$0xff] %v8863_v7  ;;  %414 = vperm.xlu1 %8366, %v113_v6   ;;  %1262 = vperm.xlu0 %8367, %v113_v6   ;;  %v139_v6 = vld [vmem:[%s13638_s0 + $0x378] sm:$0xff] }
  0xad   :  { %v8870_v10 = vpop.permute.xlu1 %234  ;;  %v8872_v11 = vpop.permute.xlu0 %1082 }
  0xae   :  { %13802 = vst [vmem:[#allocation17_spill] sm:$0xff] %v8870_v10  ;;  %420 = vperm.xlu1 %8366, %v115_v9   ;;  %1268 = vperm.xlu0 %8367, %v115_v9   ;;  %v46_v10 = vld [vmem:[%s13638_s0 + $0x90] sm:$0xff] }
  0xb1   :  { %v8877_v13 = vpop.permute.xlu1 %240  ;;  %v8879_v14 = vpop.permute.xlu0 %1088 }
  0xb2   :  { %13803 = vst [vmem:[#allocation18_spill] sm:$0xff] %v8877_v13  ;;  %426 = vperm.xlu1 %8366, %v117_v12   ;;  %1274 = vperm.xlu0 %8367, %v117_v12  }
  0xb5   :  { %v8884_v16 = vpop.permute.xlu1 %246  ;;  %v8886_v17 = vpop.permute.xlu0 %1094 }
  0xb6   :  { %13804 = vst [vmem:[#allocation19_spill] sm:$0xff] %v8884_v16  ;;  %432 = vperm.xlu1 %8366, %v119_v15   ;;  %1280 = vperm.xlu0 %8367, %v119_v15   ;;  %v141_v15 = vld [vmem:[%s13638_s0 + $0x388] sm:$0xff]  ;;  %v44_v16 = vld [vmem:[%s13638_s0 + $0x80] sm:$0xff] }
  0xb9   :  { %v8891_v19 = vpop.permute.xlu1 %252  ;;  %v8893_v20 = vpop.permute.xlu0 %1100 }
  0xba   :  { %13805 = vst [vmem:[#allocation20_spill] sm:$0xff] %v8891_v19  ;;  %438 = vperm.xlu1 %8366, %v121_v18   ;;  %1286 = vperm.xlu0 %8367, %v121_v18  }
  0xbd   :  { %v8898_v22 = vpop.permute.xlu1 %258  ;;  %v8900_v23 = vpop.permute.xlu0 %1106 }
  0xbe   :  { %13806 = vst [vmem:[#allocation21_spill] sm:$0xff] %v8898_v22  ;;  %444 = vperm.xlu1 %8366, %v123_v21   ;;  %1292 = vperm.xlu0 %8367, %v123_v21  }
  0xc1   :  { %v8905_v25 = vpop.permute.xlu1 %264  ;;  %v8907_v26 = vpop.permute.xlu0 %1112 }
  0xc2   :  { %13807 = vst [vmem:[#allocation22_spill] sm:$0xff] %v8905_v25  ;;  %450 = vperm.xlu1 %8366, %v125_v24   ;;  %1298 = vperm.xlu0 %8367, %v125_v24   ;;  %v143_v24 = vld [vmem:[%s13638_s0 + $0x398] sm:$0xff] }
  0xc5   :  { %v8912_v28 = vpop.permute.xlu1 %270  ;;  %v8914_v29 = vpop.permute.xlu0 %1118 }
  0xc6   :  { %13808 = vst [vmem:[#allocation23_spill] sm:$0xff] %v8912_v28  ;;  %456 = vperm.xlu1 %8366, %v127_v27   ;;  %1304 = vperm.xlu0 %8367, %v127_v27   ;;  %v8375_v27 = vld [vmem:[%s13641_s3 + $0x38] sm:$0xff]  }
  0xc7   :  { %7898 = vmatprep.subr.bf16.mxu0 %v8375_v27  ;;  %8342 = vmatprep.subr.bf16.mxu1 %v8375_v27 }
  0xc8   :  { %7899 = vmatpush3.bf16.msra.mxu0 %v8375_v27  ;;  %8350 = vmatpush3.bf16.msra.mxu1 %v8375_v27 }
  0xc9   :  { %v8919_v31 = vpop.permute.xlu1 %276  ;;  %v8921_v32 = vpop.permute.xlu0 %1124 }
  0xca   :  { %13809 = vst [vmem:[#allocation24_spill] sm:$0xff] %v8919_v31  ;;  %462 = vperm.xlu1 %8366, %v129_v30   ;;  %1310 = vperm.xlu0 %8367, %v129_v30  }
  0xcd   :  { %v8926_v34 = vpop.permute.xlu1 %282  ;;  %v8928_v37 = vpop.permute.xlu0 %1130 }
  0xce   :  { %13810 = vst [vmem:[#allocation25_spill] sm:$0xff] %v8926_v34  ;;  %468 = vperm.xlu1 %8366, %v131_v33   ;;  %1316 = vperm.xlu0 %8367, %v131_v33  }
  0xd1   :  { %v8933_v43 = vpop.permute.xlu1 %288  ;;  %v8935_v46 = vpop.permute.xlu0 %1136 }
  0xd2   :  { %13811 = vst [vmem:[#allocation26_spill] sm:$0xff] %v8933_v43  ;;  %474 = vperm.xlu1 %8366, %v133_v40   ;;  %1322 = vperm.xlu0 %8367, %v133_v40   ;;  %v145_v40 = vld [vmem:[%s13638_s0 + $0x3a8] sm:$0xff] }
  0xd5   :  { %v8940_v52 = vpop.permute.xlu1 %294  ;;  %v8942_v55 = vpop.permute.xlu0 %1142 }
  0xd6   :  { %13812 = vst [vmem:[#allocation27_spill] sm:$0xff] %v8940_v52  ;;  %480 = vperm.xlu1 %8366, %v135_v49   ;;  %1328 = vperm.xlu0 %8367, %v135_v49   ;;  %v8376_v49 = vld [vmem:[%s13641_s3 + $0x30] sm:$0xff]  }
  0xd7   :  { %7900 = vmatprep.subr.bf16.mxu0 %v8376_v49  ;;  %8343 = vmatprep.subr.bf16.mxu1 %v8376_v49 }
  0xd8   :  { %7901 = vmatpush3.bf16.msra.mxu0 %v8376_v49  ;;  %8351 = vmatpush3.bf16.msra.mxu1 %v8376_v49 }
  0xd9   :  { %v8947_v61 = vpop.permute.xlu1 %300  ;;  %v8949_v1 = vpop.permute.xlu0 %1148 }
  0xda   :  { %13813 = vst [vmem:[#allocation28_spill] sm:$0xff] %v8947_v61  ;;  %486 = vperm.xlu1 %8366, %v137_v58   ;;  %1334 = vperm.xlu0 %8367, %v137_v58   ;;  %v13824_v61 = vmov 1  }
  0xdd   :  { %v8954_v9 = vpop.permute.xlu1 %306  ;;  %v8956_v12 = vpop.permute.xlu0 %1154 }
  0xde   :  { %13814 = vst [vmem:[#allocation29_spill] sm:$0xff] %v8954_v9  ;;  %492 = vperm.xlu1 %8366, %v139_v6   ;;  %1340 = vperm.xlu0 %8367, %v139_v6  }
  0xe1   :  { %v8961_v18 = vpop.permute.xlu1 %312  ;;  %v8963_v21 = vpop.permute.xlu0 %1160 }
  0xe2   :  { %13815 = vst [vmem:[#allocation30_spill] sm:$0xff] %v8961_v18  ;;  %498 = vperm.xlu1 %8366, %v141_v15   ;;  %1346 = vperm.xlu0 %8367, %v141_v15   ;;  %v147_v15 = vld [vmem:[%s13638_s0 + $0x3b8] sm:$0xff] }
  0xe5   :  { %v8971_v30 = vpop.permute.xlu1 %318  ;;  %v8973_v33 = vpop.permute.xlu0 %1166 }
  0xe6   :  { %13816 = vst [vmem:[#allocation31_spill] sm:$0xff] %v8971_v30  ;;  %504 = vperm.xlu1 %8366, %v143_v24   ;;  %1352 = vperm.xlu0 %8367, %v143_v24   ;;  %v8377_v24 = vld [vmem:[%s13641_s3 + $0x28] sm:$0xff]  }
  0xe7   :  { %7902 = vmatprep.subr.bf16.mxu0 %v8377_v24  ;;  %8344 = vmatprep.subr.bf16.mxu1 %v8377_v24 }
  0xe8   :  { %7903 = vmatpush3.bf16.msra.mxu0 %v8377_v24  ;;  %8352 = vmatpush3.bf16.msra.mxu1 %v8377_v24 }
  0xe9   :  { %v8981_v58 = vpop.permute.xlu1 %324  ;;  %v8983_v6 = vpop.permute.xlu0 %1172  ;;  %7904 = vmatprep.subr.bf16.mxu0 %v8378_v2  ;;  %8345 = vmatprep.subr.bf16.mxu1 %v8378_v2 }
  0xea   :  { %13817 = vst [vmem:[#allocation32_spill] sm:$0xff] %v8981_v58  ;;  %510 = vperm.xlu1 %8366, %v145_v40   ;;  %1358 = vperm.xlu0 %8367, %v145_v40   ;;  %v149_v40 = vld [vmem:[%s13638_s0 + $0x3c8] sm:$0xff] }
  0xec   :  { %7905 = vmatpush3.bf16.msra.mxu0 %v8378_v2  ;;  %8353 = vmatpush3.bf16.msra.mxu1 %v8378_v2 }
  0xed   :  { %v8991_v3 = vpop.permute.xlu1 %330  ;;  %v8993_v27 = vpop.permute.xlu0 %1178 }
  0xee   :  { %13818 = vst [vmem:[#allocation33_spill] sm:$0xff] %v8991_v3  ;;  %516 = vperm.xlu1 %8366, %v147_v15   ;;  %1364 = vperm.xlu0 %8367, %v147_v15   ;;  %v151_v15 = vld [vmem:[%s13638_s0 + $0x3d8] sm:$0xff] }
  0xef   :  { %v8379_v3 = vld [vmem:[%s13641_s3 + $0x18] sm:$0xff]  }
  0xf0   :  { %7906 = vmatprep.subr.bf16.mxu0 %v8379_v3  ;;  %8346 = vmatprep.subr.bf16.mxu1 %v8379_v3 }
  0xf1   :  { %v9001_v58 = vpop.permute.xlu1 %336  ;;  %v9003_v49 = vpop.permute.xlu0 %1184  ;;  %7907 = vmatpush3.bf16.msra.mxu0 %v8379_v3  ;;  %8354 = vmatpush3.bf16.msra.mxu1 %v8379_v3 }
  0xf2   :  { %13819 = vst [vmem:[#allocation34_spill] sm:$0xff] %v9001_v58  ;;  %522 = vperm.xlu1 %8366, %v149_v40   ;;  %1370 = vperm.xlu0 %8367, %v149_v40   ;;  %v153_v40 = vld [vmem:[%s13638_s0 + $0x3e8] sm:$0xff]  ;;  %v8380_v58 = vld [vmem:[%s13641_s3 + $0x10] sm:$0xff]  }
  0xf3   :  { %7908 = vmatprep.subr.bf16.mxu0 %v8380_v58  ;;  %8347 = vmatprep.subr.bf16.mxu1 %v8380_v58 }
  0xf5   :  { %v9011_v30 = vpop.permute.xlu1 %342  ;;  %v9013_v24 = vpop.permute.xlu0 %1190  ;;  %7909 = vmatpush3.bf16.msra.mxu0 %v8380_v58  ;;  %8355 = vmatpush3.bf16.msra.mxu1 %v8380_v58 }
  0xf6   :  { %13820 = vst [vmem:[#allocation35_spill] sm:$0xff] %v9011_v30  ;;  %528 = vperm.xlu1 %8366, %v151_v15   ;;  %1376 = vperm.xlu0 %8367, %v151_v15   ;;  %v155_v15 = vld [vmem:[%s13638_s0 + $0x3f8] sm:$0xff]  ;;  %v8381_v30 = vld [vmem:[%s13641_s3 + $0x8] sm:$0xff]  }
  0xf7   :  { %7910 = vmatprep.subr.bf16.mxu0 %v8381_v30  ;;  %8348 = vmatprep.subr.bf16.mxu1 %v8381_v30 }
  0xf9   :  { %v9021_v18 = vpop.permute.xlu1 %348  ;;  %v9023_v2 = vpop.permute.xlu0 %1196  ;;  %7911 = vmatpush3.bf16.msra.mxu0 %v8381_v30  ;;  %8356 = vmatpush3.bf16.msra.mxu1 %v8381_v30  ;;  %v9054_v30 = vld [vmem:[%s13638_s0 + $0x20] sm:$0xff] }
  0xfa   :  { %13821 = vst [vmem:[#allocation36_spill] sm:$0xff] %v9021_v18  ;;  %534 = vperm.xlu1 %8366, %v153_v40   ;;  %1382 = vperm.xlu0 %8367, %v153_v40   ;;  %v8382_v40 = vld [vmem:[%s13641_s3] sm:$0xff]   ;;  %v9041_v18 = vld [vmem:[%s13638_s0 + $0x8] sm:$0xff] }
  0xfb   :  { %7912 = vmatprep.subr.bf16.mxu0 %v8382_v40  ;;  %8349 = vmatprep.subr.bf16.mxu1 %v8382_v40 }
  0xfd   :  { %v9031_v9 = vpop.permute.xlu1 %354  ;;  %v9033_v3 = vpop.permute.xlu0 %1202  ;;  %7913 = vmatpush3.bf16.msra.mxu0 %v8382_v40  ;;  %8357 = vmatpush3.bf16.msra.mxu1 %v8382_v40  ;;  %v9076_v40 = vld [vmem:[%s13638_s0 + $0x40] sm:$0xff] }
  0xfe   :  { %13822 = vst [vmem:[#allocation37_spill] sm:$0xff] %v9031_v9  ;;  %540 = vperm.xlu1 %8366, %v155_v15   ;;  %1388 = vperm.xlu0 %8367, %v155_v15   ;;  %v13650_v15 = vmov 2  }
 0x101   :  { %v9043_v58 = vpop.permute.xlu1 %360  ;;  %v9045_v9 = vpop.permute.xlu0 %1208 }
 0x102   :  { %13823 = vst [vmem:[#allocation38_spill] sm:$0xff] %v9043_v58  ;;  %8368 = vset.pattern.permute.xlu1 %v13824_v61  ;;  %8370 = vset.pattern.permute.xlu0 %v13650_v15  ;;  %v9065_v15 = vld [vmem:[%s13638_s0 + $0x30] sm:$0xff] }
 0x103   :  { %1010 = vperm.xlu1 %8368, %v9041_v18   ;;  %3044 = vperm.xlu0 %8370, %v9041_v18  }
 0x105   :  { %v9056_v58 = vpop.permute.xlu1 %366  ;;  %v9058_v52 = vpop.permute.xlu0 %1214 }
 0x106   :  { %13825 = vst [vmem:[#allocation39_spill] sm:$0xff] %v9056_v58 }
 0x107   :  { %1013 = vperm.xlu1 %8368, %v8685_v0   ;;  %3053 = vperm.xlu0 %8370, %v9054_v30  }
 0x109   :  { %v9067_v61 = vpop.permute.xlu1 %372  ;;  %v9069_v43 = vpop.permute.xlu0 %1220 }
 0x10a   :  { %13826 = vst [vmem:[#allocation40_spill] sm:$0xff] %v9067_v61  ;;  %v9087_v61 = vld [vmem:[%s13638_s0 + $0x50] sm:$0xff] }
 0x10b   :  { %1019 = vperm.xlu1 %8368, %v9054_v30   ;;  %3059 = vperm.xlu0 %8370, %v9065_v15  }
 0x10d   :  { %v9078_v0 = vpop.permute.xlu1 %378  ;;  %v9080_v58 = vpop.permute.xlu0 %1226 }
 0x10e   :  { %13827 = vst [vmem:[#allocation41_spill] sm:$0xff] %v9078_v0  ;;  %v40_v0 = vld [vmem:[%s13638_s0 + $0x60] sm:$0xff] }
 0x10f   :  { %1025 = vperm.xlu1 %8368, %v9065_v15   ;;  %3065 = vperm.xlu0 %8370, %v9076_v40  }
 0x111   :  { %v9089_v34 = vpop.permute.xlu1 %384  ;;  %v9091_v31 = vpop.permute.xlu0 %1232 }
 0x112   :  { %13828 = vst [vmem:[#allocation42_spill] sm:$0xff] %v9089_v34  ;;  %v42_v34 = vld [vmem:[%s13638_s0 + $0x70] sm:$0xff] }
 0x113   :  { %1031 = vperm.xlu1 %8368, %v9076_v40   ;;  %3071 = vperm.xlu0 %8370, %v9087_v61  }
 0x115   :  { %v9098_v28 = vpop.permute.xlu1 %390  ;;  %v9100_v25 = vpop.permute.xlu0 %1238 }
 0x116   :  { %13829 = vst [vmem:[#allocation43_spill] sm:$0xff] %v9098_v28 }
 0x117   :  { %1037 = vperm.xlu1 %8368, %v9087_v61   ;;  %3077 = vperm.xlu0 %8370, %v40_v0  }
 0x119   :  { %v9106_v22 = vpop.permute.xlu1 %396  ;;  %v9108_v19 = vpop.permute.xlu0 %1244 }
 0x11a   :  { %13830 = vst [vmem:[#allocation44_spill] sm:$0xff] %v9106_v22 }
 0x11b   :  { %1043 = vperm.xlu1 %8368, %v40_v0   ;;  %3083 = vperm.xlu0 %8370, %v42_v34   ;;  %v48_v0 = vld [vmem:[%s13638_s0 + $0xa0] sm:$0xff] }
 0x11d   :  { %v9113_v28 = vpop.permute.xlu1 %402  ;;  %v9115_v13 = vpop.permute.xlu0 %1250 }
 0x11e   :  { %13831 = vst [vmem:[#allocation45_spill] sm:$0xff] %v9113_v28 }
 0x11f   :  { %1049 = vperm.xlu1 %8368, %v42_v34   ;;  %3089 = vperm.xlu0 %8370, %v44_v16   ;;  %v50_v34 = vld [vmem:[%s13638_s0 + $0xb0] sm:$0xff] }
 0x121   :  { %v9120_v7 = vpop.permute.xlu1 %408  ;;  %v9122_v22 = vpop.permute.xlu0 %1256 }
 0x122   :  { %13832 = vst [vmem:[#allocation46_spill] sm:$0xff] %v9120_v7 }
 0x123   :  { %1055 = vperm.xlu1 %8368, %v44_v16   ;;  %3095 = vperm.xlu0 %8370, %v46_v10   ;;  %v52_v16 = vld [vmem:[%s13638_s0 + $0xc0] sm:$0xff] }
 0x125   :  { %v9127_v4 = vpop.permute.xlu1 %414  ;;  %v9129_v28 = vpop.permute.xlu0 %1262 }
 0x126   :  { %13833 = vst [vmem:[#allocation47_spill] sm:$0xff] %v9127_v4 }
 0x127   :  { %1061 = vperm.xlu1 %8368, %v46_v10   ;;  %3101 = vperm.xlu0 %8370, %v48_v0   ;;  %v54_v10 = vld [vmem:[%s13638_s0 + $0xd0] sm:$0xff] }
 0x129   :  { %v9134_v62 = vpop.permute.xlu1 %420  ;;  %v9136_v7 = vpop.permute.xlu0 %1268 }
 0x12a   :  { %13834 = vst [vmem:[#allocation48_spill] sm:$0xff] %v9134_v62 }
 0x12b   :  { %1067 = vperm.xlu1 %8368, %v48_v0   ;;  %3107 = vperm.xlu0 %8370, %v50_v34   ;;  %v56_v0 = vld [vmem:[%s13638_s0 + $0xe0] sm:$0xff] }
 0x12d   :  { %v9141_v59 = vpop.permute.xlu1 %426  ;;  %v9143_v4 = vpop.permute.xlu0 %1274 }
 0x12e   :  { %13835 = vst [vmem:[#allocation49_spill] sm:$0xff] %v9141_v59 }
 0x12f   :  { %1073 = vperm.xlu1 %8368, %v50_v34   ;;  %3113 = vperm.xlu0 %8370, %v52_v16   ;;  %v58_v34 = vld [vmem:[%s13638_s0 + $0xf0] sm:$0xff] }
 0x131   :  { %v9148_v56 = vpop.permute.xlu1 %432  ;;  %v9150_v62 = vpop.permute.xlu0 %1280 }
 0x132   :  { %13836 = vst [vmem:[#allocation50_spill] sm:$0xff] %v9148_v56 }
 0x133   :  { %1079 = vperm.xlu1 %8368, %v52_v16   ;;  %3119 = vperm.xlu0 %8370, %v54_v10   ;;  %v60_v16 = vld [vmem:[%s13638_s0 + $0x100] sm:$0xff] }
 0x135   :  { %v9155_v53 = vpop.permute.xlu1 %438  ;;  %v9157_v59 = vpop.permute.xlu0 %1286 }
 0x136   :  { %13837 = vst [vmem:[#allocation51_spill] sm:$0xff] %v9155_v53 }
 0x137   :  { %1085 = vperm.xlu1 %8368, %v54_v10   ;;  %3125 = vperm.xlu0 %8370, %v56_v0   ;;  %v62_v10 = vld [vmem:[%s13638_s0 + $0x110] sm:$0xff] }
 0x139   :  { %v9162_v50 = vpop.permute.xlu1 %444  ;;  %v9164_v56 = vpop.permute.xlu0 %1292 }
 0x13a   :  { %13838 = vst [vmem:[#allocation52_spill] sm:$0xff] %v9162_v50 }
 0x13b   :  { %1091 = vperm.xlu1 %8368, %v56_v0   ;;  %3131 = vperm.xlu0 %8370, %v58_v34   ;;  %v64_v0 = vld [vmem:[%s13638_s0 + $0x120] sm:$0xff] }
 0x13d   :  { %v9169_v47 = vpop.permute.xlu1 %450  ;;  %v9171_v53 = vpop.permute.xlu0 %1298 }
 0x13e   :  { %13839 = vst [vmem:[#allocation53_spill] sm:$0xff] %v9169_v47 }
 0x13f   :  { %1097 = vperm.xlu1 %8368, %v58_v34   ;;  %3137 = vperm.xlu0 %8370, %v60_v16   ;;  %v66_v34 = vld [vmem:[%s13638_s0 + $0x130] sm:$0xff] }
 0x141   :  { %v9176_v44 = vpop.permute.xlu1 %456  ;;  %v9178_v50 = vpop.permute.xlu0 %1304 }
 0x142   :  { %13840 = vst [vmem:[#allocation54_spill] sm:$0xff] %v9176_v44 }
 0x143   :  { %1103 = vperm.xlu1 %8368, %v60_v16   ;;  %3143 = vperm.xlu0 %8370, %v62_v10   ;;  %v68_v16 = vld [vmem:[%s13638_s0 + $0x140] sm:$0xff] }
 0x145   :  { %v9183_v41 = vpop.permute.xlu1 %462  ;;  %v9185_v47 = vpop.permute.xlu0 %1310 }
 0x146   :  { %13841 = vst [vmem:[#allocation55_spill] sm:$0xff] %v9183_v41  ;;  %13842 = vst [vmem:[#allocation56_spill] sm:$0xff] %v9185_v47 }
 0x147   :  { %1109 = vperm.xlu1 %8368, %v62_v10   ;;  %3149 = vperm.xlu0 %8370, %v64_v0   ;;  %v70_v10 = vld [vmem:[%s13638_s0 + $0x150] sm:$0xff] }
 0x149   :  { %v9190_v35 = vpop.permute.xlu1 %468  ;;  %v9192_v44 = vpop.permute.xlu0 %1316 }
 0x14a   :  { %13843 = vst [vmem:[#allocation57_spill] sm:$0xff] %v9190_v35  ;;  %13844 = vst [vmem:[#allocation58_spill] sm:$0xff] %v9192_v44 }
 0x14b   :  { %1115 = vperm.xlu1 %8368, %v64_v0   ;;  %3155 = vperm.xlu0 %8370, %v66_v34   ;;  %v72_v0 = vld [vmem:[%s13638_s0 + $0x160] sm:$0xff] }
 0x14d   :  { %v9197_v38 = vpop.permute.xlu1 %474  ;;  %v9199_v41 = vpop.permute.xlu0 %1322 }
 0x14e   :  { %13845 = vst [vmem:[#allocation59_spill] sm:$0xff] %v9197_v38  ;;  %13846 = vst [vmem:[#allocation60_spill] sm:$0xff] %v9199_v41 }
 0x14f   :  { %1121 = vperm.xlu1 %8368, %v66_v34   ;;  %3161 = vperm.xlu0 %8370, %v68_v16   ;;  %v74_v34 = vld [vmem:[%s13638_s0 + $0x170] sm:$0xff] }
 0x151   :  { %v9204_v47 = vpop.permute.xlu1 %480  ;;  %v9206_v35 = vpop.permute.xlu0 %1328 }
 0x152   :  { %13847 = vst [vmem:[#allocation61_spill] sm:$0xff] %v9204_v47  ;;  %13848 = vst [vmem:[#allocation62_spill] sm:$0xff] %v9206_v35 }
 0x153   :  { %1127 = vperm.xlu1 %8368, %v68_v16   ;;  %3167 = vperm.xlu0 %8370, %v70_v10   ;;  %v76_v16 = vld [vmem:[%s13638_s0 + $0x180] sm:$0xff] }
 0x155   :  { %v9211_v44 = vpop.permute.xlu1 %486  ;;  %v9213_v38 = vpop.permute.xlu0 %1334 }
 0x156   :  { %13849 = vst [vmem:[#allocation63_spill] sm:$0xff] %v9211_v44  ;;  %13850 = vst [vmem:[#allocation64_spill] sm:$0xff] %v9213_v38 }
 0x157   :  { %1133 = vperm.xlu1 %8368, %v70_v10   ;;  %3173 = vperm.xlu0 %8370, %v72_v0   ;;  %v78_v10 = vld [vmem:[%s13638_s0 + $0x190] sm:$0xff] }
 0x159   :  { %v9218_v41 = vpop.permute.xlu1 %492  ;;  %v9220_v47 = vpop.permute.xlu0 %1340 }
 0x15a   :  { %13851 = vst [vmem:[#allocation65_spill] sm:$0xff] %v9218_v41  ;;  %13852 = vst [vmem:[#allocation66_spill] sm:$0xff] %v9220_v47 }
 0x15b   :  { %1139 = vperm.xlu1 %8368, %v72_v0   ;;  %3179 = vperm.xlu0 %8370, %v74_v34   ;;  %v80_v0 = vld [vmem:[%s13638_s0 + $0x1a0] sm:$0xff] }
 0x15d   :  { %v9225_v35 = vpop.permute.xlu1 %498  ;;  %v9227_v44 = vpop.permute.xlu0 %1346 }
 0x15e   :  { %13853 = vst [vmem:[#allocation67_spill] sm:$0xff] %v9225_v35  ;;  %13854 = vst [vmem:[#allocation68_spill] sm:$0xff] %v9227_v44 }
 0x15f   :  { %1145 = vperm.xlu1 %8368, %v74_v34   ;;  %3185 = vperm.xlu0 %8370, %v76_v16   ;;  %v82_v34 = vld [vmem:[%s13638_s0 + $0x1b0] sm:$0xff] }
 0x161   :  { %v9232_v38 = vpop.permute.xlu1 %504  ;;  %v9234_v41 = vpop.permute.xlu0 %1352 }
 0x162   :  { %13855 = vst [vmem:[#allocation69_spill] sm:$0xff] %v9232_v38  ;;  %13856 = vst [vmem:[#allocation70_spill] sm:$0xff] %v9234_v41 }
 0x163   :  { %1151 = vperm.xlu1 %8368, %v76_v16   ;;  %3191 = vperm.xlu0 %8370, %v78_v10   ;;  %v84_v16 = vld [vmem:[%s13638_s0 + $0x1c0] sm:$0xff] }
 0x165   :  { %v9239_v47 = vpop.permute.xlu1 %510  ;;  %v9241_v35 = vpop.permute.xlu0 %1358 }
 0x166   :  { %13857 = vst [vmem:[#allocation71_spill] sm:$0xff] %v9239_v47  ;;  %13858 = vst [vmem:[#allocation72_spill] sm:$0xff] %v9241_v35 }
 0x167   :  { %1157 = vperm.xlu1 %8368, %v78_v10   ;;  %3197 = vperm.xlu0 %8370, %v80_v0   ;;  %v86_v10 = vld [vmem:[%s13638_s0 + $0x1d0] sm:$0xff] }
 0x169   :  { %v9246_v44 = vpop.permute.xlu1 %516  ;;  %v9248_v38 = vpop.permute.xlu0 %1364 }
 0x16a   :  { %13859 = vst [vmem:[#allocation73_spill] sm:$0xff] %v9246_v44  ;;  %13860 = vst [vmem:[#allocation74_spill] sm:$0xff] %v9248_v38 }
 0x16b   :  { %1163 = vperm.xlu1 %8368, %v80_v0   ;;  %3203 = vperm.xlu0 %8370, %v82_v34   ;;  %v88_v0 = vld [vmem:[%s13638_s0 + $0x1e0] sm:$0xff] }
 0x16d   :  { %v9253_v41 = vpop.permute.xlu1 %522  ;;  %v9255_v47 = vpop.permute.xlu0 %1370 }
 0x16e   :  { %13861 = vst [vmem:[#allocation75_spill] sm:$0xff] %v9253_v41  ;;  %13862 = vst [vmem:[#allocation76_spill] sm:$0xff] %v9255_v47  ;;  %v156_v47 = vlaneseq }
 0x16f   :  { %1169 = vperm.xlu1 %8368, %v82_v34   ;;  %3209 = vperm.xlu0 %8370, %v84_v16   ;;  %v90_v34 = vld [vmem:[%s13638_s0 + $0x1f0] sm:$0xff] }
 0x171   :  { %v9260_v35 = vpop.permute.xlu1 %528  ;;  %v9262_v44 = vpop.permute.xlu0 %1376 }
 0x172   :  { %13863 = vst [vmem:[#allocation77_spill] sm:$0xff] %v9260_v35  ;;  %13864 = vst [vmem:[#allocation78_spill] sm:$0xff] %v9262_v44 }
 0x173   :  { %1175 = vperm.xlu1 %8368, %v84_v16   ;;  %3215 = vperm.xlu0 %8370, %v86_v10   ;;  %v92_v16 = vld [vmem:[%s13638_s0 + $0x200] sm:$0xff] }
 0x175   :  { %v9267_v38 = vpop.permute.xlu1 %534  ;;  %v9269_v41 = vpop.permute.xlu0 %1382 }
 0x176   :  { %13865 = vst [vmem:[#allocation79_spill] sm:$0xff] %v9267_v38  ;;  %13866 = vst [vmem:[#allocation80_spill] sm:$0xff] %v9269_v41  ;;  %v9281_v38 = vand.u32 127, %v156_v47 }
 0x177   :  { %1181 = vperm.xlu1 %8368, %v86_v10   ;;  %3221 = vperm.xlu0 %8370, %v88_v0  }
 0x178   :  { %vm1390_vm0 = vcmp.eq.s32.totalorder %v8788_v36, %v9281_v38  ;;  %vm1393_vm3 = vcmp.eq.s32.totalorder %v8795_v39, %v9281_v38  ;;  %v96_v36 = vld [vmem:[%s13638_s0 + $0x220] sm:$0xff]  ;;  %vm1395_vm6 = vcmp.eq.s32.totalorder %v8802_v42, %v9281_v38  ;;  %v98_v39 = vld [vmem:[%s13638_s0 + $0x230] sm:$0xff]  ;;  %vm1397_vm9 = vcmp.eq.s32.totalorder %v8809_v45, %v9281_v38 }
 0x179   :  { %v9274_v35 = vpop.permute.xlu1 %540  ;;  %v9276_v44 = vpop.permute.xlu0 %1388  ;;  %v100_v42 = vld [vmem:[%s13638_s0 + $0x240] sm:$0xff]  ;;  %vm1399_vm12 = vcmp.eq.s32.totalorder %v8816_v48, %v9281_v38  ;;  %v102_v45 = vld [vmem:[%s13638_s0 + $0x250] sm:$0xff]  ;;  %vm1401_vm15 = vcmp.eq.s32.totalorder %v8823_v51, %v9281_v38 }
 0x17a   :  { %13867 = vst [vmem:[#allocation81_spill] sm:$0xff] %v9274_v35  ;;  %13868 = vst [vmem:[#allocation82_spill] sm:$0xff] %v9276_v44  ;;  %v13657_v35 = vmov 1.0|1.0   ;;  %v104_v48 = vld [vmem:[%s13638_s0 + $0x260] sm:$0xff]  ;;  %v106_v51 = vld [vmem:[%s13638_s0 + $0x270] sm:$0xff] }
 0x17b   :  { %1187 = vperm.xlu1 %8368, %v88_v0   ;;  %3227 = vperm.xlu0 %8370, %v90_v34   ;;  %v94_v0 = vld [vmem:[%s13638_s0 + $0x210] sm:$0xff] }
 0x17e   :  { %v1011_v41 = vpop.permute.xlu1 %1010  ;;  %v9283_v10 = vpop.permute.xlu0 %3044 }
 0x17f   :  { %1193 = vperm.xlu1 %8368, %v90_v34   ;;  %3233 = vperm.xlu0 %8370, %v92_v16   ;;  %vm1391_vm1 = vcmp.eq.s32.totalorder %v1011_v41, %v9281_v38 }
 0x180   :  { %vm7143_vm2 = vmpackc.low %vm1391_vm1, %vm1390_vm0 }
 0x181   :  { %7914 = vmatprep.mubr.msk.bf16.mxu0 %vm7143_vm2, %v13657_v35  ;;  %vm1403_vm2 = vcmp.eq.s32.totalorder %v8830_v54, %v9281_v38  ;;  %v108_v54 = vld [vmem:[%s13638_s0 + $0x280] sm:$0xff] }
 0x182   :  { %v1014_v47 = vpop.permute.xlu1 %1013  ;;  %v9292_v44 = vpop.permute.xlu0 %3053 }
 0x183   :  { %vm1392_vm4 = vcmp.eq.s32.totalorder %v1014_v47, %v9281_v38  ;;  %1199 = vperm.xlu1 %8368, %v92_v16   ;;  %3239 = vperm.xlu0 %8370, %v94_v0  }
 0x184   :  { %vm7145_vm5 = vmpackc.low %vm1393_vm3, %vm1392_vm4 }
 0x185   :  { %7915 = vmatmul.mubr.msk.bf16.vlgmr.msra.gmra.mxu0 %vm7145_vm5, %v13657_v35  ;;  %vm1405_vm5 = vcmp.eq.s32.totalorder %v8837_v57, %v9281_v38  ;;  %v110_v57 = vld [vmem:[%s13638_s0 + $0x290] sm:$0xff] }
 0x186   :  { %v1020_v41 = vpop.permute.xlu1 %1019  ;;  %v9301_v34 = vpop.permute.xlu0 %3059 }
 0x187   :  { %vm1394_vm7 = vcmp.eq.s32.totalorder %v1020_v41, %v9281_v38  ;;  %1205 = vperm.xlu1 %8368, %v94_v0   ;;  %3245 = vperm.xlu0 %8370, %v96_v36  }
 0x188   :  { %vm7147_vm8 = vmpackc.low %vm1395_vm6, %vm1394_vm7 }
 0x189   :  { %7918 = vmatprep.mubr.msk.bf16.mxu0 %vm7147_vm8, %v13657_v35  ;;  %vm1407_vm8 = vcmp.eq.s32.totalorder %v8844_v60, %v9281_v38  ;;  %v112_v60 = vld [vmem:[%s13638_s0 + $0x2a0] sm:$0xff] }
 0x18a   :  { %v1026_v16 = vpop.permute.xlu1 %1025  ;;  %v9310_v47 = vpop.permute.xlu0 %3065 }
 0x18b   :  { %vm1396_vm10 = vcmp.eq.s32.totalorder %v1026_v16, %v9281_v38  ;;  %1211 = vperm.xlu1 %8368, %v96_v36   ;;  %3251 = vperm.xlu0 %8370, %v98_v39  }
 0x18c   :  { %vm7149_vm11 = vmpackc.low %vm1397_vm9, %vm1396_vm10 }
 0x18d   :  { %7919 = vmatmul.mubr.msk.bf16.gmra.mxu0 %vm7149_vm11, %v13657_v35  ;;  %vm1409_vm11 = vcmp.eq.s32.totalorder %v8851_v63, %v9281_v38  ;;  %v114_v63 = vld [vmem:[%s13638_s0 + $0x2b0] sm:$0xff] }
 0x18e   :  { %v1032_v0 = vpop.permute.xlu1 %1031  ;;  %v9319_v41 = vpop.permute.xlu0 %3071 }
 0x18f   :  { %vm1398_vm13 = vcmp.eq.s32.totalorder %v1032_v0, %v9281_v38  ;;  %1217 = vperm.xlu1 %8368, %v98_v39   ;;  %3257 = vperm.xlu0 %8370, %v100_v42  }
 0x190   :  { %vm7151_vm14 = vmpackc.low %vm1399_vm12, %vm1398_vm13 }
 0x191   :  { %7922 = vmatprep.mubr.msk.bf16.mxu0 %vm7151_vm14, %v13657_v35  ;;  %vm1411_vm14 = vcmp.eq.s32.totalorder %v8858_v5, %v9281_v38  ;;  %v116_v5 = vld [vmem:[%s13638_s0 + $0x2c0] sm:$0xff] }
 0x192   :  { %v1038_v36 = vpop.permute.xlu1 %1037  ;;  %v9328_v16 = vpop.permute.xlu0 %3077 }
 0x193   :  { %vm1400_vm0 = vcmp.eq.s32.totalorder %v1038_v36, %v9281_v38  ;;  %1223 = vperm.xlu1 %8368, %v100_v42   ;;  %3263 = vperm.xlu0 %8370, %v102_v45  }
 0x194   :  { %vm7153_vm1 = vmpackc.low %vm1401_vm15, %vm1400_vm0 }
 0x195   :  { %7923 = vmatmul.mubr.msk.bf16.gmra.mxu0 %vm7153_vm1, %v13657_v35  ;;  %vm1413_vm1 = vcmp.eq.s32.totalorder %v8865_v8, %v9281_v38  ;;  %v118_v8 = vld [vmem:[%s13638_s0 + $0x2d0] sm:$0xff] }
 0x196   :  { %v1044_v39 = vpop.permute.xlu1 %1043  ;;  %v9337_v0 = vpop.permute.xlu0 %3083 }
 0x197   :  { %vm1402_vm3 = vcmp.eq.s32.totalorder %v1044_v39, %v9281_v38  ;;  %1229 = vperm.xlu1 %8368, %v102_v45   ;;  %3269 = vperm.xlu0 %8370, %v104_v48  }
 0x198   :  { %vm7155_vm4 = vmpackc.low %vm1403_vm2, %vm1402_vm3 }
 0x199   :  { %7926 = vmatprep.mubr.msk.bf16.mxu0 %vm7155_vm4, %v13657_v35  ;;  %vm1415_vm4 = vcmp.eq.s32.totalorder %v8872_v11, %v9281_v38  ;;  %v120_v11 = vld [vmem:[%s13638_s0 + $0x2e0] sm:$0xff] }
 0x19a   :  { %v1050_v42 = vpop.permute.xlu1 %1049  ;;  %v9346_v36 = vpop.permute.xlu0 %3089 }
 0x19b   :  { %vm1404_vm6 = vcmp.eq.s32.totalorder %v1050_v42, %v9281_v38  ;;  %1235 = vperm.xlu1 %8368, %v104_v48   ;;  %3275 = vperm.xlu0 %8370, %v106_v51  }
 0x19c   :  { %vm7157_vm7 = vmpackc.low %vm1405_vm5, %vm1404_vm6 }
 0x19d   :  { %7927 = vmatmul.mubr.msk.bf16.gmra.mxu0 %vm7157_vm7, %v13657_v35  ;;  %vm1417_vm7 = vcmp.eq.s32.totalorder %v8879_v14, %v9281_v38  ;;  %v122_v14 = vld [vmem:[%s13638_s0 + $0x2f0] sm:$0xff] }
 0x19e   :  { %v1056_v45 = vpop.permute.xlu1 %1055  ;;  %v9355_v39 = vpop.permute.xlu0 %3095 }
 0x19f   :  { %vm1406_vm9 = vcmp.eq.s32.totalorder %v1056_v45, %v9281_v38  ;;  %1241 = vperm.xlu1 %8368, %v106_v51   ;;  %3281 = vperm.xlu0 %8370, %v108_v54  }
 0x1a0   :  { %vm7159_vm10 = vmpackc.low %vm1407_vm8, %vm1406_vm9 }
 0x1a1   :  { %7930 = vmatprep.mubr.msk.bf16.mxu0 %vm7159_vm10, %v13657_v35  ;;  %vm1419_vm10 = vcmp.eq.s32.totalorder %v8886_v17, %v9281_v38  ;;  %v124_v17 = vld [vmem:[%s13638_s0 + $0x300] sm:$0xff] }
 0x1a2   :  { %v1062_v48 = vpop.permute.xlu1 %1061  ;;  %v9364_v42 = vpop.permute.xlu0 %3101 }
 0x1a3   :  { %vm1408_vm12 = vcmp.eq.s32.totalorder %v1062_v48, %v9281_v38  ;;  %1247 = vperm.xlu1 %8368, %v108_v54   ;;  %3287 = vperm.xlu0 %8370, %v110_v57  }
 0x1a4   :  { %vm7161_vm13 = vmpackc.low %vm1409_vm11, %vm1408_vm12 }
 0x1a5   :  { %7931 = vmatmul.mubr.msk.bf16.gmra.mxu0 %vm7161_vm13, %v13657_v35  ;;  %vm1421_vm13 = vcmp.eq.s32.totalorder %v8893_v20, %v9281_v38  ;;  %v126_v20 = vld [vmem:[%s13638_s0 + $0x310] sm:$0xff] }
 0x1a6   :  { %v1068_v51 = vpop.permute.xlu1 %1067  ;;  %v9373_v45 = vpop.permute.xlu0 %3107 }
 0x1a7   :  { %vm1410_vm15 = vcmp.eq.s32.totalorder %v1068_v51, %v9281_v38  ;;  %1253 = vperm.xlu1 %8368, %v110_v57   ;;  %3293 = vperm.xlu0 %8370, %v112_v60  }
 0x1a8   :  { %vm7163_vm0 = vmpackc.low %vm1411_vm14, %vm1410_vm15 }
 0x1a9   :  { %7934 = vmatprep.mubr.msk.bf16.mxu0 %vm7163_vm0, %v13657_v35  ;;  %vm1423_vm0 = vcmp.eq.s32.totalorder %v8900_v23, %v9281_v38  ;;  %v128_v23 = vld [vmem:[%s13638_s0 + $0x320] sm:$0xff] }
 0x1aa   :  { %v1074_v54 = vpop.permute.xlu1 %1073  ;;  %v9382_v48 = vpop.permute.xlu0 %3113 }
 0x1ab   :  { %vm1412_vm2 = vcmp.eq.s32.totalorder %v1074_v54, %v9281_v38  ;;  %1259 = vperm.xlu1 %8368, %v112_v60   ;;  %3299 = vperm.xlu0 %8370, %v114_v63  }
 0x1ac   :  { %vm7165_vm3 = vmpackc.low %vm1413_vm1, %vm1412_vm2 }
 0x1ad   :  { %7935 = vmatmul.mubr.msk.bf16.gmra.mxu0 %vm7165_vm3, %v13657_v35  ;;  %vm1425_vm3 = vcmp.eq.s32.totalorder %v8907_v26, %v9281_v38  ;;  %v130_v26 = vld [vmem:[%s13638_s0 + $0x330] sm:$0xff] }
 0x1ae   :  { %v1080_v57 = vpop.permute.xlu1 %1079  ;;  %v9391_v51 = vpop.permute.xlu0 %3119 }
 0x1af   :  { %vm1414_vm5 = vcmp.eq.s32.totalorder %v1080_v57, %v9281_v38  ;;  %1265 = vperm.xlu1 %8368, %v114_v63   ;;  %3305 = vperm.xlu0 %8370, %v116_v5  }
 0x1b0   :  { %vm7167_vm6 = vmpackc.low %vm1415_vm4, %vm1414_vm5 }
 0x1b1   :  { %7938 = vmatprep.mubr.msk.bf16.mxu0 %vm7167_vm6, %v13657_v35  ;;  %vm1427_vm6 = vcmp.eq.s32.totalorder %v8914_v29, %v9281_v38  ;;  %v132_v29 = vld [vmem:[%s13638_s0 + $0x340] sm:$0xff] }
 0x1b2   :  { %v1086_v60 = vpop.permute.xlu1 %1085  ;;  %v9400_v54 = vpop.permute.xlu0 %3125 }
 0x1b3   :  { %vm1416_vm8 = vcmp.eq.s32.totalorder %v1086_v60, %v9281_v38  ;;  %1271 = vperm.xlu1 %8368, %v116_v5   ;;  %3311 = vperm.xlu0 %8370, %v118_v8  }
 0x1b4   :  { %vm7169_vm9 = vmpackc.low %vm1417_vm7, %vm1416_vm8 }
 0x1b5   :  { %7939 = vmatmul.mubr.msk.bf16.gmra.mxu0 %vm7169_vm9, %v13657_v35  ;;  %vm1429_vm9 = vcmp.eq.s32.totalorder %v8921_v32, %v9281_v38  ;;  %v134_v32 = vld [vmem:[%s13638_s0 + $0x350] sm:$0xff] }
 0x1b6   :  { %v1092_v63 = vpop.permute.xlu1 %1091  ;;  %v9409_v57 = vpop.permute.xlu0 %3131 }
 0x1b7   :  { %vm1418_vm11 = vcmp.eq.s32.totalorder %v1092_v63, %v9281_v38  ;;  %1277 = vperm.xlu1 %8368, %v118_v8   ;;  %3317 = vperm.xlu0 %8370, %v120_v11  }
 0x1b8   :  { %vm7171_vm12 = vmpackc.low %vm1419_vm10, %vm1418_vm11 }
 0x1b9   :  { %7942 = vmatprep.mubr.msk.bf16.mxu0 %vm7171_vm12, %v13657_v35  ;;  %vm1431_vm12 = vcmp.eq.s32.totalorder %v8928_v37, %v9281_v38  ;;  %v136_v37 = vld [vmem:[%s13638_s0 + $0x360] sm:$0xff] }
 0x1ba   :  { %v1098_v5 = vpop.permute.xlu1 %1097  ;;  %v9418_v60 = vpop.permute.xlu0 %3137 }
 0x1bb   :  { %vm1420_vm14 = vcmp.eq.s32.totalorder %v1098_v5, %v9281_v38  ;;  %1283 = vperm.xlu1 %8368, %v120_v11   ;;  %3323 = vperm.xlu0 %8370, %v122_v14  }
 0x1bc   :  { %vm7173_vm15 = vmpackc.low %vm1421_vm13, %vm1420_vm14 }
 0x1bd   :  { %7943 = vmatmul.mubr.msk.bf16.gmra.mxu0 %vm7173_vm15, %v13657_v35  ;;  %vm1433_vm15 = vcmp.eq.s32.totalorder %v8935_v46, %v9281_v38  ;;  %v138_v46 = vld [vmem:[%s13638_s0 + $0x370] sm:$0xff] }
 0x1be   :  { %v1104_v8 = vpop.permute.xlu1 %1103  ;;  %v9427_v63 = vpop.permute.xlu0 %3143 }
 0x1bf   :  { %vm1422_vm1 = vcmp.eq.s32.totalorder %v1104_v8, %v9281_v38  ;;  %1289 = vperm.xlu1 %8368, %v122_v14   ;;  %3329 = vperm.xlu0 %8370, %v124_v17  }
 0x1c0   :  { %vm7175_vm2 = vmpackc.low %vm1423_vm0, %vm1422_vm1 }
 0x1c1   :  { %7946 = vmatprep.mubr.msk.bf16.mxu0 %vm7175_vm2, %v13657_v35  ;;  %vm1435_vm2 = vcmp.eq.s32.totalorder %v8942_v55, %v9281_v38  ;;  %v140_v55 = vld [vmem:[%s13638_s0 + $0x380] sm:$0xff] }
 0x1c2   :  { %v1110_v11 = vpop.permute.xlu1 %1109  ;;  %v9436_v5 = vpop.permute.xlu0 %3149 }
 0x1c3   :  { %vm1424_vm4 = vcmp.eq.s32.totalorder %v1110_v11, %v9281_v38  ;;  %1295 = vperm.xlu1 %8368, %v124_v17   ;;  %3335 = vperm.xlu0 %8370, %v126_v20  }
 0x1c4   :  { %vm7177_vm5 = vmpackc.low %vm1425_vm3, %vm1424_vm4 }
 0x1c5   :  { %7947 = vmatmul.mubr.msk.bf16.gmra.mxu0 %vm7177_vm5, %v13657_v35  ;;  %vm1437_vm5 = vcmp.eq.s32.totalorder %v8949_v1, %v9281_v38  ;;  %v142_v1 = vld [vmem:[%s13638_s0 + $0x390] sm:$0xff] }
 0x1c6   :  { %v1116_v14 = vpop.permute.xlu1 %1115  ;;  %v9445_v8 = vpop.permute.xlu0 %3155 }
 0x1c7   :  { %vm1426_vm7 = vcmp.eq.s32.totalorder %v1116_v14, %v9281_v38  ;;  %1301 = vperm.xlu1 %8368, %v126_v20   ;;  %3341 = vperm.xlu0 %8370, %v128_v23  }
 0x1c8   :  { %vm7179_vm8 = vmpackc.low %vm1427_vm6, %vm1426_vm7 }
 0x1c9   :  { %7950 = vmatprep.mubr.msk.bf16.mxu0 %vm7179_vm8, %v13657_v35  ;;  %vm1439_vm8 = vcmp.eq.s32.totalorder %v8956_v12, %v9281_v38  ;;  %v9516_v12 = vld [vmem:[%s13640_s2 + $0x38] sm:$0xff]  }
 0x1ca   :  { %v1122_v17 = vpop.permute.xlu1 %1121  ;;  %v9454_v11 = vpop.permute.xlu0 %3161  ;;  %8042 = vmatprep.subr.bf16.mxu1 %v9516_v12 }
 0x1cb   :  { %vm1428_vm10 = vcmp.eq.s32.totalorder %v1122_v17, %v9281_v38  ;;  %1307 = vperm.xlu1 %8368, %v128_v23   ;;  %3347 = vperm.xlu0 %8370, %v130_v26  }
 0x1cc   :  { %vm7181_vm11 = vmpackc.low %vm1429_vm9, %vm1428_vm10 }
 0x1cd   :  { %7951 = vmatmul.mubr.msk.bf16.gmra.mxu0 %vm7181_vm11, %v13657_v35  ;;  %vm1441_vm11 = vcmp.eq.s32.totalorder %v8963_v21, %v9281_v38 }
 0x1ce   :  { %v1128_v20 = vpop.permute.xlu1 %1127  ;;  %v9463_v14 = vpop.permute.xlu0 %3167 }
 0x1cf   :  { %vm1430_vm13 = vcmp.eq.s32.totalorder %v1128_v20, %v9281_v38  ;;  %1313 = vperm.xlu1 %8368, %v130_v26   ;;  %3353 = vperm.xlu0 %8370, %v132_v29  }
 0x1d0   :  { %vm7183_vm14 = vmpackc.low %vm1431_vm12, %vm1430_vm13 }
 0x1d1   :  { %7954 = vmatprep.mubr.msk.bf16.mxu0 %vm7183_vm14, %v13657_v35  ;;  %vm1443_vm14 = vcmp.eq.s32.totalorder %v8973_v33, %v9281_v38  ;;  %v148_v33 = vld [vmem:[%s13638_s0 + $0x3c0] sm:$0xff] }
 0x1d2   :  { %v1134_v23 = vpop.permute.xlu1 %1133  ;;  %v9472_v17 = vpop.permute.xlu0 %3173 }
 0x1d3   :  { %vm1432_vm0 = vcmp.eq.s32.totalorder %v1134_v23, %v9281_v38  ;;  %1319 = vperm.xlu1 %8368, %v132_v29   ;;  %3359 = vperm.xlu0 %8370, %v134_v32  }
 0x1d4   :  { %vm7185_vm1 = vmpackc.low %vm1433_vm15, %vm1432_vm0 }
 0x1d5   :  { %7955 = vmatmul.mubr.msk.bf16.gmra.mxu0 %vm7185_vm1, %v13657_v35  ;;  %vm1445_vm1 = vcmp.eq.s32.totalorder %v8983_v6, %v9281_v38  ;;  %v150_v6 = vld [vmem:[%s13638_s0 + $0x3d0] sm:$0xff] }
 0x1d6   :  { %v1140_v26 = vpop.permute.xlu1 %1139  ;;  %v9481_v20 = vpop.permute.xlu0 %3179 }
 0x1d7   :  { %vm1434_vm3 = vcmp.eq.s32.totalorder %v1140_v26, %v9281_v38  ;;  %1325 = vperm.xlu1 %8368, %v134_v32   ;;  %3365 = vperm.xlu0 %8370, %v136_v37  }
 0x1d8   :  { %vm7187_vm4 = vmpackc.low %vm1435_vm2, %vm1434_vm3 }
 0x1d9   :  { %7958 = vmatprep.mubr.msk.bf16.mxu0 %vm7187_vm4, %v13657_v35  ;;  %vm1447_vm4 = vcmp.eq.s32.totalorder %v8993_v27, %v9281_v38  ;;  %v152_v27 = vld [vmem:[%s13638_s0 + $0x3e0] sm:$0xff] }
 0x1da   :  { %v1146_v29 = vpop.permute.xlu1 %1145  ;;  %v9490_v23 = vpop.permute.xlu0 %3185 }
 0x1db   :  { %vm1436_vm6 = vcmp.eq.s32.totalorder %v1146_v29, %v9281_v38  ;;  %1331 = vperm.xlu1 %8368, %v136_v37   ;;  %3371 = vperm.xlu0 %8370, %v138_v46  }
 0x1dc   :  { %vm7189_vm7 = vmpackc.low %vm1437_vm5, %vm1436_vm6 }
 0x1dd   :  { %7959 = vmatmul.mubr.msk.bf16.gmra.mxu0 %vm7189_vm7, %v13657_v35  ;;  %vm1449_vm7 = vcmp.eq.s32.totalorder %v9003_v49, %v9281_v38  ;;  %v154_v49 = vld [vmem:[%s13638_s0 + $0x3f0] sm:$0xff] }
 0x1de   :  { %v1152_v32 = vpop.permute.xlu1 %1151  ;;  %v9499_v26 = vpop.permute.xlu0 %3191 }
 0x1df   :  { %vm1438_vm9 = vcmp.eq.s32.totalorder %v1152_v32, %v9281_v38  ;;  %1337 = vperm.xlu1 %8368, %v138_v46   ;;  %3377 = vperm.xlu0 %8370, %v140_v55   ;;  %v144_v46 = vld [vmem:[%s13638_s0 + $0x3a0] sm:$0xff] }
 0x1e0   :  { %vm7191_vm10 = vmpackc.low %vm1439_vm8, %vm1438_vm9 }
 0x1e1   :  { %7962 = vmatprep.mubr.msk.bf16.mxu0 %vm7191_vm10, %v13657_v35  ;;  %vm1451_vm10 = vcmp.eq.s32.totalorder %v9013_v24, %v9281_v38  ;;  %v8395_v24 = vld [vmem:[%s13642_s4 + $0x10] sm:$0xff]  }
 0x1e2   :  { %v1158_v37 = vpop.permute.xlu1 %1157  ;;  %v9508_v29 = vpop.permute.xlu0 %3197 }
 0x1e3   :  { %13869 = vst [vmem:[#allocation83_spill] sm:$0xff] %v9508_v29  ;;  %vm1440_vm12 = vcmp.eq.s32.totalorder %v1158_v37, %v9281_v38  ;;  %1343 = vperm.xlu1 %8368, %v140_v55   ;;  %3383 = vperm.xlu0 %8370, %v142_v1   ;;  %v146_v55 = vld [vmem:[%s13638_s0 + $0x3b0] sm:$0xff]  ;;  %v8385_v37 = vld [vmem:[%s13642_s4 + $0x38] sm:$0xff]  }
 0x1e4   :  { %vm7193_vm13 = vmpackc.low %vm1441_vm11, %vm1440_vm12  ;;  %8186 = vmatprep.subr.bf16.mxu0 %v8385_v37 }
 0x1e5   :  { %7963 = vmatmul.mubr.msk.bf16.gmra.mxu0 %vm7193_vm13, %v13657_v35  ;;  %vm1453_vm13 = vcmp.eq.s32.totalorder %v9023_v2, %v9281_v38  ;;  %v13872_v2 = vmov 0  }
 0x1e6   :  { %v1164_v32 = vpop.permute.xlu1 %1163  ;;  %v9523_v21 = vpop.permute.xlu0 %3203  ;;  %8187 = vmatpush3.bf16.msra.mxu0 %v8385_v37 }
 0x1e7   :  { %13870 = vst [vmem:[#allocation84_spill] sm:$0xff] %v9523_v21  ;;  %vm1442_vm15 = vcmp.eq.s32.totalorder %v1164_v32, %v9281_v38  ;;  %1349 = vperm.xlu1 %8368, %v142_v1   ;;  %3389 = vperm.xlu0 %8370, %v144_v46   ;;  %v8387_v1 = vld [vmem:[%s13642_s4 + $0x30] sm:$0xff]  }
 0x1e8   :  { %vm7195_vm0 = vmpackc.low %vm1443_vm14, %vm1442_vm15  ;;  %8188 = vmatprep.subr.bf16.mxu0 %v8387_v1 }
 0x1e9   :  { %7966 = vmatprep.mubr.msk.bf16.mxu0 %vm7195_vm0, %v13657_v35  ;;  %vm1455_vm0 = vcmp.eq.s32.totalorder %v9033_v3, %v9281_v38 }
 0x1ea   :  { %v1170_v29 = vpop.permute.xlu1 %1169  ;;  %v9535_v21 = vpop.permute.xlu0 %3209  ;;  %8189 = vmatpush3.bf16.msra.mxu0 %v8387_v1 }
 0x1eb   :  { %13871 = vst [vmem:[#allocation85_spill] sm:$0xff] %v9535_v21  ;;  %vm1444_vm2 = vcmp.eq.s32.totalorder %v1170_v29, %v9281_v38  ;;  %1355 = vperm.xlu1 %8368, %v144_v46   ;;  %3395 = vperm.xlu0 %8370, %v146_v55   ;;  %v8389_v29 = vld [vmem:[%s13642_s4 + $0x28] sm:$0xff]  }
 0x1ec   :  { %vm7197_vm3 = vmpackc.low %vm1445_vm1, %vm1444_vm2  ;;  %8190 = vmatprep.subr.bf16.mxu0 %v8389_v29 }
 0x1ed   :  { %7967 = vmatmul.mubr.msk.bf16.gmra.mxu0 %vm7197_vm3, %v13657_v35  ;;  %vm1457_vm3 = vcmp.eq.s32.totalorder %v9045_v9, %v9281_v38  ;;  %v8404_v9 = vld [vmem:[%s13638_s0 + $0x10] sm:$0xff] }
 0x1ee   :  { %v1176_v32 = vpop.permute.xlu1 %1175  ;;  %v9547_v21 = vpop.permute.xlu0 %3215  ;;  %8191 = vmatpush3.bf16.msra.mxu0 %v8389_v29 }
 0x1ef   :  { %vm1446_vm5 = vcmp.eq.s32.totalorder %v1176_v32, %v9281_v38  ;;  %1361 = vperm.xlu1 %8368, %v146_v55   ;;  %3401 = vperm.xlu0 %8370, %v148_v33   ;;  %v8391_v55 = vld [vmem:[%s13642_s4 + $0x20] sm:$0xff]  }
 0x1f0   :  { %vm7199_vm6 = vmpackc.low %vm1447_vm4, %vm1446_vm5  ;;  %8192 = vmatprep.subr.bf16.mxu0 %v8391_v55 }
 0x1f1   :  { %7970 = vmatprep.mubr.msk.bf16.mxu0 %vm7199_vm6, %v13657_v35 }
 0x1f2   :  { %v1182_v46 = vpop.permute.xlu1 %1181  ;;  %v9559_v37 = vpop.permute.xlu0 %3221  ;;  %8193 = vmatpush3.bf16.msra.mxu0 %v8391_v55 }
 0x1f3   :  { %vm1448_vm8 = vcmp.eq.s32.totalorder %v1182_v46, %v9281_v38  ;;  %1367 = vperm.xlu1 %8368, %v148_v33   ;;  %3407 = vperm.xlu0 %8370, %v150_v6   ;;  %v8393_v33 = vld [vmem:[%s13642_s4 + $0x18] sm:$0xff]  }
 0x1f4   :  { %vm7201_vm9 = vmpackc.low %vm1449_vm7, %vm1448_vm8  ;;  %8194 = vmatprep.subr.bf16.mxu0 %v8393_v33  ;;  %vm1459_vm7 = vcmp.eq.s32.totalorder %v9058_v52, %v9281_v38  ;;  %v8384_v52 = vld [vmem:[%s13640_s2 + $0x30] sm:$0xff]  }
 0x1f5   :  { %7971 = vmatmul.mubr.msk.bf16.gmra.mxu0 %vm7201_vm9, %v13657_v35  ;;  %vm1461_vm9 = vcmp.eq.s32.totalorder %v9069_v43, %v9281_v38  ;;  %v8386_v43 = vld [vmem:[%s13640_s2 + $0x28] sm:$0xff]  }
 0x1f6   :  { %v1188_v1 = vpop.permute.xlu1 %1187  ;;  %v9571_v32 = vpop.permute.xlu0 %3227  ;;  %8195 = vmatpush3.bf16.msra.mxu0 %v8393_v33 }
 0x1f7   :  { %vm1450_vm11 = vcmp.eq.s32.totalorder %v1188_v1, %v9281_v38  ;;  %1373 = vperm.xlu1 %8368, %v150_v6   ;;  %3413 = vperm.xlu0 %8370, %v152_v27   ;;  %v8397_v1 = vld [vmem:[%s13642_s4 + $0x8] sm:$0xff]  }
 0x1f8   :  { %vm7203_vm12 = vmpackc.low %vm1451_vm10, %vm1450_vm11  ;;  %8196 = vmatprep.subr.bf16.mxu0 %v8395_v24 }
 0x1f9   :  { %7974 = vmatprep.mubr.msk.bf16.mxu0 %vm7203_vm12, %v13657_v35  ;;  %vm1463_vm12 = vcmp.eq.s32.totalorder %v9080_v58, %v9281_v38  ;;  %v8388_v58 = vld [vmem:[%s13640_s2 + $0x20] sm:$0xff]  }
 0x1fa   :  { %v1194_v29 = vpop.permute.xlu1 %1193  ;;  %v9583_v46 = vpop.permute.xlu0 %3233  ;;  %8197 = vmatpush3.bf16.msra.mxu0 %v8395_v24 }
 0x1fb   :  { %vm1452_vm14 = vcmp.eq.s32.totalorder %v1194_v29, %v9281_v38  ;;  %1379 = vperm.xlu1 %8368, %v152_v27   ;;  %3419 = vperm.xlu0 %8370, %v154_v49   ;;  %v8403_v27 = vld [vmem:[%s13638_s0] sm:$0xff] }
 0x1fc   :  { %vm7205_vm15 = vmpackc.low %vm1453_vm13, %vm1452_vm14  ;;  %8198 = vmatprep.subr.bf16.mxu0 %v8397_v1  ;;  %v8398_v29 = vld [vmem:[%s13642_s4] sm:$0xff]  }
 0x1fd   :  { %7975 = vmatmul.mubr.msk.bf16.gmra.mxu0 %vm7205_vm15, %v13657_v35  ;;  %vm1465_vm15 = vcmp.eq.s32.totalorder %v9091_v31, %v9281_v38  ;;  %v8390_v31 = vld [vmem:[%s13640_s2 + $0x18] sm:$0xff]  }
 0x1fe   :  { %v1200_v6 = vpop.permute.xlu1 %1199  ;;  %v9592_v55 = vpop.permute.xlu0 %3239  ;;  %8199 = vmatpush3.bf16.msra.mxu0 %v8397_v1 }
 0x1ff   :  { %vm1454_vm1 = vcmp.eq.s32.totalorder %v1200_v6, %v9281_v38  ;;  %1385 = vperm.xlu1 %8368, %v154_v49   ;;  %8371 = vset.pattern.permute.xlu0 %v13872_v2  ;;  %v13873_v49 = vmov 2  }
 0x200   :  { %vm7207_vm2 = vmpackc.low %vm1455_vm0, %vm1454_vm1  ;;  %159 = vperm.xlu0 %8371, %v8403_v27   ;;  %8200 = vmatprep.subr.bf16.mxu0 %v8398_v29 }
 0x201   :  { %7978 = vmatprep.mubr.msk.bf16.mxu0 %vm7207_vm2, %v13657_v35  ;;  %vm1467_vm2 = vcmp.eq.s32.totalorder %v9100_v25, %v9281_v38 }
 0x202   :  { %v1206_v33 = vpop.permute.xlu1 %1205  ;;  %v9605_v3 = vpop.permute.xlu0 %3245  ;;  %8201 = vmatpush3.bf16.msra.mxu0 %v8398_v29 }
 0x203   :  { %vm1456_vm4 = vcmp.eq.s32.totalorder %v1206_v33, %v9281_v38  ;;  %8369 = vset.pattern.permute.xlu1 %v13873_v49 }
 0x204   :  { %vm7209_vm5 = vmpackc.low %vm1457_vm3, %vm1456_vm4  ;;  %3041 = vperm.xlu1 %8369, %v8403_v27   ;;  %162 = vperm.xlu0 %8371, %v9041_v18  }
 0x205   :  { %7979 = vmatmul.mubr.msk.bf16.gmra.mxu0 %vm7209_vm5, %v13657_v35  ;;  %vm1469_vm5 = vcmp.eq.s32.totalorder %v9108_v19, %v9281_v38 }
 0x206   :  { %v1212_v24 = vpop.permute.xlu1 %1211  ;;  %v9616_v6 = vpop.permute.xlu0 %3251 }
 0x207   :  { %vm1458_vm6 = vcmp.eq.s32.totalorder %v1212_v24, %v9281_v38 }
 0x208   :  { %3047 = vperm.xlu1 %8369, %v8404_v9   ;;  %171 = vperm.xlu0 %8371, %v9054_v30   ;;  %vm7211_vm8 = vmpackc.low %vm1459_vm7, %vm1458_vm6  ;;  %v8405_v30 = vld [vmem:[%s13638_s0 + $0x18] sm:$0xff]  ;;  %v8409_v9 = vld [vmem:[%s13638_s0 + $0x60] sm:$0xff] }
 0x209   :  { %7982 = vmatprep.mubr.msk.bf16.mxu1 %vm7211_vm8, %v13657_v35  ;;  %vm1471_vm8 = vcmp.eq.s32.totalorder %v9115_v13, %v9281_v38 }
 0x20a   :  { %v1218_v18 = vpop.permute.xlu1 %1217  ;;  %v9626_v27 = vpop.permute.xlu0 %3257 }
 0x20b   :  { %vm1460_vm10 = vcmp.eq.s32.totalorder %v1218_v18, %v9281_v38 }
 0x20c   :  { %vm7213_vm11 = vmpackc.low %vm1461_vm9, %vm1460_vm10  ;;  %3050 = vperm.xlu1 %8369, %v8405_v30   ;;  %177 = vperm.xlu0 %8371, %v9065_v15   ;;  %v8406_v15 = vld [vmem:[%s13638_s0 + $0x28] sm:$0xff]  ;;  %v8410_v30 = vld [vmem:[%s13638_s0 + $0x58] sm:$0xff] }
 0x20d   :  { %7983 = vmatmul.mubr.msk.bf16.vlgmr.msra.gmra.mxu1 %vm7213_vm11, %v13657_v35  ;;  %vm1473_vm11 = vcmp.eq.s32.totalorder %v9122_v22, %v9281_v38 }
 0x20e   :  { %v1224_v1 = vpop.permute.xlu1 %1223  ;;  %v9639_v33 = vpop.permute.xlu0 %3263  ;;  %8043 = vmatpush3.bf16.msra.mxu1 %v9516_v12 }
 0x20f   :  { %vm1462_vm13 = vcmp.eq.s32.totalorder %v1224_v1, %v9281_v38  ;;  %8044 = vmatprep.subr.bf16.mxu1 %v8384_v52  ;;  %v8411_v1 = vld [vmem:[%s13638_s0 + $0x70] sm:$0xff] }
 0x210   :  { %vm7215_vm14 = vmpackc.low %vm1463_vm12, %vm1462_vm13  ;;  %3056 = vperm.xlu1 %8369, %v8406_v15   ;;  %183 = vperm.xlu0 %8371, %v9076_v40   ;;  %v8407_v40 = vld [vmem:[%s13638_s0 + $0x38] sm:$0xff]  ;;  %v8394_v15 = vld [vmem:[%s13640_s2 + $0x8] sm:$0xff]  }
 0x211   :  { %7986 = vmatprep.mubr.msk.bf16.mxu1 %vm7215_vm14, %v13657_v35  ;;  %vm1475_vm14 = vcmp.eq.s32.totalorder %v9129_v28, %v9281_v38  ;;  %v8418_v28 = vld [vmem:[%s13638_s0 + $0x98] sm:$0xff] }
 0x212   :  { %v1230_v12 = vpop.permute.xlu1 %1229  ;;  %v9653_v49 = vpop.permute.xlu0 %3269  ;;  %8045 = vmatpush3.bf16.msra.mxu1 %v8384_v52  ;;  %v8392_v52 = vld [vmem:[%s13640_s2 + $0x10] sm:$0xff]  }
 0x213   :  { %vm1464_vm0 = vcmp.eq.s32.totalorder %v1230_v12, %v9281_v38  ;;  %8046 = vmatprep.subr.bf16.mxu1 %v8386_v43  ;;  %v8412_v12 = vld [vmem:[%s13638_s0 + $0x68] sm:$0xff] }
 0x214   :  { %vm7217_vm1 = vmpackc.low %vm1465_vm15, %vm1464_vm0  ;;  %3062 = vperm.xlu1 %8369, %v8407_v40   ;;  %189 = vperm.xlu0 %8371, %v9087_v61   ;;  %v8408_v61 = vld [vmem:[%s13638_s0 + $0x48] sm:$0xff] }
 0x215   :  { %7987 = vmatmul.mubr.msk.bf16.gmra.mxu1 %vm7217_vm1, %v13657_v35  ;;  %vm1477_vm1 = vcmp.eq.s32.totalorder %v9136_v7, %v9281_v38  ;;  %v8420_v7 = vld [vmem:[%s13638_s0 + $0xa8] sm:$0xff] }
 0x216   :  { %v1236_v29 = vpop.permute.xlu1 %1235  ;;  %v9666_v24 = vpop.permute.xlu0 %3275  ;;  %8047 = vmatpush3.bf16.msra.mxu1 %v8386_v43 }
 0x217   :  { %vm1466_vm3 = vcmp.eq.s32.totalorder %v1236_v29, %v9281_v38  ;;  %8048 = vmatprep.subr.bf16.mxu1 %v8388_v58  ;;  %v8396_v29 = vld [vmem:[%s13640_s2] sm:$0xff]  }
 0x218   :  { %vm7219_vm4 = vmpackc.low %vm1467_vm2, %vm1466_vm3  ;;  %3068 = vperm.xlu1 %8369, %v8408_v61   ;;  %195 = vperm.xlu0 %8371, %v8409_v9   ;;  %v8415_v61 = vld [vmem:[%s13638_s0 + $0x90] sm:$0xff] }
 0x219   :  { %7990 = vmatprep.mubr.msk.bf16.mxu1 %vm7219_vm4, %v13657_v35  ;;  %vm1479_vm4 = vcmp.eq.s32.totalorder %v9143_v4, %v9281_v38  ;;  %v8422_v4 = vld [vmem:[%s13638_s0 + $0xb8] sm:$0xff] }
 0x21a   :  { %v1242_v25 = vpop.permute.xlu1 %1241  ;;  %v9681_v18 = vpop.permute.xlu0 %3281  ;;  %8049 = vmatpush3.bf16.msra.mxu1 %v8388_v58  ;;  %v8413_v58 = vld [vmem:[%s13638_s0 + $0x80] sm:$0xff] }
 0x21b   :  { %vm1468_vm6 = vcmp.eq.s32.totalorder %v1242_v25, %v9281_v38  ;;  %8050 = vmatprep.subr.bf16.mxu1 %v8390_v31  ;;  %v8416_v25 = vld [vmem:[%s13638_s0 + $0x88] sm:$0xff] }
 0x21c   :  { %vm7221_vm7 = vmpackc.low %vm1469_vm5, %vm1468_vm6  ;;  %3074 = vperm.xlu1 %8369, %v8410_v30   ;;  %201 = vperm.xlu0 %8371, %v8411_v1  }
 0x21d   :  { %7991 = vmatmul.mubr.msk.bf16.gmra.mxu1 %vm7221_vm7, %v13657_v35  ;;  %vm1481_vm7 = vcmp.eq.s32.totalorder %v9150_v62, %v9281_v38  ;;  %v8424_v62 = vld [vmem:[%s13638_s0 + $0xc8] sm:$0xff] }
 0x21e   :  { %v1248_v19 = vpop.permute.xlu1 %1247  ;;  %v9696_v43 = vpop.permute.xlu0 %3287  ;;  %8051 = vmatpush3.bf16.msra.mxu1 %v8390_v31  ;;  %v8414_v31 = vld [vmem:[%s13638_s0 + $0x78] sm:$0xff] }
 0x21f   :  { %vm1470_vm9 = vcmp.eq.s32.totalorder %v1248_v19, %v9281_v38  ;;  %8052 = vmatprep.subr.bf16.mxu1 %v8392_v52  ;;  %v8419_v19 = vld [vmem:[%s13638_s0 + $0xb0] sm:$0xff] }
 0x220   :  { %vm7223_vm10 = vmpackc.low %vm1471_vm8, %vm1470_vm9  ;;  %3080 = vperm.xlu1 %8369, %v8412_v12   ;;  %207 = vperm.xlu0 %8371, %v8413_v58   ;;  %v8421_v58 = vld [vmem:[%s13638_s0 + $0xc0] sm:$0xff] }
 0x221   :  { %7994 = vmatprep.mubr.msk.bf16.mxu1 %vm7223_vm10, %v13657_v35  ;;  %vm1483_vm10 = vcmp.eq.s32.totalorder %v9157_v59, %v9281_v38  ;;  %v8426_v59 = vld [vmem:[%s13638_s0 + $0xd8] sm:$0xff] }
 0x222   :  { %v1254_v13 = vpop.permute.xlu1 %1253  ;;  %v9711_v40 = vpop.permute.xlu0 %3293  ;;  %8053 = vmatpush3.bf16.msra.mxu1 %v8392_v52  ;;  %v8417_v52 = vld [vmem:[%s13638_s0 + $0xa0] sm:$0xff] }
 0x223   :  { %vm1472_vm12 = vcmp.eq.s32.totalorder %v1254_v13, %v9281_v38  ;;  %8054 = vmatprep.subr.bf16.mxu1 %v8394_v15 }
 0x224   :  { %vm7225_vm13 = vmpackc.low %vm1473_vm11, %vm1472_vm12  ;;  %3086 = vperm.xlu1 %8369, %v8414_v31   ;;  %213 = vperm.xlu0 %8371, %v8415_v61   ;;  %v8423_v31 = vld [vmem:[%s13638_s0 + $0xd0] sm:$0xff] }
 0x225   :  { %7995 = vmatmul.mubr.msk.bf16.gmra.mxu1 %vm7225_vm13, %v13657_v35  ;;  %vm1485_vm13 = vcmp.eq.s32.totalorder %v9164_v56, %v9281_v38  ;;  %v8428_v56 = vld [vmem:[%s13638_s0 + $0xe8] sm:$0xff] }
 0x226   :  { %v1260_v22 = vpop.permute.xlu1 %1259  ;;  %v9726_v9 = vpop.permute.xlu0 %3299  ;;  %8055 = vmatpush3.bf16.msra.mxu1 %v8394_v15 }
 0x227   :  { %vm1474_vm15 = vcmp.eq.s32.totalorder %v1260_v22, %v9281_v38  ;;  %8056 = vmatprep.subr.bf16.mxu1 %v8396_v29 }
 0x228   :  { %vm7227_vm0 = vmpackc.low %vm1475_vm14, %vm1474_vm15  ;;  %3092 = vperm.xlu1 %8369, %v8416_v25   ;;  %219 = vperm.xlu0 %8371, %v8417_v52   ;;  %v8425_v25 = vld [vmem:[%s13638_s0 + $0xe0] sm:$0xff] }
 0x229   :  { %7998 = vmatprep.mubr.msk.bf16.mxu1 %vm7227_vm0, %v13657_v35  ;;  %vm1487_vm0 = vcmp.eq.s32.totalorder %v9171_v53, %v9281_v38  ;;  %v8430_v53 = vld [vmem:[%s13638_s0 + $0xf8] sm:$0xff] }
 0x22a   :  { %v1266_v30 = vpop.permute.xlu1 %1265  ;;  %v9738_v1 = vpop.permute.xlu0 %3305  ;;  %8057 = vmatpush3.bf16.msra.mxu1 %v8396_v29 }
 0x22b   :  { %vm1476_vm2 = vcmp.eq.s32.totalorder %v1266_v30, %v9281_v38 }
 0x22c   :  { %vm7229_vm3 = vmpackc.low %vm1477_vm1, %vm1476_vm2  ;;  %3098 = vperm.xlu1 %8369, %v8418_v28   ;;  %225 = vperm.xlu0 %8371, %v8419_v19   ;;  %v8427_v28 = vld [vmem:[%s13638_s0 + $0xf0] sm:$0xff] }
 0x22d   :  { %7999 = vmatmul.mubr.msk.bf16.gmra.mxu1 %vm7229_vm3, %v13657_v35  ;;  %vm1489_vm3 = vcmp.eq.s32.totalorder %v9178_v50, %v9281_v38  ;;  %v13874_v50 = vld [vmem:[#allocation56_spill] sm:$0xff] }
 0x22e   :  { %v1272_v15 = vpop.permute.xlu1 %1271  ;;  %v9750_v12 = vpop.permute.xlu0 %3311 }
 0x22f   :  { %vm1478_vm5 = vcmp.eq.s32.totalorder %v1272_v15, %v9281_v38 }
 0x230   :  { %vm7231_vm6 = vmpackc.low %vm1479_vm4, %vm1478_vm5  ;;  %3104 = vperm.xlu1 %8369, %v8420_v7   ;;  %231 = vperm.xlu0 %8371, %v8421_v58   ;;  %v8429_v7 = vld [vmem:[%s13638_s0 + $0x100] sm:$0xff] }
 0x231   :  { %8002 = vmatprep.mubr.msk.bf16.mxu1 %vm7231_vm6, %v13657_v35  ;;  %vm1491_vm6 = vcmp.eq.s32.totalorder %v13874_v50, %v9281_v38 }
 0x232   :  { %v1278_v13 = vpop.permute.xlu1 %1277  ;;  %v9762_v29 = vpop.permute.xlu0 %3317 }
 0x233   :  { %vm1480_vm8 = vcmp.eq.s32.totalorder %v1278_v13, %v9281_v38 }
 0x234   :  { %vm7233_vm9 = vmpackc.low %vm1481_vm7, %vm1480_vm8  ;;  %3110 = vperm.xlu1 %8369, %v8422_v4   ;;  %237 = vperm.xlu0 %8371, %v8423_v31   ;;  %v8431_v4 = vld [vmem:[%s13638_s0 + $0x110] sm:$0xff] }
 0x235   :  { %8003 = vmatmul.mubr.msk.bf16.gmra.mxu1 %vm7233_vm9, %v13657_v35 }
 0x236   :  { %v1284_v61 = vpop.permute.xlu1 %1283  ;;  %v9774_v22 = vpop.permute.xlu0 %3323 }
 0x237   :  { %vm1482_vm11 = vcmp.eq.s32.totalorder %v1284_v61, %v9281_v38 }
 0x238   :  { %vm7235_vm12 = vmpackc.low %vm1483_vm10, %vm1482_vm11  ;;  %3116 = vperm.xlu1 %8369, %v8424_v62   ;;  %243 = vperm.xlu0 %8371, %v8425_v25  }
 0x239   :  { %8006 = vmatprep.mubr.msk.bf16.mxu1 %vm7235_vm12, %v13657_v35 }
 0x23a   :  { %v1290_v52 = vpop.permute.xlu1 %1289  ;;  %v9786_v30 = vpop.permute.xlu0 %3329 }
 0x23b   :  { %vm1484_vm14 = vcmp.eq.s32.totalorder %v1290_v52, %v9281_v38  ;;  %v8432_v52 = vld [vmem:[%s13638_s0 + $0x108] sm:$0xff] }
 0x23c   :  { %vm7237_vm15 = vmpackc.low %vm1485_vm13, %vm1484_vm14  ;;  %3122 = vperm.xlu1 %8369, %v8426_v59   ;;  %249 = vperm.xlu0 %8371, %v8427_v28   ;;  %v8433_v59 = vld [vmem:[%s13638_s0 + $0x120] sm:$0xff] }
 0x23d   :  { %8007 = vmatmul.mubr.msk.bf16.gmra.mxu1 %vm7237_vm15, %v13657_v35 }
 0x23e   :  { %v1296_v19 = vpop.permute.xlu1 %1295  ;;  %v9798_v15 = vpop.permute.xlu0 %3335 }
 0x23f   :  { %vm1486_vm1 = vcmp.eq.s32.totalorder %v1296_v19, %v9281_v38 }
 0x240   :  { %vm7239_vm2 = vmpackc.low %vm1487_vm0, %vm1486_vm1  ;;  %3128 = vperm.xlu1 %8369, %v8428_v56   ;;  %255 = vperm.xlu0 %8371, %v8429_v7   ;;  %v13876_v7 = vld [vmem:[#allocation58_spill] sm:$0xff] }
 0x241   :  { %8010 = vmatprep.mubr.msk.bf16.mxu1 %vm7239_vm2, %v13657_v35  ;;  %vm1493_vm9 = vcmp.eq.s32.totalorder %v13876_v7, %v9281_v38  ;;  %v8436_v7 = vld [vmem:[%s13638_s0 + $0x128] sm:$0xff] }
 0x242   :  { %v1302_v58 = vpop.permute.xlu1 %1301  ;;  %v9810_v13 = vpop.permute.xlu0 %3341 }
 0x243   :  { %vm1488_vm4 = vcmp.eq.s32.totalorder %v1302_v58, %v9281_v38 }
 0x244   :  { %vm7241_vm5 = vmpackc.low %vm1489_vm3, %vm1488_vm4  ;;  %3134 = vperm.xlu1 %8369, %v8430_v53   ;;  %261 = vperm.xlu0 %8371, %v8431_v4   ;;  %v8434_v53 = vld [vmem:[%s13638_s0 + $0x118] sm:$0xff]  ;;  %v8435_v4 = vld [vmem:[%s13638_s0 + $0x130] sm:$0xff] }
 0x245   :  { %v9821_v31 = vpop.f32.mrf.mxu0  ;;  %8011 = vmatmul.mubr.msk.bf16.gmra.mxu1 %vm7241_vm5, %v13657_v35 }
 0x246   :  { %v1308_v61 = vpop.permute.xlu1 %1307  ;;  %v9824_v62 = vpop.permute.xlu0 %3347 }
 0x247   :  { %vm1490_vm7 = vcmp.eq.s32.totalorder %v1308_v61, %v9281_v38  ;;  %v9829_v25 = vpop.f32.mrf.mxu0 }
 0x248   :  { %vm7243_vm8 = vmpackc.low %vm1491_vm6, %vm1490_vm7  ;;  %3140 = vperm.xlu1 %8369, %v8432_v52   ;;  %267 = vperm.xlu0 %8371, %v8433_v59   ;;  %v13878_v59 = vld [vmem:[#allocation60_spill] sm:$0xff] }
 0x249   :  { %v9837_v28 = vpop.f32.mrf.mxu0  ;;  %8014 = vmatprep.mubr.msk.bf16.mxu1 %vm7243_vm8, %v13657_v35  ;;  %vm1495_vm12 = vcmp.eq.s32.totalorder %v13878_v59, %v9281_v38 }
 0x24a   :  { %v1314_v19 = vpop.permute.xlu1 %1313  ;;  %v9840_v56 = vpop.permute.xlu0 %3353 }
 0x24b   :  { %13875 = vst [vmem:[#allocation56_spill] sm:$0xff] %v9840_v56  ;;  %vm1492_vm10 = vcmp.eq.s32.totalorder %v1314_v19, %v9281_v38  ;;  %v9845_v58 = vpop.f32.mrf.mxu0 }
 0x24c   :  { %vm7245_vm11 = vmpackc.low %vm1493_vm9, %vm1492_vm10  ;;  %3146 = vperm.xlu1 %8369, %v8434_v53   ;;  %273 = vperm.xlu0 %8371, %v8435_v4   ;;  %v8437_v53 = vld [vmem:[%s13638_s0 + $0x140] sm:$0xff] }
 0x24d   :  { %v9853_v61 = vpop.f32.mrf.mxu0  ;;  %8015 = vmatmul.mubr.msk.bf16.gmra.mxu1 %vm7245_vm11, %v13657_v35 }
 0x24e   :  { %v1320_v50 = vpop.permute.xlu1 %1319  ;;  %v9856_v52 = vpop.permute.xlu0 %3359 }
 0x24f   :  { %13877 = vst [vmem:[#allocation58_spill] sm:$0xff] %v9856_v52  ;;  %vm1494_vm13 = vcmp.eq.s32.totalorder %v1320_v50, %v9281_v38  ;;  %v9861_v19 = vpop.f32.mrf.mxu0  ;;  %v13880_v50 = vld [vmem:[#allocation62_spill] sm:$0xff] }
 0x250   :  { %vm7247_vm14 = vmpackc.low %vm1495_vm12, %vm1494_vm13  ;;  %3152 = vperm.xlu1 %8369, %v8436_v7   ;;  %279 = vperm.xlu0 %8371, %v8437_v53   ;;  %vm1497_vm15 = vcmp.eq.s32.totalorder %v13880_v50, %v9281_v38  ;;  %v8438_v7 = vld [vmem:[%s13638_s0 + $0x138] sm:$0xff]  ;;  %v8439_v53 = vld [vmem:[%s13638_s0 + $0x150] sm:$0xff] }
 0x251   :  { %8018 = vmatprep.mubr.msk.bf16.mxu1 %vm7247_vm14, %v13657_v35  ;;  %v9875_v59 = vpop.f32.mrf.mxu0 }
 0x252   :  { %v1326_v4 = vpop.permute.xlu1 %1325  ;;  %v9870_v52 = vpop.permute.xlu0 %3365  ;;  %13881 = vst [vmem:[#allocation62_spill] sm:$0xff] %v9875_v59 }
 0x253   :  { %13879 = vst [vmem:[#allocation60_spill] sm:$0xff] %v9870_v52  ;;  %vm1496_vm0 = vcmp.eq.s32.totalorder %v1326_v4, %v9281_v38  ;;  %v13883_v4 = vld [vmem:[#allocation64_spill] sm:$0xff]  ;;  %v9889_v50 = vpop.f32.mrf.mxu0 }
 0x254   :  { %vm7249_vm1 = vmpackc.low %vm1497_vm15, %vm1496_vm0  ;;  %3158 = vperm.xlu1 %8369, %v8438_v7   ;;  %285 = vperm.xlu0 %8371, %v8439_v53   ;;  %vm1499_vm2 = vcmp.eq.s32.totalorder %v13883_v4, %v9281_v38  ;;  %13884 = vst [vmem:[#allocation64_spill] sm:$0xff] %v9889_v50  ;;  %v8440_v7 = vld [vmem:[%s13638_s0 + $0x148] sm:$0xff]  ;;  %v8441_v53 = vld [vmem:[%s13638_s0 + $0x160] sm:$0xff] }
 0x255   :  { %8019 = vmatmul.mubr.msk.bf16.gmra.mxu1 %vm7249_vm1, %v13657_v35  ;;  %v9903_v4 = vpop.f32.mrf.mxu0 }
 0x256   :  { %v1332_v52 = vpop.permute.xlu1 %1331  ;;  %v9884_v56 = vpop.permute.xlu0 %3371 }
 0x257   :  { %13882 = vst [vmem:[#allocation86_spill] sm:$0xff] %v9884_v56  ;;  %vm1498_vm3 = vcmp.eq.s32.totalorder %v1332_v52, %v9281_v38  ;;  %v13886_v52 = vld [vmem:[#allocation66_spill] sm:$0xff] }
 0x258   :  { %vm7251_vm4 = vmpackc.low %vm1499_vm2, %vm1498_vm3  ;;  %3164 = vperm.xlu1 %8369, %v8440_v7   ;;  %291 = vperm.xlu0 %8371, %v8441_v53   ;;  %vm1501_vm5 = vcmp.eq.s32.totalorder %v13886_v52, %v9281_v38  ;;  %13887 = vst [vmem:[#allocation66_spill] sm:$0xff] %v9903_v4  ;;  %v8442_v7 = vld [vmem:[%s13638_s0 + $0x158] sm:$0xff]  ;;  %v8443_v53 = vld [vmem:[%s13638_s0 + $0x170] sm:$0xff]  ;;  %v9917_v52 = vpop.f32.mrf.mxu0 }
 0x259   :  { %8022 = vmatprep.mubr.msk.bf16.mxu1 %vm7251_vm4, %v13657_v35 }
 0x25a   :  { %v1338_v56 = vpop.permute.xlu1 %1337  ;;  %v9898_v59 = vpop.permute.xlu0 %3377 }
 0x25b   :  { %13885 = vst [vmem:[#allocation87_spill] sm:$0xff] %v9898_v59  ;;  %vm1500_vm6 = vcmp.eq.s32.totalorder %v1338_v56, %v9281_v38  ;;  %v13889_v56 = vld [vmem:[#allocation68_spill] sm:$0xff] }
 0x25c   :  { %vm7253_vm7 = vmpackc.low %vm1501_vm5, %vm1500_vm6  ;;  %3170 = vperm.xlu1 %8369, %v8442_v7   ;;  %297 = vperm.xlu0 %8371, %v8443_v53   ;;  %vm1503_vm8 = vcmp.eq.s32.totalorder %v13889_v56, %v9281_v38  ;;  %13890 = vst [vmem:[#allocation68_spill] sm:$0xff] %v9917_v52  ;;  %v8444_v7 = vld [vmem:[%s13638_s0 + $0x168] sm:$0xff]  ;;  %v8445_v53 = vld [vmem:[%s13638_s0 + $0x180] sm:$0xff]  ;;  %v9931_v56 = vpop.f32.mrf.mxu0 }
 0x25d   :  { %8023 = vmatmul.mubr.msk.bf16.gmra.mxu1 %vm7253_vm7, %v13657_v35 }
 0x25e   :  { %v1344_v59 = vpop.permute.xlu1 %1343  ;;  %v9912_v50 = vpop.permute.xlu0 %3383 }
 0x25f   :  { %13888 = vst [vmem:[#allocation88_spill] sm:$0xff] %v9912_v50  ;;  %vm1502_vm9 = vcmp.eq.s32.totalorder %v1344_v59, %v9281_v38  ;;  %v13892_v59 = vld [vmem:[#allocation70_spill] sm:$0xff] }
 0x260   :  { %vm7255_vm10 = vmpackc.low %vm1503_vm8, %vm1502_vm9  ;;  %3176 = vperm.xlu1 %8369, %v8444_v7   ;;  %303 = vperm.xlu0 %8371, %v8445_v53   ;;  %vm1505_vm11 = vcmp.eq.s32.totalorder %v13892_v59, %v9281_v38  ;;  %13893 = vst [vmem:[#allocation70_spill] sm:$0xff] %v9931_v56  ;;  %v8446_v7 = vld [vmem:[%s13638_s0 + $0x178] sm:$0xff]  ;;  %v8447_v53 = vld [vmem:[%s13638_s0 + $0x190] sm:$0xff]  ;;  %v9945_v59 = vpop.f32.mrf.mxu0 }
 0x261   :  { %8026 = vmatprep.mubr.msk.bf16.mxu1 %vm7255_vm10, %v13657_v35 }
 0x262   :  { %v1350_v50 = vpop.permute.xlu1 %1349  ;;  %v9926_v4 = vpop.permute.xlu0 %3389 }
 0x263   :  { %13891 = vst [vmem:[#allocation89_spill] sm:$0xff] %v9926_v4  ;;  %vm1504_vm12 = vcmp.eq.s32.totalorder %v1350_v50, %v9281_v38  ;;  %v13895_v50 = vld [vmem:[#allocation72_spill] sm:$0xff] }
 0x264   :  { %vm7257_vm13 = vmpackc.low %vm1505_vm11, %vm1504_vm12  ;;  %3182 = vperm.xlu1 %8369, %v8446_v7   ;;  %309 = vperm.xlu0 %8371, %v8447_v53   ;;  %vm1507_vm14 = vcmp.eq.s32.totalorder %v13895_v50, %v9281_v38  ;;  %13896 = vst [vmem:[#allocation72_spill] sm:$0xff] %v9945_v59  ;;  %v8448_v7 = vld [vmem:[%s13638_s0 + $0x188] sm:$0xff]  ;;  %v8449_v53 = vld [vmem:[%s13638_s0 + $0x1a0] sm:$0xff]  ;;  %v9959_v50 = vpop.f32.mrf.mxu0 }
 0x265   :  { %8027 = vmatmul.mubr.msk.bf16.gmra.mxu1 %vm7257_vm13, %v13657_v35 }
 0x266   :  { %v1356_v4 = vpop.permute.xlu1 %1355  ;;  %v9940_v52 = vpop.permute.xlu0 %3395 }
 0x267   :  { %13894 = vst [vmem:[#allocation90_spill] sm:$0xff] %v9940_v52  ;;  %vm1506_vm15 = vcmp.eq.s32.totalorder %v1356_v4, %v9281_v38  ;;  %v13898_v4 = vld [vmem:[#allocation74_spill] sm:$0xff] }
 0x268   :  { %vm7259_vm0 = vmpackc.low %vm1507_vm14, %vm1506_vm15  ;;  %3188 = vperm.xlu1 %8369, %v8448_v7   ;;  %315 = vperm.xlu0 %8371, %v8449_v53   ;;  %vm1509_vm1 = vcmp.eq.s32.totalorder %v13898_v4, %v9281_v38  ;;  %13899 = vst [vmem:[#allocation74_spill] sm:$0xff] %v9959_v50  ;;  %v8450_v7 = vld [vmem:[%s13638_s0 + $0x198] sm:$0xff]  ;;  %v8451_v53 = vld [vmem:[%s13638_s0 + $0x1b0] sm:$0xff]  ;;  %v9973_v4 = vpop.f32.mrf.mxu0 }
 0x269   :  { %8030 = vmatprep.mubr.msk.bf16.mxu1 %vm7259_vm0, %v13657_v35 }
 0x26a   :  { %v1362_v52 = vpop.permute.xlu1 %1361  ;;  %v9954_v56 = vpop.permute.xlu0 %3401 }
 0x26b   :  { %13897 = vst [vmem:[#allocation91_spill] sm:$0xff] %v9954_v56  ;;  %vm1508_vm2 = vcmp.eq.s32.totalorder %v1362_v52, %v9281_v38  ;;  %v13901_v52 = vld [vmem:[#allocation76_spill] sm:$0xff] }
 0x26c   :  { %vm7261_vm3 = vmpackc.low %vm1509_vm1, %vm1508_vm2  ;;  %3194 = vperm.xlu1 %8369, %v8450_v7   ;;  %321 = vperm.xlu0 %8371, %v8451_v53   ;;  %vm1511_vm4 = vcmp.eq.s32.totalorder %v13901_v52, %v9281_v38  ;;  %13902 = vst [vmem:[#allocation76_spill] sm:$0xff] %v9973_v4  ;;  %v8452_v7 = vld [vmem:[%s13638_s0 + $0x1a8] sm:$0xff]  ;;  %v8453_v53 = vld [vmem:[%s13638_s0 + $0x1c0] sm:$0xff]  ;;  %v9987_v52 = vpop.f32.mrf.mxu0  ;;  %vm3425_vm1 = vcmp.eq.s32.totalorder %v9283_v10, %v9281_v38 }
 0x26d   :  { %8031 = vmatmul.mubr.msk.bf16.gmra.mxu1 %vm7261_vm3, %v13657_v35  ;;  %v13912_v10 = vld [vmem:[#allocation5_spill] sm:$0xff] }
 0x26e   :  { %v1368_v56 = vpop.permute.xlu1 %1367  ;;  %v9968_v59 = vpop.permute.xlu0 %3407 }
 0x26f   :  { %13900 = vst [vmem:[#allocation92_spill] sm:$0xff] %v9968_v59  ;;  %vm1510_vm5 = vcmp.eq.s32.totalorder %v1368_v56, %v9281_v38  ;;  %v13904_v56 = vld [vmem:[#allocation78_spill] sm:$0xff] }
 0x270   :  { %vm7263_vm6 = vmpackc.low %vm1511_vm4, %vm1510_vm5  ;;  %3200 = vperm.xlu1 %8369, %v8452_v7   ;;  %327 = vperm.xlu0 %8371, %v8453_v53   ;;  %vm1513_vm7 = vcmp.eq.s32.totalorder %v13904_v56, %v9281_v38  ;;  %v8454_v7 = vld [vmem:[%s13638_s0 + $0x1b8] sm:$0xff]  ;;  %v8455_v53 = vld [vmem:[%s13638_s0 + $0x1d0] sm:$0xff]  ;;  %v10001_v56 = vpop.f32.mrf.mxu0 }
 0x271   :  { %8034 = vmatprep.mubr.msk.bf16.mxu1 %vm7263_vm6, %v13657_v35 }
 0x272   :  { %v1374_v59 = vpop.permute.xlu1 %1373  ;;  %v9982_v50 = vpop.permute.xlu0 %3413 }
 0x273   :  { %13903 = vst [vmem:[#allocation93_spill] sm:$0xff] %v9982_v50  ;;  %vm1512_vm8 = vcmp.eq.s32.totalorder %v1374_v59, %v9281_v38  ;;  %v13906_v59 = vld [vmem:[#allocation80_spill] sm:$0xff] }
 0x274   :  { %vm7265_vm9 = vmpackc.low %vm1513_vm7, %vm1512_vm8  ;;  %3206 = vperm.xlu1 %8369, %v8454_v7   ;;  %333 = vperm.xlu0 %8371, %v8455_v53   ;;  %vm1515_vm10 = vcmp.eq.s32.totalorder %v13906_v59, %v9281_v38  ;;  %13907 = vst [vmem:[#allocation80_spill] sm:$0xff] %v10001_v56  ;;  %v8456_v7 = vld [vmem:[%s13638_s0 + $0x1c8] sm:$0xff]  ;;  %v8457_v53 = vld [vmem:[%s13638_s0 + $0x1e0] sm:$0xff]  ;;  %v10013_v56 = vpop.f32.mrf.mxu0  ;;  %vm544_vm7 = vcmp.eq.s32.totalorder %v13912_v10, %v9281_v38 }
 0x275   :  { %8035 = vmatmul.mubr.msk.bf16.gmra.mxu1 %vm7265_vm9, %v13657_v35  ;;  %v13908_v59 = vld [vmem:[#allocation82_spill] sm:$0xff] }
 0x276   :  { %v1380_v50 = vpop.permute.xlu1 %1379  ;;  %v9996_v4 = vpop.permute.xlu0 %3419  ;;  %vm1517_vm13 = vcmp.eq.s32.totalorder %v13908_v59, %v9281_v38  ;;  %13909 = vst [vmem:[#allocation82_spill] sm:$0xff] %v10013_v56 }
 0x277   :  { %13905 = vst [vmem:[#allocation78_spill] sm:$0xff] %v9996_v4  ;;  %vm1514_vm11 = vcmp.eq.s32.totalorder %v1380_v50, %v9281_v38 }
 0x278   :  { %vm7267_vm12 = vmpackc.low %vm1515_vm10, %vm1514_vm11  ;;  %3212 = vperm.xlu1 %8369, %v8456_v7   ;;  %339 = vperm.xlu0 %8371, %v8457_v53   ;;  %v8458_v7 = vld [vmem:[%s13638_s0 + $0x1d8] sm:$0xff]  ;;  %v8459_v53 = vld [vmem:[%s13638_s0 + $0x1f0] sm:$0xff] }
 0x279   :  { %8038 = vmatprep.mubr.msk.bf16.mxu1 %vm7267_vm12, %v13657_v35 }
 0x27a   :  { %v1386_v4 = vpop.permute.xlu1 %1385 }
 0x27b   :  { %vm1516_vm14 = vcmp.eq.s32.totalorder %v1386_v4, %v9281_v38  ;;  %v160_v50 = vpop.permute.xlu0 %159  ;;  %v10025_v4 = vpop.f32.mrf.mxu0 }
 0x27c   :  { %vm7269_vm15 = vmpackc.low %vm1517_vm13, %vm1516_vm14  ;;  %3218 = vperm.xlu1 %8369, %v8458_v7   ;;  %345 = vperm.xlu0 %8371, %v8459_v53   ;;  %vm542_vm0 = vcmp.eq.s32.totalorder %v160_v50, %v9281_v38  ;;  %13910 = vst [vmem:[#allocation94_spill] sm:$0xff] %v10025_v4  ;;  %v8460_v7 = vld [vmem:[%s13638_s0 + $0x1e8] sm:$0xff]  ;;  %v8461_v53 = vld [vmem:[%s13638_s0 + $0x200] sm:$0xff] }
 0x27d   :  { %8039 = vmatmul.mubr.msk.bf16.gmra.mxu1 %vm7269_vm15, %v13657_v35  ;;  %v13911_v50 = vld [vmem:[#allocation6_spill] sm:$0xff] }
 0x27e   :  { %vm545_vm3 = vcmp.eq.s32.totalorder %v13911_v50, %v9281_v38  ;;  %v13914_v50 = vld [vmem:[#allocation7_spill] sm:$0xff] }
 0x27f   :  { %v3042_v59 = vpop.permute.xlu1 %3041  ;;  %v163_v56 = vpop.permute.xlu0 %162  ;;  %vm7281_vm8 = vmpackc.low %vm545_vm3, %vm544_vm7  ;;  %vm547_vm9 = vcmp.eq.s32.totalorder %v13914_v50, %v9281_v38 }
 0x280   :  { %vm3424_vm2 = vcmp.eq.s32.totalorder %v3042_v59, %v9281_v38  ;;  %3224 = vperm.xlu1 %8369, %v8460_v7   ;;  %351 = vperm.xlu0 %8371, %v8461_v53   ;;  %vm543_vm5 = vcmp.eq.s32.totalorder %v163_v56, %v9281_v38  ;;  %v10041_v7 = vpop.f32.mrf.mxu0  ;;  %v8462_v53 = vld [vmem:[%s13638_s0 + $0x1f8] sm:$0xff]  ;;  %v8463_v56 = vld [vmem:[%s13638_s0 + $0x210] sm:$0xff] }
 0x281   :  { %vm7543_vm4 = vmpackc.low %vm3425_vm1, %vm3424_vm2  ;;  %13913 = vst [vmem:[#allocation6_spill] sm:$0xff] %v10041_v7  ;;  %vm3428_vm1 = vcmp.eq.s32.totalorder %v9292_v44, %v9281_v38 }
 0x282   :  { %vm7279_vm6 = vmpackc.low %vm543_vm5, %vm542_vm0  ;;  %8202 = vmatprep.mubr.msk.bf16.mxu0 %vm7543_vm4, %v13657_v35  ;;  %v10054_v7 = vpop.f32.mrf.mxu0 }
 0x283   :  { %v3048_v59 = vpop.permute.xlu1 %3047  ;;  %8058 = vmatprep.mubr.msk.bf16.mxu1 %vm7279_vm6, %v13657_v35  ;;  %v172_v4 = vpop.permute.xlu0 %171  ;;  %13915 = vst [vmem:[#allocation5_spill] sm:$0xff] %v10054_v7 }
 0x284   :  { %3230 = vperm.xlu1 %8369, %v8462_v53   ;;  %357 = vperm.xlu0 %8371, %v8463_v56   ;;  %vm546_vm10 = vcmp.eq.s32.totalorder %v172_v4, %v9281_v38  ;;  %vm3426_vm12 = vcmp.eq.s32.totalorder %v3048_v59, %v9281_v38  ;;  %v8464_v56 = vld [vmem:[%s13638_s0 + $0x208] sm:$0xff]  ;;  %v8465_v4 = vld [vmem:[%s13638_s0 + $0x220] sm:$0xff] }
 0x285   :  { %8059 = vmatmul.mubr.msk.bf16.vlgmr.msra.gmra.mxu1 %vm7281_vm8, %v13657_v35  ;;  %vm7283_vm11 = vmpackc.low %vm547_vm9, %vm546_vm10  ;;  %v13916_v59 = vld [vmem:[#allocation8_spill] sm:$0xff]  ;;  %vm3430_vm8 = vcmp.eq.s32.totalorder %v9301_v34, %v9281_v38  ;;  %v13918_v34 = vld [vmem:[#allocation10_spill] sm:$0xff] }
 0x286   :  { %8062 = vmatprep.mubr.msk.bf16.mxu1 %vm7283_vm11, %v13657_v35  ;;  %vm549_vm0 = vcmp.eq.s32.totalorder %v13916_v59, %v9281_v38  ;;  %v13917_v59 = vld [vmem:[#allocation9_spill] sm:$0xff] }
 0x287   :  { %v3051_v10 = vpop.permute.xlu1 %3050  ;;  %v178_v53 = vpop.permute.xlu0 %177  ;;  %vm551_vm4 = vcmp.eq.s32.totalorder %v13917_v59, %v9281_v38 }
 0x288   :  { %vm3427_vm13 = vcmp.eq.s32.totalorder %v3051_v10, %v9281_v38  ;;  %3236 = vperm.xlu1 %8369, %v8464_v56   ;;  %363 = vperm.xlu0 %8371, %v8465_v4   ;;  %vm548_vm15 = vcmp.eq.s32.totalorder %v178_v53, %v9281_v38  ;;  %v10070_v10 = vpop.f32.mrf.mxu0  ;;  %v8466_v4 = vld [vmem:[%s13638_s0 + $0x218] sm:$0xff]  ;;  %v8467_v53 = vld [vmem:[%s13638_s0 + $0x230] sm:$0xff] }
 0x289   :  { %vm7545_vm14 = vmpackc.low %vm3427_vm13, %vm3426_vm12  ;;  %vm553_vm12 = vcmp.eq.s32.totalorder %v13918_v34, %v9281_v38  ;;  %vm3432_vm13 = vcmp.eq.s32.totalorder %v9310_v47, %v9281_v38  ;;  %v13919_v34 = vld [vmem:[#allocation11_spill] sm:$0xff] }
 0x28a   :  { %8203 = vmatmul.mubr.msk.bf16.vlgmr.msra.gmra.mxu0 %vm7545_vm14, %v13657_v35  ;;  %vm7285_vm2 = vmpackc.low %vm549_vm0, %vm548_vm15  ;;  %vm555_vm0 = vcmp.eq.s32.totalorder %v13919_v34, %v9281_v38 }
 0x28b   :  { %v3057_v50 = vpop.permute.xlu1 %3056  ;;  %v184_v56 = vpop.permute.xlu0 %183 }
 0x28c   :  { %vm3429_vm3 = vcmp.eq.s32.totalorder %v3057_v50, %v9281_v38  ;;  %3242 = vperm.xlu1 %8369, %v8466_v4   ;;  %369 = vperm.xlu0 %8371, %v8467_v53   ;;  %vm550_vm6 = vcmp.eq.s32.totalorder %v184_v56, %v9281_v38  ;;  %v10087_v50 = vpop.f32.mrf.mxu0  ;;  %v8468_v56 = vld [vmem:[%s13638_s0 + $0x228] sm:$0xff]  ;;  %v8469_v53 = vld [vmem:[%s13638_s0 + $0x240] sm:$0xff] }
 0x28d   :  { %vm7547_vm5 = vmpackc.low %vm3429_vm3, %vm3428_vm1  ;;  %8063 = vmatmul.mubr.msk.bf16.gmra.mxu1 %vm7285_vm2, %v13657_v35 }
 0x28e   :  { %vm7287_vm7 = vmpackc.low %vm551_vm4, %vm550_vm6  ;;  %8206 = vmatprep.mubr.msk.bf16.mxu0 %vm7547_vm5, %v13657_v35  ;;  %vm3434_vm4 = vcmp.eq.s32.totalorder %v9319_v41, %v9281_v38  ;;  %v13920_v41 = vld [vmem:[#allocation12_spill] sm:$0xff] }
 0x28f   :  { %8066 = vmatprep.mubr.msk.bf16.mxu1 %vm7287_vm7, %v13657_v35  ;;  %v3063_v44 = vpop.permute.xlu1 %3062  ;;  %v190_v4 = vpop.permute.xlu0 %189 }
 0x290   :  { %vm3431_vm9 = vcmp.eq.s32.totalorder %v3063_v44, %v9281_v38  ;;  %3248 = vperm.xlu1 %8369, %v8468_v56   ;;  %375 = vperm.xlu0 %8371, %v8469_v53   ;;  %vm552_vm11 = vcmp.eq.s32.totalorder %v190_v4, %v9281_v38  ;;  %v10102_v44 = vpop.f32.mrf.mxu0  ;;  %v8470_v53 = vld [vmem:[%s13638_s0 + $0x238] sm:$0xff]  ;;  %v8471_v4 = vld [vmem:[%s13638_s0 + $0x250] sm:$0xff] }
 0x291   :  { %vm7549_vm10 = vmpackc.low %vm3431_vm9, %vm3430_vm8  ;;  %vm557_vm8 = vcmp.eq.s32.totalorder %v13920_v41, %v9281_v38  ;;  %vm3436_vm9 = vcmp.eq.s32.totalorder %v9328_v16, %v9281_v38  ;;  %v13921_v41 = vld [vmem:[#allocation13_spill] sm:$0xff] }
 0x292   :  { %8207 = vmatmul.mubr.msk.bf16.gmra.mxu0 %vm7549_vm10, %v13657_v35  ;;  %vm7289_vm14 = vmpackc.low %vm553_vm12, %vm552_vm11  ;;  %vm559_vm12 = vcmp.eq.s32.totalorder %v13921_v41, %v9281_v38 }
 0x293   :  { %v3069_v59 = vpop.permute.xlu1 %3068  ;;  %v196_v56 = vpop.permute.xlu0 %195 }
 0x294   :  { %vm3433_vm15 = vcmp.eq.s32.totalorder %v3069_v59, %v9281_v38  ;;  %3254 = vperm.xlu1 %8369, %v8470_v53   ;;  %381 = vperm.xlu0 %8371, %v8471_v4   ;;  %vm554_vm2 = vcmp.eq.s32.totalorder %v196_v56, %v9281_v38  ;;  %v10119_v59 = vpop.f32.mrf.mxu0  ;;  %v8472_v56 = vld [vmem:[%s13638_s0 + $0x248] sm:$0xff]  ;;  %v8473_v4 = vld [vmem:[%s13638_s0 + $0x260] sm:$0xff] }
 0x295   :  { %vm7551_vm1 = vmpackc.low %vm3433_vm15, %vm3432_vm13  ;;  %8067 = vmatmul.mubr.msk.bf16.gmra.mxu1 %vm7289_vm14, %v13657_v35 }
 0x296   :  { %vm7291_vm3 = vmpackc.low %vm555_vm0, %vm554_vm2  ;;  %8210 = vmatprep.mubr.msk.bf16.mxu0 %vm7551_vm1, %v13657_v35  ;;  %vm3438_vm0 = vcmp.eq.s32.totalorder %v9337_v0, %v9281_v38  ;;  %v13922_v0 = vld [vmem:[#allocation14_spill] sm:$0xff] }
 0x297   :  { %8070 = vmatprep.mubr.msk.bf16.mxu1 %vm7291_vm3, %v13657_v35  ;;  %v3075_v47 = vpop.permute.xlu1 %3074  ;;  %v202_v53 = vpop.permute.xlu0 %201 }
 0x298   :  { %vm3435_vm5 = vcmp.eq.s32.totalorder %v3075_v47, %v9281_v38  ;;  %3260 = vperm.xlu1 %8369, %v8472_v56   ;;  %387 = vperm.xlu0 %8371, %v8473_v4   ;;  %vm556_vm7 = vcmp.eq.s32.totalorder %v202_v53, %v9281_v38  ;;  %v10134_v47 = vpop.f32.mrf.mxu0  ;;  %v8474_v4 = vld [vmem:[%s13638_s0 + $0x258] sm:$0xff]  ;;  %v8475_v53 = vld [vmem:[%s13638_s0 + $0x270] sm:$0xff] }
 0x299   :  { %vm7553_vm6 = vmpackc.low %vm3435_vm5, %vm3434_vm4  ;;  %vm561_vm4 = vcmp.eq.s32.totalorder %v13922_v0, %v9281_v38  ;;  %vm3440_vm5 = vcmp.eq.s32.totalorder %v9346_v36, %v9281_v38  ;;  %v13923_v0 = vld [vmem:[#allocation15_spill] sm:$0xff] }
 0x29a   :  { %8211 = vmatmul.mubr.msk.bf16.gmra.mxu0 %vm7553_vm6, %v13657_v35  ;;  %vm7293_vm10 = vmpackc.low %vm557_vm8, %vm556_vm7  ;;  %vm563_vm8 = vcmp.eq.s32.totalorder %v13923_v0, %v9281_v38 }
 0x29b   :  { %v3081_v34 = vpop.permute.xlu1 %3080  ;;  %v208_v56 = vpop.permute.xlu0 %207 }
 0x29c   :  { %vm3437_vm11 = vcmp.eq.s32.totalorder %v3081_v34, %v9281_v38  ;;  %3266 = vperm.xlu1 %8369, %v8474_v4   ;;  %393 = vperm.xlu0 %8371, %v8475_v53   ;;  %vm558_vm14 = vcmp.eq.s32.totalorder %v208_v56, %v9281_v38  ;;  %v10151_v34 = vpop.f32.mrf.mxu0  ;;  %v8476_v56 = vld [vmem:[%s13638_s0 + $0x268] sm:$0xff]  ;;  %v8477_v53 = vld [vmem:[%s13638_s0 + $0x280] sm:$0xff] }
 0x29d   :  { %vm7555_vm13 = vmpackc.low %vm3437_vm11, %vm3436_vm9  ;;  %8071 = vmatmul.mubr.msk.bf16.gmra.mxu1 %vm7293_vm10, %v13657_v35 }
 0x29e   :  { %vm7295_vm15 = vmpackc.low %vm559_vm12, %vm558_vm14  ;;  %8214 = vmatprep.mubr.msk.bf16.mxu0 %vm7555_vm13, %v13657_v35  ;;  %vm3442_vm12 = vcmp.eq.s32.totalorder %v9355_v39, %v9281_v38  ;;  %v13924_v39 = vld [vmem:[#allocation16_spill] sm:$0xff] }
 0x29f   :  { %8074 = vmatprep.mubr.msk.bf16.mxu1 %vm7295_vm15, %v13657_v35  ;;  %v3087_v16 = vpop.permute.xlu1 %3086  ;;  %v214_v4 = vpop.permute.xlu0 %213 }
 0x2a0   :  { %vm3439_vm1 = vcmp.eq.s32.totalorder %v3087_v16, %v9281_v38  ;;  %3272 = vperm.xlu1 %8369, %v8476_v56   ;;  %399 = vperm.xlu0 %8371, %v8477_v53   ;;  %vm560_vm3 = vcmp.eq.s32.totalorder %v214_v4, %v9281_v38  ;;  %v10166_v16 = vpop.f32.mrf.mxu0  ;;  %v8478_v53 = vld [vmem:[%s13638_s0 + $0x278] sm:$0xff]  ;;  %v8479_v4 = vld [vmem:[%s13638_s0 + $0x290] sm:$0xff] }
 0x2a1   :  { %vm7557_vm2 = vmpackc.low %vm3439_vm1, %vm3438_vm0  ;;  %vm565_vm0 = vcmp.eq.s32.totalorder %v13924_v39, %v9281_v38  ;;  %vm3444_vm1 = vcmp.eq.s32.totalorder %v9364_v42, %v9281_v38  ;;  %v13925_v39 = vld [vmem:[#allocation17_spill] sm:$0xff] }
 0x2a2   :  { %8215 = vmatmul.mubr.msk.bf16.gmra.mxu0 %vm7557_vm2, %v13657_v35  ;;  %vm7297_vm6 = vmpackc.low %vm561_vm4, %vm560_vm3  ;;  %vm567_vm4 = vcmp.eq.s32.totalorder %v13925_v39, %v9281_v38 }
 0x2a3   :  { %v3093_v41 = vpop.permute.xlu1 %3092  ;;  %v220_v56 = vpop.permute.xlu0 %219 }
 0x2a4   :  { %vm3441_vm7 = vcmp.eq.s32.totalorder %v3093_v41, %v9281_v38  ;;  %3278 = vperm.xlu1 %8369, %v8478_v53   ;;  %405 = vperm.xlu0 %8371, %v8479_v4   ;;  %vm562_vm10 = vcmp.eq.s32.totalorder %v220_v56, %v9281_v38  ;;  %v10183_v41 = vpop.f32.mrf.mxu0  ;;  %v8480_v56 = vld [vmem:[%s13638_s0 + $0x288] sm:$0xff]  ;;  %v8481_v4 = vld [vmem:[%s13638_s0 + $0x2a0] sm:$0xff] }
 0x2a5   :  { %vm7559_vm9 = vmpackc.low %vm3441_vm7, %vm3440_vm5  ;;  %8075 = vmatmul.mubr.msk.bf16.gmra.mxu1 %vm7297_vm6, %v13657_v35 }
 0x2a6   :  { %vm7299_vm11 = vmpackc.low %vm563_vm8, %vm562_vm10  ;;  %8218 = vmatprep.mubr.msk.bf16.mxu0 %vm7559_vm9, %v13657_v35  ;;  %vm3446_vm8 = vcmp.eq.s32.totalorder %v9373_v45, %v9281_v38  ;;  %v13926_v45 = vld [vmem:[#allocation18_spill] sm:$0xff] }
 0x2a7   :  { %8078 = vmatprep.mubr.msk.bf16.mxu1 %vm7299_vm11, %v13657_v35  ;;  %v3099_v36 = vpop.permute.xlu1 %3098  ;;  %v226_v53 = vpop.permute.xlu0 %225 }
 0x2a8   :  { %vm3443_vm13 = vcmp.eq.s32.totalorder %v3099_v36, %v9281_v38  ;;  %3284 = vperm.xlu1 %8369, %v8480_v56   ;;  %411 = vperm.xlu0 %8371, %v8481_v4   ;;  %vm564_vm15 = vcmp.eq.s32.totalorder %v226_v53, %v9281_v38  ;;  %v10198_v36 = vpop.f32.mrf.mxu0  ;;  %v8482_v4 = vld [vmem:[%s13638_s0 + $0x298] sm:$0xff]  ;;  %v8483_v53 = vld [vmem:[%s13638_s0 + $0x2b0] sm:$0xff] }
 0x2a9   :  { %vm7561_vm14 = vmpackc.low %vm3443_vm13, %vm3442_vm12  ;;  %vm569_vm12 = vcmp.eq.s32.totalorder %v13926_v45, %v9281_v38  ;;  %vm3448_vm13 = vcmp.eq.s32.totalorder %v9382_v48, %v9281_v38  ;;  %v13927_v45 = vld [vmem:[#allocation19_spill] sm:$0xff] }
 0x2aa   :  { %8219 = vmatmul.mubr.msk.bf16.gmra.mxu0 %vm7561_vm14, %v13657_v35  ;;  %vm7301_vm2 = vmpackc.low %vm565_vm0, %vm564_vm15  ;;  %vm571_vm0 = vcmp.eq.s32.totalorder %v13927_v45, %v9281_v38 }
 0x2ab   :  { %v3105_v0 = vpop.permute.xlu1 %3104  ;;  %v232_v56 = vpop.permute.xlu0 %231 }
 0x2ac   :  { %vm3445_vm3 = vcmp.eq.s32.totalorder %v3105_v0, %v9281_v38  ;;  %3290 = vperm.xlu1 %8369, %v8482_v4   ;;  %417 = vperm.xlu0 %8371, %v8483_v53   ;;  %vm566_vm6 = vcmp.eq.s32.totalorder %v232_v56, %v9281_v38  ;;  %v10215_v0 = vpop.f32.mrf.mxu0  ;;  %v8484_v56 = vld [vmem:[%s13638_s0 + $0x2a8] sm:$0xff]  ;;  %v8485_v53 = vld [vmem:[%s13638_s0 + $0x2c0] sm:$0xff] }
 0x2ad   :  { %vm7563_vm5 = vmpackc.low %vm3445_vm3, %vm3444_vm1  ;;  %8079 = vmatmul.mubr.msk.bf16.gmra.mxu1 %vm7301_vm2, %v13657_v35 }
 0x2ae   :  { %vm7303_vm7 = vmpackc.low %vm567_vm4, %vm566_vm6  ;;  %8222 = vmatprep.mubr.msk.bf16.mxu0 %vm7563_vm5, %v13657_v35  ;;  %vm3450_vm4 = vcmp.eq.s32.totalorder %v9391_v51, %v9281_v38  ;;  %v13928_v51 = vld [vmem:[#allocation20_spill] sm:$0xff] }
 0x2af   :  { %8082 = vmatprep.mubr.msk.bf16.mxu1 %vm7303_vm7, %v13657_v35  ;;  %v3111_v42 = vpop.permute.xlu1 %3110  ;;  %v238_v4 = vpop.permute.xlu0 %237 }
 0x2b0   :  { %vm3447_vm9 = vcmp.eq.s32.totalorder %v3111_v42, %v9281_v38  ;;  %3296 = vperm.xlu1 %8369, %v8484_v56   ;;  %423 = vperm.xlu0 %8371, %v8485_v53   ;;  %vm568_vm11 = vcmp.eq.s32.totalorder %v238_v4, %v9281_v38  ;;  %v10230_v42 = vpop.f32.mrf.mxu0  ;;  %v8486_v53 = vld [vmem:[%s13638_s0 + $0x2b8] sm:$0xff]  ;;  %v8487_v4 = vld [vmem:[%s13638_s0 + $0x2d0] sm:$0xff] }
 0x2b1   :  { %vm7565_vm10 = vmpackc.low %vm3447_vm9, %vm3446_vm8  ;;  %vm573_vm8 = vcmp.eq.s32.totalorder %v13928_v51, %v9281_v38  ;;  %vm3452_vm9 = vcmp.eq.s32.totalorder %v9400_v54, %v9281_v38  ;;  %v13929_v51 = vld [vmem:[#allocation21_spill] sm:$0xff] }
 0x2b2   :  { %8223 = vmatmul.mubr.msk.bf16.gmra.mxu0 %vm7565_vm10, %v13657_v35  ;;  %vm7305_vm14 = vmpackc.low %vm569_vm12, %vm568_vm11  ;;  %vm575_vm12 = vcmp.eq.s32.totalorder %v13929_v51, %v9281_v38 }
 0x2b3   :  { %v3117_v39 = vpop.permute.xlu1 %3116  ;;  %v244_v56 = vpop.permute.xlu0 %243 }
 0x2b4   :  { %vm3449_vm15 = vcmp.eq.s32.totalorder %v3117_v39, %v9281_v38  ;;  %3302 = vperm.xlu1 %8369, %v8486_v53   ;;  %429 = vperm.xlu0 %8371, %v8487_v4   ;;  %vm570_vm2 = vcmp.eq.s32.totalorder %v244_v56, %v9281_v38  ;;  %v10247_v39 = vpop.f32.mrf.mxu0  ;;  %v8488_v56 = vld [vmem:[%s13638_s0 + $0x2c8] sm:$0xff]  ;;  %v8489_v4 = vld [vmem:[%s13638_s0 + $0x2e0] sm:$0xff] }
 0x2b5   :  { %vm7567_vm1 = vmpackc.low %vm3449_vm15, %vm3448_vm13  ;;  %8083 = vmatmul.mubr.msk.bf16.gmra.mxu1 %vm7305_vm14, %v13657_v35 }
 0x2b6   :  { %vm7307_vm3 = vmpackc.low %vm571_vm0, %vm570_vm2  ;;  %8226 = vmatprep.mubr.msk.bf16.mxu0 %vm7567_vm1, %v13657_v35  ;;  %vm3454_vm0 = vcmp.eq.s32.totalorder %v9409_v57, %v9281_v38  ;;  %v13930_v57 = vld [vmem:[#allocation22_spill] sm:$0xff] }
 0x2b7   :  { %8086 = vmatprep.mubr.msk.bf16.mxu1 %vm7307_vm3, %v13657_v35  ;;  %v3123_v48 = vpop.permute.xlu1 %3122  ;;  %v250_v53 = vpop.permute.xlu0 %249 }
 0x2b8   :  { %vm3451_vm5 = vcmp.eq.s32.totalorder %v3123_v48, %v9281_v38  ;;  %3308 = vperm.xlu1 %8369, %v8488_v56   ;;  %435 = vperm.xlu0 %8371, %v8489_v4   ;;  %vm572_vm7 = vcmp.eq.s32.totalorder %v250_v53, %v9281_v38  ;;  %v10262_v48 = vpop.f32.mrf.mxu0  ;;  %v8490_v4 = vld [vmem:[%s13638_s0 + $0x2d8] sm:$0xff]  ;;  %v8491_v53 = vld [vmem:[%s13638_s0 + $0x2f0] sm:$0xff] }
 0x2b9   :  { %vm7569_vm6 = vmpackc.low %vm3451_vm5, %vm3450_vm4  ;;  %vm577_vm4 = vcmp.eq.s32.totalorder %v13930_v57, %v9281_v38  ;;  %vm3456_vm5 = vcmp.eq.s32.totalorder %v9418_v60, %v9281_v38  ;;  %v13931_v57 = vld [vmem:[#allocation23_spill] sm:$0xff] }
 0x2ba   :  { %8227 = vmatmul.mubr.msk.bf16.gmra.mxu0 %vm7569_vm6, %v13657_v35  ;;  %vm7309_vm10 = vmpackc.low %vm573_vm8, %vm572_vm7  ;;  %vm579_vm8 = vcmp.eq.s32.totalorder %v13931_v57, %v9281_v38 }
 0x2bb   :  { %v3129_v45 = vpop.permute.xlu1 %3128  ;;  %v256_v56 = vpop.permute.xlu0 %255 }
 0x2bc   :  { %vm3453_vm11 = vcmp.eq.s32.totalorder %v3129_v45, %v9281_v38  ;;  %3314 = vperm.xlu1 %8369, %v8490_v4   ;;  %441 = vperm.xlu0 %8371, %v8491_v53   ;;  %vm574_vm14 = vcmp.eq.s32.totalorder %v256_v56, %v9281_v38  ;;  %v10279_v45 = vpop.f32.mrf.mxu0  ;;  %v8492_v56 = vld [vmem:[%s13638_s0 + $0x2e8] sm:$0xff]  ;;  %v8493_v53 = vld [vmem:[%s13638_s0 + $0x300] sm:$0xff] }
 0x2bd   :  { %vm7571_vm13 = vmpackc.low %vm3453_vm11, %vm3452_vm9  ;;  %8087 = vmatmul.mubr.msk.bf16.gmra.mxu1 %vm7309_vm10, %v13657_v35 }
 0x2be   :  { %vm7311_vm15 = vmpackc.low %vm575_vm12, %vm574_vm14  ;;  %8230 = vmatprep.mubr.msk.bf16.mxu0 %vm7571_vm13, %v13657_v35  ;;  %vm3458_vm12 = vcmp.eq.s32.totalorder %v9427_v63, %v9281_v38  ;;  %v13932_v63 = vld [vmem:[#allocation24_spill] sm:$0xff] }
 0x2bf   :  { %8090 = vmatprep.mubr.msk.bf16.mxu1 %vm7311_vm15, %v13657_v35  ;;  %v3135_v54 = vpop.permute.xlu1 %3134  ;;  %v262_v4 = vpop.permute.xlu0 %261 }
 0x2c0   :  { %vm3455_vm1 = vcmp.eq.s32.totalorder %v3135_v54, %v9281_v38  ;;  %3320 = vperm.xlu1 %8369, %v8492_v56   ;;  %447 = vperm.xlu0 %8371, %v8493_v53   ;;  %vm576_vm3 = vcmp.eq.s32.totalorder %v262_v4, %v9281_v38  ;;  %v10294_v54 = vpop.f32.mrf.mxu0  ;;  %v8494_v53 = vld [vmem:[%s13638_s0 + $0x2f8] sm:$0xff]  ;;  %v8495_v4 = vld [vmem:[%s13638_s0 + $0x310] sm:$0xff] }
 0x2c1   :  { %vm7573_vm2 = vmpackc.low %vm3455_vm1, %vm3454_vm0  ;;  %vm581_vm0 = vcmp.eq.s32.totalorder %v13932_v63, %v9281_v38  ;;  %vm3460_vm1 = vcmp.eq.s32.totalorder %v9436_v5, %v9281_v38  ;;  %v13933_v63 = vld [vmem:[#allocation25_spill] sm:$0xff] }
 0x2c2   :  { %8231 = vmatmul.mubr.msk.bf16.gmra.mxu0 %vm7573_vm2, %v13657_v35  ;;  %vm7313_vm6 = vmpackc.low %vm577_vm4, %vm576_vm3  ;;  %vm583_vm4 = vcmp.eq.s32.totalorder %v13933_v63, %v9281_v38  ;;  %v8500_v63 = vld [vmem:[%s13638_s0 + $0x328] sm:$0xff] }
 0x2c3   :  { %v3141_v51 = vpop.permute.xlu1 %3140  ;;  %v268_v56 = vpop.permute.xlu0 %267 }
 0x2c4   :  { %vm3457_vm7 = vcmp.eq.s32.totalorder %v3141_v51, %v9281_v38  ;;  %3326 = vperm.xlu1 %8369, %v8494_v53   ;;  %453 = vperm.xlu0 %8371, %v8495_v4   ;;  %vm578_vm10 = vcmp.eq.s32.totalorder %v268_v56, %v9281_v38  ;;  %v10311_v51 = vpop.f32.mrf.mxu0  ;;  %v8496_v56 = vld [vmem:[%s13638_s0 + $0x308] sm:$0xff]  ;;  %v8497_v4 = vld [vmem:[%s13638_s0 + $0x320] sm:$0xff] }
 0x2c5   :  { %vm7575_vm9 = vmpackc.low %vm3457_vm7, %vm3456_vm5  ;;  %8091 = vmatmul.mubr.msk.bf16.gmra.mxu1 %vm7313_vm6, %v13657_v35 }
 0x2c6   :  { %vm7315_vm11 = vmpackc.low %vm579_vm8, %vm578_vm10  ;;  %8234 = vmatprep.mubr.msk.bf16.mxu0 %vm7575_vm9, %v13657_v35  ;;  %vm3462_vm8 = vcmp.eq.s32.totalorder %v9445_v8, %v9281_v38  ;;  %v13937_v8 = vmov 1.0|1.0  }
 0x2c7   :  { %8094 = vmatprep.mubr.msk.bf16.mxu1 %vm7315_vm11, %v13657_v35  ;;  %v3147_v60 = vpop.permute.xlu1 %3146  ;;  %v274_v53 = vpop.permute.xlu0 %273 }
 0x2c8   :  { %vm3459_vm13 = vcmp.eq.s32.totalorder %v3147_v60, %v9281_v38  ;;  %3332 = vperm.xlu1 %8369, %v8496_v56   ;;  %459 = vperm.xlu0 %8371, %v8497_v4   ;;  %vm580_vm15 = vcmp.eq.s32.totalorder %v274_v53, %v9281_v38  ;;  %v10326_v60 = vpop.f32.mrf.mxu0  ;;  %v8498_v4 = vld [vmem:[%s13638_s0 + $0x318] sm:$0xff]  ;;  %v8499_v53 = vld [vmem:[%s13638_s0 + $0x330] sm:$0xff] }
 0x2c9   :  { %vm7577_vm14 = vmpackc.low %vm3459_vm13, %vm3458_vm12  ;;  %vm3464_vm13 = vcmp.eq.s32.totalorder %v9454_v11, %v9281_v38 }
 0x2ca   :  { %8235 = vmatmul.mubr.msk.bf16.gmra.mxu0 %vm7577_vm14, %v13657_v35  ;;  %vm7317_vm2 = vmpackc.low %vm581_vm0, %vm580_vm15 }
 0x2cb   :  { %v3153_v57 = vpop.permute.xlu1 %3152  ;;  %v280_v56 = vpop.permute.xlu0 %279 }
 0x2cc   :  { %vm3461_vm3 = vcmp.eq.s32.totalorder %v3153_v57, %v9281_v38  ;;  %3338 = vperm.xlu1 %8369, %v8498_v4   ;;  %465 = vperm.xlu0 %8371, %v8499_v53   ;;  %vm582_vm6 = vcmp.eq.s32.totalorder %v280_v56, %v9281_v38  ;;  %v10347_v53 = vpop.f32.mrf.mxu0 }
 0x2cd   :  { %vm7579_vm5 = vmpackc.low %vm3461_vm3, %vm3460_vm1  ;;  %v10338_v5 = vpop.f32.mrf.mxu1  ;;  %8095 = vmatmul.mubr.msk.bf16.gmra.mxu1 %vm7317_vm2, %v13657_v35 }
 0x2ce   :  { %13934 = vst [vmem:[#allocation7_spill] sm:$0xff] %v10338_v5  ;;  %vm7319_vm7 = vmpackc.low %vm583_vm4, %vm582_vm6  ;;  %8238 = vmatprep.mubr.msk.bf16.mxu0 %vm7579_vm5, %v13657_v35  ;;  %vm3466_vm4 = vcmp.eq.s32.totalorder %v9463_v14, %v9281_v38  ;;  %v13944_v14 = vld [vmem:[#allocation28_spill] sm:$0xff] }
 0x2cf   :  { %8098 = vmatprep.mubr.msk.bf16.mxu1 %vm7319_vm7, %v13657_v35  ;;  %v3159_v57 = vpop.permute.xlu1 %3158  ;;  %v10343_v4 = vpop.f32.mrf.mxu1  ;;  %v8501_v35 = vld [vmem:[%s13638_s0 + $0x340] sm:$0xff] }
 0x2d0   :  { %13935 = vst [vmem:[#allocation8_spill] sm:$0xff] %v10343_v4  ;;  %vm3463_vm9 = vcmp.eq.s32.totalorder %v3159_v57, %v9281_v38  ;;  %v286_v56 = vpop.permute.xlu0 %285  ;;  %3344 = vperm.xlu1 %8369, %v8500_v63   ;;  %471 = vperm.xlu0 %8371, %v8501_v35   ;;  %v13938_v57 = vld [vmem:[#allocation26_spill] sm:$0xff]  ;;  %v10366_v63 = vpop.f32.mrf.mxu0 }
 0x2d1   :  { %vm7581_vm10 = vmpackc.low %vm3463_vm9, %vm3462_vm8  ;;  %vm584_vm11 = vcmp.eq.s32.totalorder %v286_v56, %v9281_v38  ;;  %v10357_v7 = vpop.f32.mrf.mxu1  ;;  %vm585_vm12 = vcmp.eq.s32.totalorder %v13938_v57, %v9281_v38  ;;  %v8502_v56 = vld [vmem:[%s13638_s0 + $0x338] sm:$0xff]  ;;  %v8503_v57 = vld [vmem:[%s13638_s0 + $0x350] sm:$0xff]  ;;  %vm589_vm8 = vcmp.eq.s32.totalorder %v13944_v14, %v9281_v38  ;;  %vm3468_vm9 = vcmp.eq.s32.totalorder %v9472_v17, %v9281_v38 }
 0x2d2   :  { %13936 = vst [vmem:[#allocation9_spill] sm:$0xff] %v10357_v7  ;;  %8239 = vmatmul.mubr.msk.bf16.gmra.mxu0 %vm7581_vm10, %v13937_v8  ;;  %vm7321_vm14 = vmpackc.low %vm585_vm12, %vm584_vm11  ;;  %v8507_v14 = vld [vmem:[%s13638_s0 + $0x370] sm:$0xff] }
 0x2d3   :  { %v3165_v4 = vpop.permute.xlu1 %3164  ;;  %v10362_v5 = vpop.f32.mrf.mxu1 }
 0x2d4   :  { %13939 = vst [vmem:[#allocation10_spill] sm:$0xff] %v10362_v5  ;;  %vm3465_vm15 = vcmp.eq.s32.totalorder %v3165_v4, %v9281_v38  ;;  %v292_v35 = vpop.permute.xlu0 %291  ;;  %3350 = vperm.xlu1 %8369, %v8502_v56   ;;  %477 = vperm.xlu0 %8371, %v8503_v57   ;;  %v13940_v5 = vld [vmem:[#allocation27_spill] sm:$0xff]  ;;  %v10387_v57 = vpop.f32.mrf.mxu0 }
 0x2d5   :  { %vm587_vm0 = vcmp.eq.s32.totalorder %v13940_v5, %v9281_v38  ;;  %vm7583_vm1 = vmpackc.low %vm3465_vm15, %vm3464_vm13  ;;  %vm586_vm2 = vcmp.eq.s32.totalorder %v292_v35, %v9281_v38  ;;  %v10378_v11 = vpop.f32.mrf.mxu1  ;;  %8099 = vmatmul.mubr.msk.bf16.gmra.mxu1 %vm7321_vm14, %v13937_v8  ;;  %v8504_v35 = vld [vmem:[%s13638_s0 + $0x348] sm:$0xff] }
 0x2d6   :  { %13941 = vst [vmem:[#allocation11_spill] sm:$0xff] %v10378_v11  ;;  %vm7323_vm3 = vmpackc.low %vm587_vm0, %vm586_vm2  ;;  %8242 = vmatprep.mubr.msk.bf16.mxu0 %vm7583_vm1, %v13937_v8  ;;  %v8505_v11 = vld [vmem:[%s13638_s0 + $0x360] sm:$0xff]  ;;  %vm3470_vm0 = vcmp.eq.s32.totalorder %v9481_v20, %v9281_v38  ;;  %v13950_v20 = vld [vmem:[#allocation30_spill] sm:$0xff] }
 0x2d7   :  { %8102 = vmatprep.mubr.msk.bf16.mxu1 %vm7323_vm3, %v13937_v8  ;;  %v3171_v4 = vpop.permute.xlu1 %3170  ;;  %v10383_v56 = vpop.f32.mrf.mxu1 }
 0x2d8   :  { %13942 = vst [vmem:[#allocation12_spill] sm:$0xff] %v10383_v56  ;;  %vm3467_vm5 = vcmp.eq.s32.totalorder %v3171_v4, %v9281_v38  ;;  %v298_v5 = vpop.permute.xlu0 %297  ;;  %3356 = vperm.xlu1 %8369, %v8504_v35   ;;  %483 = vperm.xlu0 %8371, %v8505_v11   ;;  %v10406_v35 = vpop.f32.mrf.mxu0 }
 0x2d9   :  { %vm7585_vm6 = vmpackc.low %vm3467_vm5, %vm3466_vm4  ;;  %vm588_vm7 = vcmp.eq.s32.totalorder %v298_v5, %v9281_v38  ;;  %v10397_v56 = vpop.f32.mrf.mxu1  ;;  %v8506_v5 = vld [vmem:[%s13638_s0 + $0x358] sm:$0xff]  ;;  %vm593_vm4 = vcmp.eq.s32.totalorder %v13950_v20, %v9281_v38  ;;  %vm3472_vm5 = vcmp.eq.s32.totalorder %v9490_v23, %v9281_v38  ;;  %v8511_v20 = vld [vmem:[%s13638_s0 + $0x390] sm:$0xff] }
 0x2da   :  { %13943 = vst [vmem:[#allocation13_spill] sm:$0xff] %v10397_v56  ;;  %8243 = vmatmul.mubr.msk.bf16.gmra.mxu0 %vm7585_vm6, %v13937_v8  ;;  %vm7325_vm10 = vmpackc.low %vm589_vm8, %vm588_vm7 }
 0x2db   :  { %v3177_v4 = vpop.permute.xlu1 %3176  ;;  %v10402_v7 = vpop.f32.mrf.mxu1 }
 0x2dc   :  { %13945 = vst [vmem:[#allocation14_spill] sm:$0xff] %v10402_v7  ;;  %vm3469_vm11 = vcmp.eq.s32.totalorder %v3177_v4, %v9281_v38  ;;  %v304_v11 = vpop.permute.xlu0 %303  ;;  %3362 = vperm.xlu1 %8369, %v8506_v5   ;;  %489 = vperm.xlu0 %8371, %v8507_v14   ;;  %v13946_v7 = vld [vmem:[#allocation29_spill] sm:$0xff]  ;;  %v10427_v14 = vpop.f32.mrf.mxu0 }
 0x2dd   :  { %vm591_vm12 = vcmp.eq.s32.totalorder %v13946_v7, %v9281_v38  ;;  %vm7587_vm13 = vmpackc.low %vm3469_vm11, %vm3468_vm9  ;;  %vm590_vm14 = vcmp.eq.s32.totalorder %v304_v11, %v9281_v38  ;;  %v10418_v17 = vpop.f32.mrf.mxu1  ;;  %8103 = vmatmul.mubr.msk.bf16.gmra.mxu1 %vm7325_vm10, %v13937_v8  ;;  %v8508_v11 = vld [vmem:[%s13638_s0 + $0x368] sm:$0xff] }
 0x2de   :  { %13947 = vst [vmem:[#allocation15_spill] sm:$0xff] %v10418_v17  ;;  %vm7327_vm15 = vmpackc.low %vm591_vm12, %vm590_vm14  ;;  %8246 = vmatprep.mubr.msk.bf16.mxu0 %vm7587_vm13, %v13937_v8  ;;  %v8509_v17 = vld [vmem:[%s13638_s0 + $0x380] sm:$0xff]  ;;  %vm3474_vm12 = vcmp.eq.s32.totalorder %v9499_v26, %v9281_v38 }
 0x2df   :  { %8106 = vmatprep.mubr.msk.bf16.mxu1 %vm7327_vm15, %v13937_v8  ;;  %v3183_v4 = vpop.permute.xlu1 %3182  ;;  %v10423_v5 = vpop.f32.mrf.mxu1  ;;  %v13957_v26 = vld [vmem:[#allocation32_spill] sm:$0xff] }
 0x2e0   :  { %13948 = vst [vmem:[#allocation16_spill] sm:$0xff] %v10423_v5  ;;  %vm3471_vm1 = vcmp.eq.s32.totalorder %v3183_v4, %v9281_v38  ;;  %v310_v7 = vpop.permute.xlu0 %309  ;;  %3368 = vperm.xlu1 %8369, %v8508_v11   ;;  %495 = vperm.xlu0 %8371, %v8509_v17   ;;  %v10446_v11 = vpop.f32.mrf.mxu0 }
 0x2e1   :  { %vm7589_vm2 = vmpackc.low %vm3471_vm1, %vm3470_vm0  ;;  %vm592_vm3 = vcmp.eq.s32.totalorder %v310_v7, %v9281_v38  ;;  %v10437_v5 = vpop.f32.mrf.mxu1  ;;  %v8510_v7 = vld [vmem:[%s13638_s0 + $0x378] sm:$0xff]  ;;  %vm597_vm0 = vcmp.eq.s32.totalorder %v13957_v26, %v9281_v38  ;;  %v8515_v26 = vld [vmem:[%s13638_s0 + $0x3b0] sm:$0xff] }
 0x2e2   :  { %13949 = vst [vmem:[#allocation17_spill] sm:$0xff] %v10437_v5  ;;  %8247 = vmatmul.mubr.msk.bf16.gmra.mxu0 %vm7589_vm2, %v13937_v8  ;;  %vm7329_vm6 = vmpackc.low %vm593_vm4, %vm592_vm3 }
 0x2e3   :  { %v3189_v4 = vpop.permute.xlu1 %3188  ;;  %v10442_v56 = vpop.f32.mrf.mxu1 }
 0x2e4   :  { %13951 = vst [vmem:[#allocation18_spill] sm:$0xff] %v10442_v56  ;;  %vm3473_vm7 = vcmp.eq.s32.totalorder %v3189_v4, %v9281_v38  ;;  %v316_v17 = vpop.permute.xlu0 %315  ;;  %3374 = vperm.xlu1 %8369, %v8510_v7   ;;  %501 = vperm.xlu0 %8371, %v8511_v20   ;;  %v13952_v56 = vld [vmem:[#allocation31_spill] sm:$0xff]  ;;  %v10467_v20 = vpop.f32.mrf.mxu0 }
 0x2e5   :  { %vm595_vm8 = vcmp.eq.s32.totalorder %v13952_v56, %v9281_v38  ;;  %vm7591_vm9 = vmpackc.low %vm3473_vm7, %vm3472_vm5  ;;  %vm594_vm10 = vcmp.eq.s32.totalorder %v316_v17, %v9281_v38  ;;  %v10458_v23 = vpop.f32.mrf.mxu1  ;;  %8107 = vmatmul.mubr.msk.bf16.gmra.mxu1 %vm7329_vm6, %v13937_v8  ;;  %13955 = vst [vmem:[#allocation21_spill] sm:$0xff] %v10467_v20  ;;  %v8512_v17 = vld [vmem:[%s13638_s0 + $0x388] sm:$0xff] }
 0x2e6   :  { %13953 = vst [vmem:[#allocation19_spill] sm:$0xff] %v10458_v23  ;;  %vm7331_vm11 = vmpackc.low %vm595_vm8, %vm594_vm10  ;;  %8250 = vmatprep.mubr.msk.bf16.mxu0 %vm7591_vm9, %v13937_v8  ;;  %v8513_v23 = vld [vmem:[%s13638_s0 + $0x3a0] sm:$0xff]  ;;  %v10486_v20 = vpop.f32.mrf.mxu0 }
 0x2e7   :  { %8110 = vmatprep.mubr.msk.bf16.mxu1 %vm7331_vm11, %v13937_v8  ;;  %v3195_v4 = vpop.permute.xlu1 %3194  ;;  %v10463_v7 = vpop.f32.mrf.mxu1  ;;  %13960 = vst [vmem:[#allocation24_spill] sm:$0xff] %v10486_v20 }
 0x2e8   :  { %13954 = vst [vmem:[#allocation20_spill] sm:$0xff] %v10463_v7  ;;  %vm3475_vm13 = vcmp.eq.s32.totalorder %v3195_v4, %v9281_v38  ;;  %v322_v56 = vpop.permute.xlu0 %321  ;;  %3380 = vperm.xlu1 %8369, %v8512_v17   ;;  %507 = vperm.xlu0 %8371, %v8513_v23   ;;  %v13959_v17 = vld [vmem:[#allocation83_spill] sm:$0xff] }
 0x2e9   :  { %vm7593_vm14 = vmpackc.low %vm3475_vm13, %vm3474_vm12  ;;  %vm596_vm15 = vcmp.eq.s32.totalorder %v322_v56, %v9281_v38  ;;  %v10477_v7 = vpop.f32.mrf.mxu1  ;;  %vm3476_vm1 = vcmp.eq.s32.totalorder %v13959_v17, %v9281_v38  ;;  %v8514_v56 = vld [vmem:[%s13638_s0 + $0x398] sm:$0xff] }
 0x2ea   :  { %13956 = vst [vmem:[#allocation22_spill] sm:$0xff] %v10477_v7  ;;  %8251 = vmatmul.mubr.msk.bf16.gmra.mxu0 %vm7593_vm14, %v13937_v8  ;;  %vm7333_vm2 = vmpackc.low %vm597_vm0, %vm596_vm15  ;;  %v10507_v7 = vpop.f32.mrf.mxu0 }
 0x2eb   :  { %v3201_v4 = vpop.permute.xlu1 %3200  ;;  %v10482_v5 = vpop.f32.mrf.mxu1  ;;  %13965 = vst [vmem:[#allocation27_spill] sm:$0xff] %v10507_v7 }
 0x2ec   :  { %13958 = vst [vmem:[#allocation23_spill] sm:$0xff] %v10482_v5  ;;  %vm3477_vm3 = vcmp.eq.s32.totalorder %v3201_v4, %v9281_v38  ;;  %v328_v23 = vpop.permute.xlu0 %327  ;;  %3386 = vperm.xlu1 %8369, %v8514_v56   ;;  %513 = vperm.xlu0 %8371, %v8515_v26   ;;  %v13961_v5 = vld [vmem:[#allocation33_spill] sm:$0xff]  ;;  %v13964_v26 = vld [vmem:[#allocation84_spill] sm:$0xff]  ;;  %v10526_v20 = vpop.f32.mrf.mxu0 }
 0x2ed   :  { %vm599_vm4 = vcmp.eq.s32.totalorder %v13961_v5, %v9281_v38  ;;  %vm7595_vm5 = vmpackc.low %vm3477_vm3, %vm3476_vm1  ;;  %vm598_vm6 = vcmp.eq.s32.totalorder %v328_v23, %v9281_v38  ;;  %v10498_v17 = vpop.f32.mrf.mxu1  ;;  %8111 = vmatmul.mubr.msk.bf16.gmra.mxu1 %vm7333_vm2, %v13937_v8  ;;  %vm3478_vm8 = vcmp.eq.s32.totalorder %v13964_v26, %v9281_v38  ;;  %v8516_v23 = vld [vmem:[%s13638_s0 + $0x3a8] sm:$0xff] }
 0x2ee   :  { %13962 = vst [vmem:[#allocation25_spill] sm:$0xff] %v10498_v17  ;;  %vm7335_vm7 = vmpackc.low %vm599_vm4, %vm598_vm6  ;;  %8254 = vmatprep.mubr.msk.bf16.mxu0 %vm7595_vm5, %v13937_v8  ;;  %v8517_v17 = vld [vmem:[%s13638_s0 + $0x3c0] sm:$0xff]  ;;  %vm3482_vm4 = vcmp.eq.s32.totalorder %v9547_v21, %v9281_v38 }
 0x2ef   :  { %8114 = vmatprep.mubr.msk.bf16.mxu1 %vm7335_vm7, %v13937_v8  ;;  %v3207_v4 = vpop.permute.xlu1 %3206  ;;  %v10503_v56 = vpop.f32.mrf.mxu1  ;;  %v13974_v21 = vld [vmem:[#allocation36_spill] sm:$0xff] }
 0x2f0   :  { %13963 = vst [vmem:[#allocation26_spill] sm:$0xff] %v10503_v56  ;;  %vm3479_vm9 = vcmp.eq.s32.totalorder %v3207_v4, %v9281_v38  ;;  %v334_v5 = vpop.permute.xlu0 %333  ;;  %3392 = vperm.xlu1 %8369, %v8516_v23   ;;  %519 = vperm.xlu0 %8371, %v8517_v17   ;;  %v13967_v4 = vld [vmem:[#allocation34_spill] sm:$0xff]  ;;  %v13969_v23 = vld [vmem:[#allocation85_spill] sm:$0xff] }
 0x2f1   :  { %vm7597_vm10 = vmpackc.low %vm3479_vm9, %vm3478_vm8  ;;  %vm600_vm11 = vcmp.eq.s32.totalorder %v334_v5, %v9281_v38  ;;  %v10517_v56 = vpop.f32.mrf.mxu1  ;;  %vm601_vm12 = vcmp.eq.s32.totalorder %v13967_v4, %v9281_v38  ;;  %vm3480_vm13 = vcmp.eq.s32.totalorder %v13969_v23, %v9281_v38  ;;  %v8518_v5 = vld [vmem:[%s13638_s0 + $0x3b8] sm:$0xff]  ;;  %v8519_v4 = vld [vmem:[%s13638_s0 + $0x3d0] sm:$0xff]  ;;  %vm605_vm8 = vcmp.eq.s32.totalorder %v13974_v21, %v9281_v38 }
 0x2f2   :  { %13966 = vst [vmem:[#allocation28_spill] sm:$0xff] %v10517_v56  ;;  %8255 = vmatmul.mubr.msk.bf16.gmra.mxu0 %vm7597_vm10, %v13937_v8  ;;  %vm7337_vm14 = vmpackc.low %vm601_vm12, %vm600_vm11  ;;  %vm3484_vm9 = vcmp.eq.s32.totalorder %v9559_v37, %v9281_v38  ;;  %v8523_v21 = vld [vmem:[%s13638_s0 + $0x3f0] sm:$0xff] }
 0x2f3   :  { %v3213_v26 = vpop.permute.xlu1 %3212  ;;  %v10522_v7 = vpop.f32.mrf.mxu1 }
 0x2f4   :  { %13968 = vst [vmem:[#allocation29_spill] sm:$0xff] %v10522_v7  ;;  %vm3481_vm15 = vcmp.eq.s32.totalorder %v3213_v26, %v9281_v38  ;;  %v340_v17 = vpop.permute.xlu0 %339  ;;  %3398 = vperm.xlu1 %8369, %v8518_v5   ;;  %525 = vperm.xlu0 %8371, %v8519_v4   ;;  %v13970_v7 = vld [vmem:[#allocation35_spill] sm:$0xff]  ;;  %v10547_v4 = vpop.f32.mrf.mxu0 }
 0x2f5   :  { %vm603_vm0 = vcmp.eq.s32.totalorder %v13970_v7, %v9281_v38  ;;  %vm7599_vm1 = vmpackc.low %vm3481_vm15, %vm3480_vm13  ;;  %vm602_vm2 = vcmp.eq.s32.totalorder %v340_v17, %v9281_v38  ;;  %v10538_v23 = vpop.f32.mrf.mxu1  ;;  %8115 = vmatmul.mubr.msk.bf16.gmra.mxu1 %vm7337_vm14, %v13937_v8  ;;  %v8520_v17 = vld [vmem:[%s13638_s0 + $0x3c8] sm:$0xff] }
 0x2f6   :  { %13971 = vst [vmem:[#allocation30_spill] sm:$0xff] %v10538_v23  ;;  %vm7339_vm3 = vmpackc.low %vm603_vm0, %vm602_vm2  ;;  %8258 = vmatprep.mubr.msk.bf16.mxu0 %vm7599_vm1, %v13937_v8  ;;  %v8521_v23 = vld [vmem:[%s13638_s0 + $0x3e0] sm:$0xff]  ;;  %vm3486_vm0 = vcmp.eq.s32.totalorder %v9571_v32, %v9281_v38  ;;  %v4612_v32 = vld [vmem:[%s13639_s1 + $0x18] sm:$0xff] }
 0x2f7   :  { %8118 = vmatprep.mubr.msk.bf16.mxu1 %vm7339_vm3, %v13937_v8  ;;  %v3219_v26 = vpop.permute.xlu1 %3218  ;;  %v10543_v5 = vpop.f32.mrf.mxu1 }
 0x2f8   :  { %13972 = vst [vmem:[#allocation31_spill] sm:$0xff] %v10543_v5  ;;  %vm3483_vm5 = vcmp.eq.s32.totalorder %v3219_v26, %v9281_v38  ;;  %v346_v7 = vpop.permute.xlu0 %345  ;;  %3404 = vperm.xlu1 %8369, %v8520_v17   ;;  %531 = vperm.xlu0 %8371, %v8521_v23   ;;  %v10566_v17 = vpop.f32.mrf.mxu0 }
 0x2f9   :  { %vm7601_vm6 = vmpackc.low %vm3483_vm5, %vm3482_vm4  ;;  %vm604_vm7 = vcmp.eq.s32.totalorder %v346_v7, %v9281_v38  ;;  %v10557_v5 = vpop.f32.mrf.mxu1  ;;  %v8522_v7 = vld [vmem:[%s13638_s0 + $0x3d8] sm:$0xff]  ;;  %vm3488_vm5 = vcmp.eq.s32.totalorder %v9583_v46, %v9281_v38  ;;  %v4614_v46 = vld [vmem:[%s13639_s1 + $0x28] sm:$0xff] }
 0x2fa   :  { %13973 = vst [vmem:[#allocation32_spill] sm:$0xff] %v10557_v5  ;;  %8259 = vmatmul.mubr.msk.bf16.gmra.mxu0 %vm7601_vm6, %v13937_v8  ;;  %vm7341_vm10 = vmpackc.low %vm605_vm8, %vm604_vm7 }
 0x2fb   :  { %v3225_v26 = vpop.permute.xlu1 %3224  ;;  %v10562_v56 = vpop.f32.mrf.mxu1 }
 0x2fc   :  { %13975 = vst [vmem:[#allocation83_spill] sm:$0xff] %v10562_v56  ;;  %vm3485_vm11 = vcmp.eq.s32.totalorder %v3225_v26, %v9281_v38  ;;  %v352_v23 = vpop.permute.xlu0 %351  ;;  %3410 = vperm.xlu1 %8369, %v8522_v7   ;;  %537 = vperm.xlu0 %8371, %v8523_v21   ;;  %v13976_v56 = vld [vmem:[#allocation37_spill] sm:$0xff]  ;;  %v4609_v26 = vld [vmem:[%s13639_s1] sm:$0xff] }
 0x2fd   :  { %vm607_vm12 = vcmp.eq.s32.totalorder %v13976_v56, %v9281_v38  ;;  %vm7603_vm13 = vmpackc.low %vm3485_vm11, %vm3484_vm9  ;;  %vm606_vm14 = vcmp.eq.s32.totalorder %v352_v23, %v9281_v38  ;;  %v10578_v37 = vpop.f32.mrf.mxu1  ;;  %8119 = vmatmul.mubr.msk.bf16.gmra.mxu1 %vm7341_vm10, %v13937_v8  ;;  %v10590_v56 = vpop.f32.mrf.mxu0 }
 0x2fe   :  { %13977 = vst [vmem:[#allocation33_spill] sm:$0xff] %v10578_v37  ;;  %vm7343_vm15 = vmpackc.low %vm607_vm12, %vm606_vm14  ;;  %8262 = vmatprep.mubr.msk.bf16.mxu0 %vm7603_vm13, %v13937_v8  ;;  %v8524_v37 = vld [vmem:[%s13638_s0 + $0x3e8] sm:$0xff]  ;;  %vm3490_vm12 = vcmp.eq.s32.totalorder %v9592_v55, %v9281_v38  ;;  %v4611_v55 = vld [vmem:[%s13639_s1 + $0x10] sm:$0xff] }
 0x2ff   :  { %8122 = vmatprep.mubr.msk.bf16.mxu1 %vm7343_vm15, %v13937_v8  ;;  %v3231_v7 = vpop.permute.xlu1 %3230  ;;  %v10586_v21 = vpop.f32.mrf.mxu1  ;;  %13979 = vst [vmem:[#allocation34_spill] sm:$0xff] %v10590_v56 }
 0x300   :  { %13978 = vst [vmem:[#allocation84_spill] sm:$0xff] %v10586_v21  ;;  %vm3487_vm1 = vcmp.eq.s32.totalorder %v3231_v7, %v9281_v38  ;;  %v358_v23 = vpop.permute.xlu0 %357  ;;  %3416 = vperm.xlu1 %8369, %v8524_v37   ;;  %4739 = vperm.xlu0 %8371, %v4609_v26   ;;  %v13981_v7 = vld [vmem:[#allocation38_spill] sm:$0xff]  ;;  %v10609_v37 = vpop.f32.mrf.mxu0 }
 0x301   :  { %vm7605_vm2 = vmpackc.low %vm3487_vm1, %vm3486_vm0  ;;  %vm608_vm3 = vcmp.eq.s32.totalorder %v358_v23, %v9281_v38  ;;  %v10597_v5 = vpop.f32.mrf.mxu1  ;;  %vm609_vm4 = vcmp.eq.s32.totalorder %v13981_v7, %v9281_v38  ;;  %v8525_v23 = vld [vmem:[%s13638_s0 + $0x3f8] sm:$0xff]  ;;  %vm3492_vm1 = vcmp.eq.s32.totalorder %v9605_v3, %v9281_v38  ;;  %v4618_v3 = vld [vmem:[%s13639_s1 + $0x48] sm:$0xff]  ;;  %s6871_s0 = sshll.u32 %s8641_s13, 4  ;;  %s6872_s0 = int_to_ptr.vmem [resolvable:$true] %s6871_s0 }
 0x302   :  { %13980 = vst [vmem:[#allocation85_spill] sm:$0xff] %v10597_v5  ;;  %8263 = vmatmul.mubr.msk.bf16.gmra.mxu0 %vm7605_vm2, %v13937_v8  ;;  %vm7345_vm6 = vmpackc.low %vm609_vm4, %vm608_vm3  ;;  %v13983_v7 = vld [vmem:[#allocation39_spill] sm:$0xff]  ;;  %s8612_s14 = scalar_lea.vmem %s6872_s0, 128  ;;  %p8617_p1 = scmp.lt.s32.totalorder %s6872_s0, %s6872_s0 }
 0x303   :  { %v3237_v21 = vpop.permute.xlu1 %3236  ;;  %v10605_v56 = vpop.f32.mrf.mxu1  ;;  %vm611_vm8 = vcmp.eq.s32.totalorder %v13983_v7, %v9281_v38  ;;  %p8613_p0 = scmp.ne.s32.totalorder %s6872_s0, %s8612_s14  ;;  %p8618_p2 = scmp.lt.s32.totalorder %s8612_s14, %s8612_s14 }
 0x304   :  { %13982 = vst [vmem:[#allocation35_spill] sm:$0xff] %v10605_v56  ;;  %vm3489_vm7 = vcmp.eq.s32.totalorder %v3237_v21, %v9281_v38  ;;  %v364_v26 = vpop.permute.xlu0 %363  ;;  %3422 = vperm.xlu1 %8369, %v8525_v23   ;;  %4754 = vperm.xlu0 %8371, %v4612_v32   ;;  %v4610_v21 = vld [vmem:[%s13639_s1 + $0x8] sm:$0xff] }
 0x305   :  { %vm7607_vm9 = vmpackc.low %vm3489_vm7, %vm3488_vm5  ;;  %vm610_vm10 = vcmp.eq.s32.totalorder %v364_v26, %v9281_v38  ;;  %v10618_v56 = vpop.f32.mrf.mxu1  ;;  %8123 = vmatmul.mubr.msk.bf16.gmra.mxu1 %vm7345_vm6, %v13937_v8  ;;  %v10633_v26 = vpop.f32.mrf.mxu0  ;;  %p8619_p3 = por %p8618_p2, %p8617_p1 }
 0x306   :  { %13984 = vst [vmem:[#allocation36_spill] sm:$0xff] %v10618_v56  ;;  %vm7347_vm11 = vmpackc.low %vm611_vm8, %vm610_vm10  ;;  %8266 = vmatprep.mubr.msk.bf16.mxu0 %vm7607_vm9, %v13937_v8  ;;  %vm3494_vm8 = vcmp.eq.s32.totalorder %v9616_v6, %v9281_v38  ;;  %v4615_v6 = vld [vmem:[%s13639_s1 + $0x30] sm:$0xff] }
 0x307   :  { %8126 = vmatprep.mubr.msk.bf16.mxu1 %vm7347_vm11, %v13937_v8  ;;  %v3243_v32 = vpop.permute.xlu1 %3242  ;;  %v10629_v23 = vpop.f32.mrf.mxu1  ;;  %p8620_p4 = pnand %p8619_p3, %p8613_p0 }
 0x308   :  { %13985 = vst [vmem:[#allocation37_spill] sm:$0xff] %v10629_v23  ;;  %vm3491_vm13 = vcmp.eq.s32.totalorder %v3243_v32, %v9281_v38  ;;  %v370_v7 = vpop.permute.xlu0 %369  ;;  %8372 = vset.pattern.permute.xlu1 %v13872_v2  ;;  %4764 = vperm.xlu0 %8371, %v4614_v46   ;;  %v4616_v23 = vld [vmem:[%s13639_s1 + $0x38] sm:$0xff]  ;;  %v13987_v32 = vld [vmem:[#allocation40_spill] sm:$0xff] }
 0x309   :  { %vm7609_vm14 = vmpackc.low %vm3491_vm13, %vm3490_vm12  ;;  %vm612_vm15 = vcmp.eq.s32.totalorder %v370_v7, %v9281_v38  ;;  %4744 = vperm.xlu1 %8372, %v4610_v21   ;;  %v10638_v56 = vpop.f32.mrf.mxu1  ;;  %vm613_vm0 = vcmp.eq.s32.totalorder %v13987_v32, %v9281_v38  ;;  %v10653_v21 = vpop.f32.mrf.mxu0  ;;  %vm3496_vm13 = vcmp.eq.s32.totalorder %v9626_v27, %v9281_v38  ;;  %v4622_v27 = vld [vmem:[%s13639_s1 + $0x68] sm:$0xff] }
 0x30a   :  { %13986 = vst [vmem:[#allocation38_spill] sm:$0xff] %v10638_v56  ;;  %8267 = vmatmul.mubr.msk.bf16.gmra.mxu0 %vm7609_vm14, %v13937_v8  ;;  %vm7349_vm2 = vmpackc.low %vm613_vm0, %vm612_vm15  ;;  %v13989_v56 = vld [vmem:[#allocation41_spill] sm:$0xff] }
 0x30b   :  { %v3249_v2 = vpop.permute.xlu1 %3248  ;;  %v10649_v46 = vpop.f32.mrf.mxu1  ;;  %vm615_vm4 = vcmp.eq.s32.totalorder %v13989_v56, %v9281_v38 }
 0x30c   :  { %13988 = vst [vmem:[#allocation39_spill] sm:$0xff] %v10649_v46  ;;  %vm3493_vm3 = vcmp.eq.s32.totalorder %v3249_v2, %v9281_v38  ;;  %v376_v7 = vpop.permute.xlu0 %375  ;;  %4774 = vperm.xlu0 %8371, %v4616_v23   ;;  %v4613_v23 = vld [vmem:[%s13639_s1 + $0x20] sm:$0xff]  ;;  %v4620_v46 = vld [vmem:[%s13639_s1 + $0x58] sm:$0xff] }
 0x30d   :  { %vm7611_vm5 = vmpackc.low %vm3493_vm3, %vm3492_vm1  ;;  %vm614_vm6 = vcmp.eq.s32.totalorder %v376_v7, %v9281_v38  ;;  %4749 = vperm.xlu1 %8372, %v4611_v55   ;;  %v10659_v32 = vpop.f32.mrf.mxu1  ;;  %8127 = vmatmul.mubr.msk.bf16.gmra.mxu1 %vm7349_vm2, %v13937_v8  ;;  %v10674_v55 = vpop.f32.mrf.mxu0 }
 0x30e   :  { %13990 = vst [vmem:[#allocation40_spill] sm:$0xff] %v10659_v32  ;;  %vm7351_vm7 = vmpackc.low %vm615_vm4, %vm614_vm6  ;;  %8270 = vmatprep.mubr.msk.bf16.mxu0 %vm7611_vm5, %v13937_v8  ;;  %vm3498_vm4 = vcmp.eq.s32.totalorder %v9639_v33, %v9281_v38  ;;  %v4619_v33 = vld [vmem:[%s13639_s1 + $0x50] sm:$0xff] }
 0x30f   :  { %8130 = vmatprep.mubr.msk.bf16.mxu1 %vm7351_vm7, %v13937_v8  ;;  %v3255_v56 = vpop.permute.xlu1 %3254  ;;  %v10670_v2 = vpop.f32.mrf.mxu1 }
 0x310   :  { %13991 = vst [vmem:[#allocation41_spill] sm:$0xff] %v10670_v2  ;;  %vm3495_vm9 = vcmp.eq.s32.totalorder %v3255_v56, %v9281_v38  ;;  %v382_v7 = vpop.permute.xlu0 %381  ;;  %4784 = vperm.xlu0 %8371, %v4618_v3   ;;  %v13993_v56 = vld [vmem:[#allocation42_spill] sm:$0xff] }
 0x311   :  { %vm7613_vm10 = vmpackc.low %vm3495_vm9, %vm3494_vm8  ;;  %vm616_vm11 = vcmp.eq.s32.totalorder %v382_v7, %v9281_v38  ;;  %4759 = vperm.xlu1 %8372, %v4613_v23   ;;  %v10678_v32 = vpop.f32.mrf.mxu1  ;;  %vm617_vm12 = vcmp.eq.s32.totalorder %v13993_v56, %v9281_v38  ;;  %v10693_v23 = vpop.f32.mrf.mxu0  ;;  %vm3500_vm9 = vcmp.eq.s32.totalorder %v9653_v49, %v9281_v38  ;;  %v4626_v49 = vld [vmem:[%s13639_s1 + $0x88] sm:$0xff] }
 0x312   :  { %13992 = vst [vmem:[#allocation95_spill] sm:$0xff] %v10678_v32  ;;  %8271 = vmatmul.mubr.msk.bf16.gmra.mxu0 %vm7613_vm10, %v13937_v8  ;;  %vm7353_vm14 = vmpackc.low %vm617_vm12, %vm616_vm11  ;;  %v13995_v32 = vld [vmem:[#allocation43_spill] sm:$0xff] }
 0x313   :  { %v3261_v3 = vpop.permute.xlu1 %3260  ;;  %v10689_v2 = vpop.f32.mrf.mxu1  ;;  %vm619_vm0 = vcmp.eq.s32.totalorder %v13995_v32, %v9281_v38 }
 0x314   :  { %13994 = vst [vmem:[#allocation42_spill] sm:$0xff] %v10689_v2  ;;  %vm3497_vm15 = vcmp.eq.s32.totalorder %v3261_v3, %v9281_v38  ;;  %v388_v7 = vpop.permute.xlu0 %387  ;;  %4794 = vperm.xlu0 %8371, %v4620_v46   ;;  %v4617_v46 = vld [vmem:[%s13639_s1 + $0x40] sm:$0xff]  ;;  %v4624_v2 = vld [vmem:[%s13639_s1 + $0x78] sm:$0xff] }
 0x315   :  { %vm7615_vm1 = vmpackc.low %vm3497_vm15, %vm3496_vm13  ;;  %vm618_vm2 = vcmp.eq.s32.totalorder %v388_v7, %v9281_v38  ;;  %4769 = vperm.xlu1 %8372, %v4615_v6   ;;  %v10699_v56 = vpop.f32.mrf.mxu1  ;;  %8131 = vmatmul.mubr.msk.bf16.gmra.mxu1 %vm7353_vm14, %v13937_v8  ;;  %v10714_v6 = vpop.f32.mrf.mxu0 }
 0x316   :  { %13996 = vst [vmem:[#allocation43_spill] sm:$0xff] %v10699_v56  ;;  %vm7355_vm3 = vmpackc.low %vm619_vm0, %vm618_vm2  ;;  %8274 = vmatprep.mubr.msk.bf16.mxu0 %vm7615_vm1, %v13937_v8  ;;  %vm3502_vm0 = vcmp.eq.s32.totalorder %v9666_v24, %v9281_v38  ;;  %v4623_v24 = vld [vmem:[%s13639_s1 + $0x70] sm:$0xff] }
 0x317   :  { %8134 = vmatprep.mubr.msk.bf16.mxu1 %vm7355_vm3, %v13937_v8  ;;  %v3267_v32 = vpop.permute.xlu1 %3266  ;;  %v10710_v3 = vpop.f32.mrf.mxu1 }
 0x318   :  { %13997 = vst [vmem:[#allocation96_spill] sm:$0xff] %v10710_v3  ;;  %vm3499_vm5 = vcmp.eq.s32.totalorder %v3267_v32, %v9281_v38  ;;  %v394_v7 = vpop.permute.xlu0 %393  ;;  %4804 = vperm.xlu0 %8371, %v4622_v27   ;;  %v13999_v32 = vld [vmem:[#allocation44_spill] sm:$0xff] }
 0x319   :  { %vm7617_vm6 = vmpackc.low %vm3499_vm5, %vm3498_vm4  ;;  %vm620_vm7 = vcmp.eq.s32.totalorder %v394_v7, %v9281_v38  ;;  %4779 = vperm.xlu1 %8372, %v4617_v46   ;;  %v10718_v56 = vpop.f32.mrf.mxu1  ;;  %vm621_vm8 = vcmp.eq.s32.totalorder %v13999_v32, %v9281_v38  ;;  %v10733_v46 = vpop.f32.mrf.mxu0  ;;  %vm3504_vm5 = vcmp.eq.s32.totalorder %v9681_v18, %v9281_v38  ;;  %v4630_v18 = vld [vmem:[%s13639_s1 + $0xa8] sm:$0xff] }
 0x31a   :  { %13998 = vst [vmem:[#allocation97_spill] sm:$0xff] %v10718_v56  ;;  %8275 = vmatmul.mubr.msk.bf16.gmra.mxu0 %vm7617_vm6, %v13937_v8  ;;  %vm7357_vm10 = vmpackc.low %vm621_vm8, %vm620_vm7  ;;  %v14001_v56 = vld [vmem:[#allocation45_spill] sm:$0xff] }
 0x31b   :  { %v3273_v27 = vpop.permute.xlu1 %3272  ;;  %v10729_v3 = vpop.f32.mrf.mxu1  ;;  %vm623_vm12 = vcmp.eq.s32.totalorder %v14001_v56, %v9281_v38 }
 0x31c   :  { %14000 = vst [vmem:[#allocation44_spill] sm:$0xff] %v10729_v3  ;;  %vm3501_vm11 = vcmp.eq.s32.totalorder %v3273_v27, %v9281_v38  ;;  %v400_v7 = vpop.permute.xlu0 %399  ;;  %4814 = vperm.xlu0 %8371, %v4624_v2   ;;  %v4621_v2 = vld [vmem:[%s13639_s1 + $0x60] sm:$0xff]  ;;  %v4628_v3 = vld [vmem:[%s13639_s1 + $0x98] sm:$0xff] }
 0x31d   :  { %vm7619_vm13 = vmpackc.low %vm3501_vm11, %vm3500_vm9  ;;  %vm622_vm14 = vcmp.eq.s32.totalorder %v400_v7, %v9281_v38  ;;  %4789 = vperm.xlu1 %8372, %v4619_v33   ;;  %v10739_v32 = vpop.f32.mrf.mxu1  ;;  %8135 = vmatmul.mubr.msk.bf16.gmra.mxu1 %vm7357_vm10, %v13937_v8  ;;  %v10754_v33 = vpop.f32.mrf.mxu0 }
 0x31e   :  { %14002 = vst [vmem:[#allocation45_spill] sm:$0xff] %v10739_v32  ;;  %vm7359_vm15 = vmpackc.low %vm623_vm12, %vm622_vm14  ;;  %8278 = vmatprep.mubr.msk.bf16.mxu0 %vm7619_vm13, %v13937_v8  ;;  %vm3506_vm12 = vcmp.eq.s32.totalorder %v9696_v43, %v9281_v38  ;;  %v4627_v43 = vld [vmem:[%s13639_s1 + $0x90] sm:$0xff] }
 0x31f   :  { %8138 = vmatprep.mubr.msk.bf16.mxu1 %vm7359_vm15, %v13937_v8  ;;  %v3279_v56 = vpop.permute.xlu1 %3278  ;;  %v10750_v27 = vpop.f32.mrf.mxu1 }
 0x320   :  { %14003 = vst [vmem:[#allocation98_spill] sm:$0xff] %v10750_v27  ;;  %vm3503_vm1 = vcmp.eq.s32.totalorder %v3279_v56, %v9281_v38  ;;  %v406_v7 = vpop.permute.xlu0 %405  ;;  %4824 = vperm.xlu0 %8371, %v4626_v49   ;;  %v14005_v56 = vld [vmem:[#allocation46_spill] sm:$0xff] }
 0x321   :  { %vm7621_vm2 = vmpackc.low %vm3503_vm1, %vm3502_vm0  ;;  %vm624_vm3 = vcmp.eq.s32.totalorder %v406_v7, %v9281_v38  ;;  %4799 = vperm.xlu1 %8372, %v4621_v2   ;;  %v10758_v32 = vpop.f32.mrf.mxu1  ;;  %vm625_vm4 = vcmp.eq.s32.totalorder %v14005_v56, %v9281_v38  ;;  %v10773_v2 = vpop.f32.mrf.mxu0  ;;  %vm3508_vm1 = vcmp.eq.s32.totalorder %v9711_v40, %v9281_v38  ;;  %v4634_v40 = vld [vmem:[%s13639_s1 + $0xc8] sm:$0xff] }
 0x322   :  { %14004 = vst [vmem:[#allocation99_spill] sm:$0xff] %v10758_v32  ;;  %8279 = vmatmul.mubr.msk.bf16.gmra.mxu0 %vm7621_vm2, %v13937_v8  ;;  %vm7361_vm6 = vmpackc.low %vm625_vm4, %vm624_vm3  ;;  %v14007_v32 = vld [vmem:[#allocation47_spill] sm:$0xff] }
 0x323   :  { %v3285_v49 = vpop.permute.xlu1 %3284  ;;  %v10769_v27 = vpop.f32.mrf.mxu1  ;;  %vm627_vm8 = vcmp.eq.s32.totalorder %v14007_v32, %v9281_v38 }
 0x324   :  { %14006 = vst [vmem:[#allocation46_spill] sm:$0xff] %v10769_v27  ;;  %vm3505_vm7 = vcmp.eq.s32.totalorder %v3285_v49, %v9281_v38  ;;  %v412_v7 = vpop.permute.xlu0 %411  ;;  %4834 = vperm.xlu0 %8371, %v4628_v3   ;;  %v4625_v3 = vld [vmem:[%s13639_s1 + $0x80] sm:$0xff] }
 0x325   :  { %vm7623_vm9 = vmpackc.low %vm3505_vm7, %vm3504_vm5  ;;  %vm626_vm10 = vcmp.eq.s32.totalorder %v412_v7, %v9281_v38  ;;  %4809 = vperm.xlu1 %8372, %v4623_v24   ;;  %v10779_v56 = vpop.f32.mrf.mxu1  ;;  %8139 = vmatmul.mubr.msk.bf16.gmra.mxu1 %vm7361_vm6, %v13937_v8  ;;  %v10794_v24 = vpop.f32.mrf.mxu0 }
 0x326   :  { %14008 = vst [vmem:[#allocation47_spill] sm:$0xff] %v10779_v56  ;;  %vm7363_vm11 = vmpackc.low %vm627_vm8, %vm626_vm10  ;;  %8282 = vmatprep.mubr.msk.bf16.mxu0 %vm7623_vm9, %v13937_v8  ;;  %v4632_v56 = vld [vmem:[%s13639_s1 + $0xb8] sm:$0xff]  ;;  %vm3510_vm8 = vcmp.eq.s32.totalorder %v9726_v9, %v9281_v38  ;;  %v4631_v9 = vld [vmem:[%s13639_s1 + $0xb0] sm:$0xff] }
 0x327   :  { %8142 = vmatprep.mubr.msk.bf16.mxu1 %vm7363_vm11, %v13937_v8  ;;  %v3291_v32 = vpop.permute.xlu1 %3290  ;;  %v10790_v49 = vpop.f32.mrf.mxu1 }
 0x328   :  { %14009 = vst [vmem:[#allocation100_spill] sm:$0xff] %v10790_v49  ;;  %vm3507_vm13 = vcmp.eq.s32.totalorder %v3291_v32, %v9281_v38  ;;  %v418_v7 = vpop.permute.xlu0 %417  ;;  %4844 = vperm.xlu0 %8371, %v4630_v18   ;;  %v14011_v32 = vld [vmem:[#allocation48_spill] sm:$0xff] }
 0x329   :  { %vm7625_vm14 = vmpackc.low %vm3507_vm13, %vm3506_vm12  ;;  %vm628_vm15 = vcmp.eq.s32.totalorder %v418_v7, %v9281_v38  ;;  %4819 = vperm.xlu1 %8372, %v4625_v3   ;;  %v10798_v27 = vpop.f32.mrf.mxu1  ;;  %vm629_vm0 = vcmp.eq.s32.totalorder %v14011_v32, %v9281_v38  ;;  %v10813_v3 = vpop.f32.mrf.mxu0  ;;  %vm3512_vm13 = vcmp.eq.s32.totalorder %v9738_v1, %v9281_v38  ;;  %v4638_v1 = vld [vmem:[%s13639_s1 + $0xe8] sm:$0xff] }
 0x32a   :  { %14010 = vst [vmem:[#allocation101_spill] sm:$0xff] %v10798_v27  ;;  %8283 = vmatmul.mubr.msk.bf16.gmra.mxu0 %vm7625_vm14, %v13937_v8  ;;  %vm7365_vm2 = vmpackc.low %vm629_vm0, %vm628_vm15  ;;  %v14013_v27 = vld [vmem:[#allocation49_spill] sm:$0xff] }
 0x32b   :  { %v3297_v18 = vpop.permute.xlu1 %3296  ;;  %v10809_v49 = vpop.f32.mrf.mxu1  ;;  %vm631_vm4 = vcmp.eq.s32.totalorder %v14013_v27, %v9281_v38 }
 0x32c   :  { %14012 = vst [vmem:[#allocation48_spill] sm:$0xff] %v10809_v49  ;;  %vm3509_vm3 = vcmp.eq.s32.totalorder %v3297_v18, %v9281_v38  ;;  %v424_v7 = vpop.permute.xlu0 %423  ;;  %4854 = vperm.xlu0 %8371, %v4632_v56   ;;  %v4629_v56 = vld [vmem:[%s13639_s1 + $0xa0] sm:$0xff]  ;;  %v4636_v49 = vld [vmem:[%s13639_s1 + $0xd8] sm:$0xff] }
 0x32d   :  { %vm7627_vm5 = vmpackc.low %vm3509_vm3, %vm3508_vm1  ;;  %vm630_vm6 = vcmp.eq.s32.totalorder %v424_v7, %v9281_v38  ;;  %4829 = vperm.xlu1 %8372, %v4627_v43   ;;  %v10819_v32 = vpop.f32.mrf.mxu1  ;;  %8143 = vmatmul.mubr.msk.bf16.gmra.mxu1 %vm7365_vm2, %v13937_v8  ;;  %v10834_v43 = vpop.f32.mrf.mxu0 }
 0x32e   :  { %14014 = vst [vmem:[#allocation49_spill] sm:$0xff] %v10819_v32  ;;  %vm7367_vm7 = vmpackc.low %vm631_vm4, %vm630_vm6  ;;  %8286 = vmatprep.mubr.msk.bf16.mxu0 %vm7627_vm5, %v13937_v8  ;;  %vm3514_vm4 = vcmp.eq.s32.totalorder %v9750_v12, %v9281_v38  ;;  %v4635_v12 = vld [vmem:[%s13639_s1 + $0xd0] sm:$0xff] }
 0x32f   :  { %8146 = vmatprep.mubr.msk.bf16.mxu1 %vm7367_vm7, %v13937_v8  ;;  %v3303_v27 = vpop.permute.xlu1 %3302  ;;  %v10830_v18 = vpop.f32.mrf.mxu1 }
 0x330   :  { %14015 = vst [vmem:[#allocation102_spill] sm:$0xff] %v10830_v18  ;;  %vm3511_vm9 = vcmp.eq.s32.totalorder %v3303_v27, %v9281_v38  ;;  %v430_v7 = vpop.permute.xlu0 %429  ;;  %4864 = vperm.xlu0 %8371, %v4634_v40   ;;  %v14017_v27 = vld [vmem:[#allocation50_spill] sm:$0xff] }
 0x331   :  { %vm7629_vm10 = vmpackc.low %vm3511_vm9, %vm3510_vm8  ;;  %vm632_vm11 = vcmp.eq.s32.totalorder %v430_v7, %v9281_v38  ;;  %4839 = vperm.xlu1 %8372, %v4629_v56   ;;  %v10838_v32 = vpop.f32.mrf.mxu1  ;;  %vm633_vm12 = vcmp.eq.s32.totalorder %v14017_v27, %v9281_v38  ;;  %v10853_v56 = vpop.f32.mrf.mxu0  ;;  %vm3516_vm9 = vcmp.eq.s32.totalorder %v9762_v29, %v9281_v38  ;;  %v4642_v29 = vld [vmem:[%s13639_s1 + $0x108] sm:$0xff] }
 0x332   :  { %14016 = vst [vmem:[#allocation103_spill] sm:$0xff] %v10838_v32  ;;  %8287 = vmatmul.mubr.msk.bf16.gmra.mxu0 %vm7629_vm10, %v13937_v8  ;;  %vm7369_vm14 = vmpackc.low %vm633_vm12, %vm632_vm11  ;;  %v14019_v32 = vld [vmem:[#allocation51_spill] sm:$0xff] }
 0x333   :  { %v3309_v40 = vpop.permute.xlu1 %3308  ;;  %v10849_v18 = vpop.f32.mrf.mxu1  ;;  %vm635_vm0 = vcmp.eq.s32.totalorder %v14019_v32, %v9281_v38 }
 0x334   :  { %14018 = vst [vmem:[#allocation50_spill] sm:$0xff] %v10849_v18  ;;  %vm3513_vm15 = vcmp.eq.s32.totalorder %v3309_v40, %v9281_v38  ;;  %v436_v7 = vpop.permute.xlu0 %435  ;;  %4874 = vperm.xlu0 %8371, %v4636_v49   ;;  %v4633_v49 = vld [vmem:[%s13639_s1 + $0xc0] sm:$0xff]  ;;  %v4640_v18 = vld [vmem:[%s13639_s1 + $0xf8] sm:$0xff] }
 0x335   :  { %vm7631_vm1 = vmpackc.low %vm3513_vm15, %vm3512_vm13  ;;  %vm634_vm2 = vcmp.eq.s32.totalorder %v436_v7, %v9281_v38  ;;  %4849 = vperm.xlu1 %8372, %v4631_v9   ;;  %v10859_v27 = vpop.f32.mrf.mxu1  ;;  %8147 = vmatmul.mubr.msk.bf16.gmra.mxu1 %vm7369_vm14, %v13937_v8  ;;  %v10874_v9 = vpop.f32.mrf.mxu0 }
 0x336   :  { %14020 = vst [vmem:[#allocation51_spill] sm:$0xff] %v10859_v27  ;;  %vm7371_vm3 = vmpackc.low %vm635_vm0, %vm634_vm2  ;;  %8290 = vmatprep.mubr.msk.bf16.mxu0 %vm7631_vm1, %v13937_v8  ;;  %vm3518_vm0 = vcmp.eq.s32.totalorder %v9774_v22, %v9281_v38  ;;  %v4639_v22 = vld [vmem:[%s13639_s1 + $0xf0] sm:$0xff] }
 0x337   :  { %8150 = vmatprep.mubr.msk.bf16.mxu1 %vm7371_vm3, %v13937_v8  ;;  %v3315_v32 = vpop.permute.xlu1 %3314  ;;  %v10870_v40 = vpop.f32.mrf.mxu1 }
 0x338   :  { %14021 = vst [vmem:[#allocation104_spill] sm:$0xff] %v10870_v40  ;;  %vm3515_vm5 = vcmp.eq.s32.totalorder %v3315_v32, %v9281_v38  ;;  %v442_v7 = vpop.permute.xlu0 %441  ;;  %4884 = vperm.xlu0 %8371, %v4638_v1   ;;  %v14023_v32 = vld [vmem:[#allocation52_spill] sm:$0xff] }
 0x339   :  { %vm7633_vm6 = vmpackc.low %vm3515_vm5, %vm3514_vm4  ;;  %vm636_vm7 = vcmp.eq.s32.totalorder %v442_v7, %v9281_v38  ;;  %4859 = vperm.xlu1 %8372, %v4633_v49   ;;  %v10878_v27 = vpop.f32.mrf.mxu1  ;;  %vm637_vm8 = vcmp.eq.s32.totalorder %v14023_v32, %v9281_v38  ;;  %v10893_v49 = vpop.f32.mrf.mxu0  ;;  %vm3520_vm5 = vcmp.eq.s32.totalorder %v9786_v30, %v9281_v38  ;;  %v4646_v30 = vld [vmem:[%s13639_s1 + $0x128] sm:$0xff] }
 0x33a   :  { %14022 = vst [vmem:[#allocation105_spill] sm:$0xff] %v10878_v27  ;;  %8291 = vmatmul.mubr.msk.bf16.gmra.mxu0 %vm7633_vm6, %v13937_v8  ;;  %14025 = vst [vmem:[#allocation106_spill] sm:$0xff] %v10893_v49  ;;  %v14026_v27 = vld [vmem:[#allocation53_spill] sm:$0xff] }
 0x33b   :  { %v3321_v1 = vpop.permute.xlu1 %3320  ;;  %v10889_v40 = vpop.f32.mrf.mxu1  ;;  %vm7373_vm10 = vmpackc.low %vm637_vm8, %vm636_vm7  ;;  %vm639_vm12 = vcmp.eq.s32.totalorder %v14026_v27, %v9281_v38 }
 0x33c   :  { %14024 = vst [vmem:[#allocation52_spill] sm:$0xff] %v10889_v40  ;;  %vm3517_vm11 = vcmp.eq.s32.totalorder %v3321_v1, %v9281_v38  ;;  %v448_v7 = vpop.permute.xlu0 %447  ;;  %4894 = vperm.xlu0 %8371, %v4640_v18   ;;  %v4637_v18 = vld [vmem:[%s13639_s1 + $0xe0] sm:$0xff]  ;;  %v4644_v40 = vld [vmem:[%s13639_s1 + $0x118] sm:$0xff] }
 0x33d   :  { %vm7635_vm13 = vmpackc.low %vm3517_vm11, %vm3516_vm9  ;;  %vm638_vm14 = vcmp.eq.s32.totalorder %v448_v7, %v9281_v38  ;;  %4869 = vperm.xlu1 %8372, %v4635_v12   ;;  %v10899_v32 = vpop.f32.mrf.mxu1  ;;  %8151 = vmatmul.mubr.msk.bf16.gmra.mxu1 %vm7373_vm10, %v13937_v8  ;;  %v10914_v12 = vpop.f32.mrf.mxu0 }
 0x33e   :  { %14027 = vst [vmem:[#allocation53_spill] sm:$0xff] %v10899_v32  ;;  %vm7375_vm15 = vmpackc.low %vm639_vm12, %vm638_vm14  ;;  %8294 = vmatprep.mubr.msk.bf16.mxu0 %vm7635_vm13, %v13937_v8  ;;  %vm3522_vm12 = vcmp.eq.s32.totalorder %v9798_v15, %v9281_v38  ;;  %v4643_v15 = vld [vmem:[%s13639_s1 + $0x110] sm:$0xff] }
 0x33f   :  { %8154 = vmatprep.mubr.msk.bf16.mxu1 %vm7375_vm15, %v13937_v8  ;;  %v3327_v27 = vpop.permute.xlu1 %3326  ;;  %v10910_v1 = vpop.f32.mrf.mxu1  ;;  %14029 = vst [vmem:[#allocation108_spill] sm:$0xff] %v10914_v12 }
 0x340   :  { %14028 = vst [vmem:[#allocation107_spill] sm:$0xff] %v10910_v1  ;;  %vm3519_vm1 = vcmp.eq.s32.totalorder %v3327_v27, %v9281_v38  ;;  %v454_v7 = vpop.permute.xlu0 %453  ;;  %4904 = vperm.xlu0 %8371, %v4642_v29   ;;  %v14031_v27 = vld [vmem:[#allocation54_spill] sm:$0xff] }
 0x341   :  { %vm7637_vm2 = vmpackc.low %vm3519_vm1, %vm3518_vm0  ;;  %vm640_vm3 = vcmp.eq.s32.totalorder %v454_v7, %v9281_v38  ;;  %4879 = vperm.xlu1 %8372, %v4637_v18   ;;  %v10918_v32 = vpop.f32.mrf.mxu1  ;;  %vm641_vm4 = vcmp.eq.s32.totalorder %v14031_v27, %v9281_v38  ;;  %v10933_v18 = vpop.f32.mrf.mxu0 }
 0x342   :  { %14030 = vst [vmem:[#allocation109_spill] sm:$0xff] %v10918_v32  ;;  %8295 = vmatmul.mubr.msk.bf16.gmra.mxu0 %vm7637_vm2, %v13937_v8  ;;  %14033 = vst [vmem:[#allocation110_spill] sm:$0xff] %v10933_v18  ;;  %v14034_v32 = vld [vmem:[#allocation55_spill] sm:$0xff]  ;;  %vm3524_vm2 = vcmp.eq.s32.totalorder %v9810_v13, %v9281_v38  ;;  %v4650_v13 = vld [vmem:[%s13639_s1 + $0x148] sm:$0xff] }
 0x343   :  { %v3333_v29 = vpop.permute.xlu1 %3332  ;;  %v10929_v1 = vpop.f32.mrf.mxu1  ;;  %vm7377_vm6 = vmpackc.low %vm641_vm4, %vm640_vm3  ;;  %vm643_vm8 = vcmp.eq.s32.totalorder %v14034_v32, %v9281_v38  ;;  %v4648_v18 = vld [vmem:[%s13639_s1 + $0x138] sm:$0xff] }
 0x344   :  { %14032 = vst [vmem:[#allocation54_spill] sm:$0xff] %v10929_v1  ;;  %vm3521_vm7 = vcmp.eq.s32.totalorder %v3333_v29, %v9281_v38  ;;  %v460_v7 = vpop.permute.xlu0 %459  ;;  %4914 = vperm.xlu0 %8371, %v4644_v40   ;;  %v4641_v40 = vld [vmem:[%s13639_s1 + $0x100] sm:$0xff] }
 0x345   :  { %vm7639_vm9 = vmpackc.low %vm3521_vm7, %vm3520_vm5  ;;  %vm642_vm10 = vcmp.eq.s32.totalorder %v460_v7, %v9281_v38  ;;  %4889 = vperm.xlu1 %8372, %v4639_v22   ;;  %v8060_v27 = vpop.f32.mrf.mxu1  ;;  %8155 = vmatmul.mubr.msk.bf16.gmra.mxu1 %vm7377_vm6, %v13937_v8  ;;  %v10950_v22 = vpop.f32.mrf.mxu0 }
 0x346   :  { %vm7379_vm11 = vmpackc.low %vm643_vm8, %vm642_vm10  ;;  %8298 = vmatprep.mubr.msk.bf16.mxu0 %vm7639_vm9, %v13937_v8  ;;  %14035 = vst [vmem:[#allocation55_spill] sm:$0xff] %v10950_v22  ;;  %v2538_v1 = vadd.f32 %v8060_v27, %v9821_v31  ;;  %vm3526_vm8 = vcmp.eq.s32.totalorder %v9824_v62, %v9281_v38  ;;  %v4647_v62 = vld [vmem:[%s13639_s1 + $0x130] sm:$0xff] }
 0x347   :  { %8158 = vmatprep.mubr.msk.bf16.mxu1 %vm7379_vm11, %v13937_v8  ;;  %v3339_v32 = vpop.permute.xlu1 %3338  ;;  %v2529_v29 = vpop.f32.mrf.mxu1 }
 0x348   :  { %vm3523_vm13 = vcmp.eq.s32.totalorder %v3339_v32, %v9281_v38  ;;  %v466_v7 = vpop.permute.xlu0 %465  ;;  %4924 = vperm.xlu0 %8371, %v4646_v30   ;;  %v14036_v30 = vld [vmem:[#allocation57_spill] sm:$0xff]  ;;  %v2530_v31 = vadd.f32 %v2529_v29, %v9829_v25 }
 0x349   :  { %vm7641_vm14 = vmpackc.low %vm3523_vm13, %vm3522_vm12  ;;  %vm644_vm15 = vcmp.eq.s32.totalorder %v466_v7, %v9281_v38  ;;  %4899 = vperm.xlu1 %8372, %v4641_v40   ;;  %v8061_v5 = vpop.f32.mrf.mxu1  ;;  %vm645_vm0 = vcmp.eq.s32.totalorder %v14036_v30, %v9281_v38  ;;  %v14038_v7 = vld [vmem:[#allocation59_spill] sm:$0xff] }
 0x34a   :  { %v8204_v12 = vpop.f32.mrf.mxu0  ;;  %8299 = vmatmul.mubr.msk.bf16.gmra.mxu0 %vm7641_vm14, %v13937_v8  ;;  %vm647_vm1 = vcmp.eq.s32.totalorder %v14038_v7, %v9281_v38  ;;  %vm7381_vm3 = vmpackc.low %vm645_vm0, %vm644_vm15  ;;  %v2541_v30 = vadd.f32 %v8061_v5, %v9837_v28  ;;  %v4645_v28 = vld [vmem:[%s13639_s1 + $0x120] sm:$0xff] }
 0x34b   :  { %v10965_v27 = vadd.f32 %v8204_v12, %v2538_v1  ;;  %v3345_v40 = vpop.permute.xlu1 %3344  ;;  %v2532_v32 = vpop.f32.mrf.mxu1 }
 0x34c   :  { %vm3525_vm4 = vcmp.eq.s32.totalorder %v3345_v40, %v9281_v38  ;;  %v472_v22 = vpop.permute.xlu0 %471  ;;  %v3970_v49 = vpop.f32.mrf.mxu0  ;;  %4934 = vperm.xlu0 %8371, %v4648_v18   ;;  %v2533_v5 = vadd.f32 %v2532_v32, %v9845_v58  ;;  %v4652_v32 = vld [vmem:[%s13639_s1 + $0x158] sm:$0xff] }
 0x34d   :  { %14037 = vst [vmem:[#allocation57_spill] sm:$0xff] %v10965_v27  ;;  %vm7643_vm5 = vmpackc.low %vm3525_vm4, %vm3524_vm2  ;;  %vm646_vm6 = vcmp.eq.s32.totalorder %v472_v22, %v9281_v38  ;;  %v10974_v25 = vadd.f32 %v3970_v49, %v2530_v31  ;;  %4909 = vperm.xlu1 %8372, %v4643_v15   ;;  %v8064_v1 = vpop.f32.mrf.mxu1  ;;  %8159 = vmatmul.mubr.msk.bf16.gmra.mxu1 %vm7381_vm3, %v13937_v8 }
 0x34e   :  { %vm7383_vm7 = vmpackc.low %vm647_vm1, %vm646_vm6  ;;  %v8205_v12 = vpop.f32.mrf.mxu0  ;;  %8302 = vmatprep.mubr.msk.bf16.mxu0 %vm7643_vm5, %v13937_v8  ;;  %v2554_v31 = vadd.f32 %v8064_v1, %v9853_v61  ;;  %v14042_v61 = vld [vmem:[#allocation61_spill] sm:$0xff] }
 0x34f   :  { %14039 = vst [vmem:[#allocation59_spill] sm:$0xff] %v10974_v25  ;;  %8162 = vmatprep.mubr.msk.bf16.mxu1 %vm7383_vm7, %v13937_v8  ;;  %v10989_v49 = vadd.f32 %v8205_v12, %v2541_v30  ;;  %v3351_v18 = vpop.permute.xlu1 %3350  ;;  %v2545_v29 = vpop.f32.mrf.mxu1  ;;  %vm649_vm12 = vcmp.eq.s32.totalorder %v14042_v61, %v9281_v38  ;;  %v14046_v61 = vld [vmem:[#allocation62_spill] sm:$0xff] }
 0x350   :  { %vm3527_vm9 = vcmp.eq.s32.totalorder %v3351_v18, %v9281_v38  ;;  %v478_v22 = vpop.permute.xlu0 %477  ;;  %v3973_v15 = vpop.f32.mrf.mxu0  ;;  %4944 = vperm.xlu0 %8371, %v4650_v13   ;;  %v2546_v30 = vadd.f32 %v2545_v29, %v9861_v19 }
 0x351   :  { %14040 = vst [vmem:[#allocation111_spill] sm:$0xff] %v10989_v49  ;;  %vm7645_vm10 = vmpackc.low %vm3527_vm9, %vm3526_vm8  ;;  %vm648_vm11 = vcmp.eq.s32.totalorder %v478_v22, %v9281_v38  ;;  %v10996_v58 = vadd.f32 %v3973_v15, %v2533_v5  ;;  %4919 = vperm.xlu1 %8372, %v4645_v28   ;;  %v8065_v40 = vpop.f32.mrf.mxu1  ;;  %v14044_v28 = vld [vmem:[#allocation63_spill] sm:$0xff]  ;;  %v14045_v5 = vld [vmem:[#allocation56_spill] sm:$0xff] }
 0x352   :  { %v8208_v7 = vpop.f32.mrf.mxu0  ;;  %8303 = vmatmul.mubr.msk.bf16.gmra.mxu0 %vm7645_vm10, %v13937_v8  ;;  %vm651_vm13 = vcmp.eq.s32.totalorder %v14044_v28, %v9281_v38  ;;  %vm3528_vm14 = vcmp.eq.s32.totalorder %v14045_v5, %v9281_v38  ;;  %vm7385_vm15 = vmpackc.low %vm649_vm12, %vm648_vm11  ;;  %v2557_v19 = vadd.f32 %v8065_v40, %v14046_v61  ;;  %v4654_v22 = vld [vmem:[%s13639_s1 + $0x168] sm:$0xff]  ;;  %v4649_v40 = vld [vmem:[%s13639_s1 + $0x140] sm:$0xff] }
 0x353   :  { %14041 = vst [vmem:[#allocation112_spill] sm:$0xff] %v10996_v58  ;;  %v11008_v1 = vadd.f32 %v8208_v7, %v2554_v31  ;;  %v3357_v13 = vpop.permute.xlu1 %3356  ;;  %v2548_v12 = vpop.f32.mrf.mxu1  ;;  %v14048_v7 = vld [vmem:[#allocation64_spill] sm:$0xff]  ;;  %v14051_v61 = vld [vmem:[#allocation66_spill] sm:$0xff] }
 0x354   :  { %vm3529_vm0 = vcmp.eq.s32.totalorder %v3357_v13, %v9281_v38  ;;  %v484_v18 = vpop.permute.xlu0 %483  ;;  %v3986_v15 = vpop.f32.mrf.mxu0  ;;  %4954 = vperm.xlu0 %8371, %v4652_v32  }
 0x355   :  { %14043 = vst [vmem:[#allocation61_spill] sm:$0xff] %v11008_v1  ;;  %vm7647_vm1 = vmpackc.low %vm3529_vm0, %vm3528_vm14  ;;  %vm650_vm2 = vcmp.eq.s32.totalorder %v484_v18, %v9281_v38  ;;  %v11019_v29 = vadd.f32 %v3986_v15, %v2546_v30  ;;  %4929 = vperm.xlu1 %8372, %v4647_v62   ;;  %v8068_v31 = vpop.f32.mrf.mxu1  ;;  %8163 = vmatmul.mubr.msk.bf16.gmra.mxu1 %vm7385_vm15, %v13937_v8  ;;  %v14050_v18 = vld [vmem:[#allocation58_spill] sm:$0xff] }
 0x356   :  { %vm7387_vm3 = vmpackc.low %vm651_vm13, %vm650_vm2  ;;  %v8209_v32 = vpop.f32.mrf.mxu0  ;;  %8306 = vmatprep.mubr.msk.bf16.mxu0 %vm7647_vm1, %v13937_v8  ;;  %v2549_v62 = vadd.f32 %v2548_v12, %v14048_v7  ;;  %vm3530_vm4 = vcmp.eq.s32.totalorder %v14050_v18, %v9281_v38  ;;  %v2570_v1 = vadd.f32 %v8068_v31, %v14051_v61  ;;  %v14053_v31 = vld [vmem:[#allocation65_spill] sm:$0xff]  ;;  %v14056_v61 = vld [vmem:[#allocation67_spill] sm:$0xff] }
 0x357   :  { %14047 = vst [vmem:[#allocation63_spill] sm:$0xff] %v11019_v29  ;;  %8166 = vmatprep.mubr.msk.bf16.mxu1 %vm7387_vm3, %v13937_v8  ;;  %v11034_v30 = vadd.f32 %v8209_v32, %v2557_v19  ;;  %v3363_v13 = vpop.permute.xlu1 %3362  ;;  %v2561_v5 = vpop.f32.mrf.mxu1  ;;  %v4656_v32 = vld [vmem:[%s13639_s1 + $0x178] sm:$0xff]  ;;  %vm653_vm8 = vcmp.eq.s32.totalorder %v14053_v31, %v9281_v38  ;;  %vm655_vm9 = vcmp.eq.s32.totalorder %v14056_v61, %v9281_v38  ;;  %v14058_v31 = vld [vmem:[#allocation70_spill] sm:$0xff] }
 0x358   :  { %vm3531_vm5 = vcmp.eq.s32.totalorder %v3363_v13, %v9281_v38  ;;  %v490_v28 = vpop.permute.xlu0 %489  ;;  %v3989_v15 = vpop.f32.mrf.mxu0  ;;  %4964 = vperm.xlu0 %8371, %v4654_v22   ;;  %v4651_v22 = vld [vmem:[%s13639_s1 + $0x150] sm:$0xff]  ;;  %v14054_v13 = vld [vmem:[#allocation68_spill] sm:$0xff] }
 0x359   :  { %14049 = vst [vmem:[#allocation56_spill] sm:$0xff] %v11034_v30  ;;  %vm7649_vm6 = vmpackc.low %vm3531_vm5, %vm3530_vm4  ;;  %vm652_vm7 = vcmp.eq.s32.totalorder %v490_v28, %v9281_v38  ;;  %v11041_v12 = vadd.f32 %v3989_v15, %v2549_v62  ;;  %4939 = vperm.xlu1 %8372, %v4649_v40   ;;  %v8069_v19 = vpop.f32.mrf.mxu1  ;;  %v2562_v18 = vadd.f32 %v2561_v5, %v14054_v13  ;;  %v14057_v30 = vld [vmem:[#allocation60_spill] sm:$0xff] }
 0x35a   :  { %v8212_v7 = vpop.f32.mrf.mxu0  ;;  %8307 = vmatmul.mubr.msk.bf16.gmra.mxu0 %vm7649_vm6, %v13937_v8  ;;  %vm3532_vm10 = vcmp.eq.s32.totalorder %v14057_v30, %v9281_v38  ;;  %vm7389_vm11 = vmpackc.low %vm653_vm8, %vm652_vm7  ;;  %v2573_v5 = vadd.f32 %v8069_v19, %v14058_v31  ;;  %v4658_v30 = vld [vmem:[%s13639_s1 + $0x188] sm:$0xff]  ;;  %v14063_v31 = vld [vmem:[#allocation74_spill] sm:$0xff] }
 0x35b   :  { %14052 = vst [vmem:[#allocation62_spill] sm:$0xff] %v11041_v12  ;;  %v11053_v62 = vadd.f32 %v8212_v7, %v2570_v1  ;;  %v3369_v40 = vpop.permute.xlu1 %3368  ;;  %v2564_v15 = vpop.f32.mrf.mxu1 }
 0x35c   :  { %vm3533_vm12 = vcmp.eq.s32.totalorder %v3369_v40, %v9281_v38  ;;  %v496_v12 = vpop.permute.xlu0 %495  ;;  %v4002_v29 = vpop.f32.mrf.mxu0  ;;  %4974 = vperm.xlu0 %8371, %v4656_v32  }
 0x35d   :  { %14055 = vst [vmem:[#allocation64_spill] sm:$0xff] %v11053_v62  ;;  %vm7651_vm13 = vmpackc.low %vm3533_vm12, %vm3532_vm10  ;;  %vm654_vm14 = vcmp.eq.s32.totalorder %v496_v12, %v9281_v38  ;;  %v11064_v1 = vadd.f32 %v4002_v29, %v2562_v18  ;;  %4949 = vperm.xlu1 %8372, %v4651_v22   ;;  %v8072_v7 = vpop.f32.mrf.mxu1  ;;  %8167 = vmatmul.mubr.msk.bf16.gmra.mxu1 %vm7389_vm11, %v13937_v8  ;;  %v4653_v29 = vld [vmem:[%s13639_s1 + $0x160] sm:$0xff]  ;;  %v14062_v18 = vld [vmem:[#allocation86_spill] sm:$0xff] }
 0x35e   :  { %vm7391_vm15 = vmpackc.low %vm655_vm9, %vm654_vm14  ;;  %v8213_v28 = vpop.f32.mrf.mxu0  ;;  %8310 = vmatprep.mubr.msk.bf16.mxu0 %vm7651_vm13, %v13937_v8  ;;  %v14060_v12 = vld [vmem:[#allocation72_spill] sm:$0xff]  ;;  %vm3534_vm0 = vcmp.eq.s32.totalorder %v14062_v18, %v9281_v38  ;;  %v2586_v62 = vadd.f32 %v8072_v7, %v14063_v31  ;;  %v14065_v7 = vld [vmem:[#allocation69_spill] sm:$0xff] }
 0x35f   :  { %14059 = vst [vmem:[#allocation58_spill] sm:$0xff] %v11064_v1  ;;  %v2565_v19 = vadd.f32 %v2564_v15, %v14060_v12  ;;  %8170 = vmatprep.mubr.msk.bf16.mxu1 %vm7391_vm15, %v13937_v8  ;;  %v11079_v32 = vadd.f32 %v8213_v28, %v2573_v5  ;;  %v3375_v22 = vpop.permute.xlu1 %3374  ;;  %v2577_v13 = vpop.f32.mrf.mxu1  ;;  %v4660_v28 = vld [vmem:[%s13639_s1 + $0x198] sm:$0xff]  ;;  %vm657_vm4 = vcmp.eq.s32.totalorder %v14065_v7, %v9281_v38  ;;  %v14073_v7 = vld [vmem:[#allocation88_spill] sm:$0xff] }
 0x360   :  { %vm3535_vm1 = vcmp.eq.s32.totalorder %v3375_v22, %v9281_v38  ;;  %v502_v40 = vpop.permute.xlu0 %501  ;;  %v4005_v61 = vpop.f32.mrf.mxu0  ;;  %4984 = vperm.xlu0 %8371, %v4658_v30   ;;  %v4655_v30 = vld [vmem:[%s13639_s1 + $0x170] sm:$0xff]  ;;  %v14066_v22 = vld [vmem:[#allocation76_spill] sm:$0xff]  ;;  %v14068_v31 = vld [vmem:[#allocation71_spill] sm:$0xff]  ;;  %vm3538_vm12 = vcmp.eq.s32.totalorder %v14073_v7, %v9281_v38 }
 0x361   :  { %14061 = vst [vmem:[#allocation66_spill] sm:$0xff] %v11079_v32  ;;  %vm7653_vm2 = vmpackc.low %vm3535_vm1, %vm3534_vm0  ;;  %vm656_vm3 = vcmp.eq.s32.totalorder %v502_v40, %v9281_v38  ;;  %v11086_v15 = vadd.f32 %v4005_v61, %v2565_v19  ;;  %4959 = vperm.xlu1 %8372, %v4653_v29   ;;  %v8073_v5 = vpop.f32.mrf.mxu1  ;;  %v2578_v18 = vadd.f32 %v2577_v13, %v14066_v22  ;;  %v14069_v32 = vld [vmem:[#allocation87_spill] sm:$0xff] }
 0x362   :  { %v8216_v12 = vpop.f32.mrf.mxu0  ;;  %8311 = vmatmul.mubr.msk.bf16.gmra.mxu0 %vm7653_vm2, %v13937_v8  ;;  %vm659_vm5 = vcmp.eq.s32.totalorder %v14068_v31, %v9281_v38  ;;  %vm3536_vm6 = vcmp.eq.s32.totalorder %v14069_v32, %v9281_v38  ;;  %vm7393_vm7 = vmpackc.low %vm657_vm4, %vm656_vm3  ;;  %v2589_v13 = vadd.f32 %v8073_v5, %v9987_v52  ;;  %v4662_v32 = vld [vmem:[%s13639_s1 + $0x1a8] sm:$0xff]  ;;  %v4657_v52 = vld [vmem:[%s13639_s1 + $0x180] sm:$0xff] }
 0x363   :  { %14064 = vst [vmem:[#allocation65_spill] sm:$0xff] %v11086_v15  ;;  %v11098_v19 = vadd.f32 %v8216_v12, %v2586_v62  ;;  %v3381_v29 = vpop.permute.xlu1 %3380  ;;  %v2580_v61 = vpop.f32.mrf.mxu1 }
 0x364   :  { %vm3537_vm8 = vcmp.eq.s32.totalorder %v3381_v29, %v9281_v38  ;;  %v508_v15 = vpop.permute.xlu0 %507  ;;  %v4018_v1 = vpop.f32.mrf.mxu0  ;;  %4994 = vperm.xlu0 %8371, %v4660_v28   ;;  %v14074_v29 = vld [vmem:[#allocation82_spill] sm:$0xff] }
 0x365   :  { %14067 = vst [vmem:[#allocation68_spill] sm:$0xff] %v11098_v19  ;;  %vm7655_vm9 = vmpackc.low %vm3537_vm8, %vm3536_vm6  ;;  %vm658_vm10 = vcmp.eq.s32.totalorder %v508_v15, %v9281_v38  ;;  %v11109_v62 = vadd.f32 %v4018_v1, %v2578_v18  ;;  %4969 = vperm.xlu1 %8372, %v4655_v30   ;;  %v8076_v12 = vpop.f32.mrf.mxu1  ;;  %8171 = vmatmul.mubr.msk.bf16.gmra.mxu1 %vm7393_vm7, %v13937_v8  ;;  %v14071_v1 = vld [vmem:[#allocation80_spill] sm:$0xff] }
 0x366   :  { %vm7395_vm11 = vmpackc.low %vm659_vm5, %vm658_vm10  ;;  %v8217_v40 = vpop.f32.mrf.mxu0  ;;  %8314 = vmatprep.mubr.msk.bf16.mxu0 %vm7655_vm9, %v13937_v8  ;;  %v2581_v15 = vadd.f32 %v2580_v61, %v14071_v1  ;;  %v2602_v31 = vadd.f32 %v8076_v12, %v14074_v29  ;;  %v14076_v12 = vld [vmem:[#allocation73_spill] sm:$0xff]  ;;  %v14080_v29 = vld [vmem:[#allocation75_spill] sm:$0xff] }
 0x367   :  { %14070 = vst [vmem:[#allocation67_spill] sm:$0xff] %v11109_v62  ;;  %8174 = vmatprep.mubr.msk.bf16.mxu1 %vm7395_vm11, %v13937_v8  ;;  %v11124_v5 = vadd.f32 %v8217_v40, %v2589_v13  ;;  %v3387_v28 = vpop.permute.xlu1 %3386  ;;  %v2593_v30 = vpop.f32.mrf.mxu1  ;;  %v4664_v40 = vld [vmem:[%s13639_s1 + $0x1b8] sm:$0xff]  ;;  %vm661_vm0 = vcmp.eq.s32.totalorder %v14076_v12, %v9281_v38  ;;  %vm663_vm1 = vcmp.eq.s32.totalorder %v14080_v29, %v9281_v38 }
 0x368   :  { %vm3539_vm13 = vcmp.eq.s32.totalorder %v3387_v28, %v9281_v38  ;;  %v514_v22 = vpop.permute.xlu0 %513  ;;  %v4021_v18 = vpop.f32.mrf.mxu0  ;;  %5004 = vperm.xlu0 %8371, %v4662_v32   ;;  %v4659_v32 = vld [vmem:[%s13639_s1 + $0x190] sm:$0xff] }
 0x369   :  { %14072 = vst [vmem:[#allocation60_spill] sm:$0xff] %v11124_v5  ;;  %vm7657_vm14 = vmpackc.low %vm3539_vm13, %vm3538_vm12  ;;  %vm660_vm15 = vcmp.eq.s32.totalorder %v514_v22, %v9281_v38  ;;  %v11131_v61 = vadd.f32 %v4021_v18, %v2581_v15  ;;  %4979 = vperm.xlu1 %8372, %v4657_v52   ;;  %v8077_v13 = vpop.f32.mrf.mxu1  ;;  %v14077_v28 = vld [vmem:[#allocation94_spill] sm:$0xff]  ;;  %v14081_v5 = vld [vmem:[#allocation89_spill] sm:$0xff] }
 0x36a   :  { %v8220_v1 = vpop.f32.mrf.mxu0  ;;  %8315 = vmatmul.mubr.msk.bf16.gmra.mxu0 %vm7657_vm14, %v13937_v8  ;;  %v2594_v7 = vadd.f32 %v2593_v30, %v14077_v28  ;;  %vm3540_vm2 = vcmp.eq.s32.totalorder %v14081_v5, %v9281_v38  ;;  %vm7397_vm3 = vmpackc.low %vm661_vm0, %vm660_vm15  ;;  %v14082_v30 = vld [vmem:[#allocation6_spill] sm:$0xff]  ;;  %v4666_v5 = vld [vmem:[%s13639_s1 + $0x1c8] sm:$0xff] }
 0x36b   :  { %14075 = vst [vmem:[#allocation70_spill] sm:$0xff] %v11131_v61  ;;  %v11143_v15 = vadd.f32 %v8220_v1, %v2602_v31  ;;  %v3393_v52 = vpop.permute.xlu1 %3392  ;;  %v11145_v18 = vpop.f32.mrf.mxu1  ;;  %v2605_v31 = vadd.f32 %v8077_v13, %v14082_v30  ;;  %v14090_v61 = vld [vmem:[#allocation91_spill] sm:$0xff] }
 0x36c   :  { %14079 = vst [vmem:[#allocation86_spill] sm:$0xff] %v11145_v18  ;;  %vm3541_vm4 = vcmp.eq.s32.totalorder %v3393_v52, %v9281_v38  ;;  %v520_v19 = vpop.permute.xlu0 %519  ;;  %v4034_v12 = vpop.f32.mrf.mxu0  ;;  %5014 = vperm.xlu0 %8371, %v4664_v40   ;;  %vm3544_vm14 = vcmp.eq.s32.totalorder %v14090_v61, %v9281_v38  ;;  %v4670_v61 = vld [vmem:[%s13639_s1 + $0x1e8] sm:$0xff] }
 0x36d   :  { %14078 = vst [vmem:[#allocation72_spill] sm:$0xff] %v11143_v15  ;;  %vm7659_vm5 = vmpackc.low %vm3541_vm4, %vm3540_vm2  ;;  %vm662_vm6 = vcmp.eq.s32.totalorder %v520_v19, %v9281_v38  ;;  %v11156_v1 = vadd.f32 %v4034_v12, %v2594_v7  ;;  %4989 = vperm.xlu1 %8372, %v4659_v32   ;;  %v8080_v28 = vpop.f32.mrf.mxu1  ;;  %8175 = vmatmul.mubr.msk.bf16.gmra.mxu1 %vm7397_vm3, %v13937_v8  ;;  %v4661_v19 = vld [vmem:[%s13639_s1 + $0x1a0] sm:$0xff]  ;;  %v14085_v7 = vld [vmem:[#allocation90_spill] sm:$0xff] }
 0x36e   :  { %vm7399_vm7 = vmpackc.low %vm663_vm1, %vm662_vm6  ;;  %v8221_v22 = vpop.f32.mrf.mxu0  ;;  %8318 = vmatprep.mubr.msk.bf16.mxu0 %vm7659_vm5, %v13937_v8  ;;  %vm3542_vm8 = vcmp.eq.s32.totalorder %v14085_v7, %v9281_v38  ;;  %v2618_v12 = vadd.f32 %v8080_v28, %v10070_v10 }
 0x36f   :  { %14083 = vst [vmem:[#allocation74_spill] sm:$0xff] %v11156_v1  ;;  %8178 = vmatprep.mubr.msk.bf16.mxu1 %vm7399_vm7, %v13937_v8  ;;  %v11170_v13 = vadd.f32 %v8221_v22, %v2605_v31  ;;  %v3399_v40 = vpop.permute.xlu1 %3398  ;;  %v2609_v32 = vpop.f32.mrf.mxu1  ;;  %v4668_v31 = vld [vmem:[%s13639_s1 + $0x1d8] sm:$0xff] }
 0x370   :  { %vm3543_vm9 = vcmp.eq.s32.totalorder %v3399_v40, %v9281_v38  ;;  %v526_v52 = vpop.permute.xlu0 %525  ;;  %v11175_v29 = vpop.f32.mrf.mxu0  ;;  %5024 = vperm.xlu0 %8371, %v4666_v5   ;;  %v4663_v40 = vld [vmem:[%s13639_s1 + $0x1b0] sm:$0xff]  ;;  %v14087_v5 = vld [vmem:[#allocation77_spill] sm:$0xff]  ;;  %v2610_v10 = vadd.f32 %v2609_v32, %v10087_v50 }
 0x371   :  { %14084 = vst [vmem:[#allocation69_spill] sm:$0xff] %v11170_v13  ;;  %14086 = vst [vmem:[#allocation76_spill] sm:$0xff] %v11175_v29  ;;  %vm664_vm11 = vcmp.eq.s32.totalorder %v526_v52, %v9281_v38  ;;  %4999 = vperm.xlu1 %8372, %v4661_v19   ;;  %v8081_v30 = vpop.f32.mrf.mxu1  ;;  %vm665_vm12 = vcmp.eq.s32.totalorder %v14087_v5, %v9281_v38  ;;  %v14089_v52 = vld [vmem:[#allocation79_spill] sm:$0xff] }
 0x372   :  { %vm7661_vm10 = vmpackc.low %vm3543_vm9, %vm3542_vm8  ;;  %v8224_v22 = vpop.f32.mrf.mxu0  ;;  %vm667_vm13 = vcmp.eq.s32.totalorder %v14089_v52, %v9281_v38  ;;  %v2621_v5 = vadd.f32 %v8081_v30, %v10102_v44  ;;  %v4665_v44 = vld [vmem:[%s13639_s1 + $0x1c0] sm:$0xff]  ;;  %v4672_v52 = vld [vmem:[%s13639_s1 + $0x1f8] sm:$0xff] }
 0x373   :  { %8319 = vmatmul.mubr.msk.bf16.gmra.mxu0 %vm7661_vm10, %v13937_v8  ;;  %v11189_v28 = vadd.f32 %v8224_v22, %v2618_v12  ;;  %v3405_v19 = vpop.permute.xlu1 %3404  ;;  %v2612_v7 = vpop.f32.mrf.mxu1  ;;  %vm7401_vm15 = vmpackc.low %vm665_vm12, %vm664_vm11  ;;  %v14093_v22 = vld [vmem:[#allocation92_spill] sm:$0xff] }
 0x374   :  { %vm3545_vm0 = vcmp.eq.s32.totalorder %v3405_v19, %v9281_v38  ;;  %v532_v62 = vpop.permute.xlu0 %531  ;;  %v4050_v49 = vpop.f32.mrf.mxu0  ;;  %5034 = vperm.xlu0 %8371, %v4668_v31   ;;  %vm3546_vm4 = vcmp.eq.s32.totalorder %v14093_v22, %v9281_v38 }
 0x375   :  { %14088 = vst [vmem:[#allocation71_spill] sm:$0xff] %v11189_v28  ;;  %vm7663_vm1 = vmpackc.low %vm3545_vm0, %vm3544_vm14  ;;  %vm666_vm2 = vcmp.eq.s32.totalorder %v532_v62, %v9281_v38  ;;  %v11198_v50 = vadd.f32 %v4050_v49, %v2610_v10  ;;  %5009 = vperm.xlu1 %8372, %v4663_v40   ;;  %v8084_v32 = vpop.f32.mrf.mxu1  ;;  %8179 = vmatmul.mubr.msk.bf16.gmra.mxu1 %vm7401_vm15, %v13937_v8  ;;  %vm5505_vm0 = vcmask 261120  }
 0x376   :  { %vm7403_vm3 = vmpackc.low %vm667_vm13, %vm666_vm2  ;;  %v8225_v12 = vpop.f32.mrf.mxu0  ;;  %8322 = vmatprep.mubr.msk.bf16.mxu0 %vm7663_vm1, %v13937_v8  ;;  %v2613_v49 = vadd.f32 %v2612_v7, %v10119_v59  ;;  %v2634_v19 = vadd.f32 %v8084_v32, %v10134_v47  ;;  %v14095_v47 = vld [vmem:[#allocation81_spill] sm:$0xff]  ;;  %vm6746_vm1 = vcmask 1041409   ;;  %vm6748_vm2 = vcmask 1042434  }
 0x377   :  { %14091 = vst [vmem:[#allocation87_spill] sm:$0xff] %v11198_v50  ;;  %8182 = vmatprep.mubr.msk.bf16.mxu1 %vm7403_vm3, %v13937_v8  ;;  %v11213_v62 = vadd.f32 %v8225_v12, %v2621_v5  ;;  %v3411_v30 = vpop.permute.xlu1 %3410  ;;  %v2625_v31 = vpop.f32.mrf.mxu1  ;;  %vm669_vm8 = vcmp.eq.s32.totalorder %v14095_v47, %v9281_v38  ;;  %vm6750_vm3 = vcmask 1043459  }
 0x378   :  { %vm3547_vm5 = vcmp.eq.s32.totalorder %v3411_v30, %v9281_v38  ;;  %v538_v40 = vpop.permute.xlu0 %537  ;;  %v4053_v10 = vpop.f32.mrf.mxu0  ;;  %5044 = vperm.xlu0 %8371, %v4670_v61   ;;  %v4667_v61 = vld [vmem:[%s13639_s1 + $0x1d0] sm:$0xff]  ;;  %v2626_v32 = vadd.f32 %v2625_v31, %v10151_v34  ;;  %v14097_v30 = vld [vmem:[#allocation93_spill] sm:$0xff] }
 0x379   :  { %14092 = vst [vmem:[#allocation80_spill] sm:$0xff] %v11213_v62  ;;  %vm7665_vm6 = vmpackc.low %vm3547_vm5, %vm3546_vm4  ;;  %vm668_vm7 = vcmp.eq.s32.totalorder %v538_v40, %v9281_v38  ;;  %v11220_v59 = vadd.f32 %v4053_v10, %v2613_v49  ;;  %5019 = vperm.xlu1 %8372, %v4665_v44   ;;  %v8085_v7 = vpop.f32.mrf.mxu1  ;;  %vm3548_vm9 = vcmp.eq.s32.totalorder %v14097_v30, %v9281_v38  ;;  %v4674_v31 = vld [vmem:[%s13639_s1 + $0x208] sm:$0xff]  ;;  %vm6752_vm4 = vcmask 1044484  }
 0x37a   :  { %v8228_v5 = vpop.f32.mrf.mxu0  ;;  %vm7405_vm10 = vmpackc.low %vm669_vm8, %vm668_vm7  ;;  %v2637_v10 = vadd.f32 %v8085_v7, %v10166_v16  ;;  %vm6754_vm5 = vcmask 1045509   ;;  %vm6756_vm7 = vcmask 1046534   ;;  %vm6758_vm8 = vcmask 1047559  }
 0x37b   :  { %14094 = vst [vmem:[#allocation88_spill] sm:$0xff] %v11220_v59  ;;  %8323 = vmatmul.mubr.msk.bf16.gmra.mxu0 %vm7665_vm6, %v13937_v8  ;;  %v11232_v12 = vadd.f32 %v8228_v5, %v2634_v19  ;;  %v3417_v44 = vpop.permute.xlu1 %3416  ;;  %v2628_v49 = vpop.f32.mrf.mxu1  ;;  %vm8639_vm6 = vmmov 0  }
 0x37c   :  { %vm3549_vm11 = vcmp.eq.s32.totalorder %v3417_v44, %v9281_v38  ;;  %v11237_v22 = vpop.permute.xlu0 %4739  ;;  %v4066_v40 = vpop.f32.mrf.mxu0  ;;  %5054 = vperm.xlu0 %8371, %v4672_v52   ;;  %v4669_v52 = vld [vmem:[%s13639_s1 + $0x1e0] sm:$0xff]  ;;  %v2629_v16 = vadd.f32 %v2628_v49, %v10183_v41  ;;  %v4676_v49 = vld [vmem:[%s13639_s1 + $0x218] sm:$0xff] }
 0x37d   :  { %14096 = vst [vmem:[#allocation82_spill] sm:$0xff] %v11232_v12  ;;  %14098 = vst [vmem:[#allocation73_spill] sm:$0xff] %v11237_v22  ;;  %v11240_v47 = vadd.f32 %v4066_v40, %v2626_v32  ;;  %5029 = vperm.xlu1 %8372, %v4667_v61   ;;  %v8088_v34 = vpop.f32.mrf.mxu1  ;;  %8183 = vmatmul.mubr.msk.bf16.gmra.mxu1 %vm7405_vm10, %v13937_v8  ;;  %v14101_v32 = vld [vmem:[#allocation78_spill] sm:$0xff] }
 0x37e   :  { %vm7667_vm12 = vmpackc.low %vm3549_vm11, %vm3548_vm9  ;;  %v8229_v19 = vpop.f32.mrf.mxu0  ;;  %vm3550_vm13 = vcmp.eq.s32.totalorder %v14101_v32, %v9281_v38  ;;  %v2650_v40 = vadd.f32 %v8088_v34, %v10198_v36  ;;  %vm6820_vm9 = vcmask 523264  }
 0x37f   :  { %14099 = vst [vmem:[#allocation94_spill] sm:$0xff] %v11240_v47  ;;  %8326 = vmatprep.mubr.msk.bf16.mxu0 %vm7667_vm12, %v13937_v8  ;;  %v11251_v7 = vadd.f32 %v8229_v19, %v2637_v10  ;;  %v3423_v5 = vpop.permute.xlu1 %3422  ;;  %v2641_v61 = vpop.f32.mrf.mxu1 }
 0x380   :  { %vm3551_vm14 = vcmp.eq.s32.totalorder %v3423_v5, %v9281_v38  ;;  %v11256_v44 = vpop.permute.xlu0 %4754  ;;  %v4069_v30 = vpop.f32.mrf.mxu0  ;;  %5064 = vperm.xlu0 %8371, %v4674_v31   ;;  %v4671_v38 = vld [vmem:[%s13639_s1 + $0x1f0] sm:$0xff]  ;;  %v2642_v36 = vadd.f32 %v2641_v61, %v10215_v0  ;;  %v11284_v0 = vld [vmem:[%s13639_s1 + $0x200] sm:$0xff] }
 0x381   :  { %14100 = vst [vmem:[#allocation75_spill] sm:$0xff] %v11251_v7  ;;  %14102 = vst [vmem:[#allocation89_spill] sm:$0xff] %v11256_v44  ;;  %v11259_v22 = vadd.f32 %v4069_v30, %v2629_v16  ;;  %5039 = vperm.xlu1 %8372, %v4669_v52   ;;  %v8089_v41 = vpop.f32.mrf.mxu1 }
 0x382   :  { %vm7669_vm15 = vmpackc.low %vm3551_vm14, %vm3550_vm13  ;;  %v8232_v10 = vpop.f32.mrf.mxu0  ;;  %v2653_v32 = vadd.f32 %v8089_v41, %v10230_v42  ;;  %v4680_v41 = vld [vmem:[%s13639_s1 + $0x238] sm:$0xff] }
 0x383   :  { %14103 = vst [vmem:[#allocation6_spill] sm:$0xff] %v11259_v22  ;;  %8327 = vmatmul.mubr.msk.bf16.gmra.mxu0 %vm7669_vm15, %v13937_v8  ;;  %v11268_v19 = vadd.f32 %v8232_v10, %v2650_v40  ;;  %v2644_v31 = vpop.f32.mrf.mxu1  ;;  %v4678_v8 = vld [vmem:[%s13639_s1 + $0x228] sm:$0xff] }
 0x384   :  { %v11271_v34 = vpop.permute.xlu0 %4764  ;;  %v11273_v52 = vpop.permute.xlu1 %4744  ;;  %5074 = vperm.xlu0 %8371, %v4676_v49   ;;  %v2645_v49 = vadd.f32 %v2644_v31, %v10247_v39  ;;  %v4675_v39 = vld [vmem:[%s13639_s1 + $0x210] sm:$0xff] }
 0x385   :  { %14104 = vst [vmem:[#allocation90_spill] sm:$0xff] %v11268_v19  ;;  %14105 = vst [vmem:[#allocation77_spill] sm:$0xff] %v11271_v34  ;;  %v4082_v16 = vpop.f32.mrf.mxu0  ;;  %5049 = vperm.xlu1 %8372, %v4671_v38   ;;  %v8092_v5 = vpop.f32.mrf.mxu1 }
 0x386   :  { %14106 = vst [vmem:[#allocation79_spill] sm:$0xff] %v11273_v52  ;;  %v11279_v30 = vadd.f32 %v4082_v16, %v2642_v36  ;;  %v2666_v36 = vadd.f32 %v8092_v5, %v10262_v48 }
 0x387   :  { %v8233_v61 = vpop.f32.mrf.mxu0  ;;  %v2657_v40 = vpop.f32.mrf.mxu1 }
 0x388   :  { %14107 = vst [vmem:[#allocation91_spill] sm:$0xff] %v11279_v30  ;;  %v11287_v10 = vadd.f32 %v8233_v61, %v2653_v32  ;;  %v11289_v38 = vpop.permute.xlu0 %4774  ;;  %v11291_v34 = vpop.permute.xlu1 %4749  ;;  %5084 = vperm.xlu0 %8371, %v4678_v8   ;;  %v2658_v8 = vadd.f32 %v2657_v40, %v10279_v45  ;;  %v4677_v45 = vld [vmem:[%s13639_s1 + $0x220] sm:$0xff] }
 0x389   :  { %14109 = vst [vmem:[#allocation81_spill] sm:$0xff] %v11289_v38  ;;  %14110 = vst [vmem:[#allocation93_spill] sm:$0xff] %v11291_v34  ;;  %v4085_v44 = vpop.f32.mrf.mxu0  ;;  %5059 = vperm.xlu1 %8372, %v11284_v0   ;;  %v8093_v42 = vpop.f32.mrf.mxu1 }
 0x38a   :  { %14108 = vst [vmem:[#allocation92_spill] sm:$0xff] %v11287_v10  ;;  %v11298_v16 = vadd.f32 %v4085_v44, %v2645_v49  ;;  %v4682_v44 = vld [vmem:[%s13639_s1 + $0x248] sm:$0xff]  ;;  %v2669_v5 = vadd.f32 %v8093_v42, %v10294_v54 }
 0x38b   :  { %v8236_v31 = vpop.f32.mrf.mxu0  ;;  %v2660_v32 = vpop.f32.mrf.mxu1 }
 0x38c   :  { %14111 = vst [vmem:[#allocation78_spill] sm:$0xff] %v11298_v16  ;;  %v11304_v61 = vadd.f32 %v8236_v31, %v2666_v36  ;;  %v11306_v38 = vpop.permute.xlu0 %4784  ;;  %v11308_v10 = vpop.permute.xlu1 %4759  ;;  %5094 = vperm.xlu0 %8371, %v4680_v41   ;;  %v2661_v31 = vadd.f32 %v2660_v32, %v10311_v51  ;;  %v4679_v51 = vld [vmem:[%s13639_s1 + $0x230] sm:$0xff] }
 0x38d   :  { %14113 = vst [vmem:[#allocation114_spill] sm:$0xff] %v11306_v38  ;;  %14114 = vst [vmem:[#allocation115_spill] sm:$0xff] %v11308_v10  ;;  %v4098_v19 = vpop.f32.mrf.mxu0  ;;  %5069 = vperm.xlu1 %8372, %v4675_v39   ;;  %v8096_v48 = vpop.f32.mrf.mxu1 }
 0x38e   :  { %14112 = vst [vmem:[#allocation113_spill] sm:$0xff] %v11304_v61  ;;  %v11314_v49 = vadd.f32 %v4098_v19, %v2658_v8  ;;  %v4684_v19 = vld [vmem:[%s13639_s1 + $0x258] sm:$0xff]  ;;  %v2682_v42 = vadd.f32 %v8096_v48, %v10326_v60 }
 0x38f   :  { %v8237_v40 = vpop.f32.mrf.mxu0  ;;  %v2673_v36 = vpop.f32.mrf.mxu1 }
 0x390   :  { %14115 = vst [vmem:[#allocation116_spill] sm:$0xff] %v11314_v49  ;;  %v11320_v41 = vadd.f32 %v8237_v40, %v2669_v5  ;;  %v11322_v39 = vpop.permute.xlu0 %4794  ;;  %v11324_v38 = vpop.permute.xlu1 %4769  ;;  %5104 = vperm.xlu0 %8371, %v4682_v44   ;;  %v2674_v40 = vadd.f32 %v2673_v36, %v10347_v53  ;;  %v4681_v53 = vld [vmem:[%s13639_s1 + $0x240] sm:$0xff] }
 0x391   :  { %14117 = vst [vmem:[#allocation118_spill] sm:$0xff] %v11322_v39  ;;  %14118 = vst [vmem:[#allocation119_spill] sm:$0xff] %v11324_v38  ;;  %v4101_v10 = vpop.f32.mrf.mxu0  ;;  %5079 = vperm.xlu1 %8372, %v4677_v45   ;;  %v8097_v54 = vpop.f32.mrf.mxu1 }
 0x392   :  { %14116 = vst [vmem:[#allocation117_spill] sm:$0xff] %v11320_v41  ;;  %v11330_v8 = vadd.f32 %v4101_v10, %v2661_v31  ;;  %v4686_v10 = vld [vmem:[%s13639_s1 + $0x268] sm:$0xff]  ;;  %v2685_v48 = vadd.f32 %v8097_v54, %v10366_v63 }
 0x393   :  { %v8240_v32 = vpop.f32.mrf.mxu0  ;;  %v2676_v5 = vpop.f32.mrf.mxu1 }
 0x394   :  { %14119 = vst [vmem:[#allocation120_spill] sm:$0xff] %v11330_v8  ;;  %v11336_v44 = vadd.f32 %v8240_v32, %v2682_v42  ;;  %v11338_v45 = vpop.permute.xlu0 %4804  ;;  %v11340_v39 = vpop.permute.xlu1 %4779  ;;  %5114 = vperm.xlu0 %8371, %v4684_v19   ;;  %v2677_v32 = vadd.f32 %v2676_v5, %v10387_v57  ;;  %v4683_v57 = vld [vmem:[%s13639_s1 + $0x250] sm:$0xff] }
 0x395   :  { %14121 = vst [vmem:[#allocation122_spill] sm:$0xff] %v11338_v45  ;;  %14122 = vst [vmem:[#allocation123_spill] sm:$0xff] %v11340_v39  ;;  %v4114_v38 = vpop.f32.mrf.mxu0  ;;  %5089 = vperm.xlu1 %8372, %v4679_v51   ;;  %v8100_v60 = vpop.f32.mrf.mxu1 }
 0x396   :  { %14120 = vst [vmem:[#allocation121_spill] sm:$0xff] %v11336_v44  ;;  %v11346_v31 = vadd.f32 %v4114_v38, %v2674_v40  ;;  %v4688_v38 = vld [vmem:[%s13639_s1 + $0x278] sm:$0xff]  ;;  %v2698_v54 = vadd.f32 %v8100_v60, %v10406_v35 }
 0x397   :  { %v8241_v36 = vpop.f32.mrf.mxu0  ;;  %v2689_v42 = vpop.f32.mrf.mxu1 }
 0x398   :  { %14123 = vst [vmem:[#allocation124_spill] sm:$0xff] %v11346_v31  ;;  %v11352_v19 = vadd.f32 %v8241_v36, %v2685_v48  ;;  %v11354_v51 = vpop.permute.xlu0 %4814  ;;  %v11356_v45 = vpop.permute.xlu1 %4789  ;;  %5124 = vperm.xlu0 %8371, %v4686_v10   ;;  %v2690_v36 = vadd.f32 %v2689_v42, %v10427_v14  ;;  %v4685_v14 = vld [vmem:[%s13639_s1 + $0x260] sm:$0xff] }
 0x399   :  { %14125 = vst [vmem:[#allocation126_spill] sm:$0xff] %v11354_v51  ;;  %14126 = vst [vmem:[#allocation127_spill] sm:$0xff] %v11356_v45  ;;  %v4117_v39 = vpop.f32.mrf.mxu0  ;;  %5099 = vperm.xlu1 %8372, %v4681_v53   ;;  %v8101_v63 = vpop.f32.mrf.mxu1 }
 0x39a   :  { %14124 = vst [vmem:[#allocation125_spill] sm:$0xff] %v11352_v19  ;;  %v11362_v40 = vadd.f32 %v4117_v39, %v2677_v32  ;;  %v11377_v39 = vld [vmem:[%s13639_s1 + $0x288] sm:$0xff]  ;;  %v2701_v60 = vadd.f32 %v8101_v63, %v10446_v11  ;;  %v14136_v63 = vld [vmem:[#allocation24_spill] sm:$0xff] }
 0x39b   :  { %v8244_v5 = vpop.f32.mrf.mxu0  ;;  %v2692_v48 = vpop.f32.mrf.mxu1 }
 0x39c   :  { %14127 = vst [vmem:[#allocation128_spill] sm:$0xff] %v11362_v40  ;;  %v11368_v10 = vadd.f32 %v8244_v5, %v2698_v54  ;;  %v11370_v53 = vpop.permute.xlu0 %4824  ;;  %v11372_v51 = vpop.permute.xlu1 %4799  ;;  %5134 = vperm.xlu0 %8371, %v4688_v38   ;;  %v14132_v5 = vld [vmem:[#allocation21_spill] sm:$0xff] }
 0x39d   :  { %14129 = vst [vmem:[#allocation130_spill] sm:$0xff] %v11370_v53  ;;  %14130 = vst [vmem:[#allocation131_spill] sm:$0xff] %v11372_v51  ;;  %v4130_v45 = vpop.f32.mrf.mxu0  ;;  %5109 = vperm.xlu1 %8372, %v4683_v57   ;;  %v8104_v35 = vpop.f32.mrf.mxu1  ;;  %v2693_v38 = vadd.f32 %v2692_v48, %v14132_v5  ;;  %v4687_v48 = vld [vmem:[%s13639_s1 + $0x270] sm:$0xff]  ;;  %v14138_v5 = vld [vmem:[#allocation27_spill] sm:$0xff] }
 0x39e   :  { %14128 = vst [vmem:[#allocation129_spill] sm:$0xff] %v11368_v10  ;;  %v11380_v32 = vadd.f32 %v4130_v45, %v2690_v36  ;;  %v11396_v45 = vld [vmem:[%s13639_s1 + $0x298] sm:$0xff]  ;;  %v2714_v36 = vadd.f32 %v8104_v35, %v14136_v63  ;;  %v11415_v35 = vld [vmem:[%s13639_s1 + $0x2a8] sm:$0xff] }
 0x39f   :  { %v8245_v42 = vpop.f32.mrf.mxu0  ;;  %v2705_v54 = vpop.f32.mrf.mxu1 }
 0x3a0   :  { %14131 = vst [vmem:[#allocation132_spill] sm:$0xff] %v11380_v32  ;;  %v11386_v51 = vadd.f32 %v8245_v42, %v2701_v60  ;;  %v11388_v57 = vpop.permute.xlu0 %4834  ;;  %v11390_v53 = vpop.permute.xlu1 %4809  ;;  %5144 = vperm.xlu0 %8371, %v11377_v39  }
 0x3a1   :  { %14134 = vst [vmem:[#allocation133_spill] sm:$0xff] %v11388_v57  ;;  %14135 = vst [vmem:[#allocation134_spill] sm:$0xff] %v11390_v53  ;;  %v4133_v34 = vpop.f32.mrf.mxu0  ;;  %5119 = vperm.xlu1 %8372, %v4685_v14   ;;  %v8105_v11 = vpop.f32.mrf.mxu1  ;;  %v2706_v53 = vadd.f32 %v2705_v54, %v14138_v5  ;;  %v11423_v54 = vld [vmem:[%s13639_s1 + $0x280] sm:$0xff] }
 0x3a2   :  { %14133 = vst [vmem:[#allocation21_spill] sm:$0xff] %v11386_v51  ;;  %v11399_v52 = vadd.f32 %v4133_v34, %v2693_v38  ;;  %v2717_v38 = vadd.f32 %v8105_v11, %v10526_v20 }
 0x3a3   :  { %v8248_v60 = vpop.f32.mrf.mxu0  ;;  %v2708_v42 = vpop.f32.mrf.mxu1 }
 0x3a4   :  { %14137 = vst [vmem:[#allocation24_spill] sm:$0xff] %v11399_v52  ;;  %v11405_v51 = vadd.f32 %v8248_v60, %v2714_v36  ;;  %v11407_v14 = vpop.permute.xlu0 %4844  ;;  %v11409_v57 = vpop.permute.xlu1 %4819  ;;  %5154 = vperm.xlu0 %8371, %v11396_v45   ;;  %v2709_v5 = vadd.f32 %v2708_v42, %v10547_v4  ;;  %v11445_v42 = vld [vmem:[%s13639_s1 + $0x290] sm:$0xff] }
 0x3a5   :  { %14140 = vst [vmem:[#allocation135_spill] sm:$0xff] %v11407_v14  ;;  %14141 = vst [vmem:[#allocation136_spill] sm:$0xff] %v11409_v57  ;;  %v4146_v16 = vpop.f32.mrf.mxu0  ;;  %5129 = vperm.xlu1 %8372, %v4687_v48   ;;  %v8108_v34 = vpop.f32.mrf.mxu1 }
 0x3a6   :  { %14139 = vst [vmem:[#allocation27_spill] sm:$0xff] %v11405_v51  ;;  %v11418_v63 = vadd.f32 %v4146_v16, %v2706_v53  ;;  %v11437_v53 = vld [vmem:[%s13639_s1 + $0x2b8] sm:$0xff]  ;;  %v2730_v11 = vadd.f32 %v8108_v34, %v10566_v17 }
 0x3a7   :  { %v8249_v36 = vpop.f32.mrf.mxu0  ;;  %v2721_v60 = vpop.f32.mrf.mxu1 }
 0x3a8   :  { %14142 = vst [vmem:[#allocation137_spill] sm:$0xff] %v11418_v63  ;;  %v11426_v48 = vadd.f32 %v8249_v36, %v2717_v38  ;;  %v11428_v14 = vpop.permute.xlu0 %4854  ;;  %v11430_v51 = vpop.permute.xlu1 %4829  ;;  %5164 = vperm.xlu0 %8371, %v11415_v35  }
 0x3a9   :  { %14144 = vst [vmem:[#allocation139_spill] sm:$0xff] %v11428_v14  ;;  %14145 = vst [vmem:[#allocation140_spill] sm:$0xff] %v11430_v51  ;;  %v4149_v20 = vpop.f32.mrf.mxu0  ;;  %5139 = vperm.xlu1 %8372, %v11423_v54   ;;  %v8109_v16 = vpop.f32.mrf.mxu1  ;;  %v14147_v14 = vld [vmem:[#allocation34_spill] sm:$0xff] }
 0x3aa   :  { %14143 = vst [vmem:[#allocation138_spill] sm:$0xff] %v11426_v48  ;;  %v11440_v4 = vadd.f32 %v4149_v20, %v2709_v5  ;;  %v2722_v48 = vadd.f32 %v2721_v60, %v14147_v14  ;;  %v11459_v5 = vld [vmem:[%s13639_s1 + $0x2c8] sm:$0xff]  ;;  %v2733_v20 = vadd.f32 %v8109_v16, %v10609_v37  ;;  %v11467_v60 = vld [vmem:[%s13639_s1 + $0x2a0] sm:$0xff]  ;;  %v4700_v16 = vld [vmem:[%s13639_s1 + $0x2d8] sm:$0xff] }
 0x3ab   :  { %v8252_v38 = vpop.f32.mrf.mxu0  ;;  %v2724_v36 = vpop.f32.mrf.mxu1 }
 0x3ac   :  { %14146 = vst [vmem:[#allocation141_spill] sm:$0xff] %v11440_v4  ;;  %v11448_v63 = vadd.f32 %v8252_v38, %v2730_v11  ;;  %v11450_v51 = vpop.permute.xlu0 %4864  ;;  %v11452_v57 = vpop.permute.xlu1 %4839  ;;  %5174 = vperm.xlu0 %8371, %v11437_v53  }
 0x3ad   :  { %14149 = vst [vmem:[#allocation142_spill] sm:$0xff] %v11450_v51  ;;  %14150 = vst [vmem:[#allocation143_spill] sm:$0xff] %v11452_v57  ;;  %v4162_v17 = vpop.f32.mrf.mxu0  ;;  %5149 = vperm.xlu1 %8372, %v11445_v42   ;;  %v8112_v34 = vpop.f32.mrf.mxu1  ;;  %v2725_v51 = vadd.f32 %v2724_v36, %v10633_v26  ;;  %v11487_v26 = vld [vmem:[%s13639_s1 + $0x2b0] sm:$0xff] }
 0x3ae   :  { %14148 = vst [vmem:[#allocation34_spill] sm:$0xff] %v11448_v63  ;;  %v11462_v14 = vadd.f32 %v4162_v17, %v2722_v48  ;;  %v2746_v17 = vadd.f32 %v8112_v34, %v10653_v21 }
 0x3af   :  { %v8253_v11 = vpop.f32.mrf.mxu0  ;;  %v2737_v38 = vpop.f32.mrf.mxu1 }
 0x3b0   :  { %14151 = vst [vmem:[#allocation144_spill] sm:$0xff] %v11462_v14  ;;  %v11470_v4 = vadd.f32 %v8253_v11, %v2733_v20  ;;  %v11472_v57 = vpop.permute.xlu0 %4874  ;;  %v11474_v30 = vpop.permute.xlu1 %4849  ;;  %5184 = vperm.xlu0 %8371, %v11459_v5   ;;  %v2738_v11 = vadd.f32 %v2737_v38, %v10674_v55  ;;  %v11506_v55 = vld [vmem:[%s13639_s1 + $0x2c0] sm:$0xff] }
 0x3b1   :  { %14153 = vst [vmem:[#allocation146_spill] sm:$0xff] %v11472_v57  ;;  %14154 = vst [vmem:[#allocation147_spill] sm:$0xff] %v11474_v30  ;;  %v4165_v37 = vpop.f32.mrf.mxu0  ;;  %5159 = vperm.xlu1 %8372, %v11467_v60   ;;  %v8113_v48 = vpop.f32.mrf.mxu1 }
 0x3b2   :  { %14152 = vst [vmem:[#allocation145_spill] sm:$0xff] %v11470_v4  ;;  %v11482_v7 = vadd.f32 %v4165_v37, %v2725_v51  ;;  %v4702_v51 = vld [vmem:[%s13639_s1 + $0x2e8] sm:$0xff]  ;;  %v2749_v34 = vadd.f32 %v8113_v48, %v10693_v23 }
 0x3b3   :  { %v8256_v36 = vpop.f32.mrf.mxu0  ;;  %v2740_v20 = vpop.f32.mrf.mxu1 }
 0x3b4   :  { %14155 = vst [vmem:[#allocation148_spill] sm:$0xff] %v11482_v7  ;;  %v11490_v57 = vadd.f32 %v8256_v36, %v2746_v17  ;;  %v11492_v30 = vpop.permute.xlu0 %4884  ;;  %v11494_v12 = vpop.permute.xlu1 %4859  ;;  %5194 = vperm.xlu0 %8371, %v4700_v16   ;;  %v2741_v16 = vadd.f32 %v2740_v20, %v10714_v6  ;;  %v11525_v6 = vld [vmem:[%s13639_s1 + $0x2d0] sm:$0xff] }
 0x3b5   :  { %14157 = vst [vmem:[#allocation150_spill] sm:$0xff] %v11492_v30  ;;  %14158 = vst [vmem:[#allocation151_spill] sm:$0xff] %v11494_v12  ;;  %v4178_v22 = vpop.f32.mrf.mxu0  ;;  %5169 = vperm.xlu1 %8372, %v11487_v26   ;;  %v8116_v21 = vpop.f32.mrf.mxu1 }
 0x3b6   :  { %14156 = vst [vmem:[#allocation149_spill] sm:$0xff] %v11490_v57  ;;  %v11501_v37 = vadd.f32 %v4178_v22, %v2738_v11  ;;  %v4704_v22 = vld [vmem:[%s13639_s1 + $0x2f8] sm:$0xff]  ;;  %v2762_v48 = vadd.f32 %v8116_v21, %v10733_v46 }
 0x3b7   :  { %v8257_v38 = vpop.f32.mrf.mxu0  ;;  %v2753_v17 = vpop.f32.mrf.mxu1 }
 0x3b8   :  { %14159 = vst [vmem:[#allocation152_spill] sm:$0xff] %v11501_v37  ;;  %v11509_v36 = vadd.f32 %v8257_v38, %v2749_v34  ;;  %v11511_v30 = vpop.permute.xlu0 %4894  ;;  %v11513_v12 = vpop.permute.xlu1 %4869  ;;  %5204 = vperm.xlu0 %8371, %v4702_v51   ;;  %v2754_v51 = vadd.f32 %v2753_v17, %v10754_v33  ;;  %v4701_v33 = vld [vmem:[%s13639_s1 + $0x2e0] sm:$0xff] }
 0x3b9   :  { %14161 = vst [vmem:[#allocation154_spill] sm:$0xff] %v11511_v30  ;;  %14162 = vst [vmem:[#allocation155_spill] sm:$0xff] %v11513_v12  ;;  %v4181_v47 = vpop.f32.mrf.mxu0  ;;  %5179 = vperm.xlu1 %8372, %v11506_v55   ;;  %v8117_v23 = vpop.f32.mrf.mxu1 }
 0x3ba   :  { %14160 = vst [vmem:[#allocation153_spill] sm:$0xff] %v11509_v36  ;;  %v11520_v11 = vadd.f32 %v4181_v47, %v2741_v16  ;;  %v11538_v47 = vld [vmem:[%s13639_s1 + $0x308] sm:$0xff]  ;;  %v2765_v21 = vadd.f32 %v8117_v23, %v10773_v2 }
 0x3bb   :  { %v8260_v20 = vpop.f32.mrf.mxu0  ;;  %v2756_v34 = vpop.f32.mrf.mxu1 }
 0x3bc   :  { %14163 = vst [vmem:[#allocation156_spill] sm:$0xff] %v11520_v11  ;;  %v11528_v38 = vadd.f32 %v8260_v20, %v2762_v48  ;;  %v11530_v30 = vpop.permute.xlu0 %4904  ;;  %v11532_v12 = vpop.permute.xlu1 %4879  ;;  %5214 = vperm.xlu0 %8371, %v4704_v22   ;;  %v2757_v22 = vadd.f32 %v2756_v34, %v10794_v24  ;;  %v4703_v24 = vld [vmem:[%s13639_s1 + $0x2f0] sm:$0xff] }
 0x3bd   :  { %14165 = vst [vmem:[#allocation158_spill] sm:$0xff] %v11530_v30  ;;  %14166 = vst [vmem:[#allocation159_spill] sm:$0xff] %v11532_v12  ;;  %v4194_v10 = vpop.f32.mrf.mxu0  ;;  %5189 = vperm.xlu1 %8372, %v11525_v6   ;;  %v8120_v46 = vpop.f32.mrf.mxu1 }
 0x3be   :  { %14164 = vst [vmem:[#allocation157_spill] sm:$0xff] %v11528_v38  ;;  %v11541_v16 = vadd.f32 %v4194_v10, %v2754_v51  ;;  %v11557_v10 = vld [vmem:[%s13639_s1 + $0x318] sm:$0xff]  ;;  %v2778_v23 = vadd.f32 %v8120_v46, %v10813_v3 }
 0x3bf   :  { %v8261_v17 = vpop.f32.mrf.mxu0  ;;  %v2769_v48 = vpop.f32.mrf.mxu1 }
 0x3c0   :  { %14167 = vst [vmem:[#allocation160_spill] sm:$0xff] %v11541_v16  ;;  %v11547_v20 = vadd.f32 %v8261_v17, %v2765_v21  ;;  %v11549_v12 = vpop.permute.xlu0 %4914  ;;  %v11551_v30 = vpop.permute.xlu1 %4889  ;;  %5224 = vperm.xlu0 %8371, %v11538_v47   ;;  %v2770_v17 = vadd.f32 %v2769_v48, %v10834_v43  ;;  %v11584_v43 = vld [vmem:[%s13639_s1 + $0x300] sm:$0xff] }
 0x3c1   :  { %14169 = vst [vmem:[#allocation162_spill] sm:$0xff] %v11549_v12  ;;  %14170 = vst [vmem:[#allocation163_spill] sm:$0xff] %v11551_v30  ;;  %v4197_v38 = vpop.f32.mrf.mxu0  ;;  %5199 = vperm.xlu1 %8372, %v4701_v33   ;;  %v8121_v2 = vpop.f32.mrf.mxu1 }
 0x3c2   :  { %14168 = vst [vmem:[#allocation161_spill] sm:$0xff] %v11547_v20  ;;  %v11560_v51 = vadd.f32 %v4197_v38, %v2757_v22  ;;  %v11576_v38 = vld [vmem:[%s13639_s1 + $0x328] sm:$0xff]  ;;  %v2781_v46 = vadd.f32 %v8121_v2, %v10853_v56  ;;  %v11598_v2 = vld [vmem:[%s13639_s1 + $0x338] sm:$0xff] }
 0x3c3   :  { %v8264_v34 = vpop.f32.mrf.mxu0  ;;  %v2772_v21 = vpop.f32.mrf.mxu1 }
 0x3c4   :  { %14171 = vst [vmem:[#allocation164_spill] sm:$0xff] %v11560_v51  ;;  %v11566_v30 = vadd.f32 %v8264_v34, %v2778_v23  ;;  %v11568_v33 = vpop.permute.xlu0 %4924  ;;  %v11570_v12 = vpop.permute.xlu1 %4899  ;;  %5234 = vperm.xlu0 %8371, %v11557_v10   ;;  %v2773_v34 = vadd.f32 %v2772_v21, %v10874_v9  ;;  %v11606_v21 = vld [vmem:[%s13639_s1 + $0x310] sm:$0xff] }
 0x3c5   :  { %14173 = vst [vmem:[#allocation166_spill] sm:$0xff] %v11568_v33  ;;  %14174 = vst [vmem:[#allocation167_spill] sm:$0xff] %v11570_v12  ;;  %v4210_v20 = vpop.f32.mrf.mxu0  ;;  %5209 = vperm.xlu1 %8372, %v4703_v24   ;;  %v8124_v3 = vpop.f32.mrf.mxu1 }
 0x3c6   :  { %14172 = vst [vmem:[#allocation165_spill] sm:$0xff] %v11566_v30  ;;  %v11579_v22 = vadd.f32 %v4210_v20, %v2770_v17  ;;  %v14179_v17 = vld [vmem:[#allocation106_spill] sm:$0xff] }
 0x3c7   :  { %v8265_v48 = vpop.f32.mrf.mxu0  ;;  %v2785_v23 = vpop.f32.mrf.mxu1  ;;  %v2794_v30 = vadd.f32 %v8124_v3, %v14179_v17  ;;  %v14185_v17 = vld [vmem:[#allocation110_spill] sm:$0xff] }
 0x3c8   :  { %14175 = vst [vmem:[#allocation168_spill] sm:$0xff] %v11579_v22  ;;  %v11587_v24 = vadd.f32 %v8265_v48, %v2781_v46  ;;  %v11589_v33 = vpop.permute.xlu0 %4934  ;;  %v11591_v12 = vpop.permute.xlu1 %4909  ;;  %5244 = vperm.xlu0 %8371, %v11576_v38  }
 0x3c9   :  { %14177 = vst [vmem:[#allocation170_spill] sm:$0xff] %v11589_v33  ;;  %14178 = vst [vmem:[#allocation171_spill] sm:$0xff] %v11591_v12  ;;  %v4213_v56 = vpop.f32.mrf.mxu0  ;;  %5219 = vperm.xlu1 %8372, %v11584_v43   ;;  %v8125_v20 = vpop.f32.mrf.mxu1  ;;  %v14181_v33 = vld [vmem:[#allocation108_spill] sm:$0xff] }
 0x3ca   :  { %14176 = vst [vmem:[#allocation169_spill] sm:$0xff] %v11587_v24  ;;  %v11601_v9 = vadd.f32 %v4213_v56, %v2773_v34  ;;  %v2786_v12 = vadd.f32 %v2785_v23, %v14181_v33  ;;  %v11620_v56 = vld [vmem:[%s13639_s1 + $0x348] sm:$0xff] }
 0x3cb   :  { %v8268_v46 = vpop.f32.mrf.mxu0  ;;  %v2788_v48 = vpop.f32.mrf.mxu1 }
 0x3cc   :  { %14180 = vst [vmem:[#allocation106_spill] sm:$0xff] %v11601_v9  ;;  %v11609_v24 = vadd.f32 %v8268_v46, %v2794_v30  ;;  %v11611_v22 = vpop.permute.xlu0 %4944  ;;  %v11613_v51 = vpop.permute.xlu1 %4919  ;;  %5254 = vperm.xlu0 %8371, %v11598_v2   ;;  %v2797_v9 = vadd.f32 %v8125_v20, %v14185_v17  ;;  %v11628_v30 = vld [vmem:[%s13639_s1 + $0x320] sm:$0xff]  ;;  %v14191_v17 = vld [vmem:[#allocation7_spill] sm:$0xff] }
 0x3cd   :  { %14183 = vst [vmem:[#allocation172_spill] sm:$0xff] %v11611_v22  ;;  %14184 = vst [vmem:[#allocation173_spill] sm:$0xff] %v11613_v51  ;;  %v4226_v3 = vpop.f32.mrf.mxu0  ;;  %5229 = vperm.xlu1 %8372, %v11606_v21   ;;  %v8128_v34 = vpop.f32.mrf.mxu1  ;;  %v14187_v22 = vld [vmem:[#allocation55_spill] sm:$0xff] }
 0x3ce   :  { %14182 = vst [vmem:[#allocation108_spill] sm:$0xff] %v11609_v24  ;;  %v11623_v33 = vadd.f32 %v4226_v3, %v2786_v12  ;;  %v2789_v51 = vadd.f32 %v2788_v48, %v14187_v22  ;;  %v11642_v3 = vld [vmem:[%s13639_s1 + $0x358] sm:$0xff]  ;;  %v2810_v59 = vadd.f32 %v8128_v34, %v14191_v17  ;;  %v14198_v17 = vld [vmem:[#allocation9_spill] sm:$0xff] }
 0x3cf   :  { %v8269_v23 = vpop.f32.mrf.mxu0  ;;  %v2801_v46 = vpop.f32.mrf.mxu1 }
 0x3d0   :  { %14186 = vst [vmem:[#allocation110_spill] sm:$0xff] %v11623_v33  ;;  %v11631_v62 = vadd.f32 %v8269_v23, %v2797_v9  ;;  %v11633_v16 = vpop.permute.xlu0 %4954  ;;  %v11635_v28 = vpop.permute.xlu1 %4929  ;;  %5264 = vperm.xlu0 %8371, %v11620_v56   ;;  %v11650_v9 = vld [vmem:[%s13639_s1 + $0x330] sm:$0xff] }
 0x3d1   :  { %14189 = vst [vmem:[#allocation174_spill] sm:$0xff] %v11633_v16  ;;  %14190 = vst [vmem:[#allocation175_spill] sm:$0xff] %v11635_v28  ;;  %v4229_v20 = vpop.f32.mrf.mxu0  ;;  %5239 = vperm.xlu1 %8372, %v11628_v30   ;;  %v8129_v12 = vpop.f32.mrf.mxu1  ;;  %v14193_v16 = vld [vmem:[#allocation8_spill] sm:$0xff] }
 0x3d2   :  { %14188 = vst [vmem:[#allocation55_spill] sm:$0xff] %v11631_v62  ;;  %v11645_v22 = vadd.f32 %v4229_v20, %v2789_v51  ;;  %v2802_v28 = vadd.f32 %v2801_v46, %v14193_v16  ;;  %v11664_v20 = vld [vmem:[%s13639_s1 + $0x368] sm:$0xff]  ;;  %v2813_v13 = vadd.f32 %v8129_v12, %v14198_v17  ;;  %v14204_v17 = vld [vmem:[#allocation11_spill] sm:$0xff] }
 0x3d3   :  { %v8272_v48 = vpop.f32.mrf.mxu0  ;;  %v2804_v23 = vpop.f32.mrf.mxu1  ;;  %14197 = vst [vmem:[#allocation178_spill] sm:$0xff] %v11664_v20 }
 0x3d4   :  { %14192 = vst [vmem:[#allocation7_spill] sm:$0xff] %v11645_v22  ;;  %v11653_v50 = vadd.f32 %v8272_v48, %v2810_v59  ;;  %v11655_v52 = vpop.permute.xlu0 %4964  ;;  %v11657_v36 = vpop.permute.xlu1 %4939  ;;  %5274 = vperm.xlu0 %8371, %v11642_v3   ;;  %v11672_v59 = vld [vmem:[%s13639_s1 + $0x340] sm:$0xff] }
 0x3d5   :  { %14195 = vst [vmem:[#allocation176_spill] sm:$0xff] %v11655_v52  ;;  %14196 = vst [vmem:[#allocation177_spill] sm:$0xff] %v11657_v36  ;;  %v4242_v34 = vpop.f32.mrf.mxu0  ;;  %5249 = vperm.xlu1 %8372, %v11650_v9   ;;  %v8132_v51 = vpop.f32.mrf.mxu1  ;;  %v14200_v52 = vld [vmem:[#allocation10_spill] sm:$0xff] }
 0x3d6   :  { %14194 = vst [vmem:[#allocation8_spill] sm:$0xff] %v11653_v50  ;;  %v11667_v16 = vadd.f32 %v4242_v34, %v2802_v28  ;;  %v2805_v36 = vadd.f32 %v2804_v23, %v14200_v52  ;;  %v4720_v34 = vld [vmem:[%s13639_s1 + $0x378] sm:$0xff]  ;;  %v2826_v15 = vadd.f32 %v8132_v51, %v14204_v17  ;;  %v11705_v51 = vld [vmem:[%s13639_s1 + $0x388] sm:$0xff] }
 0x3d7   :  { %v8273_v46 = vpop.f32.mrf.mxu0  ;;  %v2817_v48 = vpop.f32.mrf.mxu1 }
 0x3d8   :  { %14199 = vst [vmem:[#allocation9_spill] sm:$0xff] %v11667_v16  ;;  %v11675_v27 = vadd.f32 %v8273_v46, %v2813_v13  ;;  %v11677_v58 = vpop.permute.xlu0 %4974  ;;  %v11679_v50 = vpop.permute.xlu1 %4949  ;;  %5284 = vperm.xlu0 %8371, %v11664_v20   ;;  %v11692_v13 = vld [vmem:[%s13639_s1 + $0x350] sm:$0xff]  ;;  %v14206_v46 = vld [vmem:[#allocation12_spill] sm:$0xff] }
 0x3d9   :  { %14202 = vst [vmem:[#allocation179_spill] sm:$0xff] %v11677_v58  ;;  %14203 = vst [vmem:[#allocation180_spill] sm:$0xff] %v11679_v50  ;;  %v4245_v12 = vpop.f32.mrf.mxu0  ;;  %5259 = vperm.xlu1 %8372, %v11672_v59   ;;  %v8133_v28 = vpop.f32.mrf.mxu1  ;;  %v2818_v50 = vadd.f32 %v2817_v48, %v14206_v46 }
 0x3da   :  { %14201 = vst [vmem:[#allocation10_spill] sm:$0xff] %v11675_v27  ;;  %v11687_v25 = vadd.f32 %v4245_v12, %v2805_v36  ;;  %v14210_v12 = vld [vmem:[#allocation13_spill] sm:$0xff] }
 0x3db   :  { %v8276_v52 = vpop.f32.mrf.mxu0  ;;  %v2820_v23 = vpop.f32.mrf.mxu1  ;;  %v2829_v17 = vadd.f32 %v8133_v28, %v14210_v12  ;;  %v14217_v12 = vld [vmem:[#allocation15_spill] sm:$0xff] }
 0x3dc   :  { %14205 = vst [vmem:[#allocation11_spill] sm:$0xff] %v11687_v25  ;;  %v11695_v58 = vadd.f32 %v8276_v52, %v2826_v15  ;;  %v11697_v27 = vpop.permute.xlu0 %4984  ;;  %v11699_v1 = vpop.permute.xlu1 %4959  ;;  %5294 = vperm.xlu0 %8371, %v4720_v34   ;;  %v11713_v15 = vld [vmem:[%s13639_s1 + $0x360] sm:$0xff]  ;;  %v14213_v52 = vld [vmem:[#allocation14_spill] sm:$0xff] }
 0x3dd   :  { %14208 = vst [vmem:[#allocation181_spill] sm:$0xff] %v11697_v27  ;;  %14209 = vst [vmem:[#allocation182_spill] sm:$0xff] %v11699_v1  ;;  %v4258_v32 = vpop.f32.mrf.mxu0  ;;  %5269 = vperm.xlu1 %8372, %v11692_v13   ;;  %v8136_v36 = vpop.f32.mrf.mxu1  ;;  %v2821_v46 = vadd.f32 %v2820_v23, %v14213_v52 }
 0x3de   :  { %14207 = vst [vmem:[#allocation12_spill] sm:$0xff] %v11695_v58  ;;  %v11708_v57 = vadd.f32 %v4258_v32, %v2818_v50  ;;  %14212 = vst [vmem:[#allocation183_spill] sm:$0xff] %v11713_v15  ;;  %v11727_v32 = vld [vmem:[%s13639_s1 + $0x398] sm:$0xff] }
 0x3df   :  { %v8277_v48 = vpop.f32.mrf.mxu0  ;;  %v2833_v34 = vpop.f32.mrf.mxu1 }
 0x3e0   :  { %14211 = vst [vmem:[#allocation13_spill] sm:$0xff] %v11708_v57  ;;  %v11716_v1 = vadd.f32 %v8277_v48, %v2829_v17  ;;  %v11718_v27 = vpop.permute.xlu0 %4994  ;;  %v11720_v58 = vpop.permute.xlu1 %4969  ;;  %5304 = vperm.xlu0 %8371, %v11705_v51   ;;  %v2842_v57 = vadd.f32 %v8136_v36, %v14217_v12  ;;  %v4719_v17 = vld [vmem:[%s13639_s1 + $0x370] sm:$0xff] }
 0x3e1   :  { %14215 = vst [vmem:[#allocation184_spill] sm:$0xff] %v11718_v27  ;;  %14216 = vst [vmem:[#allocation185_spill] sm:$0xff] %v11720_v58  ;;  %v4261_v28 = vpop.f32.mrf.mxu0  ;;  %5279 = vperm.xlu1 %8372, %v11713_v15   ;;  %v8137_v50 = vpop.f32.mrf.mxu1  ;;  %v14219_v58 = vld [vmem:[#allocation16_spill] sm:$0xff] }
 0x3e2   :  { %14214 = vst [vmem:[#allocation14_spill] sm:$0xff] %v11716_v1  ;;  %v11730_v23 = vadd.f32 %v4261_v28, %v2821_v46  ;;  %v2834_v27 = vadd.f32 %v2833_v34, %v14219_v58  ;;  %v11746_v46 = vld [vmem:[%s13639_s1 + $0x3a8] sm:$0xff]  ;;  %v11754_v58 = vld [vmem:[%s13639_s1 + $0x380] sm:$0xff] }
 0x3e3   :  { %v8280_v48 = vpop.f32.mrf.mxu0  ;;  %v2836_v52 = vpop.f32.mrf.mxu1  ;;  %v14223_v28 = vld [vmem:[#allocation17_spill] sm:$0xff] }
 0x3e4   :  { %14218 = vst [vmem:[#allocation15_spill] sm:$0xff] %v11730_v23  ;;  %v11736_v1 = vadd.f32 %v8280_v48, %v2842_v57  ;;  %v11738_v29 = vpop.permute.xlu0 %5004  ;;  %v11740_v18 = vpop.permute.xlu1 %4979  ;;  %5314 = vperm.xlu0 %8371, %v11727_v32   ;;  %v2845_v12 = vadd.f32 %v8137_v50, %v14223_v28  ;;  %v14225_v48 = vld [vmem:[#allocation18_spill] sm:$0xff]  ;;  %v14229_v28 = vld [vmem:[#allocation19_spill] sm:$0xff] }
 0x3e5   :  { %14221 = vst [vmem:[#allocation186_spill] sm:$0xff] %v11738_v29  ;;  %14222 = vst [vmem:[#allocation187_spill] sm:$0xff] %v11740_v18  ;;  %v4274_v25 = vpop.f32.mrf.mxu0  ;;  %5289 = vperm.xlu1 %8372, %v4719_v17   ;;  %v8140_v36 = vpop.f32.mrf.mxu1  ;;  %v2837_v29 = vadd.f32 %v2836_v52, %v14225_v48 }
 0x3e6   :  { %14220 = vst [vmem:[#allocation16_spill] sm:$0xff] %v11736_v1  ;;  %v11749_v23 = vadd.f32 %v4274_v25, %v2834_v27  ;;  %v11768_v25 = vld [vmem:[%s13639_s1 + $0x3b8] sm:$0xff] }
 0x3e7   :  { %v8281_v57 = vpop.f32.mrf.mxu0  ;;  %v2849_v34 = vpop.f32.mrf.mxu1 }
 0x3e8   :  { %14224 = vst [vmem:[#allocation17_spill] sm:$0xff] %v11749_v23  ;;  %v11757_v17 = vadd.f32 %v8281_v57, %v2845_v12  ;;  %v11759_v18 = vpop.permute.xlu0 %5014  ;;  %v11761_v1 = vpop.permute.xlu1 %4989  ;;  %5324 = vperm.xlu0 %8371, %v11746_v46   ;;  %v2858_v23 = vadd.f32 %v8140_v36, %v14229_v28  ;;  %v11776_v12 = vld [vmem:[%s13639_s1 + $0x390] sm:$0xff] }
 0x3e9   :  { %14227 = vst [vmem:[#allocation188_spill] sm:$0xff] %v11759_v18  ;;  %14228 = vst [vmem:[#allocation189_spill] sm:$0xff] %v11761_v1  ;;  %v4277_v50 = vpop.f32.mrf.mxu0  ;;  %5299 = vperm.xlu1 %8372, %v11754_v58   ;;  %v8141_v27 = vpop.f32.mrf.mxu1  ;;  %v14231_v18 = vld [vmem:[#allocation20_spill] sm:$0xff]  ;;  %v14235_v28 = vld [vmem:[#allocation22_spill] sm:$0xff] }
 0x3ea   :  { %14226 = vst [vmem:[#allocation18_spill] sm:$0xff] %v11757_v17  ;;  %v11771_v52 = vadd.f32 %v4277_v50, %v2837_v29  ;;  %v2850_v1 = vadd.f32 %v2849_v34, %v14231_v18  ;;  %v11792_v50 = vld [vmem:[%s13639_s1 + $0x3c8] sm:$0xff] }
 0x3eb   :  { %v8284_v57 = vpop.f32.mrf.mxu0  ;;  %v11778_v48 = vpop.f32.mrf.mxu1 }
 0x3ec   :  { %14230 = vst [vmem:[#allocation19_spill] sm:$0xff] %v11771_v52  ;;  %v11781_v17 = vadd.f32 %v8284_v57, %v2858_v23  ;;  %v11783_v19 = vpop.permute.xlu0 %5024  ;;  %v11785_v11 = vpop.permute.xlu1 %4999  ;;  %5334 = vperm.xlu0 %8371, %v11768_v25   ;;  %v2861_v52 = vadd.f32 %v8141_v27, %v14235_v28  ;;  %v11800_v23 = vld [vmem:[%s13639_s1 + $0x3a0] sm:$0xff]  ;;  %v11815_v27 = vld [vmem:[%s13639_s1 + $0x3d8] sm:$0xff] }
 0x3ed   :  { %14233 = vst [vmem:[#allocation190_spill] sm:$0xff] %v11783_v19  ;;  %14234 = vst [vmem:[#allocation191_spill] sm:$0xff] %v11785_v11  ;;  %v4290_v29 = vpop.f32.mrf.mxu0  ;;  %5309 = vperm.xlu1 %8372, %v11776_v12   ;;  %v8144_v36 = vpop.f32.mrf.mxu1 }
 0x3ee   :  { %14232 = vst [vmem:[#allocation20_spill] sm:$0xff] %v11781_v17  ;;  %v11795_v18 = vadd.f32 %v4290_v29, %v2850_v1  ;;  %14240 = vst [vmem:[#allocation195_spill] sm:$0xff] %v11815_v27  ;;  %v14241_v29 = vld [vmem:[#allocation25_spill] sm:$0xff] }
 0x3ef   :  { %v8285_v34 = vpop.f32.mrf.mxu0  ;;  %v2865_v57 = vpop.f32.mrf.mxu1  ;;  %v2874_v28 = vadd.f32 %v8144_v36, %v14241_v29  ;;  %v11837_v29 = vld [vmem:[%s13639_s1 + $0x3e8] sm:$0xff] }
 0x3f0   :  { %14236 = vst [vmem:[#allocation22_spill] sm:$0xff] %v11795_v18  ;;  %v11802_v19 = vadd.f32 %v8285_v34, %v2861_v52  ;;  %v11804_v11 = vpop.permute.xlu0 %5034  ;;  %v11806_v16 = vpop.permute.xlu1 %5009  ;;  %5344 = vperm.xlu0 %8371, %v11792_v50   ;;  %v11821_v52 = vld [vmem:[%s13639_s1 + $0x3b0] sm:$0xff]  ;;  %14247 = vst [vmem:[#allocation198_spill] sm:$0xff] %v11837_v29 }
 0x3f1   :  { %14238 = vst [vmem:[#allocation193_spill] sm:$0xff] %v11804_v11  ;;  %14239 = vst [vmem:[#allocation194_spill] sm:$0xff] %v11806_v16  ;;  %v11809_v44 = vpop.f32.mrf.mxu0  ;;  %5319 = vperm.xlu1 %8372, %v11800_v23   ;;  %v8145_v1 = vpop.f32.mrf.mxu1  ;;  %v14243_v16 = vld [vmem:[#allocation26_spill] sm:$0xff] }
 0x3f2   :  { %14237 = vst [vmem:[#allocation192_spill] sm:$0xff] %v11802_v19  ;;  %v2866_v37 = vadd.f32 %v2865_v57, %v14243_v16  ;;  %v11845_v57 = vld [vmem:[%s13639_s1 + $0x3c0] sm:$0xff] }
 0x3f3   :  { %v8288_v34 = vpop.f32.mrf.mxu0  ;;  %v11823_v11 = vpop.f32.mrf.mxu1 }
 0x3f4   :  { %14242 = vst [vmem:[#allocation25_spill] sm:$0xff] %v11823_v11  ;;  %v11826_v62 = vadd.f32 %v8288_v34, %v2874_v28  ;;  %v11828_v20 = vpop.permute.xlu0 %5044  ;;  %v11830_v40 = vpop.permute.xlu1 %5019  ;;  %5354 = vperm.xlu0 %8371, %v11815_v27   ;;  %v14248_v11 = vld [vmem:[#allocation28_spill] sm:$0xff] }
 0x3f5   :  { %14245 = vst [vmem:[#allocation196_spill] sm:$0xff] %v11828_v20  ;;  %14246 = vst [vmem:[#allocation197_spill] sm:$0xff] %v11830_v40  ;;  %v4306_v17 = vpop.f32.mrf.mxu0  ;;  %5329 = vperm.xlu1 %8372, %v11821_v52   ;;  %v8148_v36 = vpop.f32.mrf.mxu1  ;;  %v2877_v19 = vadd.f32 %v8145_v1, %v14248_v11  ;;  %v11860_v11 = vld [vmem:[%s13639_s1 + $0x3f8] sm:$0xff] }
 0x3f6   :  { %14244 = vst [vmem:[#allocation26_spill] sm:$0xff] %v11826_v62  ;;  %v11840_v16 = vadd.f32 %v4306_v17, %v2866_v37  ;;  %14254 = vst [vmem:[#allocation203_spill] sm:$0xff] %v11860_v11  ;;  %v14255_v17 = vld [vmem:[#allocation30_spill] sm:$0xff] }
 0x3f7   :  { %v8289_v28 = vpop.f32.mrf.mxu0  ;;  %v2881_v34 = vpop.f32.mrf.mxu1  ;;  %v2890_v1 = vadd.f32 %v8148_v36, %v14255_v17  ;;  %v14262_v17 = vld [vmem:[#allocation32_spill] sm:$0xff] }
 0x3f8   :  { %14249 = vst [vmem:[#allocation28_spill] sm:$0xff] %v11840_v16  ;;  %v11847_v20 = vadd.f32 %v8289_v28, %v2877_v19  ;;  %v11849_v40 = vpop.permute.xlu0 %5054  ;;  %v11851_v62 = vpop.permute.xlu1 %5029  ;;  %5364 = vperm.xlu0 %8371, %v11837_v29   ;;  %v11866_v19 = vld [vmem:[%s13639_s1 + $0x3d0] sm:$0xff] }
 0x3f9   :  { %14251 = vst [vmem:[#allocation200_spill] sm:$0xff] %v11849_v40  ;;  %14252 = vst [vmem:[#allocation201_spill] sm:$0xff] %v11851_v62  ;;  %v11854_v27 = vpop.f32.mrf.mxu0  ;;  %5339 = vperm.xlu1 %8372, %v11845_v57   ;;  %v8149_v37 = vpop.f32.mrf.mxu1  ;;  %v14258_v62 = vld [vmem:[#allocation31_spill] sm:$0xff] }
 0x3fa   :  { %14250 = vst [vmem:[#allocation199_spill] sm:$0xff] %v11847_v20  ;;  %14253 = vst [vmem:[#allocation202_spill] sm:$0xff] %v11854_v27  ;;  %v2882_v20 = vadd.f32 %v2881_v34, %v14258_v62  ;;  %v2893_v15 = vadd.f32 %v8149_v37, %v14262_v17  ;;  %v11885_v62 = vld [vmem:[%s13639_s1 + $0x3e0] sm:$0xff] }
 0x3fb   :  { %14256 = vst [vmem:[#allocation30_spill] sm:$0xff] %v11866_v19  ;;  %v8292_v28 = vpop.f32.mrf.mxu0  ;;  %v11868_v40 = vpop.f32.mrf.mxu1  ;;  %14264 = vst [vmem:[#allocation207_spill] sm:$0xff] %v11885_v62 }
 0x3fc   :  { %14257 = vst [vmem:[#allocation204_spill] sm:$0xff] %v11868_v40  ;;  %v11871_v29 = vadd.f32 %v8292_v28, %v2890_v1  ;;  %v11873_v27 = vpop.permute.xlu0 %5064  ;;  %v11875_v16 = vpop.permute.xlu1 %5039  ;;  %5374 = vperm.xlu0 %8371, %v11860_v11  }
 0x3fd   :  { %14260 = vst [vmem:[#allocation205_spill] sm:$0xff] %v11873_v27  ;;  %14261 = vst [vmem:[#allocation206_spill] sm:$0xff] %v11875_v16  ;;  %v4322_v24 = vpop.f32.mrf.mxu0  ;;  %5349 = vperm.xlu1 %8372, %v11866_v19   ;;  %v8152_v36 = vpop.f32.mrf.mxu1 }
 0x3fe   :  { %14259 = vst [vmem:[#allocation31_spill] sm:$0xff] %v11871_v29  ;;  %v11880_v31 = vadd.f32 %v4322_v24, %v2882_v20  ;;  %v14268_v29 = vmov 1   ;;  %v8526_v24 = vld [vmem:[%s13639_s1 + $0x8] sm:$0xff] }
 0x3ff   :  { %v8293_v34 = vpop.f32.mrf.mxu0  ;;  %v2897_v1 = vpop.f32.mrf.mxu1  ;;  %v14270_v20 = vld [vmem:[#allocation33_spill] sm:$0xff] }
 0x400   :  { %14263 = vst [vmem:[#allocation32_spill] sm:$0xff] %v11880_v31  ;;  %v11887_v28 = vadd.f32 %v8293_v34, %v2893_v15  ;;  %v11889_v16 = vpop.permute.xlu0 %5074  ;;  %v11891_v27 = vpop.permute.xlu1 %5049  ;;  %8374 = vset.pattern.permute.xlu0 %v14268_v29  ;;  %v2906_v37 = vadd.f32 %v8152_v36, %v14270_v20  ;;  %v11904_v15 = vld [vmem:[%s13639_s1 + $0x3f0] sm:$0xff]  ;;  %v8527_v36 = vld [vmem:[%s13639_s1 + $0x20] sm:$0xff] }
 0x401   :  { %14266 = vst [vmem:[#allocation209_spill] sm:$0xff] %v11889_v16  ;;  %14267 = vst [vmem:[#allocation210_spill] sm:$0xff] %v11891_v27  ;;  %v11894_v40 = vpop.f32.mrf.mxu0  ;;  %5359 = vperm.xlu1 %8372, %v11885_v62   ;;  %5807 = vperm.xlu0 %8374, %v8526_v24   ;;  %v8153_v17 = vpop.f32.mrf.mxu1  ;;  %v14271_v27 = vld [vmem:[#allocation84_spill] sm:$0xff]  ;;  %v14275_v24 = vld [vmem:[#allocation85_spill] sm:$0xff] }
 0x402   :  { %14265 = vst [vmem:[#allocation208_spill] sm:$0xff] %v11887_v28  ;;  %14269 = vst [vmem:[#allocation211_spill] sm:$0xff] %v11894_v40  ;;  %v2898_v16 = vadd.f32 %v2897_v1, %v14271_v27  ;;  %v2909_v20 = vadd.f32 %v8153_v17, %v14275_v24  ;;  %v8529_v17 = vld [vmem:[%s13639_s1] sm:$0xff] }
 0x403   :  { %v8296_v34 = vpop.f32.mrf.mxu0 }
 0x404   :  { %v11907_v28 = vadd.f32 %v8296_v34, %v2906_v37  ;;  %v11909_v40 = vpop.permute.xlu0 %5084  ;;  %v11911_v31 = vpop.permute.xlu1 %5059  ;;  %v8528_v34 = vld [vmem:[%s13639_s1 + $0x30] sm:$0xff] }
 0x405   :  { %14273 = vst [vmem:[#allocation84_spill] sm:$0xff] %v11909_v40  ;;  %14274 = vst [vmem:[#allocation212_spill] sm:$0xff] %v11911_v31  ;;  %v4338_v11 = vpop.f32.mrf.mxu0  ;;  %5369 = vperm.xlu1 %8372, %v11904_v15   ;;  %5819 = vperm.xlu0 %8374, %v8527_v36   ;;  %v8584_v31 = vld [vmem:[%s13639_s1 + $0x150] sm:$0xff] }
 0x406   :  { %14272 = vst [vmem:[#allocation33_spill] sm:$0xff] %v11907_v28  ;;  %v11918_v62 = vadd.f32 %v4338_v11, %v2898_v16 }
 0x407   :  { %v8297_v19 = vpop.f32.mrf.mxu0 }
 0x408   :  { %14276 = vst [vmem:[#allocation85_spill] sm:$0xff] %v11918_v62  ;;  %v11920_v27 = vadd.f32 %v8297_v19, %v2909_v20  ;;  %v11922_v1 = vpop.permute.xlu0 %5094  ;;  %v11924_v37 = vpop.permute.xlu1 %5069  ;;  %v8530_v19 = vld [vmem:[%s13639_s1 + $0x40] sm:$0xff]  ;;  %v8532_v20 = vld [vmem:[%s13639_s1 + $0x50] sm:$0xff] }
 0x409   :  { %14278 = vst [vmem:[#allocation214_spill] sm:$0xff] %v11922_v1  ;;  %14279 = vst [vmem:[#allocation215_spill] sm:$0xff] %v11924_v37  ;;  %8373 = vset.pattern.permute.xlu1 %v14268_v29  ;;  %5827 = vperm.xlu0 %8374, %v8528_v34   ;;  %v8531_v29 = vld [vmem:[%s13639_s1 + $0x10] sm:$0xff]  ;;  %v8533_v34 = vld [vmem:[%s13639_s1 + $0x18] sm:$0xff] }
 0x40a   :  { %14277 = vst [vmem:[#allocation213_spill] sm:$0xff] %v11920_v27  ;;  %5803 = vperm.xlu1 %8373, %v8529_v17  }
 0x40c   :  { %v11933_v16 = vpop.permute.xlu0 %5104  ;;  %v11935_v11 = vpop.permute.xlu1 %5079 }
 0x40d   :  { %14280 = vst [vmem:[#allocation216_spill] sm:$0xff] %v11933_v16  ;;  %14281 = vst [vmem:[#allocation217_spill] sm:$0xff] %v11935_v11  ;;  %5835 = vperm.xlu0 %8374, %v8530_v19  }
 0x40e   :  { %5811 = vperm.xlu1 %8373, %v8531_v29   ;;  %v8534_v29 = vld [vmem:[%s13639_s1 + $0x60] sm:$0xff] }
 0x410   :  { %v11943_v36 = vpop.permute.xlu0 %5114  ;;  %v11945_v24 = vpop.permute.xlu1 %5089 }
 0x411   :  { %14282 = vst [vmem:[#allocation218_spill] sm:$0xff] %v11943_v36  ;;  %14283 = vst [vmem:[#allocation219_spill] sm:$0xff] %v11945_v24  ;;  %5843 = vperm.xlu0 %8374, %v8532_v20   ;;  %v8535_v36 = vld [vmem:[%s13639_s1 + $0x28] sm:$0xff] }
 0x412   :  { %5815 = vperm.xlu1 %8373, %v8533_v34   ;;  %v8536_v34 = vld [vmem:[%s13639_s1 + $0x70] sm:$0xff] }
 0x414   :  { %v11953_v17 = vpop.permute.xlu0 %5124  ;;  %v11955_v19 = vpop.permute.xlu1 %5099 }
 0x415   :  { %14284 = vst [vmem:[#allocation220_spill] sm:$0xff] %v11953_v17  ;;  %14285 = vst [vmem:[#allocation221_spill] sm:$0xff] %v11955_v19  ;;  %5851 = vperm.xlu0 %8374, %v8534_v29   ;;  %v8537_v17 = vld [vmem:[%s13639_s1 + $0x38] sm:$0xff] }
 0x416   :  { %5823 = vperm.xlu1 %8373, %v8535_v36   ;;  %v8538_v36 = vld [vmem:[%s13639_s1 + $0x80] sm:$0xff] }
 0x418   :  { %v11963_v20 = vpop.permute.xlu0 %5134  ;;  %v11965_v16 = vpop.permute.xlu1 %5109 }
 0x419   :  { %14286 = vst [vmem:[#allocation222_spill] sm:$0xff] %v11963_v20  ;;  %14287 = vst [vmem:[#allocation223_spill] sm:$0xff] %v11965_v16  ;;  %5859 = vperm.xlu0 %8374, %v8536_v34   ;;  %v8539_v20 = vld [vmem:[%s13639_s1 + $0x48] sm:$0xff] }
 0x41a   :  { %5831 = vperm.xlu1 %8373, %v8537_v17   ;;  %v8540_v17 = vld [vmem:[%s13639_s1 + $0x90] sm:$0xff] }
 0x41c   :  { %v11973_v29 = vpop.permute.xlu0 %5144  ;;  %v11975_v19 = vpop.permute.xlu1 %5119 }
 0x41d   :  { %14288 = vst [vmem:[#allocation224_spill] sm:$0xff] %v11973_v29  ;;  %14289 = vst [vmem:[#allocation225_spill] sm:$0xff] %v11975_v19  ;;  %5867 = vperm.xlu0 %8374, %v8538_v36   ;;  %v8541_v19 = vld [vmem:[%s13639_s1 + $0x58] sm:$0xff] }
 0x41e   :  { %5839 = vperm.xlu1 %8373, %v8539_v20   ;;  %v8542_v20 = vld [vmem:[%s13639_s1 + $0xa0] sm:$0xff] }
 0x420   :  { %v11983_v34 = vpop.permute.xlu0 %5154  ;;  %v11985_v16 = vpop.permute.xlu1 %5129 }
 0x421   :  { %14290 = vst [vmem:[#allocation226_spill] sm:$0xff] %v11983_v34  ;;  %14291 = vst [vmem:[#allocation227_spill] sm:$0xff] %v11985_v16  ;;  %5875 = vperm.xlu0 %8374, %v8540_v17   ;;  %v8543_v16 = vld [vmem:[%s13639_s1 + $0x68] sm:$0xff] }
 0x422   :  { %5847 = vperm.xlu1 %8373, %v8541_v19   ;;  %v8544_v19 = vld [vmem:[%s13639_s1 + $0xb0] sm:$0xff] }
 0x424   :  { %v11993_v36 = vpop.permute.xlu0 %5164  ;;  %v11995_v1 = vpop.permute.xlu1 %5139 }
 0x425   :  { %14292 = vst [vmem:[#allocation228_spill] sm:$0xff] %v11993_v36  ;;  %14293 = vst [vmem:[#allocation229_spill] sm:$0xff] %v11995_v1  ;;  %5883 = vperm.xlu0 %8374, %v8542_v20   ;;  %v8545_v36 = vld [vmem:[%s13639_s1 + $0x78] sm:$0xff] }
 0x426   :  { %5855 = vperm.xlu1 %8373, %v8543_v16   ;;  %v8546_v16 = vld [vmem:[%s13639_s1 + $0xc0] sm:$0xff] }
 0x428   :  { %v12003_v17 = vpop.permute.xlu0 %5174  ;;  %v12005_v24 = vpop.permute.xlu1 %5149 }
 0x429   :  { %14294 = vst [vmem:[#allocation230_spill] sm:$0xff] %v12003_v17  ;;  %14295 = vst [vmem:[#allocation231_spill] sm:$0xff] %v12005_v24  ;;  %5891 = vperm.xlu0 %8374, %v8544_v19   ;;  %v8547_v17 = vld [vmem:[%s13639_s1 + $0x88] sm:$0xff]  ;;  %v8582_v24 = vld [vmem:[%s13639_s1 + $0x238] sm:$0xff] }
 0x42a   :  { %5863 = vperm.xlu1 %8373, %v8545_v36   ;;  %v8548_v36 = vld [vmem:[%s13639_s1 + $0xd0] sm:$0xff] }
 0x42c   :  { %v12013_v20 = vpop.permute.xlu0 %5184  ;;  %v12015_v40 = vpop.permute.xlu1 %5159 }
 0x42d   :  { %14296 = vst [vmem:[#allocation232_spill] sm:$0xff] %v12013_v20  ;;  %14297 = vst [vmem:[#allocation233_spill] sm:$0xff] %v12015_v40  ;;  %5899 = vperm.xlu0 %8374, %v8546_v16   ;;  %v8549_v20 = vld [vmem:[%s13639_s1 + $0x98] sm:$0xff] }
 0x42e   :  { %5871 = vperm.xlu1 %8373, %v8547_v17   ;;  %v8550_v17 = vld [vmem:[%s13639_s1 + $0xe0] sm:$0xff] }
 0x430   :  { %v12023_v19 = vpop.permute.xlu0 %5194  ;;  %v12025_v11 = vpop.permute.xlu1 %5169 }
 0x431   :  { %14298 = vst [vmem:[#allocation234_spill] sm:$0xff] %v12023_v19  ;;  %14299 = vst [vmem:[#allocation235_spill] sm:$0xff] %v12025_v11  ;;  %5907 = vperm.xlu0 %8374, %v8548_v36   ;;  %v8551_v19 = vld [vmem:[%s13639_s1 + $0xa8] sm:$0xff] }
 0x432   :  { %5879 = vperm.xlu1 %8373, %v8549_v20   ;;  %v8552_v20 = vld [vmem:[%s13639_s1 + $0xf0] sm:$0xff] }
 0x434   :  { %v12033_v16 = vpop.permute.xlu0 %5204  ;;  %v12035_v40 = vpop.permute.xlu1 %5179 }
 0x435   :  { %14300 = vst [vmem:[#allocation236_spill] sm:$0xff] %v12033_v16  ;;  %14301 = vst [vmem:[#allocation237_spill] sm:$0xff] %v12035_v40  ;;  %5915 = vperm.xlu0 %8374, %v8550_v17   ;;  %v8553_v16 = vld [vmem:[%s13639_s1 + $0xb8] sm:$0xff] }
 0x436   :  { %5887 = vperm.xlu1 %8373, %v8551_v19   ;;  %v8554_v19 = vld [vmem:[%s13639_s1 + $0x100] sm:$0xff] }
 0x438   :  { %v12043_v36 = vpop.permute.xlu0 %5214  ;;  %v12045_v11 = vpop.permute.xlu1 %5189 }
 0x439   :  { %14302 = vst [vmem:[#allocation238_spill] sm:$0xff] %v12043_v36  ;;  %14303 = vst [vmem:[#allocation239_spill] sm:$0xff] %v12045_v11  ;;  %5923 = vperm.xlu0 %8374, %v8552_v20   ;;  %v8555_v36 = vld [vmem:[%s13639_s1 + $0xc8] sm:$0xff] }
 0x43a   :  { %5895 = vperm.xlu1 %8373, %v8553_v16   ;;  %v8556_v16 = vld [vmem:[%s13639_s1 + $0x110] sm:$0xff] }
 0x43c   :  { %v12053_v17 = vpop.permute.xlu0 %5224  ;;  %v12055_v40 = vpop.permute.xlu1 %5199 }
 0x43d   :  { %14304 = vst [vmem:[#allocation240_spill] sm:$0xff] %v12053_v17  ;;  %14305 = vst [vmem:[#allocation241_spill] sm:$0xff] %v12055_v40  ;;  %5931 = vperm.xlu0 %8374, %v8554_v19   ;;  %v8557_v40 = vld [vmem:[%s13639_s1 + $0xd8] sm:$0xff] }
 0x43e   :  { %5903 = vperm.xlu1 %8373, %v8555_v36   ;;  %v8558_v36 = vld [vmem:[%s13639_s1 + $0x180] sm:$0xff] }
 0x440   :  { %v12063_v20 = vpop.permute.xlu0 %5234  ;;  %v12065_v11 = vpop.permute.xlu1 %5209 }
 0x441   :  { %14306 = vst [vmem:[#allocation242_spill] sm:$0xff] %v12063_v20  ;;  %14307 = vst [vmem:[#allocation243_spill] sm:$0xff] %v12065_v11  ;;  %5939 = vperm.xlu0 %8374, %v8556_v16   ;;  %v8559_v11 = vld [vmem:[%s13639_s1 + $0xe8] sm:$0xff] }
 0x442   :  { %5911 = vperm.xlu1 %8373, %v8557_v40   ;;  %v8560_v40 = vld [vmem:[%s13639_s1 + $0xf8] sm:$0xff] }
 0x444   :  { %v12073_v19 = vpop.permute.xlu0 %5244  ;;  %v12075_v34 = vpop.permute.xlu1 %5219 }
 0x445   :  { %14308 = vst [vmem:[#allocation244_spill] sm:$0xff] %v12073_v19  ;;  %14309 = vst [vmem:[#allocation245_spill] sm:$0xff] %v12075_v34  ;;  %5995 = vperm.xlu0 %8374, %v8558_v36   ;;  %v8561_v36 = vld [vmem:[%s13639_s1 + $0x190] sm:$0xff] }
 0x446   :  { %5919 = vperm.xlu1 %8373, %v8559_v11   ;;  %v8562_v11 = vld [vmem:[%s13639_s1 + $0x108] sm:$0xff] }
 0x448   :  { %v12083_v16 = vpop.permute.xlu0 %5254  ;;  %v12085_v20 = vpop.permute.xlu1 %5229 }
 0x449   :  { %14310 = vst [vmem:[#allocation246_spill] sm:$0xff] %v12083_v16  ;;  %14311 = vst [vmem:[#allocation247_spill] sm:$0xff] %v12085_v20  ;;  %6059 = vperm.xlu0 %8374, %v11284_v0  }
 0x44a   :  { %5927 = vperm.xlu1 %8373, %v8560_v40   ;;  %v8563_v40 = vld [vmem:[%s13639_s1 + $0x118] sm:$0xff] }
 0x44c   :  { %v12091_v19 = vpop.permute.xlu0 %5264  ;;  %v12093_v17 = vpop.permute.xlu1 %5239 }
 0x44d   :  { %14312 = vst [vmem:[#allocation248_spill] sm:$0xff] %v12091_v19  ;;  %14313 = vst [vmem:[#allocation249_spill] sm:$0xff] %v12093_v17  ;;  %6003 = vperm.xlu0 %8374, %v8561_v36   ;;  %v8564_v36 = vld [vmem:[%s13639_s1 + $0x188] sm:$0xff] }
 0x44e   :  { %5935 = vperm.xlu1 %8373, %v8562_v11  }
 0x450   :  { %v12101_v0 = vpop.permute.xlu0 %5274  ;;  %v12103_v16 = vpop.permute.xlu1 %5249 }
 0x451   :  { %14314 = vst [vmem:[#allocation250_spill] sm:$0xff] %v12101_v0  ;;  %14315 = vst [vmem:[#allocation251_spill] sm:$0xff] %v12103_v16  ;;  %6127 = vperm.xlu0 %8374, %v11377_v39   ;;  %v8565_v39 = vld [vmem:[%s13639_s1 + $0x198] sm:$0xff] }
 0x452   :  { %5943 = vperm.xlu1 %8373, %v8563_v40   ;;  %v8566_v40 = vld [vmem:[%s13639_s1 + $0x208] sm:$0xff] }
 0x454   :  { %v12109_v19 = vpop.permute.xlu0 %5284  ;;  %v12111_v17 = vpop.permute.xlu1 %5259 }
 0x455   :  { %14316 = vst [vmem:[#allocation252_spill] sm:$0xff] %v12109_v19  ;;  %14317 = vst [vmem:[#allocation253_spill] sm:$0xff] %v12111_v17  ;;  %6187 = vperm.xlu0 %8374, %v11584_v43   ;;  %v12237_v17 = vpop.f32.mrf.mxu1 }
 0x456   :  { %5999 = vperm.xlu1 %8373, %v8564_v36   ;;  %14341 = vst [vmem:[#allocation277_spill] sm:$0xff] %v12237_v17 }
 0x458   :  { %v12117_v11 = vpop.permute.xlu0 %5294  ;;  %v12119_v0 = vpop.permute.xlu1 %5269 }
 0x459   :  { %14318 = vst [vmem:[#allocation254_spill] sm:$0xff] %v12117_v11  ;;  %14319 = vst [vmem:[#allocation255_spill] sm:$0xff] %v12119_v0  ;;  %6007 = vperm.xlu0 %8374, %v8565_v39   ;;  %v8567_v39 = vld [vmem:[%s13639_s1 + $0x120] sm:$0xff] }
 0x45a   :  { %6063 = vperm.xlu1 %8373, %v8566_v40   ;;  %v8568_v40 = vld [vmem:[%s13639_s1 + $0x210] sm:$0xff] }
 0x45c   :  { %v12127_v43 = vpop.permute.xlu0 %5304  ;;  %v12129_v19 = vpop.permute.xlu1 %5279 }
 0x45d   :  { %14320 = vst [vmem:[#allocation256_spill] sm:$0xff] %v12127_v43  ;;  %14321 = vst [vmem:[#allocation257_spill] sm:$0xff] %v12129_v19  ;;  %6251 = vperm.xlu0 %8374, %v11754_v58  }
 0x45e   :  { %6123 = vperm.xlu1 %8373, %v11423_v54  }
 0x460   :  { %v12133_v36 = vpop.permute.xlu0 %5314  ;;  %v12135_v11 = vpop.permute.xlu1 %5289 }
 0x461   :  { %14322 = vst [vmem:[#allocation258_spill] sm:$0xff] %v12133_v36  ;;  %14323 = vst [vmem:[#allocation259_spill] sm:$0xff] %v12135_v11  ;;  %5947 = vperm.xlu0 %8374, %v8567_v39  }
 0x462   :  { %6067 = vperm.xlu1 %8373, %v8568_v40   ;;  %v8569_v40 = vld [vmem:[%s13639_s1 + $0x128] sm:$0xff] }
 0x464   :  { %v12143_v0 = vpop.permute.xlu0 %5324  ;;  %v12145_v19 = vpop.permute.xlu1 %5299 }
 0x465   :  { %14324 = vst [vmem:[#allocation260_spill] sm:$0xff] %v12143_v0  ;;  %14325 = vst [vmem:[#allocation261_spill] sm:$0xff] %v12145_v19  ;;  %6195 = vperm.xlu0 %8374, %v11606_v21  }
 0x466   :  { %6191 = vperm.xlu1 %8373, %v11538_v47  }
 0x468   :  { %v12149_v54 = vpop.permute.xlu0 %5334  ;;  %v12151_v58 = vpop.permute.xlu1 %5309 }
 0x469   :  { %14326 = vst [vmem:[#allocation262_spill] sm:$0xff] %v12149_v54  ;;  %14327 = vst [vmem:[#allocation263_spill] sm:$0xff] %v12151_v58  ;;  %6135 = vperm.xlu0 %8374, %v11396_v45   ;;  %v8570_v45 = vld [vmem:[%s13639_s1 + $0x218] sm:$0xff]  ;;  %v12244_v54 = vpop.f32.mrf.mxu0  ;;  %v8581_v58 = vld [vmem:[%s13639_s1 + $0x148] sm:$0xff] }
 0x46a   :  { %6131 = vperm.xlu1 %8373, %v11445_v42   ;;  %14343 = vst [vmem:[#allocation279_spill] sm:$0xff] %v12244_v54  ;;  %v8585_v54 = vld [vmem:[%s13639_s1 + $0x240] sm:$0xff] }
 0x46c   :  { %v12155_v39 = vpop.permute.xlu0 %5344  ;;  %v12157_v11 = vpop.permute.xlu1 %5319 }
 0x46d   :  { %14328 = vst [vmem:[#allocation264_spill] sm:$0xff] %v12155_v39  ;;  %14329 = vst [vmem:[#allocation265_spill] sm:$0xff] %v12157_v11  ;;  %5951 = vperm.xlu0 %8374, %v8569_v40  }
 0x46e   :  { %6255 = vperm.xlu1 %8373, %v11705_v51   ;;  %v8571_v51 = vld [vmem:[%s13639_s1 + $0x1a0] sm:$0xff] }
 0x470   :  { %v12163_v47 = vpop.permute.xlu0 %5354  ;;  %v12165_v21 = vpop.permute.xlu1 %5329 }
 0x471   :  { %14330 = vst [vmem:[#allocation266_spill] sm:$0xff] %v12163_v47  ;;  %14331 = vst [vmem:[#allocation267_spill] sm:$0xff] %v12165_v21  ;;  %6199 = vperm.xlu0 %8374, %v11557_v10   ;;  %v8572_v10 = vld [vmem:[%s13639_s1 + $0x130] sm:$0xff] }
 0x472   :  { %6071 = vperm.xlu1 %8373, %v8570_v45  }
 0x474   :  { %v12171_v42 = vpop.permute.xlu0 %5364  ;;  %v12173_v39 = vpop.permute.xlu1 %5339 }
 0x475   :  { %14332 = vst [vmem:[#allocation268_spill] sm:$0xff] %v12171_v42  ;;  %14333 = vst [vmem:[#allocation269_spill] sm:$0xff] %v12173_v39  ;;  %6139 = vperm.xlu0 %8374, %v11467_v60   ;;  %v8573_v60 = vld [vmem:[%s13639_s1 + $0x220] sm:$0xff] }
 0x476   :  { %6011 = vperm.xlu1 %8373, %v8571_v51  }
 0x478   :  { %v12179_v40 = vpop.permute.xlu0 %5374  ;;  %v12181_v47 = vpop.permute.xlu1 %5349 }
 0x479   :  { %14334 = vst [vmem:[#allocation270_spill] sm:$0xff] %v12179_v40  ;;  %14335 = vst [vmem:[#allocation271_spill] sm:$0xff] %v12181_v47  ;;  %5955 = vperm.xlu0 %8374, %v8572_v10  }
 0x47a   :  { %6259 = vperm.xlu1 %8373, %v11776_v12   ;;  %v8574_v12 = vld [vmem:[%s13639_s1 + $0x1a8] sm:$0xff] }
 0x47c   :  { %v12187_v45 = vpop.permute.xlu1 %5359  ;;  %v12189_v42 = vpop.permute.xlu0 %5807 }
 0x47d   :  { %14336 = vst [vmem:[#allocation272_spill] sm:$0xff] %v12187_v45  ;;  %6203 = vperm.xlu0 %8374, %v11628_v30   ;;  %v8575_v30 = vld [vmem:[%s13639_s1 + $0x138] sm:$0xff] }
 0x47e   :  { %6075 = vperm.xlu1 %8373, %v8573_v60  }
 0x480   :  { %v12195_v51 = vpop.permute.xlu1 %5369  ;;  %v12197_v40 = vpop.permute.xlu0 %5819 }
 0x481   :  { %14337 = vst [vmem:[#allocation273_spill] sm:$0xff] %v12195_v51  ;;  %6143 = vperm.xlu0 %8374, %v11415_v35   ;;  %v8576_v35 = vld [vmem:[%s13639_s1 + $0x228] sm:$0xff] }
 0x482   :  { %6015 = vperm.xlu1 %8373, %v8574_v12  }
 0x484   :  { %v12203_v10 = vpop.permute.xlu0 %5827 }
 0x485   :  { %v12205_v45 = vpop.permute.xlu1 %5803  ;;  %5959 = vperm.xlu0 %8374, %v8575_v30  }
 0x486   :  { %6263 = vperm.xlu1 %8373, %v11727_v32   ;;  %v8577_v32 = vld [vmem:[%s13639_s1 + $0x1b0] sm:$0xff] }
 0x488   :  { %v12211_v60 = vpop.permute.xlu0 %5835 }
 0x489   :  { %14338 = vst [vmem:[#allocation274_spill] sm:$0xff] %v12211_v60  ;;  %v12213_v51 = vpop.permute.xlu1 %5811  ;;  %6207 = vperm.xlu0 %8374, %v11576_v38   ;;  %v8578_v38 = vld [vmem:[%s13639_s1 + $0x140] sm:$0xff] }
 0x48a   :  { %6079 = vperm.xlu1 %8373, %v8576_v35   ;;  %v8399_v35 = vld [vmem:[%s13643_s5 + $0x18] sm:$0xff]  }
 0x48c   :  { %v12219_v12 = vpop.permute.xlu0 %5843 }
 0x48d   :  { %14339 = vst [vmem:[#allocation275_spill] sm:$0xff] %v12219_v12  ;;  %v12221_v47 = vpop.permute.xlu1 %5815  ;;  %6147 = vperm.xlu0 %8374, %v11487_v26   ;;  %v13743_v26 = vmov 0.0  }
 0x48e   :  { %6019 = vperm.xlu1 %8373, %v8577_v32   ;;  %8330 = vmatprep.subr.bf16.mxu1 %v13743_v26 }
 0x48f   :  { %8331 = vmatpush3.bf16.msra.mxu1 %v8399_v35  ;;  %v12256_v35 = vpop.f32.mrf.mxu0 }
 0x490   :  { %v12227_v30 = vpop.permute.xlu0 %5851  ;;  %8332 = vmatprep.subr.bf16.mxu1 %v13743_v26 }
 0x491   :  { %14340 = vst [vmem:[#allocation276_spill] sm:$0xff] %v12227_v30  ;;  %v12229_v39 = vpop.permute.xlu1 %5823  ;;  %5963 = vperm.xlu0 %8374, %v8578_v38   ;;  %v12249_v38 = vpop.f32.mrf.mxu1  ;;  %v8587_v30 = vld [vmem:[%s13639_s1 + $0x158] sm:$0xff] }
 0x492   :  { %6267 = vperm.xlu1 %8373, %v11800_v23   ;;  %v8579_v23 = vld [vmem:[%s13639_s1 + $0x230] sm:$0xff]  ;;  %v12268_v36 = vpop.f32.mrf.mxu0 }
 0x493   :  { %v12261_v26 = vpop.f32.mrf.mxu1 }
 0x494   :  { %v12241_v32 = vpop.permute.xlu0 %5859  ;;  %v12280_v20 = vpop.f32.mrf.mxu0 }
 0x495   :  { %14342 = vst [vmem:[#allocation278_spill] sm:$0xff] %v12241_v32  ;;  %v12246_v21 = vpop.permute.xlu1 %5831  ;;  %6211 = vperm.xlu0 %8374, %v11650_v9   ;;  %v8580_v9 = vld [vmem:[%s13639_s1 + $0x1b8] sm:$0xff]  ;;  %v12275_v43 = vpop.f32.mrf.mxu1 }
 0x496   :  { %6083 = vperm.xlu1 %8373, %v8579_v23   ;;  %v12292_v29 = vpop.f32.mrf.mxu0 }
 0x497   :  { %v12285_v19 = vpop.f32.mrf.mxu1 }
 0x498   :  { %v12254_v16 = vpop.permute.xlu0 %5867  ;;  %v12304_v37 = vpop.f32.mrf.mxu0 }
 0x499   :  { %v12258_v0 = vpop.permute.xlu1 %5839  ;;  %6151 = vperm.xlu0 %8374, %v11437_v53   ;;  %v12297_v34 = vpop.f32.mrf.mxu1 }
 0x49a   :  { %14344 = vst [vmem:[#allocation280_spill] sm:$0xff] %v12258_v0  ;;  %6023 = vperm.xlu1 %8373, %v8580_v9   ;;  %v12316_v28 = vpop.f32.mrf.mxu0 }
 0x49b   :  { %v12311_v27 = vpop.f32.mrf.mxu1 }
 0x49c   :  { %v12266_v11 = vpop.permute.xlu0 %5875  ;;  %v12328_v17 = vpop.f32.mrf.mxu0 }
 0x49d   :  { %v12270_v23 = vpop.permute.xlu1 %5847  ;;  %5967 = vperm.xlu0 %8374, %v8581_v58   ;;  %v12321_v62 = vpop.f32.mrf.mxu1 }
 0x49e   :  { %14345 = vst [vmem:[#allocation281_spill] sm:$0xff] %v12270_v23  ;;  %6271 = vperm.xlu1 %8373, %v11746_v46  }
 0x4a0   :  { %v12278_v53 = vpop.permute.xlu0 %5883 }
 0x4a1   :  { %v12282_v9 = vpop.permute.xlu1 %5855  ;;  %6215 = vperm.xlu0 %8374, %v11598_v2   ;;  %v8583_v2 = vld [vmem:[%s13639_s1 + $0x1c0] sm:$0xff] }
 0x4a2   :  { %14346 = vst [vmem:[#allocation282_spill] sm:$0xff] %v12282_v9  ;;  %6087 = vperm.xlu1 %8373, %v8582_v24   ;;  %v12340_v9 = vpop.f32.mrf.mxu0 }
 0x4a4   :  { %v12290_v58 = vpop.permute.xlu0 %5891  ;;  %v12350_v23 = vpop.f32.mrf.mxu0 }
 0x4a5   :  { %v12294_v46 = vpop.permute.xlu1 %5863  ;;  %6155 = vperm.xlu0 %8374, %v11506_v55   ;;  %14352 = vst [vmem:[#allocation288_spill] sm:$0xff] %v12350_v23 }
 0x4a6   :  { %14347 = vst [vmem:[#allocation283_spill] sm:$0xff] %v12294_v46  ;;  %6027 = vperm.xlu1 %8373, %v8583_v2   ;;  %v12333_v46 = vpop.f32.mrf.mxu1 }
 0x4a8   :  { %v12302_v1 = vpop.permute.xlu0 %5899 }
 0x4a9   :  { %v12306_v24 = vpop.permute.xlu1 %5871  ;;  %5971 = vperm.xlu0 %8374, %v8584_v31  }
 0x4aa   :  { %6275 = vperm.xlu1 %8373, %v11821_v52  }
 0x4ac   :  { %v12314_v55 = vpop.permute.xlu0 %5907 }
 0x4ad   :  { %14348 = vst [vmem:[#allocation284_spill] sm:$0xff] %v12314_v55  ;;  %v12318_v2 = vpop.permute.xlu1 %5879  ;;  %6219 = vperm.xlu0 %8374, %v11672_v59   ;;  %v8586_v59 = vld [vmem:[%s13639_s1 + $0x1c8] sm:$0xff] }
 0x4ae   :  { %6091 = vperm.xlu1 %8373, %v8585_v54  }
 0x4b0   :  { %v12326_v31 = vpop.permute.xlu0 %5915 }
 0x4b1   :  { %14349 = vst [vmem:[#allocation285_spill] sm:$0xff] %v12326_v31  ;;  %v12330_v52 = vpop.permute.xlu1 %5887  ;;  %6159 = vperm.xlu0 %8374, %v11459_v5   ;;  %v12347_v31 = vpop.f32.mrf.mxu1 }
 0x4b2   :  { %6031 = vperm.xlu1 %8373, %v8586_v59   ;;  %14351 = vst [vmem:[#allocation287_spill] sm:$0xff] %v12347_v31 }
 0x4b3   :  { %v12355_v59 = vpop.f32.mrf.mxu1 }
 0x4b4   :  { %v12338_v32 = vpop.permute.xlu0 %5923  ;;  %14354 = vst [vmem:[#allocation290_spill] sm:$0xff] %v12355_v59 }
 0x4b5   :  { %14350 = vst [vmem:[#allocation286_spill] sm:$0xff] %v12338_v32  ;;  %v12342_v54 = vpop.permute.xlu1 %5895  ;;  %5975 = vperm.xlu0 %8374, %v8587_v30   ;;  %v8588_v32 = vld [vmem:[%s13639_s1 + $0x248] sm:$0xff]  ;;  %v12360_v30 = vpop.f32.mrf.mxu0 }
 0x4b6   :  { %6279 = vperm.xlu1 %8373, %v11768_v25   ;;  %14355 = vst [vmem:[#allocation291_spill] sm:$0xff] %v12360_v30  ;;  %v12365_v25 = vpop.f32.mrf.mxu1 }
 0x4b7   :  { %14357 = vst [vmem:[#allocation293_spill] sm:$0xff] %v12365_v25  ;;  %v12370_v59 = vpop.f32.mrf.mxu0 }
 0x4b8   :  { %v5932_v5 = vpop.permute.xlu0 %5931  ;;  %14358 = vst [vmem:[#allocation294_spill] sm:$0xff] %v12370_v59  ;;  %v12377_v30 = vpop.f32.mrf.mxu1  ;;  %v8591_v59 = vld [vmem:[%s13639_s1 + $0x250] sm:$0xff] }
 0x4b9   :  { %v12352_v12 = vpop.permute.xlu1 %5903  ;;  %6223 = vperm.xlu0 %8374, %v11620_v56   ;;  %v8589_v56 = vld [vmem:[%s13639_s1 + $0x1d0] sm:$0xff]  ;;  %14360 = vst [vmem:[#allocation296_spill] sm:$0xff] %v12377_v30  ;;  %v12380_v25 = vpop.f32.mrf.mxu0 }
 0x4ba   :  { %14353 = vst [vmem:[#allocation289_spill] sm:$0xff] %v12352_v12  ;;  %6095 = vperm.xlu1 %8373, %v8588_v32   ;;  %v8590_v32 = vld [vmem:[%s13639_s1 + $0x160] sm:$0xff]  ;;  %14361 = vst [vmem:[#allocation297_spill] sm:$0xff] %v12380_v25  ;;  %v8592_v25 = vld [vmem:[%s13639_s1 + $0x2d8] sm:$0xff] }
 0x4bb   :  { %v12391_v30 = vpop.f32.mrf.mxu0 }
 0x4bc   :  { %v5940_v55 = vpop.permute.xlu0 %5939  ;;  %14364 = vst [vmem:[#allocation300_spill] sm:$0xff] %v12391_v30 }
 0x4bd   :  { %v12362_v31 = vpop.permute.xlu1 %5911  ;;  %6163 = vperm.xlu0 %8374, %v11525_v6   ;;  %v12405_v12 = vpop.f32.mrf.mxu0 }
 0x4be   :  { %14356 = vst [vmem:[#allocation292_spill] sm:$0xff] %v12362_v31  ;;  %6035 = vperm.xlu1 %8373, %v8589_v56   ;;  %v12385_v56 = vpop.f32.mrf.mxu1  ;;  %14365 = vst [vmem:[#allocation301_spill] sm:$0xff] %v12405_v12 }
 0x4bf   :  { %14363 = vst [vmem:[#allocation299_spill] sm:$0xff] %v12385_v56 }
 0x4c0   :  { %v5996_v23 = vpop.permute.xlu0 %5995 }
 0x4c1   :  { %v12372_v0 = vpop.permute.xlu1 %5919  ;;  %5979 = vperm.xlu0 %8374, %v8590_v32   ;;  %v6346_v32 = vmul.f32 %v5932_v5, %v11314_v49 }
 0x4c2   :  { %14359 = vst [vmem:[#allocation295_spill] sm:$0xff] %v12372_v0  ;;  %6283 = vperm.xlu1 %8373, %v11845_v57  }
 0x4c3   :  { %v6516_v5 = vsel %vm5505_vm0, %v6346_v32, -inf }
 0x4c4   :  { %v6060_v6 = vpop.permute.xlu0 %6059 }
 0x4c5   :  { %v12382_v31 = vpop.permute.xlu1 %5927  ;;  %6227 = vperm.xlu0 %8374, %v11692_v13   ;;  %v6348_v13 = vmul.f32 %v5940_v55, %v11304_v61  ;;  %v8594_v55 = vld [vmem:[%s13639_s1 + $0x168] sm:$0xff] }
 0x4c6   :  { %14362 = vst [vmem:[#allocation298_spill] sm:$0xff] %v12382_v31  ;;  %6099 = vperm.xlu1 %8373, %v8591_v59   ;;  %v12396_v31 = vpop.f32.mrf.mxu1  ;;  %v8593_v59 = vld [vmem:[%s13639_s1 + $0x1d8] sm:$0xff] }
 0x4c7   :  { %v6519_v61 = vsel %vm5505_vm0, %v6348_v13, -inf  ;;  %v8595_v13 = vld [vmem:[%s13639_s1 + $0x258] sm:$0xff] }
 0x4c8   :  { %v6004_v0 = vpop.permute.xlu0 %6003 }
 0x4c9   :  { %v5936_v57 = vpop.permute.xlu1 %5935  ;;  %6167 = vperm.xlu0 %8374, %v8592_v25  }
 0x4ca   :  { %v6347_v56 = vmul.f32 %v5936_v57, %v11330_v8  ;;  %6039 = vperm.xlu1 %8373, %v8593_v59   ;;  %v12410_v57 = vpop.f32.mrf.mxu1  ;;  %v12423_v8 = vpop.f32.mrf.mxu0 }
 0x4cb   :  { %14366 = vst [vmem:[#allocation302_spill] sm:$0xff] %v12410_v57  ;;  %14367 = vst [vmem:[#allocation303_spill] sm:$0xff] %v12423_v8  ;;  %v14370_v8 = vmov 0.0   ;;  %v14377_v57 = vld [vmem:[#allocation183_spill] sm:$0xff] }
 0x4cc   :  { %v6517_v49 = vsel %vm5505_vm0, %v6347_v56, -inf  ;;  %v6128_v30 = vpop.permute.xlu0 %6127  ;;  %v6362_v56 = vmul.f32 %v5996_v23, %v11462_v14 }
 0x4cd   :  { %v6518_v25 = vmax.f32 %v6516_v5, %v6517_v49  ;;  %v5944_v60 = vpop.permute.xlu1 %5943  ;;  %5983 = vperm.xlu0 %8374, %v8594_v55   ;;  %v6378_v55 = vmul.f32 %v6060_v6, %v11623_v33 }
 0x4ce   :  { %v6349_v59 = vmul.f32 %v5944_v60, %v11320_v41  ;;  %6287 = vperm.xlu1 %8373, %v11792_v50   ;;  %v12431_v50 = vpop.f32.mrf.mxu1  ;;  %v6364_v60 = vmul.f32 %v6004_v0, %v11448_v63  ;;  %v12444_v0 = vpop.f32.mrf.mxu0 }
 0x4cf   :  { %v12415_v32 = vmax.f32 %v6518_v25, %v6519_v61  ;;  %v8400_v61 = vld [vmem:[%s13643_s5 + $0x10] sm:$0xff]   ;;  %14368 = vst [vmem:[#allocation304_spill] sm:$0xff] %v12431_v50  ;;  %v14369_v25 = vld [vmem:[#allocation23_spill] sm:$0xff] }
 0x4d0   :  { %v12419_v49 = vsel %vm5505_vm0, %v6349_v59, -inf  ;;  %v12421_v5 = vpop.permute.xlu0 %6187  ;;  %8333 = vmatpush3.bf16.msra.mxu1 %v8400_v61  ;;  %v2853_v59 = vadd.f32 %v11778_v48, %v14369_v25  ;;  %14371 = vst [vmem:[#allocation23_spill] sm:$0xff] %v12444_v0  ;;  %v8596_v61 = vld [vmem:[%s13639_s1 + $0x2e0] sm:$0xff]  ;;  %v12453_v6 = vpop.f32.mrf.mxu1  ;;  %v6590_v25 = vsel %vm5505_vm0, %v6378_v55, -inf }
 0x4d1   :  { %v6000_v12 = vpop.permute.xlu1 %5999  ;;  %6231 = vperm.xlu0 %8374, %v11642_v3   ;;  %v6553_v3 = vsel %vm5505_vm0, %v6362_v56, -inf  ;;  %8334 = vmatprep.subr.bf16.mxu1 %v14370_v8  ;;  %v6556_v56 = vsel %vm5505_vm0, %v6364_v60, -inf  ;;  %v12468_v60 = vpop.f32.mrf.mxu0  ;;  %v14376_v0 = vld [vmem:[#allocation124_spill] sm:$0xff] }
 0x4d2   :  { %v6363_v23 = vmul.f32 %v6000_v12, %v11482_v7  ;;  %6103 = vperm.xlu1 %8373, %v8595_v13   ;;  %v12451_v48 = vadd.f32 %v11809_v44, %v2853_v59 }
 0x4d4   :  { %v6554_v14 = vsel %vm5505_vm0, %v6363_v23, -inf  ;;  %v6008_v41 = vpop.permute.xlu0 %6007  ;;  %14372 = vst [vmem:[#allocation305_spill] sm:$0xff] %v12451_v48  ;;  %v6395_v44 = vmul.f32 %v6128_v30, %v12451_v48  ;;  %v14374_v30 = vld [vmem:[#allocation37_spill] sm:$0xff] }
 0x4d5   :  { %v6555_v12 = vmax.f32 %v6553_v3, %v6554_v14  ;;  %v6365_v63 = vmul.f32 %v6008_v41, %v11470_v4  ;;  %v6064_v7 = vpop.permute.xlu1 %6063  ;;  %6171 = vperm.xlu0 %8374, %v8596_v61   ;;  %v8597_v14 = vld [vmem:[%s13639_s1 + $0x1e0] sm:$0xff] }
 0x4d6   :  { %v6379_v23 = vmul.f32 %v6064_v7, %v11645_v22  ;;  %6043 = vperm.xlu1 %8373, %v8597_v14   ;;  %v6628_v14 = vsel %vm5505_vm0, %v6395_v44, -inf  ;;  %v4418_v22 = vpop.f32.mrf.mxu0 }
 0x4d7   :  { %v12460_v41 = vmax.f32 %v6555_v12, %v6556_v56  ;;  %v12463_v13 = vsel %vm5505_vm0, %v6365_v63, -inf  ;;  %v8598_v12 = vld [vmem:[%s13639_s1 + $0x170] sm:$0xff]  ;;  %v2977_v63 = vpop.f32.mrf.mxu1 }
 0x4d8   :  { %v6591_v59 = vsel %vm5505_vm0, %v6379_v23, -inf  ;;  %v6252_v3 = vpop.permute.xlu0 %6251  ;;  %v14373_v56 = vld [vmem:[#allocation30_spill] sm:$0xff]  ;;  %v2914_v23 = vadd.f32 %v12261_v26, %v14374_v30 }
 0x4d9   :  { %v6592_v61 = vmax.f32 %v6590_v25, %v6591_v59  ;;  %v6124_v4 = vpop.permute.xlu1 %6123  ;;  %5987 = vperm.xlu0 %8374, %v8598_v12   ;;  %v14375_v25 = vld [vmem:[#allocation36_spill] sm:$0xff]  ;;  %v12490_v44 = vpop.f32.mrf.mxu1 }
 0x4da   :  { %v6394_v55 = vmul.f32 %v6124_v4, %v11795_v18  ;;  %6291 = vperm.xlu1 %8373, %v14373_v56   ;;  %v2922_v59 = vadd.f32 %v12249_v38, %v14375_v25  ;;  %v14378_v4 = vld [vmem:[#allocation39_spill] sm:$0xff]  ;;  %v12488_v26 = vadd.f32 %v12268_v36, %v2914_v23  ;;  %v8599_v38 = vld [vmem:[%s13639_s1 + $0x260] sm:$0xff]  ;;  %v14383_v36 = vmax.f32 %v12415_v32, %v12419_v49  ;;  %v12511_v25 = vpop.f32.mrf.mxu0  ;;  %v8601_v49 = vld [vmem:[%s13639_s1 + $0x1e8] sm:$0xff] }
 0x4db   :  { %v2917_v56 = vadd.f32 %v12285_v19, %v14378_v4  ;;  %v14384_v4 = vld [vmem:[#allocation100_spill] sm:$0xff] }
 0x4dc   :  { %v6627_v48 = vsel %vm5505_vm0, %v6394_v55, -inf  ;;  %v5948_v7 = vpop.permute.xlu0 %5947  ;;  %14379 = vst [vmem:[#allocation30_spill] sm:$0xff] %v12488_v26  ;;  %v14380_v55 = vld [vmem:[#allocation108_spill] sm:$0xff]  ;;  %v6410_v19 = vmul.f32 %v12421_v5, %v12488_v26 }
 0x4dd   :  { %v6629_v33 = vmax.f32 %v6627_v48, %v6628_v14  ;;  %v6350_v12 = vmul.f32 %v5948_v7, %v14376_v0  ;;  %v6068_v50 = vpop.permute.xlu1 %6067  ;;  %6235 = vperm.xlu0 %8374, %v14377_v57   ;;  %v12497_v48 = vadd.f32 %v12256_v35, %v2922_v59  ;;  %v12501_v7 = vadd.f32 %v12292_v29, %v2917_v56  ;;  %v8600_v29 = vld [vmem:[%s13639_s1 + $0x2e8] sm:$0xff] }
 0x4de   :  { %v6380_v30 = vmul.f32 %v6068_v50, %v14380_v55  ;;  %6107 = vperm.xlu1 %8373, %v8599_v38   ;;  %v2978_v56 = vadd.f32 %v2977_v63, %v14384_v4  ;;  %v14387_v63 = vld [vmem:[#allocation192_spill] sm:$0xff] }
 0x4df   :  { %14381 = vst [vmem:[#allocation37_spill] sm:$0xff] %v12497_v48  ;;  %v6523_v57 = vsel %vm5505_vm0, %v6350_v12, -inf  ;;  %14382 = vst [vmem:[#allocation36_spill] sm:$0xff] %v12501_v7  ;;  %v2980_v12 = vpop.f32.mrf.mxu1 }
 0x4e0   :  { %v12508_v50 = vmax.f32 %v14383_v36, %v6523_v57  ;;  %v6593_v23 = vsel %vm5505_vm0, %v6380_v30, -inf  ;;  %v6196_v14 = vpop.permute.xlu0 %6195  ;;  %v14385_v57 = vld [vmem:[#allocation48_spill] sm:$0xff] }
 0x4e1   :  { %v12513_v35 = vmax.f32 %v6592_v61, %v6593_v23  ;;  %v6192_v59 = vpop.permute.xlu1 %6191  ;;  %6175 = vperm.xlu0 %8374, %v8600_v29   ;;  %v6412_v5 = vmul.f32 %v6196_v14, %v12497_v48  ;;  %v6664_v61 = vsel %vm5505_vm0, %v6410_v19, -inf  ;;  %v2981_v36 = vadd.f32 %v2980_v12, %v14385_v57  ;;  %v4421_v23 = vpop.f32.mrf.mxu0  ;;  %v8602_v14 = vld [vmem:[%s13639_s1 + $0x178] sm:$0xff]  ;;  %v14388_v19 = vld [vmem:[#allocation20_spill] sm:$0xff] }
 0x4e2   :  { %v6411_v32 = vmul.f32 %v6192_v59, %v12501_v7  ;;  %6047 = vperm.xlu1 %8373, %v8601_v49   ;;  %v12530_v59 = vadd.f32 %v4418_v22, %v2978_v56 }
 0x4e3   :  { %v6667_v49 = vsel %vm5505_vm0, %v6412_v5, -inf  ;;  %v12538_v12 = vadd.f32 %v4421_v23, %v2981_v36  ;;  %v14392_v5 = vld [vmem:[#allocation128_spill] sm:$0xff] }
 0x4e4   :  { %v6665_v30 = vsel %vm5505_vm0, %v6411_v32, -inf  ;;  %v6136_v38 = vpop.permute.xlu0 %6135  ;;  %14386 = vst [vmem:[#allocation183_spill] sm:$0xff] %v12530_v59  ;;  %v14389_v32 = vld [vmem:[#allocation195_spill] sm:$0xff] }
 0x4e5   :  { %v6666_v29 = vmax.f32 %v6664_v61, %v6665_v30  ;;  %v6132_v26 = vpop.permute.xlu1 %6131  ;;  %5991 = vperm.xlu0 %8374, %v8602_v14   ;;  %v6397_v4 = vmul.f32 %v6136_v38, %v14387_v63  ;;  %14390 = vst [vmem:[#allocation39_spill] sm:$0xff] %v12538_v12  ;;  %v6426_v61 = vmul.f32 %v6252_v3, %v12530_v59  ;;  %v14391_v14 = vld [vmem:[#allocation38_spill] sm:$0xff]  ;;  %v8603_v3 = vld [vmem:[%s13639_s1 + $0x268] sm:$0xff] }
 0x4e6   :  { %v6396_v48 = vmul.f32 %v6132_v26, %v14388_v19  ;;  %6295 = vperm.xlu1 %8373, %v14389_v32   ;;  %v2925_v22 = vadd.f32 %v12275_v43, %v14391_v14  ;;  %v14393_v63 = vld [vmem:[#allocation178_spill] sm:$0xff]  ;;  %v14478_v19 = vld [vmem:[#allocation281_spill] sm:$0xff] }
 0x4e7   :  { %v12536_v7 = vmax.f32 %v6666_v29, %v6667_v49  ;;  %v6632_v26 = vsel %vm5505_vm0, %v6397_v4, -inf  ;;  %v6701_v36 = vsel %vm5505_vm0, %v6426_v61, -inf }
 0x4e8   :  { %v6630_v30 = vsel %vm5505_vm0, %v6396_v48, -inf  ;;  %v5952_v57 = vpop.permute.xlu0 %5951  ;;  %v12552_v48 = vadd.f32 %v12280_v20, %v2925_v22  ;;  %v14395_v20 = vld [vmem:[#allocation55_spill] sm:$0xff] }
 0x4e9   :  { %v6631_v56 = vmax.f32 %v6629_v33, %v6630_v30  ;;  %v6351_v18 = vmul.f32 %v5952_v57, %v14392_v5  ;;  %v6256_v38 = vpop.permute.xlu1 %6255  ;;  %6239 = vperm.xlu0 %8374, %v14393_v63   ;;  %v8604_v57 = vld [vmem:[%s13639_s1 + $0x2f0] sm:$0xff] }
 0x4ea   :  { %v6427_v29 = vmul.f32 %v6256_v38, %v12538_v12  ;;  %6111 = vperm.xlu1 %8373, %v8603_v3   ;;  %14394 = vst [vmem:[#allocation100_spill] sm:$0xff] %v12552_v48 }
 0x4eb   :  { %v6525_v43 = vsel %vm5505_vm0, %v6351_v18, -inf  ;;  %v6633_v33 = vmax.f32 %v6631_v56, %v6632_v26  ;;  %v8605_v18 = vld [vmem:[%s13639_s1 + $0x1f0] sm:$0xff]  ;;  %v14396_v26 = vld [vmem:[#allocation28_spill] sm:$0xff] }
 0x4ec   :  { %v6526_v23 = vmax.f32 %v12508_v50, %v6525_v43  ;;  %v6702_v49 = vsel %vm5505_vm0, %v6427_v29, -inf  ;;  %v6200_v63 = vpop.permute.xlu0 %6199  ;;  %v8606_v43 = vld [vmem:[%s13639_s1 + $0x278] sm:$0xff] }
 0x4ed   :  { %v6703_v4 = vmax.f32 %v6701_v36, %v6702_v49  ;;  %v6413_v32 = vmul.f32 %v6200_v63, %v12552_v48  ;;  %v6072_v30 = vpop.permute.xlu1 %6071  ;;  %6179 = vperm.xlu0 %8374, %v8604_v57   ;;  %v14397_v36 = vld [vmem:[#allocation47_spill] sm:$0xff]  ;;  %v14398_v63 = vld [vmem:[#allocation152_spill] sm:$0xff] }
 0x4ee   :  { %v6381_v14 = vmul.f32 %v6072_v30, %v14395_v20  ;;  %6051 = vperm.xlu1 %8373, %v8605_v18   ;;  %v2986_v49 = vadd.f32 %v12453_v6, %v14397_v36  ;;  %v14399_v30 = vld [vmem:[#allocation207_spill] sm:$0xff]  ;;  %v14402_v6 = vmax.f32 %v12460_v41, %v12463_v13 }
 0x4ef   :  { %v6669_v50 = vsel %vm5505_vm0, %v6413_v32, -inf  ;;  %v14424_v48 = vld [vmem:[#allocation203_spill] sm:$0xff] }
 0x4f0   :  { %v6670_v61 = vmax.f32 %v12536_v7, %v6669_v50  ;;  %v6595_v22 = vsel %vm5505_vm0, %v6381_v14, -inf  ;;  %v6140_v56 = vpop.permute.xlu0 %6139  ;;  %v12580_v57 = vadd.f32 %v12468_v60, %v2986_v49  ;;  %v14401_v50 = vld [vmem:[#allocation41_spill] sm:$0xff]  ;;  %v8607_v60 = vld [vmem:[%s13639_s1 + $0x2f8] sm:$0xff] }
 0x4f1   :  { %v6596_v38 = vmax.f32 %v12513_v35, %v6595_v22  ;;  %v6398_v29 = vmul.f32 %v6140_v56, %v14396_v26  ;;  %v6012_v3 = vpop.permute.xlu1 %6011  ;;  %6119 = vperm.xlu0 %8374, %v8606_v43   ;;  %v2930_v22 = vadd.f32 %v12311_v27, %v14401_v50 }
 0x4f2   :  { %v6366_v32 = vmul.f32 %v6012_v3, %v14398_v63  ;;  %6299 = vperm.xlu1 %8373, %v14399_v30   ;;  %14400 = vst [vmem:[#allocation48_spill] sm:$0xff] %v12580_v57  ;;  %v14403_v3 = vld [vmem:[#allocation121_spill] sm:$0xff] }
 0x4f3   :  { %v6634_v7 = vsel %vm5505_vm0, %v6398_v29, -inf  ;;  %v8608_v29 = vld [vmem:[%s13639_s1 + $0x270] sm:$0xff]  ;;  %v12601_v27 = vadd.f32 %v12316_v28, %v2930_v22  ;;  %v14405_v30 = vld [vmem:[#allocation29_spill] sm:$0xff]  ;;  %v8609_v28 = vld [vmem:[%s13639_s1 + $0x378] sm:$0xff] }
 0x4f4   :  { %v12582_v35 = vmax.f32 %v6633_v33, %v6634_v7  ;;  %v6560_v14 = vsel %vm5505_vm0, %v6366_v32, -inf  ;;  %v5956_v18 = vpop.permute.xlu0 %5955  ;;  %v14406_v7 = vld [vmem:[#allocation25_spill] sm:$0xff] }
 0x4f5   :  { %v12590_v56 = vmax.f32 %v14402_v6, %v6560_v14  ;;  %v6352_v43 = vmul.f32 %v5956_v18, %v14403_v3  ;;  %v6260_v36 = vpop.permute.xlu1 %6259  ;;  %6183 = vperm.xlu0 %8374, %v8607_v60   ;;  %14404 = vst [vmem:[#allocation195_spill] sm:$0xff] %v12601_v27  ;;  %v2869_v14 = vadd.f32 %v14406_v7, %v14405_v30  ;;  %v14407_v22 = vld [vmem:[#allocation9_spill] sm:$0xff]  ;;  %v14487_v3 = vld [vmem:[#allocation282_spill] sm:$0xff] }
 0x4f6   :  { %v6428_v33 = vmul.f32 %v6260_v36, %v12580_v57  ;;  %6115 = vperm.xlu1 %8373, %v8608_v29   ;;  %v14408_v36 = vld [vmem:[#allocation202_spill] sm:$0xff]  ;;  %v14410_v7 = vld [vmem:[#allocation101_spill] sm:$0xff]  ;;  %v14438_v57 = vld [vmem:[#allocation111_spill] sm:$0xff] }
 0x4f7   :  { %v6527_v41 = vsel %vm5505_vm0, %v6352_v43, -inf  ;;  %v12620_v60 = vadd.f32 %v14408_v36, %v2869_v14  ;;  %v14414_v36 = vld [vmem:[#allocation42_spill] sm:$0xff] }
 0x4f8   :  { %v12604_v13 = vmax.f32 %v6526_v23, %v6527_v41  ;;  %v6704_v49 = vsel %vm5505_vm0, %v6428_v33, -inf  ;;  %v6204_v32 = vpop.permute.xlu0 %6203  ;;  %v8610_v23 = vld [vmem:[%s13639_s1 + $0x1f8] sm:$0xff] }
 0x4f9   :  { %v12609_v18 = vmax.f32 %v6703_v4, %v6704_v49  ;;  %v6414_v50 = vmul.f32 %v6204_v32, %v12601_v27  ;;  %v6076_v6 = vpop.permute.xlu1 %6075  ;;  %6247 = vperm.xlu0 %8374, %v8609_v28   ;;  %14409 = vst [vmem:[#allocation38_spill] sm:$0xff] %v12620_v60  ;;  %v14411_v28 = vld [vmem:[#allocation156_spill] sm:$0xff]  ;;  %v14412_v27 = vld [vmem:[#allocation198_spill] sm:$0xff] }
 0x4fa   :  { %v6382_v43 = vmul.f32 %v6076_v6, %v14407_v22  ;;  %6055 = vperm.xlu1 %8373, %v8610_v23   ;;  %v2989_v6 = vadd.f32 %v12490_v44, %v14410_v7  ;;  %v14415_v44 = vld [vmem:[#allocation125_spill] sm:$0xff] }
 0x4fb   :  { %v6671_v4 = vsel %vm5505_vm0, %v6414_v50, -inf }
 0x4fc   :  { %v12623_v33 = vmax.f32 %v6670_v61, %v6671_v4  ;;  %v6597_v29 = vsel %vm5505_vm0, %v6382_v43, -inf  ;;  %v6144_v41 = vpop.permute.xlu0 %6143  ;;  %v12635_v61 = vadd.f32 %v12511_v25, %v2989_v6  ;;  %v2933_v4 = vadd.f32 %v12333_v46, %v14414_v36  ;;  %v8611_v25 = vld [vmem:[%s13639_s1 + $0x370] sm:$0xff]  ;;  %v14417_v36 = vld [vmem:[#allocation11_spill] sm:$0xff] }
 0x4fd   :  { %v12626_v49 = vmax.f32 %v6596_v38, %v6597_v29  ;;  %v6399_v32 = vmul.f32 %v6144_v41, %v12620_v60  ;;  %v6016_v30 = vpop.permute.xlu1 %6015 }
 0x4fe   :  { %v6367_v23 = vmul.f32 %v6016_v30, %v14411_v28  ;;  %6303 = vperm.xlu1 %8373, %v14412_v27   ;;  %14413 = vst [vmem:[#allocation178_spill] sm:$0xff] %v12635_v61 }
 0x4ff   :  { %v6636_v14 = vsel %vm5505_vm0, %v6399_v32, -inf  ;;  %v12650_v32 = vpop.f32.mrf.mxu1 }
 0x500   :  { %v6637_v50 = vmax.f32 %v12582_v35, %v6636_v14  ;;  %v6562_v38 = vsel %vm5505_vm0, %v6367_v23, -inf  ;;  %v5960_v43 = vpop.permute.xlu0 %5959  ;;  %v12648_v35 = vadd.f32 %v12340_v9, %v2933_v4  ;;  %v12655_v23 = vpop.f32.mrf.mxu0 }
 0x501   :  { %v6563_v29 = vmax.f32 %v12590_v56, %v6562_v38  ;;  %v6353_v41 = vmul.f32 %v5960_v43, %v14415_v44  ;;  %v6264_v30 = vpop.permute.xlu1 %6263  ;;  %v2993_v9 = vpop.f32.mrf.mxu1 }
 0x502   :  { %v6429_v27 = vmul.f32 %v6264_v30, %v12635_v61  ;;  %6243 = vperm.xlu1 %8373, %v8611_v25   ;;  %14416 = vst [vmem:[#allocation47_spill] sm:$0xff] %v12648_v35  ;;  %v14419_v25 = vld [vmem:[#allocation86_spill] sm:$0xff]  ;;  %v4434_v28 = vpop.f32.mrf.mxu0 }
 0x503   :  { %v6529_v7 = vsel %vm5505_vm0, %v6353_v41, -inf  ;;  %v14418_v41 = vld [vmem:[#allocation5_spill] sm:$0xff] }
 0x504   :  { %v6530_v46 = vmax.f32 %v12604_v13, %v6529_v7  ;;  %v6706_v56 = vsel %vm5505_vm0, %v6429_v27, -inf  ;;  %v6208_v6 = vpop.permute.xlu0 %6207  ;;  %v2597_v13 = vadd.f32 %v14419_v25, %v14418_v41  ;;  %v14426_v25 = vld [vmem:[#allocation40_spill] sm:$0xff] }
 0x505   :  { %v6707_v14 = vmax.f32 %v12609_v18, %v6706_v56  ;;  %v6415_v38 = vmul.f32 %v6208_v6, %v12648_v35  ;;  %v6080_v43 = vpop.permute.xlu1 %6079  ;;  %v14420_v56 = vld [vmem:[#allocation26_spill] sm:$0xff] }
 0x506   :  { %v6383_v30 = vmul.f32 %v6080_v43, %v14417_v36  ;;  %6307 = vperm.xlu1 %8373, %v11904_v15   ;;  %v14421_v43 = vld [vmem:[#allocation76_spill] sm:$0xff]  ;;  %v14422_v15 = vld [vmem:[#allocation102_spill] sm:$0xff] }
 0x507   :  { %v6673_v4 = vsel %vm5505_vm0, %v6415_v38, -inf  ;;  %v12669_v36 = vadd.f32 %v14421_v43, %v2597_v13  ;;  %v2994_v61 = vadd.f32 %v2993_v9, %v14422_v15  ;;  %v14423_v38 = vld [vmem:[#allocation149_spill] sm:$0xff]  ;;  %v2938_v13 = vadd.f32 %v12297_v34, %v14426_v25  ;;  %v12687_v43 = vpop.f32.mrf.mxu1 }
 0x508   :  { %v6674_v27 = vmax.f32 %v12623_v33, %v6673_v4  ;;  %v6599_v7 = vsel %vm5505_vm0, %v6383_v30, -inf  ;;  %v6148_v60 = vpop.permute.xlu0 %6147 }
 0x509   :  { %v6600_v18 = vmax.f32 %v12626_v49, %v6599_v7  ;;  %v6400_v6 = vmul.f32 %v6148_v60, %v14420_v56  ;;  %v6020_v35 = vpop.permute.xlu1 %6019  ;;  %v12675_v4 = vadd.f32 %v4434_v28, %v2994_v61  ;;  %v6331_v30 = vmul.f32 %v12306_v24, %v12669_v36  ;;  %v14428_v28 = vld [vmem:[#allocation74_spill] sm:$0xff]  ;;  %v2996_v25 = vpop.f32.mrf.mxu1 }
 0x50a   :  { %v6368_v26 = vmul.f32 %v6020_v35, %v14423_v38  ;;  %6311 = vperm.xlu1 %8373, %v14424_v48   ;;  %v14427_v35 = vld [vmem:[#allocation132_spill] sm:$0xff]  ;;  %v6330_v61 = vmul.f32 %v12254_v16, %v14428_v28 }
 0x50b   :  { %v6638_v33 = vsel %vm5505_vm0, %v6400_v6, -inf  ;;  %14425 = vst [vmem:[#allocation207_spill] sm:$0xff] %v12675_v4  ;;  %v12696_v6 = vpop.f32.mrf.mxu0  ;;  %v6480_v34 = vsel %vm5505_vm0, %v6331_v30, -inf  ;;  %v14432_v30 = vld [vmem:[#allocation8_spill] sm:$0xff] }
 0x50c   :  { %v12679_v49 = vmax.f32 %v6637_v50, %v6638_v33  ;;  %v6564_v60 = vsel %vm5505_vm0, %v6368_v26, -inf  ;;  %v5964_v41 = vpop.permute.xlu0 %5963  ;;  %v12693_v50 = vadd.f32 %v12304_v37, %v2938_v13  ;;  %v6479_v13 = vsel %vm5505_vm0, %v6330_v61, -inf  ;;  %v14435_v61 = vld [vmem:[#allocation69_spill] sm:$0xff] }
 0x50d   :  { %v12684_v9 = vmax.f32 %v6563_v29, %v6564_v60  ;;  %v6354_v7 = vmul.f32 %v5964_v41, %v14427_v35  ;;  %v6268_v48 = vpop.permute.xlu1 %6267  ;;  %v6481_v38 = vmax.f32 %v6479_v13, %v6480_v34 }
 0x50e   :  { %v6430_v24 = vmul.f32 %v6268_v48, %v12675_v4  ;;  %14429 = vst [vmem:[#allocation41_spill] sm:$0xff] %v12693_v50  ;;  %v14430_v48 = vld [vmem:[#allocation59_spill] sm:$0xff]  ;;  %v6333_v4 = vmul.f32 %v12318_v2, %v14435_v61 }
 0x50f   :  { %v6531_v26 = vsel %vm5505_vm0, %v6354_v7, -inf  ;;  %v6314_v37 = vmul.f32 %v12205_v45, %v14430_v48  ;;  %v14431_v7 = vld [vmem:[#allocation72_spill] sm:$0xff] }
 0x510   :  { %v12699_v29 = vmax.f32 %v6530_v46, %v6531_v26  ;;  %v6708_v15 = vsel %vm5505_vm0, %v6430_v24, -inf  ;;  %v6212_v33 = vpop.permute.xlu0 %6211  ;;  %v6332_v56 = vmul.f32 %v12266_v11, %v14431_v7  ;;  %v14433_v26 = vld [vmem:[#allocation112_spill] sm:$0xff] }
 0x511   :  { %v12702_v60 = vmax.f32 %v6707_v14, %v6708_v15  ;;  %v6416_v16 = vmul.f32 %v6212_v33, %v12693_v50  ;;  %v6084_v41 = vpop.permute.xlu1 %6083  ;;  %v6315_v24 = vmul.f32 %v12189_v42, %v14433_v26  ;;  %v8401_v15 = vld [vmem:[%s13643_s5 + $0x8] sm:$0xff]   ;;  %v4437_v33 = vpop.f32.mrf.mxu0  ;;  %v14436_v42 = vld [vmem:[#allocation50_spill] sm:$0xff]  ;;  %v6442_v63 = vsel %vm5505_vm0, %v6314_v37, -inf }
 0x512   :  { %v6384_v46 = vmul.f32 %v6084_v41, %v14432_v30  ;;  %v14434_v50 = vld [vmem:[#allocation57_spill] sm:$0xff]  ;;  %v2997_v34 = vadd.f32 %v2996_v25, %v14436_v42  ;;  %8335 = vmatpush3.bf16.msra.mxu1 %v8401_v15  ;;  %v6482_v2 = vsel %vm5505_vm0, %v6332_v56, -inf  ;;  %v6484_v37 = vsel %vm5505_vm0, %v6333_v4, -inf }
 0x513   :  { %v6675_v14 = vsel %vm5505_vm0, %v6416_v16, -inf  ;;  %v6316_v45 = vmul.f32 %v12213_v51, %v14434_v50  ;;  %v14437_v16 = vld [vmem:[#allocation199_spill] sm:$0xff]  ;;  %v6317_v51 = vmul.f32 %v12221_v47, %v14438_v57  ;;  %8336 = vmatprep.subr.bf16.mxu1 %v14370_v8  ;;  %v6483_v25 = vmax.f32 %v6481_v38, %v6482_v2 }
 0x514   :  { %v12721_v11 = vmax.f32 %v6674_v27, %v6675_v14  ;;  %v6601_v41 = vsel %vm5505_vm0, %v6384_v46, -inf  ;;  %v6152_v30 = vpop.permute.xlu0 %6151  ;;  %v14439_v27 = vld [vmem:[#allocation153_spill] sm:$0xff]  ;;  %v12734_v46 = vadd.f32 %v4437_v33, %v2997_v34  ;;  %v14441_v33 = vld [vmem:[#allocation95_spill] sm:$0xff] }
 0x515   :  { %v12725_v13 = vmax.f32 %v6600_v18, %v6601_v41  ;;  %v6401_v22 = vmul.f32 %v6152_v30, %v14437_v16  ;;  %v6024_v20 = vpop.permute.xlu1 %6023  ;;  %v6443_v18 = vsel %vm5505_vm0, %v6315_v24, -inf  ;;  %v6445_v15 = vsel %vm5505_vm0, %v6316_v45, -inf  ;;  %v14443_v2 = vld [vmem:[#allocation87_spill] sm:$0xff] }
 0x516   :  { %v6369_v14 = vmul.f32 %v6024_v20, %v14439_v27  ;;  %14440 = vst [vmem:[#allocation29_spill] sm:$0xff] %v12734_v46  ;;  %v8402_v20 = vld [vmem:[%s13643_s5] sm:$0xff]   ;;  %v2941_v42 = vadd.f32 %v12321_v62, %v14441_v33  ;;  %v6444_v24 = vmax.f32 %v6442_v63, %v6443_v18  ;;  %v6447_v4 = vsel %vm5505_vm0, %v6317_v51, -inf  ;;  %v14445_v63 = vld [vmem:[#allocation63_spill] sm:$0xff]  ;;  %s8640_s5 = smov 32  }
 0x517   :  { %v6640_v30 = vsel %vm5505_vm0, %v6401_v22, -inf  ;;  %v14442_v22 = vld [vmem:[#allocation24_spill] sm:$0xff]  ;;  %8337 = vmatpush3.bf16.msra.mxu1 %v8402_v20  ;;  %v6485_v27 = vmax.f32 %v6483_v25, %v6484_v37  ;;  %v14447_v25 = vld [vmem:[#allocation62_spill] sm:$0xff]  ;;  %v14522_v8 = vld [vmem:[#allocation279_spill] sm:$0xff] }
 0x518   :  { %v6641_v41 = vmax.f32 %v12679_v49, %v6640_v30  ;;  %v6566_v47 = vsel %vm5505_vm0, %v6369_v14, -inf  ;;  %v5968_v56 = vpop.permute.xlu0 %5967  ;;  %v6334_v49 = vmul.f32 %v12278_v53, %v14443_v2  ;;  %v12754_v30 = vadd.f32 %v12328_v17, %v2941_v42  ;;  %v14446_v18 = vld [vmem:[#allocation88_spill] sm:$0xff] }
 0x519   :  { %v6567_v38 = vmax.f32 %v12684_v9, %v6566_v47  ;;  %v6355_v34 = vmul.f32 %v5968_v56, %v14442_v22  ;;  %v6272_v45 = vpop.permute.xlu1 %6271  ;;  %v6446_v16 = vmax.f32 %v6444_v24, %v6445_v15  ;;  %v6318_v9 = vmul.f32 %v12197_v40, %v14445_v63  ;;  %v14448_v40 = vld [vmem:[#allocation10_spill] sm:$0xff] }
 0x51a   :  { %v6431_v14 = vmul.f32 %v6272_v45, %v12734_v46  ;;  %14444 = vst [vmem:[#allocation25_spill] sm:$0xff] %v12754_v30  ;;  %v6335_v47 = vmul.f32 %v12330_v52, %v14446_v18  ;;  %v6319_v37 = vmul.f32 %v12229_v39, %v14447_v25  ;;  %v6486_v42 = vsel %vm5505_vm0, %v6334_v49, -inf  ;;  %v14484_v22 = vld [vmem:[#allocation78_spill] sm:$0xff] }
 0x51b   :  { %v6533_v62 = vsel %vm5505_vm0, %v6355_v34, -inf  ;;  %v6448_v33 = vmax.f32 %v6446_v16, %v6447_v4  ;;  %v6487_v34 = vmax.f32 %v6485_v27, %v6486_v42  ;;  %v14450_v27 = vld [vmem:[#allocation32_spill] sm:$0xff] }
 0x51c   :  { %v6534_v51 = vmax.f32 %v12699_v29, %v6533_v62  ;;  %v6710_v53 = vsel %vm5505_vm0, %v6431_v14, -inf  ;;  %v6216_v56 = vpop.permute.xlu0 %6215  ;;  %v6449_v29 = vsel %vm5505_vm0, %v6318_v9, -inf  ;;  %v6488_v16 = vsel %vm5505_vm0, %v6335_v47, -inf  ;;  %v14449_v14 = vld [vmem:[#allocation49_spill] sm:$0xff]  ;;  %v14451_v9 = vld [vmem:[#allocation71_spill] sm:$0xff] }
 0x51d   :  { %v6711_v20 = vmax.f32 %v12702_v60, %v6710_v53  ;;  %v6417_v17 = vmul.f32 %v6216_v56, %v12754_v30  ;;  %v6088_v15 = vpop.permute.xlu1 %6087  ;;  %v3002_v39 = vadd.f32 %v12650_v32, %v14449_v14  ;;  %v6450_v49 = vmax.f32 %v6448_v33, %v6449_v29  ;;  %v14454_v32 = vld [vmem:[#allocation61_spill] sm:$0xff] }
 0x51e   :  { %v6385_v24 = vmul.f32 %v6088_v15, %v14448_v40  ;;  %v6336_v47 = vmul.f32 %v12290_v58, %v14451_v9  ;;  %v14452_v15 = vld [vmem:[#allocation160_spill] sm:$0xff]  ;;  %v6320_v33 = vmul.f32 %v12203_v10, %v14454_v32 }
 0x51f   :  { %v12770_v52 = vsel %vm5505_vm0, %v6417_v17, -inf  ;;  %v6451_v17 = vsel %vm5505_vm0, %v6319_v37, -inf  ;;  %v12786_v60 = vadd.f32 %v12655_v23, %v3002_v39 }
 0x520   :  { %v6603_v45 = vsel %vm5505_vm0, %v6385_v24, -inf  ;;  %v6156_v4 = vpop.permute.xlu0 %6155  ;;  %v6489_v24 = vmax.f32 %v6487_v34, %v6488_v16  ;;  %v6452_v58 = vmax.f32 %v6450_v49, %v6451_v17  ;;  %v14457_v34 = vld [vmem:[#allocation56_spill] sm:$0xff] }
 0x521   :  { %v6604_v62 = vmax.f32 %v12725_v13, %v6603_v45  ;;  %v6402_v53 = vmul.f32 %v6156_v4, %v14450_v27  ;;  %v6028_v56 = vpop.permute.xlu1 %6027  ;;  %14453 = vst [vmem:[#allocation202_spill] sm:$0xff] %v12786_v60  ;;  %v14455_v13 = vld [vmem:[#allocation80_spill] sm:$0xff]  ;;  %v6321_v16 = vmul.f32 %v12246_v21, %v14457_v34 }
 0x522   :  { %v6370_v42 = vmul.f32 %v6028_v56, %v14452_v15  ;;  %v6337_v29 = vmul.f32 %v12342_v54, %v14455_v13  ;;  %v14456_v56 = vld [vmem:[#allocation129_spill] sm:$0xff]  ;;  %v14526_v13 = vld [vmem:[#allocation96_spill] sm:$0xff] }
 0x523   :  { %v6642_v30 = vsel %vm5505_vm0, %v6402_v53, -inf  ;;  %v6490_v53 = vsel %vm5505_vm0, %v6336_v47, -inf  ;;  %v6455_v47 = vsel %vm5505_vm0, %v6321_v16, -inf  ;;  %v14464_v15 = vld [vmem:[#allocation289_spill] sm:$0xff] }
 0x524   :  { %v12793_v45 = vmax.f32 %v6641_v41, %v6642_v30  ;;  %v6568_v37 = vsel %vm5505_vm0, %v6370_v42, -inf  ;;  %v5972_v4 = vpop.permute.xlu0 %5971  ;;  %v6491_v27 = vmax.f32 %v6489_v24, %v6490_v53  ;;  %v6453_v41 = vsel %vm5505_vm0, %v6320_v33, -inf  ;;  %v14461_v53 = vld [vmem:[#allocation58_spill] sm:$0xff] }
 0x525   :  { %v12796_v14 = vmax.f32 %v6567_v38, %v6568_v37  ;;  %v6356_v23 = vmul.f32 %v5972_v4, %v14456_v56  ;;  %v6276_v39 = vpop.permute.xlu1 %6275  ;;  %v6492_v30 = vsel %vm5505_vm0, %v6337_v29, -inf  ;;  %v6454_v42 = vmax.f32 %v6452_v58, %v6453_v41  ;;  %v14459_v4 = vld [vmem:[#allocation94_spill] sm:$0xff] }
 0x526   :  { %v6432_v10 = vmul.f32 %v6276_v39, %v12786_v60  ;;  %v6338_v24 = vmul.f32 %v12302_v1, %v14459_v4  ;;  %v6493_v33 = vmax.f32 %v6491_v27, %v6492_v30  ;;  %v14462_v29 = vld [vmem:[#allocation274_spill] sm:$0xff]  ;;  %v14466_v60 = vld [vmem:[#allocation65_spill] sm:$0xff] }
 0x527   :  { %v6535_v54 = vsel %vm5505_vm0, %v6356_v23, -inf  ;;  %v14460_v23 = vld [vmem:[#allocation13_spill] sm:$0xff] }
 0x528   :  { %v12806_v49 = vmax.f32 %v6534_v51, %v6535_v54  ;;  %v6712_v38 = vsel %vm5505_vm0, %v6432_v10, -inf  ;;  %v12809_v17 = vpop.permute.xlu0 %6219  ;;  %v6322_v51 = vmul.f32 %v14462_v29, %v14461_v53  ;;  %v14463_v54 = vld [vmem:[#allocation6_spill] sm:$0xff]  ;;  %v6494_v30 = vsel %vm5505_vm0, %v6338_v24, -inf  ;;  %v14468_v29 = vld [vmem:[#allocation164_spill] sm:$0xff] }
 0x529   :  { %v12811_v37 = vmax.f32 %v6711_v20, %v6712_v38  ;;  %v6092_v21 = vpop.permute.xlu1 %6091  ;;  %v6339_v10 = vmul.f32 %v14464_v15, %v14463_v54  ;;  %v6456_v20 = vmax.f32 %v6454_v42, %v6455_v47  ;;  %v14465_v38 = vld [vmem:[#allocation103_spill] sm:$0xff]  ;;  %v6495_v46 = vmax.f32 %v6493_v33, %v6494_v30  ;;  %v14470_v33 = vld [vmem:[#allocation82_spill] sm:$0xff] }
 0x52a   :  { %v6386_v39 = vmul.f32 %v6092_v21, %v14460_v23  ;;  %v3005_v1 = vadd.f32 %v12687_v43, %v14465_v38  ;;  %v14467_v21 = vld [vmem:[#allocation280_spill] sm:$0xff]  ;;  %v14527_v53 = vld [vmem:[#allocation290_spill] sm:$0xff] }
 0x52b   :  { %14458 = vst [vmem:[#allocation101_spill] sm:$0xff] %v12811_v37  ;;  %v6323_v27 = vmul.f32 %v14467_v21, %v14466_v60  ;;  %v14471_v38 = vld [vmem:[#allocation284_spill] sm:$0xff]  ;;  %v8324_v60 = vpop.f32.mrf.mxu0 }
 0x52c   :  { %v6605_v40 = vsel %vm5505_vm0, %v6386_v39, -inf  ;;  %v12822_v58 = vpop.permute.xlu0 %6159  ;;  %v12833_v15 = vadd.f32 %v12696_v6, %v3005_v1  ;;  %v6457_v39 = vsel %vm5505_vm0, %v6322_v51, -inf  ;;  %v6340_v6 = vmul.f32 %v14471_v38, %v14470_v33  ;;  %v14472_v21 = vld [vmem:[#allocation64_spill] sm:$0xff]  ;;  %v14477_v38 = vld [vmem:[#allocation66_spill] sm:$0xff] }
 0x52d   :  { %v12824_v41 = vmax.f32 %v6604_v62, %v6605_v40  ;;  %v6032_v16 = vpop.permute.xlu1 %6031  ;;  %v6496_v40 = vsel %vm5505_vm0, %v6339_v10, -inf  ;;  %v6458_v43 = vmax.f32 %v6456_v20, %v6457_v39  ;;  %v14473_v10 = vld [vmem:[#allocation275_spill] sm:$0xff] }
 0x52e   :  { %v6371_v23 = vmul.f32 %v6032_v16, %v14468_v29  ;;  %14469 = vst [vmem:[#allocation198_spill] sm:$0xff] %v12833_v15  ;;  %v6459_v16 = vsel %vm5505_vm0, %v6323_v27, -inf  ;;  %v6497_v51 = vmax.f32 %v6495_v46, %v6496_v40  ;;  %v6324_v30 = vmul.f32 %v14473_v10, %v14472_v21  ;;  %v14475_v29 = vld [vmem:[#allocation292_spill] sm:$0xff]  ;;  %v14479_v40 = vld [vmem:[#allocation15_spill] sm:$0xff]  ;;  %v14486_v27 = vld [vmem:[#allocation70_spill] sm:$0xff] }
 0x52f   :  { %v6460_v47 = vmax.f32 %v6458_v43, %v6459_v16  ;;  %v6498_v46 = vsel %vm5505_vm0, %v6340_v6, -inf  ;;  %v14480_v6 = vld [vmem:[#allocation91_spill] sm:$0xff]  ;;  %v6327_v5 = vmul.f32 %v14487_v3, %v14486_v27  ;;  %v14490_v3 = vld [vmem:[#allocation93_spill] sm:$0xff] }
 0x530   :  { %v12838_v62 = vsel %vm5505_vm0, %v6371_v23, -inf  ;;  %v12840_v42 = vpop.permute.xlu0 %5975  ;;  %v14474_v23 = vld [vmem:[#allocation75_spill] sm:$0xff]  ;;  %v5379_v27 = vmul.f32 %v14490_v3, %v14434_v50  ;;  %v14497_v3 = vld [vmem:[#allocation60_spill] sm:$0xff] }
 0x531   :  { %v6280_v24 = vpop.permute.xlu1 %6279  ;;  %v6341_v12 = vmul.f32 %v14475_v29, %v14474_v23  ;;  %v6461_v29 = vsel %vm5505_vm0, %v6324_v30, -inf  ;;  %v14482_v30 = vld [vmem:[#allocation67_spill] sm:$0xff] }
 0x532   :  { %v6433_v1 = vmul.f32 %v6280_v24, %v12833_v15  ;;  %v6325_v24 = vmul.f32 %v14478_v19, %v14477_v38  ;;  %v6499_v15 = vmax.f32 %v6497_v51, %v6498_v46  ;;  %v6462_v16 = vmax.f32 %v6460_v47, %v6461_v29 }
 0x534   :  { %v12853_v20 = vsel %vm5505_vm0, %v6433_v1, -inf  ;;  %v12855_v39 = vpop.permute.xlu0 %6223  ;;  %v6500_v1 = vsel %vm5505_vm0, %v6341_v12, -inf  ;;  %v6463_v19 = vsel %vm5505_vm0, %v6325_v24, -inf }
 0x535   :  { %14476 = vst [vmem:[#allocation42_spill] sm:$0xff] %v12853_v20  ;;  %v6096_v59 = vpop.permute.xlu1 %6095  ;;  %v6501_v46 = vmax.f32 %v6499_v15, %v6500_v1  ;;  %v6464_v47 = vmax.f32 %v6462_v16, %v6463_v19  ;;  %v14489_v16 = vld [vmem:[#allocation73_spill] sm:$0xff]  ;;  %v14543_v20 = vld [vmem:[#allocation99_spill] sm:$0xff] }
 0x536   :  { %v6387_v10 = vmul.f32 %v6096_v59, %v14479_v40  ;;  %v14481_v59 = vld [vmem:[#allocation285_spill] sm:$0xff]  ;;  %v14483_v40 = vld [vmem:[#allocation276_spill] sm:$0xff]  ;;  %v5377_v19 = vmul.f32 %v14489_v16, %v14430_v48 }
 0x537   :  { %v6342_v51 = vmul.f32 %v14481_v59, %v14480_v6  ;;  %v6326_v12 = vmul.f32 %v14483_v40, %v14482_v30  ;;  %v14488_v59 = vld [vmem:[#allocation79_spill] sm:$0xff]  ;;  %v14494_v30 = vld [vmem:[#allocation278_spill] sm:$0xff] }
 0x538   :  { %v12866_v55 = vsel %vm5505_vm0, %v6387_v10, -inf  ;;  %v12868_v43 = vpop.permute.xlu0 %6163  ;;  %v14485_v10 = vld [vmem:[#allocation295_spill] sm:$0xff]  ;;  %v5378_v15 = vmul.f32 %v14488_v59, %v14433_v26  ;;  %v5506_v50 = vsel %vm5505_vm0, %v5377_v19, -inf }
 0x539   :  { %v12872_v56 = vpop.permute.xlu1 %6035  ;;  %v6343_v35 = vmul.f32 %v14485_v10, %v14484_v22  ;;  %v6502_v24 = vsel %vm5505_vm0, %v6342_v51, -inf  ;;  %v6465_v1 = vsel %vm5505_vm0, %v6326_v12, -inf  ;;  %v6467_v51 = vsel %vm5505_vm0, %v6327_v5, -inf }
 0x53a   :  { %v6503_v23 = vmax.f32 %v6501_v46, %v6502_v24  ;;  %v6466_v10 = vmax.f32 %v6464_v47, %v6465_v1  ;;  %v14491_v46 = vld [vmem:[#allocation90_spill] sm:$0xff]  ;;  %v5507_v12 = vsel %vm5505_vm0, %v5378_v15, -inf  ;;  %v14495_v47 = vld [vmem:[#allocation92_spill] sm:$0xff]  ;;  %v5509_v5 = vsel %vm5505_vm0, %v5379_v27, -inf }
 0x53b   :  { %v6504_v40 = vsel %vm5505_vm0, %v6343_v35, -inf  ;;  %v14492_v24 = vld [vmem:[#allocation286_spill] sm:$0xff]  ;;  %v14493_v35 = vld [vmem:[#allocation68_spill] sm:$0xff] }
 0x53c   :  { %v12881_v44 = vpop.permute.xlu0 %5979  ;;  %v6344_v26 = vmul.f32 %v14492_v24, %v14491_v46  ;;  %v6505_v59 = vmax.f32 %v6503_v23, %v6504_v40  ;;  %v6328_v38 = vmul.f32 %v14494_v30, %v14493_v35  ;;  %v14496_v1 = vld [vmem:[#allocation298_spill] sm:$0xff]  ;;  %v6468_v48 = vmax.f32 %v6466_v10, %v6467_v51  ;;  %v14498_v24 = vld [vmem:[#allocation283_spill] sm:$0xff]  ;;  %v14499_v30 = vld [vmem:[#allocation89_spill] sm:$0xff] }
 0x53d   :  { %v12883_v29 = vpop.permute.xlu1 %6283  ;;  %v6345_v0 = vmul.f32 %v14496_v1, %v14495_v47  ;;  %v6329_v23 = vmul.f32 %v14498_v24, %v14497_v3  ;;  %v5508_v40 = vmax.f32 %v5506_v50, %v5507_v12  ;;  %v5380_v35 = vmul.f32 %v14499_v30, %v14438_v57  ;;  %v12919_v1 = vpop.f32.mrf.mxu1  ;;  %v14500_v24 = vld [vmem:[#allocation115_spill] sm:$0xff] }
 0x53e   :  { %v6506_v15 = vsel %vm5505_vm0, %v6344_v26, -inf  ;;  %v6469_v10 = vsel %vm5505_vm0, %v6328_v38, -inf  ;;  %v5381_v3 = vmul.f32 %v14500_v24, %v14445_v63  ;;  %v14501_v26 = vld [vmem:[#allocation136_spill] sm:$0xff]  ;;  %v14502_v38 = vld [vmem:[#allocation130_spill] sm:$0xff] }
 0x53f   :  { %v6507_v46 = vmax.f32 %v6505_v59, %v6506_v15  ;;  %v6508_v51 = vsel %vm5505_vm0, %v6345_v0, -inf  ;;  %v5510_v19 = vmax.f32 %v5508_v40, %v5509_v5  ;;  %v6470_v21 = vmax.f32 %v6468_v48, %v6469_v10  ;;  %v14503_v0 = vld [vmem:[#allocation140_spill] sm:$0xff]  ;;  %v12935_v48 = vpop.f32.mrf.mxu1 }
 0x540   :  { %v12892_v6 = vpop.permute.xlu0 %6227  ;;  %v5393_v59 = vmul.f32 %v14501_v26, %v14428_v28  ;;  %v6471_v12 = vsel %vm5505_vm0, %v6329_v23, -inf  ;;  %v5511_v50 = vsel %vm5505_vm0, %v5380_v35, -inf  ;;  %v5394_v15 = vmul.f32 %v14502_v38, %v12669_v36  ;;  %v14504_v35 = vld [vmem:[#allocation77_spill] sm:$0xff] }
 0x541   :  { %v12894_v22 = vpop.permute.xlu1 %6099  ;;  %v6509_v57 = vmax.f32 %v6507_v46, %v6508_v51  ;;  %v5395_v5 = vmul.f32 %v14503_v0, %v14431_v7  ;;  %v5512_v30 = vmax.f32 %v5510_v19, %v5511_v50  ;;  %v6472_v63 = vmax.f32 %v6470_v21, %v6471_v12  ;;  %v12947_v24 = vpop.f32.mrf.mxu1  ;;  %v14507_v38 = vld [vmem:[#allocation133_spill] sm:$0xff] }
 0x542   :  { %v5513_v28 = vsel %vm5505_vm0, %v5381_v3, -inf  ;;  %v5543_v46 = vsel %vm5505_vm0, %v5393_v59, -inf  ;;  %v5382_v51 = vmul.f32 %v14504_v35, %v14447_v25  ;;  %v5544_v36 = vsel %vm5505_vm0, %v5394_v15, -inf  ;;  %v14506_v3 = vld [vmem:[#allocation119_spill] sm:$0xff] }
 0x543   :  { %v6510_v23 = vrot.slane %v6509_v57, 4  ;;  %v5546_v7 = vsel %vm5505_vm0, %v5395_v5, -inf  ;;  %v12951_v19 = vmax.f32 %v5512_v30, %v5513_v28  ;;  %v5545_v21 = vmax.f32 %v5543_v46, %v5544_v36  ;;  %v12964_v35 = vpop.f32.mrf.mxu1  ;;  %v14510_v36 = vld [vmem:[#allocation21_spill] sm:$0xff] }
 0x544   :  { %v12908_v33 = vpop.permute.xlu0 %6167  ;;  %v6473_v12 = vrot.slane %v6472_v63, 4  ;;  %v5383_v59 = vmul.f32 %v14506_v3, %v14454_v32  ;;  %v5396_v25 = vmul.f32 %v14507_v38, %v14435_v61  ;;  %v12962_v5 = vsel %vm5505_vm0, %v5382_v51, -inf  ;;  %v14514_v51 = vld [vmem:[#allocation204_spill] sm:$0xff]  ;;  %v14516_v3 = vld [vmem:[#allocation277_spill] sm:$0xff] }
 0x545   :  { %v12910_v16 = vpop.permute.xlu1 %6039  ;;  %14505 = vst [vmem:[#allocation5_spill] sm:$0xff] %v12951_v19  ;;  %v12959_v0 = vmax.f32 %v5545_v21, %v5546_v7  ;;  %v6511_v15 = vmax.f32 %v6509_v57, %v6510_v23  ;;  %14509 = vst [vmem:[#allocation76_spill] sm:$0xff] %v12962_v5  ;;  %v6357_v54 = vmul.f32 %v12840_v42, %v14510_v36  ;;  %v14513_v23 = vld [vmem:[#allocation83_spill] sm:$0xff]  ;;  %v14530_v42 = vld [vmem:[#allocation97_spill] sm:$0xff] }
 0x546   :  { %v6474_v46 = vmax.f32 %v6472_v63, %v6473_v12  ;;  %v12973_v61 = vsel %vm5505_vm0, %v5383_v59, -inf  ;;  %v12976_v57 = vsel %vm5505_vm0, %v5396_v25, -inf  ;;  %v2885_v7 = vadd.f32 %v14514_v51, %v14513_v23  ;;  %v14515_v21 = vld [vmem:[#allocation35_spill] sm:$0xff]  ;;  %v14519_v59 = vld [vmem:[#allocation137_spill] sm:$0xff] }
 0x547   :  { %14508 = vst [vmem:[#allocation86_spill] sm:$0xff] %v12959_v0  ;;  %14511 = vst [vmem:[#allocation102_spill] sm:$0xff] %v12973_v61  ;;  %v2901_v38 = vadd.f32 %v14516_v3, %v14515_v21  ;;  %v14517_v63 = vld [vmem:[#allocation143_spill] sm:$0xff]  ;;  %v6512_v28 = vrot.slane %v6511_v15, 2  ;;  %v6358_v36 = vmul.f32 %v12881_v44, %v14519_v59  ;;  %v14531_v19 = vld [vmem:[#allocation293_spill] sm:$0xff] }
 0x548   :  { %v5984_v47 = vpop.permute.xlu0 %5983  ;;  %14512 = vst [vmem:[#allocation203_spill] sm:$0xff] %v12976_v57  ;;  %v12984_v12 = vmul.f32 %v14517_v63, %v14443_v2  ;;  %v14520_v25 = vld [vmem:[#allocation211_spill] sm:$0xff]  ;;  %v2946_v2 = vadd.f32 %v14527_v53, %v14526_v13  ;;  %v13000_v63 = vpop.f32.mrf.mxu1  ;;  %v2957_v61 = vadd.f32 %v14531_v19, %v14530_v42  ;;  %v6475_v44 = vrot.slane %v6474_v46, 2  ;;  %v14538_v57 = vld [vmem:[#allocation45_spill] sm:$0xff]  ;;  %v14540_v42 = vld [vmem:[#allocation294_spill] sm:$0xff] }
 0x549   :  { %v12923_v27 = vpop.permute.xlu1 %6287  ;;  %v12991_v4 = vadd.f32 %v14520_v25, %v2885_v7  ;;  %v12994_v23 = vadd.f32 %v14522_v8, %v2901_v38  ;;  %v14524_v51 = vld [vmem:[#allocation43_spill] sm:$0xff]  ;;  %14528 = vst [vmem:[#allocation72_spill] sm:$0xff] %v13000_v63  ;;  %v6537_v7 = vsel %vm5505_vm0, %v6357_v54, -inf  ;;  %v14532_v25 = vld [vmem:[#allocation141_spill] sm:$0xff]  ;;  %v14533_v38 = vld [vmem:[#allocation288_spill] sm:$0xff]  ;;  %v4450_v19 = vpop.f32.mrf.mxu0  ;;  %v6513_v54 = vmax.f32 %v6511_v15, %v6512_v28 }
 0x54a   :  { %14518 = vst [vmem:[#allocation40_spill] sm:$0xff] %v12984_v12  ;;  %v14525_v21 = vld [vmem:[#allocation287_spill] sm:$0xff]  ;;  %v6359_v59 = vmul.f32 %v5984_v47, %v14532_v25  ;;  %v13021_v12 = vadd.f32 %v14540_v42, %v2957_v61  ;;  %v6539_v47 = vsel %vm5505_vm0, %v6358_v36, -inf  ;;  %v14547_v61 = vld [vmem:[#allocation297_spill] sm:$0xff]  ;;  %v14549_v28 = vld [vmem:[#allocation300_spill] sm:$0xff] }
 0x54b   :  { %14521 = vst [vmem:[#allocation74_spill] sm:$0xff] %v12991_v4  ;;  %14523 = vst [vmem:[#allocation59_spill] sm:$0xff] %v12994_v23  ;;  %v2954_v3 = vadd.f32 %v14525_v21, %v14524_v51  ;;  %v14534_v51 = vld [vmem:[#allocation44_spill] sm:$0xff]  ;;  %v14536_v53 = vld [vmem:[#allocation291_spill] sm:$0xff] }
 0x54c   :  { %v12937_v40 = vpop.permute.xlu0 %6231  ;;  %v14535_v21 = vld [vmem:[#allocation296_spill] sm:$0xff]  ;;  %v13016_v9 = vadd.f32 %v14536_v53, %v2946_v2  ;;  %v14539_v0 = vld [vmem:[#allocation299_spill] sm:$0xff]  ;;  %v14545_v2 = vld [vmem:[#allocation46_spill] sm:$0xff] }
 0x54d   :  { %v12939_v10 = vpop.permute.xlu1 %6103  ;;  %v13011_v34 = vadd.f32 %v14533_v38, %v2954_v3  ;;  %v2949_v13 = vadd.f32 %v14535_v21, %v14534_v51  ;;  %v2970_v18 = vadd.f32 %v14539_v0, %v14538_v57  ;;  %v14541_v25 = vld [vmem:[#allocation27_spill] sm:$0xff]  ;;  %v14542_v3 = vld [vmem:[#allocation98_spill] sm:$0xff]  ;;  %v14546_v53 = vld [vmem:[#allocation304_spill] sm:$0xff]  ;;  %v6538_v0 = vmax.f32 %v12806_v49, %v6537_v7 }
 0x54e   :  { %14537 = vst [vmem:[#allocation57_spill] sm:$0xff] %v13016_v9  ;;  %v2962_v38 = vadd.f32 %v12396_v31, %v14542_v3  ;;  %v14544_v51 = vld [vmem:[#allocation302_spill] sm:$0xff]  ;;  %v2965_v37 = vadd.f32 %v14546_v53, %v14545_v2  ;;  %v6541_v31 = vsel %vm5505_vm0, %v6359_v59, -inf  ;;  %v14553_v49 = vld [vmem:[#allocation23_spill] sm:$0xff]  ;;  %v8325_v53 = vpop.f32.mrf.mxu0  ;;  %v6418_v59 = vmul.f32 %v12809_v17, %v13016_v9 }
 0x54f   :  { %v2973_v21 = vadd.f32 %v14544_v51, %v14543_v20  ;;  %v13035_v15 = vadd.f32 %v14547_v61, %v2949_v13  ;;  %v13038_v36 = vadd.f32 %v14549_v28, %v2970_v18  ;;  %v14550_v20 = vld [vmem:[#allocation301_spill] sm:$0xff]  ;;  %v14551_v51 = vld [vmem:[#allocation303_spill] sm:$0xff]  ;;  %v6540_v13 = vmax.f32 %v6538_v0, %v6539_v47 }
 0x550   :  { %v12949_v26 = vpop.permute.xlu0 %6171  ;;  %v13044_v3 = vadd.f32 %v14550_v20, %v2962_v38  ;;  %v13050_v7 = vadd.f32 %v14553_v49, %v2965_v37  ;;  %v14554_v61 = vld [vmem:[#allocation51_spill] sm:$0xff]  ;;  %v14555_v38 = vld [vmem:[#allocation104_spill] sm:$0xff]  ;;  %v6403_v47 = vmul.f32 %v12822_v58, %v12991_v4 }
 0x551   :  { %v12953_v50 = vpop.permute.xlu1 %6043  ;;  %14548 = vst [vmem:[#allocation69_spill] sm:$0xff] %v13035_v15  ;;  %v13047_v2 = vadd.f32 %v14551_v51, %v2973_v21  ;;  %v3018_v18 = vadd.f32 %v12919_v1, %v14554_v61  ;;  %v3010_v28 = vadd.f32 %v12935_v48, %v14555_v38  ;;  %v14556_v21 = vld [vmem:[#allocation105_spill] sm:$0xff]  ;;  %v6542_v0 = vmax.f32 %v6540_v13, %v6541_v31  ;;  %v14558_v48 = vld [vmem:[#allocation52_spill] sm:$0xff]  ;;  %v14559_v9 = vld [vmem:[#allocation31_spill] sm:$0xff] }
 0x552   :  { %v3021_v20 = vadd.f32 %v12947_v24, %v14556_v21  ;;  %v6419_v17 = vmul.f32 %v12855_v39, %v13035_v15  ;;  %v3013_v24 = vadd.f32 %v12964_v35, %v14558_v48  ;;  %v4453_v21 = vpop.f32.mrf.mxu0  ;;  %v6404_v58 = vmul.f32 %v12868_v43, %v14559_v9 }
 0x553   :  { %14552 = vst [vmem:[#allocation50_spill] sm:$0xff] %v13047_v2  ;;  %v13065_v1 = vadd.f32 %v8324_v60, %v3018_v18  ;;  %v13074_v38 = vadd.f32 %v4450_v19, %v3010_v28  ;;  %v6679_v18 = vsel %vm5505_vm0, %v6418_v59, -inf  ;;  %v6644_v35 = vsel %vm5505_vm0, %v6403_v47, -inf  ;;  %v14561_v19 = vld [vmem:[#allocation157_spill] sm:$0xff]  ;;  %v14564_v47 = vld [vmem:[#allocation12_spill] sm:$0xff] }
 0x554   :  { %v5988_v30 = vpop.permute.xlu0 %5987  ;;  %v13078_v60 = vadd.f32 %v8325_v53, %v3021_v20  ;;  %v6372_v28 = vmul.f32 %v12872_v56, %v14561_v19  ;;  %v13090_v43 = vadd.f32 %v4453_v21, %v3013_v24  ;;  %v6646_v56 = vsel %vm5505_vm0, %v6404_v58, -inf  ;;  %v14565_v24 = vld [vmem:[#allocation54_spill] sm:$0xff] }
 0x555   :  { %v12970_v32 = vpop.permute.xlu1 %6291  ;;  %v6360_v63 = vmul.f32 %v5988_v30, %v14541_v25  ;;  %v6476_v30 = vmax.f32 %v6474_v46, %v6475_v44  ;;  %v6514_v46 = vrot.slane %v6513_v54, 1  ;;  %v14567_v58 = vld [vmem:[#allocation14_spill] sm:$0xff] }
 0x557   :  { %v6543_v44 = vsel %vm5505_vm0, %v6360_v63, -inf  ;;  %v6477_v49 = vrot.slane %v6476_v30, 1  ;;  %v14557_v63 = vld [vmem:[#allocation138_spill] sm:$0xff]  ;;  %v6515_v13 = vmax.f32 %v6513_v54, %v6514_v46  ;;  %v13093_v54 = vsel %vm5505_vm0, %v6419_v17, -inf  ;;  %v14562_v46 = vld [vmem:[#allocation208_spill] sm:$0xff] }
 0x558   :  { %v13002_v5 = vpop.permute.xlu0 %6235  ;;  %v6544_v31 = vmax.f32 %v6542_v0, %v6543_v44  ;;  %v6405_v59 = vmul.f32 %v12908_v33, %v14562_v46  ;;  %v14563_v44 = vmax.f32 %v12721_v11, %v12770_v52  ;;  %v6388_v0 = vmul.f32 %v12894_v22, %v14564_v47  ;;  %v14566_v33 = vld [vmem:[#allocation85_spill] sm:$0xff] }
 0x559   :  { %14529 = vst [vmem:[#allocation112_spill] sm:$0xff] %v13002_v5  ;;  %v13008_v8 = vpop.permute.xlu1 %6107  ;;  %v3025_v5 = vpop.f32.mrf.mxu1  ;;  %v6478_v53 = vmax.f32 %v6476_v30, %v6477_v49  ;;  %v6645_v17 = vmax.f32 %v12793_v45, %v6644_v35  ;;  %v6406_v21 = vmul.f32 %v12949_v26, %v14566_v33  ;;  %v6572_v52 = vsel %vm5505_vm0, %v6372_v28, -inf  ;;  %v14568_v35 = vld [vmem:[#allocation161_spill] sm:$0xff] }
 0x55a   :  { %v13100_v20 = vmax.f32 %v14563_v44, %v6679_v18  ;;  %v6373_v28 = vmul.f32 %v12910_v16, %v14568_v35  ;;  %v14570_v44 = vmax.f32 %v12796_v14, %v12838_v62  ;;  %v14573_v16 = vld [vmem:[#allocation19_spill] sm:$0xff]  ;;  %v14574_v14 = vmax.f32 %v12824_v41, %v12866_v55 }
 0x55b   :  { %v13061_v37 = vpop.f32.mrf.mxu1  ;;  %v6769_v49 = vsel %vm6746_vm1, %v6515_v13, %v6478_v53  ;;  %v6648_v13 = vsel %vm5505_vm0, %v6405_v59, -inf  ;;  %v14569_v53 = vld [vmem:[#allocation17_spill] sm:$0xff]  ;;  %v6650_v59 = vsel %vm5505_vm0, %v6406_v21, -inf }
 0x55c   :  { %v13032_v57 = vpop.permute.xlu0 %6175 }
 0x55d   :  { %v13041_v42 = vpop.permute.xlu1 %6047  ;;  %v3028_v4 = vpop.f32.mrf.mxu1  ;;  %v6407_v45 = vmul.f32 %v13032_v57, %v12994_v23 }
 0x55e   :  { %v13106_v30 = vadd.f32 %v3028_v4, %v14565_v24  ;;  %v6434_v4 = vmul.f32 %v12883_v29, %v13074_v38  ;;  %v6573_v29 = vmax.f32 %v14570_v44, %v6572_v52 }
 0x55f   :  { %v6652_v21 = vsel %vm5505_vm0, %v6407_v45, -inf }
 0x560   :  { %v5992_v51 = vpop.permute.xlu0 %5991 }
 0x561   :  { %v6361_v61 = vmul.f32 %v5992_v51, %v14557_v63  ;;  %v13070_v25 = vpop.permute.xlu1 %6295  ;;  %v14560_v51 = vld [vmem:[#allocation107_spill] sm:$0xff] }
 0x562   :  { %v13083_v15 = vadd.f32 %v3025_v5, %v14560_v51  ;;  %v6609_v51 = vsel %vm5505_vm0, %v6388_v0, -inf }
 0x563   :  { %v6545_v39 = vsel %vm5505_vm0, %v6361_v61, -inf  ;;  %v6610_v62 = vmax.f32 %v14574_v14, %v6609_v51 }
 0x564   :  { %v6546_v48 = vmax.f32 %v6544_v31, %v6545_v39  ;;  %v13088_v63 = vpop.permute.xlu0 %6239  ;;  %v6389_v31 = vmul.f32 %v12939_v10, %v14567_v58  ;;  %v6647_v39 = vmax.f32 %v6645_v17, %v6646_v56  ;;  %v6390_v10 = vmul.f32 %v13008_v8, %v14569_v53  ;;  %v14571_v56 = vld [vmem:[#allocation168_spill] sm:$0xff]  ;;  %v13136_v8 = vpop.f32.mrf.mxu0 }
 0x565   :  { %v6112_v5 = vpop.permute.xlu1 %6111  ;;  %v6374_v57 = vmul.f32 %v12953_v50, %v14571_v56  ;;  %v6716_v53 = vsel %vm5505_vm0, %v6434_v4, -inf  ;;  %v14575_v50 = vld [vmem:[#allocation106_spill] sm:$0xff]  ;;  %v6420_v4 = vmul.f32 %v12892_v6, %v13011_v34 }
 0x566   :  { %v6547_v61 = vrot.slane %v6546_v48, 4  ;;  %v6649_v17 = vmax.f32 %v6647_v39, %v6648_v13  ;;  %v6611_v0 = vsel %vm5505_vm0, %v6389_v31, -inf  ;;  %v6391_v23 = vmul.f32 %v6112_v5, %v14573_v16 }
 0x567   :  { %v6375_v52 = vmul.f32 %v13041_v42, %v14575_v50  ;;  %v6574_v31 = vsel %vm5505_vm0, %v6373_v28, -inf  ;;  %v6613_v5 = vsel %vm5505_vm0, %v6390_v10, -inf  ;;  %v6612_v13 = vmax.f32 %v6610_v62, %v6611_v0  ;;  %v4466_v28 = vpop.f32.mrf.mxu0 }
 0x568   :  { %v6548_v22 = vmax.f32 %v6546_v48, %v6547_v61  ;;  %v6180_v18 = vpop.permute.xlu0 %6179  ;;  %v14572_v61 = vld [vmem:[#allocation33_spill] sm:$0xff]  ;;  %v6576_v55 = vsel %vm5505_vm0, %v6374_v57, -inf  ;;  %v6615_v42 = vsel %vm5505_vm0, %v6391_v23, -inf  ;;  %v6435_v23 = vmul.f32 %v12923_v27, %v13090_v43 }
 0x569   :  { %v6052_v26 = vpop.permute.xlu1 %6051  ;;  %v6408_v24 = vmul.f32 %v6180_v18, %v14572_v61  ;;  %v6578_v10 = vsel %vm5505_vm0, %v6375_v52, -inf  ;;  %v14577_v61 = vld [vmem:[#allocation213_spill] sm:$0xff]  ;;  %v6421_v52 = vmul.f32 %v12937_v40, %v13021_v12 }
 0x56a   :  { %v6549_v48 = vrot.slane %v6548_v22, 2 }
 0x56b   :  { %v6654_v41 = vsel %vm5505_vm0, %v6408_v24, -inf  ;;  %v14578_v24 = vld [vmem:[#allocation18_spill] sm:$0xff] }
 0x56c   :  { %v6550_v11 = vmax.f32 %v6548_v22, %v6549_v48  ;;  %v6120_v33 = vpop.permute.xlu0 %6119  ;;  %v6651_v22 = vmax.f32 %v6649_v17, %v6650_v59  ;;  %v14576_v48 = vld [vmem:[#allocation165_spill] sm:$0xff]  ;;  %v6575_v59 = vmax.f32 %v6573_v29, %v6574_v31  ;;  %v6614_v17 = vmax.f32 %v6612_v13, %v6613_v5 }
 0x56d   :  { %v13145_v18 = vpop.permute.xlu1 %6299  ;;  %v6376_v44 = vmul.f32 %v6052_v26, %v14576_v48  ;;  %v6393_v62 = vmul.f32 %v6120_v33, %v14578_v24  ;;  %v6683_v33 = vsel %vm5505_vm0, %v6420_v4, -inf  ;;  %v6436_v13 = vmul.f32 %v12970_v32, %v13065_v1 }
 0x56e   :  { %v6551_v39 = vrot.slane %v6550_v11, 1  ;;  %v6653_v45 = vmax.f32 %v6651_v22, %v6652_v21  ;;  %v6577_v26 = vmax.f32 %v6575_v59, %v6576_v55  ;;  %v6616_v22 = vmax.f32 %v6614_v17, %v6615_v42  ;;  %v14581_v42 = vld [vmem:[#allocation169_spill] sm:$0xff]  ;;  %v14583_v59 = vld [vmem:[#allocation42_spill] sm:$0xff] }
 0x56f   :  { %v6580_v31 = vsel %vm5505_vm0, %v6376_v44, -inf  ;;  %v6619_v40 = vsel %vm5505_vm0, %v6393_v62, -inf  ;;  %v6718_v4 = vsel %vm5505_vm0, %v6435_v23, -inf  ;;  %v6685_v32 = vsel %vm5505_vm0, %v6421_v52, -inf }
 0x570   :  { %v6552_v51 = vmax.f32 %v6550_v11, %v6551_v39  ;;  %v6184_v14 = vpop.permute.xlu0 %6183  ;;  %v6655_v57 = vmax.f32 %v6653_v45, %v6654_v41  ;;  %v14579_v11 = vld [vmem:[#allocation16_spill] sm:$0xff]  ;;  %v13169_v39 = vpop.f32.mrf.mxu0  ;;  %v6579_v27 = vmax.f32 %v6577_v26, %v6578_v10  ;;  %v6423_v10 = vmul.f32 %v13088_v63, %v13050_v7 }
 0x571   :  { %v6409_v16 = vmul.f32 %v6184_v14, %v14577_v61  ;;  %v6116_v6 = vpop.permute.xlu1 %6115  ;;  %v14582_v14 = vld [vmem:[#allocation101_spill] sm:$0xff]  ;;  %v13187_v62 = vadd.f32 %v4466_v28, %v13083_v15  ;;  %v6720_v52 = vsel %vm5505_vm0, %v6436_v13, -inf  ;;  %v6437_v63 = vmul.f32 %v13070_v25, %v13078_v60 }
 0x572   :  { %v13158_v0 = vsel %vm6748_vm2, %v6552_v51, %v6769_v49  ;;  %v6392_v21 = vmul.f32 %v6116_v6, %v14579_v11  ;;  %v14584_v17 = vmax.f32 %v14582_v14, %v14583_v59 }
 0x573   :  { %v6656_v29 = vsel %vm5505_vm0, %v6409_v16, -inf  ;;  %v14580_v16 = vld [vmem:[#allocation112_spill] sm:$0xff]  ;;  %v6438_v13 = vmul.f32 %v13145_v18, %v13187_v62 }
 0x574   :  { %v6657_v5 = vmax.f32 %v6655_v57, %v6656_v29  ;;  %v6617_v49 = vsel %vm5505_vm0, %v6392_v21, -inf  ;;  %v6422_v45 = vmul.f32 %v14580_v16, %v13044_v3  ;;  %v6717_v6 = vmax.f32 %v14584_v17, %v6716_v53  ;;  %v4469_v29 = vpop.f32.mrf.mxu0  ;;  %v6248_v28 = vpop.permute.xlu0 %6247 }
 0x575   :  { %v6618_v55 = vmax.f32 %v6616_v22, %v6617_v49  ;;  %v6056_v41 = vpop.permute.xlu1 %6055  ;;  %v6581_v57 = vmax.f32 %v6579_v27, %v6580_v31  ;;  %v14585_v49 = vmax.f32 %v13100_v20, %v13093_v54  ;;  %v13199_v20 = vadd.f32 %v4469_v29, %v13106_v30  ;;  %v14588_v29 = vld [vmem:[#allocation40_spill] sm:$0xff] }
 0x576   :  { %v6658_v51 = vrot.slane %v6657_v5, 4  ;;  %v6377_v44 = vmul.f32 %v6056_v41, %v14581_v42  ;;  %v6719_v27 = vmax.f32 %v6717_v6, %v6718_v4  ;;  %v6722_v6 = vsel %vm5505_vm0, %v6437_v63, -inf }
 0x577   :  { %v6620_v21 = vmax.f32 %v6618_v55, %v6619_v40  ;;  %v6684_v53 = vmax.f32 %v14585_v49, %v6683_v33  ;;  %v6687_v55 = vsel %vm5505_vm0, %v6422_v45, -inf  ;;  %v6689_v33 = vsel %vm5505_vm0, %v6423_v10, -inf }
 0x578   :  { %v6659_v26 = vmax.f32 %v6657_v5, %v6658_v51  ;;  %v6582_v22 = vsel %vm5505_vm0, %v6377_v44, -inf  ;;  %v14586_v51 = vld [vmem:[#allocation53_spill] sm:$0xff]  ;;  %v14587_v44 = vld [vmem:[#allocation72_spill] sm:$0xff]  ;;  %v6721_v45 = vmax.f32 %v6719_v27, %v6720_v52  ;;  %v6425_v4 = vmul.f32 %v6248_v28, %v13047_v2 }
 0x579   :  { %v6621_v41 = vrot.slane %v6620_v21, 4  ;;  %v6583_v23 = vmax.f32 %v6581_v57, %v6582_v22  ;;  %v6304_v31 = vpop.permute.xlu1 %6303  ;;  %v6686_v5 = vmax.f32 %v6684_v53, %v6685_v32  ;;  %v3034_v54 = vadd.f32 %v14587_v44, %v14586_v51  ;;  %v14590_v44 = vld [vmem:[#allocation88_spill] sm:$0xff]  ;;  %v14706_v2 = vld [vmem:[#allocation209_spill] sm:$0xff] }
 0x57a   :  { %v6660_v16 = vrot.slane %v6659_v26, 2  ;;  %v6439_v57 = vmul.f32 %v6304_v31, %v13199_v20  ;;  %v5550_v18 = vsel %vm5505_vm0, %v14588_v29, -inf  ;;  %v6724_v53 = vsel %vm5505_vm0, %v6438_v13, -inf }
 0x57b   :  { %v6622_v15 = vmax.f32 %v6620_v21, %v6621_v41  ;;  %v6584_v40 = vrot.slane %v6583_v23, 4  ;;  %v6688_v14 = vmax.f32 %v6686_v5, %v6687_v55  ;;  %v13211_v49 = vadd.f32 %v13136_v8, %v3034_v54  ;;  %v14591_v54 = vld [vmem:[#allocation135_spill] sm:$0xff] }
 0x57c   :  { %v6661_v32 = vmax.f32 %v6659_v26, %v6660_v16  ;;  %v6723_v31 = vmax.f32 %v6721_v45, %v6722_v6  ;;  %v6693_v5 = vsel %vm5505_vm0, %v6425_v4, -inf  ;;  %v6726_v16 = vsel %vm5505_vm0, %v6439_v57, -inf  ;;  %v14593_v45 = vld [vmem:[#allocation86_spill] sm:$0xff] }
 0x57d   :  { %v6623_v59 = vrot.slane %v6622_v15, 2  ;;  %v6585_v25 = vmax.f32 %v6583_v23, %v6584_v40  ;;  %v6244_v17 = vpop.permute.xlu1 %6243  ;;  %v6690_v30 = vmax.f32 %v6688_v14, %v6689_v33  ;;  %v14589_v23 = vld [vmem:[#allocation109_spill] sm:$0xff]  ;;  %v5398_v33 = vmul.f32 %v14591_v54, %v14590_v44  ;;  %v14594_v14 = vld [vmem:[#allocation203_spill] sm:$0xff] }
 0x57e   :  { %v6424_v21 = vmul.f32 %v6244_v17, %v13038_v36  ;;  %v3037_v27 = vadd.f32 %v13061_v37, %v14589_v23  ;;  %v6725_v8 = vmax.f32 %v6723_v31, %v6724_v53  ;;  %v6662_v28 = vrot.slane %v6661_v32, 1 }
 0x57f   :  { %v6624_v22 = vmax.f32 %v6622_v15, %v6623_v59  ;;  %v6586_v10 = vrot.slane %v6585_v25, 2  ;;  %v14595_v59 = vmax.f32 %v14593_v45, %v14594_v14  ;;  %v5552_v31 = vsel %vm5505_vm0, %v5398_v33, -inf  ;;  %v14604_v33 = vld [vmem:[#allocation58_spill] sm:$0xff]  ;;  %v14606_v14 = vld [vmem:[#allocation80_spill] sm:$0xff] }
 0x580   :  { %v6691_v41 = vsel %vm5505_vm0, %v6424_v21, -inf  ;;  %v13223_v37 = vadd.f32 %v13169_v39, %v3037_v27  ;;  %v6727_v6 = vmax.f32 %v6725_v8, %v6726_v16  ;;  %v14596_v21 = vld [vmem:[#allocation71_spill] sm:$0xff]  ;;  %v6663_v39 = vmax.f32 %v6661_v32, %v6662_v28  ;;  %v14599_v16 = vld [vmem:[#allocation81_spill] sm:$0xff] }
 0x581   :  { %v6587_v52 = vmax.f32 %v6585_v25, %v6586_v10  ;;  %v6692_v55 = vmax.f32 %v6690_v30, %v6691_v41  ;;  %v6308_v63 = vpop.permute.xlu1 %6307  ;;  %v6625_v26 = vrot.slane %v6624_v22, 1  ;;  %v5551_v25 = vmax.f32 %v14595_v59, %v5550_v18  ;;  %v14597_v30 = vld [vmem:[#allocation147_spill] sm:$0xff] }
 0x582   :  { %v6440_v15 = vmul.f32 %v6308_v63, %v13211_v49  ;;  %14592 = vst [vmem:[#allocation111_spill] sm:$0xff] %v13223_v37  ;;  %v5399_v10 = vmul.f32 %v14597_v30, %v14596_v21  ;;  %v14607_v59 = vld [vmem:[#allocation139_spill] sm:$0xff] }
 0x583   :  { %v6588_v40 = vrot.slane %v6587_v52, 1  ;;  %v6694_v51 = vmax.f32 %v6692_v55, %v6693_v5  ;;  %v6626_v29 = vmax.f32 %v6624_v22, %v6625_v26  ;;  %v5553_v55 = vmax.f32 %v5551_v25, %v5552_v31  ;;  %v14598_v26 = vld [vmem:[#allocation56_spill] sm:$0xff] }
 0x584   :  { %v6728_v13 = vsel %vm5505_vm0, %v6440_v15, -inf  ;;  %v5384_v32 = vmul.f32 %v14599_v16, %v14598_v26  ;;  %v5554_v15 = vsel %vm5505_vm0, %v5399_v10, -inf  ;;  %v5400_v25 = vmul.f32 %v14607_v59, %v14606_v14  ;;  %v14619_v59 = vld [vmem:[#allocation6_spill] sm:$0xff] }
 0x585   :  { %v6589_v17 = vmax.f32 %v6587_v52, %v6588_v40  ;;  %v6695_v4 = vrot.slane %v6694_v51, 4  ;;  %v6312_v57 = vpop.permute.xlu1 %6311  ;;  %v6729_v23 = vmax.f32 %v6727_v6, %v6728_v13  ;;  %v14601_v40 = vld [vmem:[#allocation5_spill] sm:$0xff]  ;;  %v14605_v13 = vld [vmem:[#allocation123_spill] sm:$0xff]  ;;  %v14608_v6 = vld [vmem:[#allocation116_spill] sm:$0xff]  ;;  %v14610_v10 = vmov 0.0  }
 0x586   :  { %v6441_v53 = vmul.f32 %v6312_v57, %v13223_v37  ;;  %v5385_v45 = vmul.f32 %v14605_v13, %v14604_v33  ;;  %8338 = vmatprep.mubr.msk.bf16.mxu1 %vm8639_vm6, %v14610_v10  ;;  %v14618_v33 = vld [vmem:[#allocation114_spill] sm:$0xff] }
 0x587   :  { %v6696_v41 = vmax.f32 %v6694_v51, %v6695_v4  ;;  %v6771_v27 = vsel %vm6750_vm3, %v6589_v17, %v13158_v0  ;;  %v14600_v0 = vld [vmem:[#allocation102_spill] sm:$0xff]  ;;  %v14602_v51 = vld [vmem:[#allocation76_spill] sm:$0xff]  ;;  %v5555_v17 = vmax.f32 %v5553_v55, %v5554_v15  ;;  %v14609_v4 = vld [vmem:[#allocation167_spill] sm:$0xff] }
 0x588   :  { %v6730_v18 = vsel %vm5505_vm0, %v6441_v53, -inf  ;;  %v6772_v52 = vsel %vm6752_vm4, %v6626_v29, %v6771_v27  ;;  %v14603_v44 = vmax.f32 %v14601_v40, %v14602_v51  ;;  %v5409_v57 = vmul.f32 %v14609_v4, %v14608_v6  ;;  %v14611_v53 = vld [vmem:[#allocation94_spill] sm:$0xff]  ;;  %v14621_v4 = vld [vmem:[#allocation64_spill] sm:$0xff] }
 0x589   :  { %v6697_v63 = vrot.slane %v6696_v41, 2  ;;  %v6731_v5 = vmax.f32 %v6729_v23, %v6730_v18  ;;  %v6773_v22 = vsel %vm6754_vm5, %v6663_v39, %v6772_v52  ;;  %v5519_v29 = vsel %vm5505_vm0, %v5384_v32, -inf  ;;  %v14612_v39 = vld [vmem:[#allocation151_spill] sm:$0xff]  ;;  %v14613_v23 = vld [vmem:[#allocation120_spill] sm:$0xff]  ;;  %v14614_v27 = vld [vmem:[#allocation158_spill] sm:$0xff] }
 0x58a   :  { %v5518_v54 = vmax.f32 %v14603_v44, %v14600_v0  ;;  %v5410_v31 = vmul.f32 %v14614_v27, %v14613_v23  ;;  %v14615_v18 = vld [vmem:[#allocation113_spill] sm:$0xff]  ;;  %v14616_v52 = vld [vmem:[#allocation171_spill] sm:$0xff]  ;;  %v5521_v15 = vsel %vm5505_vm0, %v5385_v45, -inf  ;;  %v5580_v32 = vsel %vm5505_vm0, %v5409_v57, -inf  ;;  %v14624_v10 = vld [vmem:[#allocation162_spill] sm:$0xff] }
 0x58b   :  { %v6698_v8 = vmax.f32 %v6696_v41, %v6697_v63  ;;  %v6732_v28 = vrot.slane %v6731_v5, 4  ;;  %v5401_v41 = vmul.f32 %v14612_v39, %v14611_v53  ;;  %v5411_v63 = vmul.f32 %v14616_v52, %v14615_v18  ;;  %v14617_v44 = vld [vmem:[#allocation65_spill] sm:$0xff]  ;;  %v14622_v57 = vld [vmem:[#allocation127_spill] sm:$0xff]  ;;  %v14625_v39 = vld [vmem:[#allocation82_spill] sm:$0xff] }
 0x58c   :  { %v5520_v16 = vmax.f32 %v5518_v54, %v5519_v29  ;;  %v5386_v13 = vmul.f32 %v14618_v33, %v14617_v44  ;;  %v5581_v14 = vsel %vm5505_vm0, %v5410_v31, -inf  ;;  %v14627_v18 = vld [vmem:[#allocation124_spill] sm:$0xff]  ;;  %v14628_v52 = vld [vmem:[#allocation173_spill] sm:$0xff]  ;;  %v14630_v44 = vld [vmem:[#allocation118_spill] sm:$0xff] }
 0x58d   :  { %v6699_v21 = vrot.slane %v6698_v8, 1  ;;  %v6733_v30 = vmax.f32 %v6731_v5, %v6732_v28  ;;  %v5556_v5 = vsel %vm5505_vm0, %v5400_v25, -inf  ;;  %v5558_v51 = vsel %vm5505_vm0, %v5401_v41, -inf  ;;  %v14620_v25 = vld [vmem:[#allocation142_spill] sm:$0xff]  ;;  %v14626_v41 = vld [vmem:[#allocation155_spill] sm:$0xff] }
 0x58e   :  { %v5557_v28 = vmax.f32 %v5555_v17, %v5556_v5  ;;  %v5522_v45 = vmax.f32 %v5520_v16, %v5521_v15  ;;  %v5402_v6 = vmul.f32 %v14620_v25, %v14619_v59  ;;  %v5582_v17 = vmax.f32 %v5580_v32, %v5581_v14  ;;  %v14634_v59 = vld [vmem:[#allocation131_spill] sm:$0xff] }
 0x58f   :  { %v6734_v55 = vrot.slane %v6733_v30, 2  ;;  %v6700_v26 = vmax.f32 %v6698_v8, %v6699_v21  ;;  %v5583_v8 = vsel %vm5505_vm0, %v5411_v63, -inf  ;;  %v5387_v21 = vmul.f32 %v14622_v57, %v14621_v4  ;;  %v14636_v4 = vld [vmem:[#allocation166_spill] sm:$0xff] }
 0x590   :  { %v5403_v23 = vmul.f32 %v14626_v41, %v14625_v39  ;;  %v5584_v27 = vmax.f32 %v5582_v17, %v5583_v8  ;;  %v5523_v31 = vsel %vm5505_vm0, %v5386_v13, -inf  ;;  %v5413_v63 = vmul.f32 %v14628_v52, %v14627_v18  ;;  %v14632_v8 = vld [vmem:[#allocation146_spill] sm:$0xff]  ;;  %v14635_v17 = vld [vmem:[#allocation128_spill] sm:$0xff]  ;;  %v14640_v39 = vld [vmem:[#allocation175_spill] sm:$0xff] }
 0x591   :  { %v6735_v0 = vmax.f32 %v6733_v30, %v6734_v55  ;;  %v6774_v40 = vsel %vm6756_vm7, %v6700_v26, %v6773_v22  ;;  %v5559_v30 = vmax.f32 %v5557_v28, %v5558_v51  ;;  %v14623_v22 = vld [vmem:[#allocation117_spill] sm:$0xff]  ;;  %v5524_v26 = vmax.f32 %v5522_v45, %v5523_v31  ;;  %v14629_v51 = vld [vmem:[#allocation66_spill] sm:$0xff]  ;;  %v14633_v45 = vld [vmem:[#allocation67_spill] sm:$0xff] }
 0x592   :  { %v5412_v29 = vmul.f32 %v14624_v10, %v14623_v22  ;;  %v5560_v16 = vsel %vm5505_vm0, %v5402_v6, -inf  ;;  %v5525_v15 = vsel %vm5505_vm0, %v5387_v21, -inf  ;;  %v5562_v32 = vsel %vm5505_vm0, %v5403_v23, -inf  ;;  %v14637_v21 = vld [vmem:[#allocation91_spill] sm:$0xff] }
 0x593   :  { %v6736_v54 = vrot.slane %v6735_v0, 1  ;;  %v5561_v5 = vmax.f32 %v5559_v30, %v5560_v16  ;;  %v5388_v33 = vmul.f32 %v14630_v44, %v14629_v51  ;;  %v5587_v13 = vsel %vm5505_vm0, %v5413_v63, -inf  ;;  %v14638_v30 = vld [vmem:[#allocation159_spill] sm:$0xff]  ;;  %v14642_v16 = vld [vmem:[#allocation122_spill] sm:$0xff] }
 0x594   :  { %v5585_v28 = vsel %vm5505_vm0, %v5412_v29, -inf  ;;  %v5526_v14 = vmax.f32 %v5524_v26, %v5525_v15  ;;  %v5389_v25 = vmul.f32 %v14634_v59, %v14633_v45  ;;  %v5414_v57 = vmul.f32 %v14636_v4, %v14635_v17  ;;  %v14641_v26 = vld [vmem:[#allocation70_spill] sm:$0xff]  ;;  %v14650_v59 = vld [vmem:[#allocation163_spill] sm:$0xff]  ;;  %v14651_v4 = vld [vmem:[#allocation60_spill] sm:$0xff] }
 0x595   :  { %v6737_v53 = vmax.f32 %v6735_v0, %v6736_v54  ;;  %v5586_v0 = vmax.f32 %v5584_v27, %v5585_v28  ;;  %v5563_v6 = vmax.f32 %v5561_v5, %v5562_v32  ;;  %v5405_v22 = vmul.f32 %v14638_v30, %v14637_v21  ;;  %v14643_v32 = vld [vmem:[#allocation68_spill] sm:$0xff]  ;;  %v14645_v44 = vld [vmem:[#allocation78_spill] sm:$0xff] }
 0x596   :  { %v5527_v29 = vsel %vm5505_vm0, %v5388_v33, -inf  ;;  %v5529_v31 = vsel %vm5505_vm0, %v5389_v25, -inf  ;;  %v5589_v52 = vsel %vm5505_vm0, %v5414_v57, -inf  ;;  %v5390_v15 = vmul.f32 %v14642_v16, %v14641_v26  ;;  %v14646_v33 = vld [vmem:[#allocation150_spill] sm:$0xff]  ;;  %v14653_v30 = vld [vmem:[#allocation132_spill] sm:$0xff]  ;;  %v14659_v16 = vld [vmem:[#allocation141_spill] sm:$0xff] }
 0x597   :  { %v6775_v55 = vsel %vm6758_vm8, %v6737_v53, %v6774_v40  ;;  %v14631_v40 = vld [vmem:[#allocation75_spill] sm:$0xff]  ;;  %v5588_v10 = vmax.f32 %v5586_v0, %v5587_v13  ;;  %v14639_v53 = vld [vmem:[#allocation121_spill] sm:$0xff]  ;;  %v5528_v23 = vmax.f32 %v5526_v14, %v5527_v29  ;;  %v5566_v63 = vsel %vm5505_vm0, %v5405_v22, -inf  ;;  %v14644_v0 = vld [vmem:[#allocation134_spill] sm:$0xff] }
 0x598   :  { %6776 = vrot.lane.b32.xlu0 %v6775_v55, %s8640_s5  ;;  %v5404_v54 = vmul.f32 %v14632_v8, %v14631_v40  ;;  %v5415_v41 = vmul.f32 %v14640_v39, %v14639_v53  ;;  %v5391_v51 = vmul.f32 %v14644_v0, %v14643_v32  ;;  %v5406_v13 = vmul.f32 %v14646_v33, %v14645_v44  ;;  %v14647_v40 = vld [vmem:[#allocation125_spill] sm:$0xff]  ;;  %v14648_v8 = vld [vmem:[#allocation170_spill] sm:$0xff]  ;;  %v14663_v44 = vld [vmem:[#allocation187_spill] sm:$0xff] }
 0x599   :  { %v5590_v55 = vmax.f32 %v5588_v10, %v5589_v52  ;;  %v5530_v28 = vmax.f32 %v5528_v23, %v5529_v31  ;;  %v14649_v45 = vld [vmem:[#allocation90_spill] sm:$0xff]  ;;  %v5531_v17 = vsel %vm5505_vm0, %v5390_v15, -inf  ;;  %v14654_v22 = vld [vmem:[#allocation177_spill] sm:$0xff]  ;;  %v14656_v31 = vld [vmem:[#allocation172_spill] sm:$0xff] }
 0x59a   :  { %v5564_v27 = vsel %vm5505_vm0, %v5404_v54, -inf  ;;  %v5591_v5 = vsel %vm5505_vm0, %v5415_v41, -inf  ;;  %v5416_v54 = vmul.f32 %v14648_v8, %v14647_v40  ;;  %v5407_v25 = vmul.f32 %v14650_v59, %v14649_v45  ;;  %v14652_v57 = vld [vmem:[#allocation126_spill] sm:$0xff]  ;;  %v14657_v52 = vld [vmem:[#allocation21_spill] sm:$0xff]  ;;  %v14660_v15 = vld [vmem:[#allocation176_spill] sm:$0xff] }
 0x59b   :  { %v5565_v18 = vmax.f32 %v5563_v6, %v5564_v27  ;;  %v5592_v6 = vmax.f32 %v5590_v55, %v5591_v5  ;;  %v5392_v21 = vmul.f32 %v14652_v57, %v14651_v4  ;;  %v5417_v10 = vmul.f32 %v14654_v22, %v14653_v30  ;;  %v14655_v27 = vld [vmem:[#allocation24_spill] sm:$0xff]  ;;  %v14666_v40 = vld [vmem:[#allocation154_spill] sm:$0xff]  ;;  %v14668_v45 = vld [vmem:[#allocation181_spill] sm:$0xff] }
 0x59c   :  { %v5532_v29 = vmax.f32 %v5530_v28, %v5531_v17  ;;  %v5533_v53 = vsel %vm5505_vm0, %v5391_v51, -inf  ;;  %v5568_v39 = vsel %vm5505_vm0, %v5406_v13, -inf  ;;  %v5593_v23 = vsel %vm5505_vm0, %v5416_v54, -inf  ;;  %v14662_v51 = vld [vmem:[#allocation144_spill] sm:$0xff]  ;;  %v14670_v17 = vld [vmem:[#allocation189_spill] sm:$0xff]  ;;  %v14672_v30 = vld [vmem:[#allocation110_spill] sm:$0xff] }
 0x59d   :  { %v5567_v14 = vmax.f32 %v5565_v18, %v5566_v63  ;;  %v5418_v18 = vmul.f32 %v14656_v31, %v14655_v27  ;;  %v14658_v63 = vld [vmem:[#allocation174_spill] sm:$0xff]  ;;  %v5570_v26 = vsel %vm5505_vm0, %v5407_v25, -inf  ;;  %v5422_v5 = vmul.f32 %v14660_v15, %v14659_v16  ;;  %v14667_v54 = vld [vmem:[#allocation148_spill] sm:$0xff]  ;;  %v14678_v31 = vld [vmem:[#allocation205_spill] sm:$0xff] }
 0x59e   :  { %v5420_v55 = vmul.f32 %v14658_v63, %v14657_v52  ;;  %v5594_v32 = vmax.f32 %v5592_v6, %v5593_v23  ;;  %v13329_v28 = vsel %vm5505_vm0, %v5392_v21, -inf  ;;  %v5595_v0 = vsel %vm5505_vm0, %v5417_v10, -inf  ;;  %v14669_v25 = vld [vmem:[#allocation34_spill] sm:$0xff]  ;;  %v14673_v22 = vld [vmem:[#allocation212_spill] sm:$0xff]  ;;  %v14675_v23 = vld [vmem:[#allocation179_spill] sm:$0xff] }
 0x59f   :  { %v5569_v41 = vmax.f32 %v5567_v14, %v5568_v39  ;;  %14661 = vst [vmem:[#allocation95_spill] sm:$0xff] %v13329_v28  ;;  %v5425_v33 = vmul.f32 %v14663_v44, %v14662_v51  ;;  %v13334_v13 = vmax.f32 %v5532_v29, %v5533_v53  ;;  %v14665_v14 = vld [vmem:[#allocation92_spill] sm:$0xff]  ;;  %v5426_v59 = vmul.f32 %v14668_v45, %v14667_v54  ;;  %v14674_v39 = vld [vmem:[#allocation138_spill] sm:$0xff]  ;;  %v14682_v15 = vld [vmem:[#allocation215_spill] sm:$0xff] }
 0x5a0   :  { %v13338_v8 = vmul.f32 %v14666_v40, %v14665_v14  ;;  %v5427_v6 = vmul.f32 %v14670_v17, %v14669_v25  ;;  %v13347_v57 = vsel %vm5505_vm0, %v5418_v18, -inf  ;;  %v13350_v21 = vsel %vm5505_vm0, %v5420_v55, -inf  ;;  %v14679_v18 = vld [vmem:[#allocation129_spill] sm:$0xff]  ;;  %v14680_v63 = vld [vmem:[#allocation180_spill] sm:$0xff]  ;;  %v14687_v25 = vld [vmem:[#allocation30_spill] sm:$0xff] }
 0x5a1   :  { %14664 = vst [vmem:[#allocation87_spill] sm:$0xff] %v13334_v13  ;;  %v13344_v4 = vmax.f32 %v5569_v41, %v5570_v26  ;;  %v5441_v10 = vmul.f32 %v14673_v22, %v14672_v30  ;;  %v13355_v29 = vsel %vm5505_vm0, %v5422_v5, -inf  ;;  %v13357_v53 = vmax.f32 %v5594_v32, %v5595_v0  ;;  %v14677_v41 = vld [vmem:[#allocation7_spill] sm:$0xff]  ;;  %v14681_v16 = vld [vmem:[#allocation108_spill] sm:$0xff]  ;;  %v14683_v5 = vld [vmem:[#allocation22_spill] sm:$0xff] }
 0x5a2   :  { %v13361_v27 = vmul.f32 %v14675_v23, %v14674_v39  ;;  %v5442_v52 = vmul.f32 %v14678_v31, %v14677_v41  ;;  %v13367_v26 = vmul.f32 %v14680_v63, %v14679_v18  ;;  %v5617_v55 = vsel %vm5505_vm0, %v5425_v33, -inf  ;;  %v14684_v44 = vld [vmem:[#allocation229_spill] sm:$0xff]  ;;  %v14686_v40 = vld [vmem:[#allocation184_spill] sm:$0xff]  ;;  %v14692_v31 = vld [vmem:[#allocation231_spill] sm:$0xff] }
 0x5a3   :  { %14671 = vst [vmem:[#allocation63_spill] sm:$0xff] %v13344_v4  ;;  %v5443_v51 = vmul.f32 %v14682_v15, %v14681_v16  ;;  %v5457_v32 = vmul.f32 %v14684_v44, %v14683_v5  ;;  %v5618_v0 = vsel %vm5505_vm0, %v5426_v59, -inf  ;;  %v14685_v14 = vld [vmem:[#allocation145_spill] sm:$0xff]  ;;  %v5620_v45 = vsel %vm5505_vm0, %v5427_v6, -inf  ;;  %v14690_v33 = vld [vmem:[#allocation224_spill] sm:$0xff]  ;;  %v14693_v63 = vld [vmem:[#allocation183_spill] sm:$0xff] }
 0x5a4   :  { %14676 = vst [vmem:[#allocation62_spill] sm:$0xff] %v13361_v27  ;;  %v5428_v54 = vmul.f32 %v14686_v40, %v14685_v14  ;;  %v14688_v17 = vld [vmem:[#allocation245_spill] sm:$0xff]  ;;  %v5654_v22 = vsel %vm5505_vm0, %v5441_v10, -inf  ;;  %v14691_v41 = vld [vmem:[#allocation20_spill] sm:$0xff]  ;;  %v5619_v59 = vmax.f32 %v5617_v55, %v5618_v0  ;;  %v5655_v5 = vsel %vm5505_vm0, %v5442_v52, -inf  ;;  %v14698_v13 = vld [vmem:[#allocation247_spill] sm:$0xff] }
 0x5a5   :  { %v5473_v30 = vmul.f32 %v14688_v17, %v14687_v25  ;;  %v14689_v39 = vld [vmem:[#allocation305_spill] sm:$0xff]  ;;  %v5459_v18 = vmul.f32 %v14692_v31, %v14691_v41  ;;  %v14695_v44 = vld [vmem:[#allocation36_spill] sm:$0xff]  ;;  %v5657_v10 = vsel %vm5505_vm0, %v5443_v51, -inf  ;;  %v5691_v17 = vsel %vm5505_vm0, %v5457_v32, -inf  ;;  %v14702_v31 = vld [vmem:[#allocation263_spill] sm:$0xff] }
 0x5a6   :  { %v5458_v23 = vmul.f32 %v14690_v33, %v14689_v39  ;;  %v14694_v16 = vld [vmem:[#allocation261_spill] sm:$0xff]  ;;  %v14696_v14 = vld [vmem:[#allocation240_spill] sm:$0xff]  ;;  %v14699_v39 = vld [vmem:[#allocation39_spill] sm:$0xff] }
 0x5a7   :  { %v5489_v15 = vmul.f32 %v14694_v16, %v14693_v63  ;;  %v5474_v6 = vmul.f32 %v14696_v14, %v14695_v44  ;;  %v14697_v40 = vld [vmem:[#allocation37_spill] sm:$0xff]  ;;  %v14700_v33 = vld [vmem:[#allocation256_spill] sm:$0xff]  ;;  %v5621_v63 = vmax.f32 %v5619_v59, %v5620_v45  ;;  %v14704_v0 = vld [vmem:[#allocation191_spill] sm:$0xff]  ;;  %v5656_v16 = vmax.f32 %v5654_v22, %v5655_v5 }
 0x5a8   :  { %v5475_v25 = vmul.f32 %v14698_v13, %v14697_v40  ;;  %v5490_v28 = vmul.f32 %v14700_v33, %v14699_v39  ;;  %v14701_v41 = vld [vmem:[#allocation48_spill] sm:$0xff]  ;;  %v5728_v44 = vsel %vm5505_vm0, %v5473_v30, -inf  ;;  %v14705_v14 = vld [vmem:[#allocation55_spill] sm:$0xff]  ;;  %v5692_v51 = vsel %vm5505_vm0, %v5458_v23, -inf  ;;  %v14710_v23 = vld [vmem:[#allocation217_spill] sm:$0xff] }
 0x5a9   :  { %v5491_v37 = vmul.f32 %v14702_v31, %v14701_v41  ;;  %v14703_v55 = vld [vmem:[#allocation152_spill] sm:$0xff]  ;;  %v5444_v13 = vmul.f32 %v14706_v2, %v14705_v14  ;;  %v5694_v32 = vsel %vm5505_vm0, %v5459_v18, -inf  ;;  %v5765_v40 = vsel %vm5505_vm0, %v5489_v15, -inf  ;;  %v14708_v31 = vld [vmem:[#allocation226_spill] sm:$0xff]  ;;  %v14718_v4 = vld [vmem:[#allocation249_spill] sm:$0xff] }
 0x5aa   :  { %v5429_v52 = vmul.f32 %v14704_v0, %v14703_v55  ;;  %v5658_v39 = vmax.f32 %v5656_v16, %v5657_v10  ;;  %v5693_v33 = vmax.f32 %v5691_v17, %v5692_v51  ;;  %v5729_v41 = vsel %vm5505_vm0, %v5474_v6, -inf  ;;  %v14707_v59 = vld [vmem:[#allocation192_spill] sm:$0xff]  ;;  %v14709_v55 = vld [vmem:[#allocation9_spill] sm:$0xff]  ;;  %v14712_v15 = vld [vmem:[#allocation242_spill] sm:$0xff] }
 0x5ab   :  { %v5731_v45 = vsel %vm5505_vm0, %v5475_v25, -inf  ;;  %v5460_v22 = vmul.f32 %v14708_v31, %v14707_v59  ;;  %v5730_v5 = vmax.f32 %v5728_v44, %v5729_v41  ;;  %v5766_v30 = vsel %vm5505_vm0, %v5490_v28, -inf  ;;  %v14711_v14 = vld [vmem:[#allocation100_spill] sm:$0xff]  ;;  %v14714_v25 = vld [vmem:[#allocation233_spill] sm:$0xff]  ;;  %v14715_v59 = vld [vmem:[#allocation178_spill] sm:$0xff] }
 0x5ac   :  { %v5768_v2 = vsel %vm5505_vm0, %v5491_v37, -inf  ;;  %v5445_v0 = vmul.f32 %v14710_v23, %v14709_v55  ;;  %v5695_v18 = vmax.f32 %v5693_v33, %v5694_v32  ;;  %v5476_v10 = vmul.f32 %v14712_v15, %v14711_v14  ;;  %v14713_v16 = vld [vmem:[#allocation28_spill] sm:$0xff]  ;;  %v14716_v44 = vld [vmem:[#allocation258_spill] sm:$0xff]  ;;  %v14717_v31 = vld [vmem:[#allocation195_spill] sm:$0xff] }
 0x5ad   :  { %v5767_v17 = vmax.f32 %v5765_v40, %v5766_v30  ;;  %v5622_v6 = vsel %vm5505_vm0, %v5428_v54, -inf  ;;  %v5461_v51 = vmul.f32 %v14714_v25, %v14713_v16  ;;  %v5732_v27 = vmax.f32 %v5730_v5, %v5731_v45  ;;  %v14719_v54 = vld [vmem:[#allocation207_spill] sm:$0xff]  ;;  %v14720_v30 = vld [vmem:[#allocation265_spill] sm:$0xff]  ;;  %v14721_v15 = vld [vmem:[#allocation156_spill] sm:$0xff] }
 0x5ae   :  { %v5492_v41 = vmul.f32 %v14716_v44, %v14715_v59  ;;  %v5623_v28 = vmax.f32 %v5621_v63, %v5622_v6  ;;  %v5659_v37 = vsel %vm5505_vm0, %v5444_v13, -inf  ;;  %v5477_v55 = vmul.f32 %v14718_v4, %v14717_v31  ;;  %v14722_v6 = vld [vmem:[#allocation186_spill] sm:$0xff]  ;;  %v14724_v16 = vld [vmem:[#allocation84_spill] sm:$0xff] }
 0x5af   :  { %v5769_v32 = vmax.f32 %v5767_v17, %v5768_v2  ;;  %v5624_v33 = vsel %vm5505_vm0, %v5429_v52, -inf  ;;  %v5660_v23 = vmax.f32 %v5658_v39, %v5659_v37  ;;  %v5696_v40 = vsel %vm5505_vm0, %v5460_v22, -inf  ;;  %v14723_v17 = vld [vmem:[#allocation11_spill] sm:$0xff]  ;;  %v14728_v37 = vld [vmem:[#allocation228_spill] sm:$0xff] }
 0x5b0   :  { %v5493_v14 = vmul.f32 %v14720_v30, %v14719_v54  ;;  %v5598_v45 = vmax.f32 %v13357_v53, %v13347_v57  ;;  %v5661_v5 = vsel %vm5505_vm0, %v5445_v0, -inf  ;;  %v5697_v63 = vmax.f32 %v5695_v18, %v5696_v40  ;;  %v14725_v53 = vld [vmem:[#allocation149_spill] sm:$0xff]  ;;  %v14726_v0 = vld [vmem:[#allocation194_spill] sm:$0xff]  ;;  %v14731_v54 = vld [vmem:[#allocation47_spill] sm:$0xff] }
 0x5b1   :  { %v5733_v13 = vsel %vm5505_vm0, %v5476_v10, -inf  ;;  %v5430_v4 = vmul.f32 %v14722_v6, %v14721_v15  ;;  %v5698_v2 = vsel %vm5505_vm0, %v5461_v51, -inf  ;;  %v5770_v39 = vsel %vm5505_vm0, %v5492_v41, -inf  ;;  %v14727_v10 = vld [vmem:[#allocation38_spill] sm:$0xff]  ;;  %v14729_v51 = vld [vmem:[#allocation8_spill] sm:$0xff]  ;;  %v14730_v41 = vld [vmem:[#allocation219_spill] sm:$0xff] }
 0x5b2   :  { %v5734_v52 = vmax.f32 %v5732_v27, %v5733_v13  ;;  %v5625_v22 = vmax.f32 %v5623_v28, %v5624_v33  ;;  %v5446_v25 = vmul.f32 %v14724_v16, %v14723_v17  ;;  %v5735_v59 = vsel %vm5505_vm0, %v5477_v55, -inf  ;;  %v14732_v30 = vld [vmem:[#allocation244_spill] sm:$0xff]  ;;  %v14733_v13 = vld [vmem:[#allocation26_spill] sm:$0xff]  ;;  %v14734_v15 = vld [vmem:[#allocation235_spill] sm:$0xff] }
 0x5b3   :  { %v5771_v57 = vmax.f32 %v5769_v32, %v5770_v39  ;;  %v5431_v18 = vmul.f32 %v14726_v0, %v14725_v53  ;;  %v5662_v44 = vmax.f32 %v5660_v23, %v5661_v5  ;;  %v5462_v31 = vmul.f32 %v14728_v37, %v14727_v10  ;;  %v14735_v6 = vld [vmem:[#allocation29_spill] sm:$0xff]  ;;  %v14736_v39 = vld [vmem:[#allocation260_spill] sm:$0xff]  ;;  %v14738_v53 = vld [vmem:[#allocation251_spill] sm:$0xff] }
 0x5b4   :  { %v5772_v40 = vsel %vm5505_vm0, %v5493_v14, -inf  ;;  %v5599_v27 = vsel %vm5505_vm0, %v13367_v26, -inf  ;;  %v5447_v28 = vmul.f32 %v14730_v41, %v14729_v51  ;;  %v5699_v33 = vmax.f32 %v5697_v63, %v5698_v2  ;;  %v14737_v26 = vld [vmem:[#allocation41_spill] sm:$0xff]  ;;  %v14740_v51 = vld [vmem:[#allocation267_spill] sm:$0xff] }
 0x5b5   :  { %v5478_v55 = vmul.f32 %v14732_v30, %v14731_v54  ;;  %v5626_v32 = vsel %vm5505_vm0, %v5430_v4, -inf  ;;  %v5463_v23 = vmul.f32 %v14734_v15, %v14733_v13  ;;  %v5736_v5 = vmax.f32 %v5734_v52, %v5735_v59  ;;  %v14739_v4 = vld [vmem:[#allocation202_spill] sm:$0xff]  ;;  %v14742_v30 = vld [vmem:[#allocation188_spill] sm:$0xff] }
 0x5b6   :  { %v5494_v17 = vmul.f32 %v14736_v39, %v14735_v6  ;;  %v5627_v14 = vmax.f32 %v5625_v22, %v5626_v32  ;;  %v5663_v16 = vsel %vm5505_vm0, %v5446_v25, -inf  ;;  %v5479_v0 = vmul.f32 %v14738_v53, %v14737_v26  ;;  %v14741_v25 = vld [vmem:[#allocation153_spill] sm:$0xff]  ;;  %v14744_v13 = vld [vmem:[#allocation214_spill] sm:$0xff]  ;;  %v14745_v6 = vld [vmem:[#allocation160_spill] sm:$0xff] }
 0x5b7   :  { %v5773_v10 = vmax.f32 %v5771_v57, %v5772_v40  ;;  %v5628_v63 = vsel %vm5505_vm0, %v5431_v18, -inf  ;;  %v5664_v2 = vmax.f32 %v5662_v44, %v5663_v16  ;;  %v5700_v37 = vsel %vm5505_vm0, %v5462_v31, -inf  ;;  %v14743_v31 = vld [vmem:[#allocation10_spill] sm:$0xff] }
 0x5b8   :  { %v5495_v41 = vmul.f32 %v14740_v51, %v14739_v4  ;;  %v13462_v54 = vmax.f32 %v5598_v45, %v5599_v27  ;;  %v5665_v52 = vsel %vm5505_vm0, %v5447_v28, -inf  ;;  %v5701_v59 = vmax.f32 %v5699_v33, %v5700_v37  ;;  %v14746_v28 = vld [vmem:[#allocation197_spill] sm:$0xff]  ;;  %v14748_v16 = vld [vmem:[#allocation230_spill] sm:$0xff] }
 0x5b9   :  { %v5737_v22 = vsel %vm5505_vm0, %v5478_v55, -inf  ;;  %v5432_v32 = vmul.f32 %v14742_v30, %v14741_v25  ;;  %v5702_v57 = vsel %vm5505_vm0, %v5463_v23, -inf  ;;  %v5774_v18 = vsel %vm5505_vm0, %v5494_v17, -inf  ;;  %v14747_v55 = vld [vmem:[#allocation199_spill] sm:$0xff]  ;;  %v14749_v23 = vld [vmem:[#allocation137_spill] sm:$0xff]  ;;  %v14755_v25 = vld [vmem:[#allocation32_spill] sm:$0xff] }
 0x5ba   :  { %v5738_v40 = vmax.f32 %v5736_v5, %v5737_v22  ;;  %v5629_v44 = vmax.f32 %v5627_v14, %v5628_v63  ;;  %v5448_v15 = vmul.f32 %v14744_v13, %v14743_v31  ;;  %v5739_v45 = vsel %vm5505_vm0, %v5479_v0, -inf  ;;  %v14750_v5 = vld [vmem:[#allocation182_spill] sm:$0xff]  ;;  %v14751_v17 = vld [vmem:[#allocation13_spill] sm:$0xff] }
 0x5bb   :  { %v5775_v27 = vmax.f32 %v5773_v10, %v5774_v18  ;;  %v5433_v33 = vmul.f32 %v14746_v28, %v14745_v6  ;;  %v5666_v39 = vmax.f32 %v5664_v2, %v5665_v52  ;;  %v5464_v26 = vmul.f32 %v14748_v16, %v14747_v55  ;;  %v14752_v14 = vld [vmem:[#allocation221_spill] sm:$0xff]  ;;  %v14754_v22 = vld [vmem:[#allocation246_spill] sm:$0xff] }
 0x5bc   :  { %v5776_v53 = vsel %vm5505_vm0, %v5495_v41, -inf  ;;  %v5421_v37 = vmul.f32 %v14750_v5, %v14749_v23  ;;  %v5449_v63 = vmul.f32 %v14752_v14, %v14751_v17  ;;  %v5703_v4 = vmax.f32 %v5701_v59, %v5702_v57  ;;  %v14753_v51 = vld [vmem:[#allocation25_spill] sm:$0xff]  ;;  %v14757_v18 = vld [vmem:[#allocation198_spill] sm:$0xff]  ;;  %v14762_v14 = vld [vmem:[#allocation164_spill] sm:$0xff] }
 0x5bd   :  { %v5480_v0 = vmul.f32 %v14754_v22, %v14753_v51  ;;  %v5630_v10 = vsel %vm5505_vm0, %v5432_v32, -inf  ;;  %v14756_v30 = vld [vmem:[#allocation237_spill] sm:$0xff]  ;;  %v5740_v52 = vmax.f32 %v5738_v40, %v5739_v45  ;;  %v14758_v31 = vld [vmem:[#allocation262_spill] sm:$0xff]  ;;  %v5667_v6 = vsel %vm5505_vm0, %v5448_v15, -inf }
 0x5be   :  { %v5465_v2 = vmul.f32 %v14756_v30, %v14755_v25  ;;  %v5496_v13 = vmul.f32 %v14758_v31, %v14757_v18  ;;  %v5631_v41 = vmax.f32 %v5629_v44, %v5630_v10  ;;  %v14759_v28 = vld [vmem:[#allocation57_spill] sm:$0xff]  ;;  %v5777_v23 = vmax.f32 %v5775_v27, %v5776_v53  ;;  %v14763_v51 = vld [vmem:[#allocation190_spill] sm:$0xff]  ;;  %v14764_v53 = vld [vmem:[#allocation15_spill] sm:$0xff] }
 0x5bf   :  { %v14760_v55 = vld [vmem:[#allocation253_spill] sm:$0xff]  ;;  %v5632_v59 = vsel %vm5505_vm0, %v5433_v33, -inf  ;;  %v5668_v57 = vmax.f32 %v5666_v39, %v5667_v6  ;;  %v5704_v5 = vsel %vm5505_vm0, %v5464_v26, -inf  ;;  %v5602_v40 = vmax.f32 %v13462_v54, %v13350_v21  ;;  %v14765_v10 = vld [vmem:[#allocation216_spill] sm:$0xff] }
 0x5c0   :  { %v5481_v16 = vmul.f32 %v14760_v55, %v14759_v28  ;;  %v14761_v32 = vld [vmem:[#allocation269_spill] sm:$0xff]  ;;  %v5669_v45 = vsel %vm5505_vm0, %v5449_v63, -inf  ;;  %v5705_v44 = vmax.f32 %v5703_v4, %v5704_v5  ;;  %v5741_v15 = vsel %vm5505_vm0, %v5480_v0, -inf  ;;  %v14767_v0 = vld [vmem:[#allocation74_spill] sm:$0xff]  ;;  %v14768_v30 = vld [vmem:[#allocation232_spill] sm:$0xff] }
 0x5c1   :  { %v5497_v17 = vmul.f32 %v14761_v32, %v13074_v38  ;;  %v5434_v22 = vmul.f32 %v14763_v51, %v14762_v14  ;;  %v5706_v27 = vsel %vm5505_vm0, %v5465_v2, -inf  ;;  %v5742_v33 = vmax.f32 %v5740_v52, %v5741_v15  ;;  %v14766_v54 = vld [vmem:[#allocation201_spill] sm:$0xff]  ;;  %v14769_v52 = vld [vmem:[#allocation223_spill] sm:$0xff]  ;;  %v14771_v28 = vld [vmem:[#allocation248_spill] sm:$0xff] }
 0x5c2   :  { %v5778_v39 = vsel %vm5505_vm0, %v5496_v13, -inf  ;;  %v5633_v26 = vmax.f32 %v5631_v41, %v5632_v59  ;;  %v5450_v38 = vmul.f32 %v14765_v10, %v14764_v53  ;;  %v5743_v25 = vsel %vm5505_vm0, %v5481_v16, -inf  ;;  %v14770_v6 = vld [vmem:[#allocation69_spill] sm:$0xff]  ;;  %v14775_v51 = vld [vmem:[#allocation271_spill] sm:$0xff] }
 0x5c3   :  { %v5779_v21 = vmax.f32 %v5777_v23, %v5778_v39  ;;  %v5435_v63 = vmul.f32 %v14766_v54, %v14561_v19  ;;  %v5670_v4 = vmax.f32 %v5668_v57, %v5669_v45  ;;  %v5466_v18 = vmul.f32 %v14768_v30, %v14767_v0  ;;  %v14772_v23 = vld [vmem:[#allocation239_spill] sm:$0xff]  ;;  %v14773_v57 = vld [vmem:[#allocation264_spill] sm:$0xff]  ;;  %v14776_v39 = vld [vmem:[#allocation193_spill] sm:$0xff] }
 0x5c4   :  { %v5780_v31 = vsel %vm5505_vm0, %v5497_v17, -inf  ;;  %v5603_v2 = vsel %vm5505_vm0, %v5421_v37, -inf  ;;  %v5451_v13 = vmul.f32 %v14769_v52, %v14564_v47  ;;  %v5707_v41 = vmax.f32 %v5705_v44, %v5706_v27  ;;  %v14774_v37 = vld [vmem:[#allocation255_spill] sm:$0xff]  ;;  %v14778_v54 = vld [vmem:[#allocation206_spill] sm:$0xff]  ;;  %v14782_v52 = vld [vmem:[#allocation17_spill] sm:$0xff] }
 0x5c5   :  { %v5482_v55 = vmul.f32 %v14771_v28, %v14770_v6  ;;  %v5634_v16 = vsel %vm5505_vm0, %v5434_v22, -inf  ;;  %v5467_v19 = vmul.f32 %v14772_v23, %v14559_v9  ;;  %v5744_v59 = vmax.f32 %v5742_v33, %v5743_v25  ;;  %v14777_v25 = vld [vmem:[#allocation218_spill] sm:$0xff] }
 0x5c6   :  { %v5498_v5 = vmul.f32 %v14773_v57, %v13090_v43  ;;  %v5635_v32 = vmax.f32 %v5633_v26, %v5634_v16  ;;  %v5671_v17 = vsel %vm5505_vm0, %v5450_v38, -inf  ;;  %v5483_v45 = vmul.f32 %v14774_v37, %v13011_v34  ;;  %v14779_v0 = vld [vmem:[#allocation234_spill] sm:$0xff]  ;;  %v14785_v16 = vld [vmem:[#allocation85_spill] sm:$0xff] }
 0x5c7   :  { %v5781_v47 = vmax.f32 %v5779_v21, %v5780_v31  ;;  %v5636_v44 = vsel %vm5505_vm0, %v5435_v63, -inf  ;;  %v5672_v15 = vmax.f32 %v5670_v4, %v5671_v17  ;;  %v5708_v14 = vsel %vm5505_vm0, %v5466_v18, -inf  ;;  %v14780_v18 = vld [vmem:[#allocation27_spill] sm:$0xff]  ;;  %v14781_v31 = vld [vmem:[#allocation185_spill] sm:$0xff] }
 0x5c8   :  { %v5499_v22 = vmul.f32 %v14775_v51, %v13065_v1  ;;  %v13529_v9 = vmax.f32 %v5602_v40, %v5603_v2  ;;  %v5673_v27 = vsel %vm5505_vm0, %v5451_v13, -inf  ;;  %v5709_v43 = vmax.f32 %v5707_v41, %v5708_v14  ;;  %v14783_v13 = vld [vmem:[#allocation225_spill] sm:$0xff] }
 0x5c9   :  { %v5745_v33 = vsel %vm5505_vm0, %v5482_v55, -inf  ;;  %v5436_v26 = vmul.f32 %v14776_v39, %v14568_v35  ;;  %v5710_v34 = vsel %vm5505_vm0, %v5467_v19, -inf  ;;  %v5782_v10 = vsel %vm5505_vm0, %v5498_v5, -inf }
 0x5ca   :  { %v5746_v53 = vmax.f32 %v5744_v59, %v5745_v33  ;;  %v5637_v38 = vmax.f32 %v5635_v32, %v5636_v44  ;;  %v5452_v21 = vmul.f32 %v14777_v25, %v14567_v58  ;;  %v5747_v1 = vsel %vm5505_vm0, %v5483_v45, -inf  ;;  %v14784_v58 = vld [vmem:[#allocation250_spill] sm:$0xff]  ;;  %v14788_v32 = vld [vmem:[#allocation257_spill] sm:$0xff]  ;;  %v14789_v44 = vld [vmem:[#allocation272_spill] sm:$0xff] }
 0x5cb   :  { %v5783_v40 = vmax.f32 %v5781_v47, %v5782_v10  ;;  %v5437_v63 = vmul.f32 %v14778_v54, %v14571_v56  ;;  %v5674_v4 = vmax.f32 %v5672_v15, %v5673_v27  ;;  %v5468_v30 = vmul.f32 %v14779_v0, %v14562_v46  ;;  %v14786_v56 = vld [vmem:[#allocation241_spill] sm:$0xff]  ;;  %v14787_v46 = vld [vmem:[#allocation266_spill] sm:$0xff]  ;;  %v14790_v27 = vld [vmem:[#allocation196_spill] sm:$0xff] }
 0x5cc   :  { %v5784_v35 = vsel %vm5505_vm0, %v5499_v22, -inf  ;;  %v5423_v2 = vmul.f32 %v14781_v31, %v14780_v18  ;;  %v5453_v41 = vmul.f32 %v14783_v13, %v14782_v52  ;;  %v5711_v6 = vmax.f32 %v5709_v43, %v5710_v34  ;;  %v14791_v34 = vld [vmem:[#allocation19_spill] sm:$0xff]  ;;  %v14798_v31 = vld [vmem:[#allocation33_spill] sm:$0xff] }
 0x5cd   :  { %v5484_v28 = vmul.f32 %v14784_v58, %v13021_v12  ;;  %v5638_v55 = vsel %vm5505_vm0, %v5436_v26, -inf  ;;  %v5469_v23 = vmul.f32 %v14786_v56, %v14785_v16  ;;  %v5748_v19 = vmax.f32 %v5746_v53, %v5747_v1  ;;  %v14792_v53 = vld [vmem:[#allocation220_spill] sm:$0xff]  ;;  %v14799_v52 = vld [vmem:[#allocation243_spill] sm:$0xff] }
 0x5ce   :  { %v5500_v59 = vmul.f32 %v14787_v46, %v13078_v60  ;;  %v5639_v57 = vmax.f32 %v5637_v38, %v5638_v55  ;;  %v5675_v5 = vsel %vm5505_vm0, %v5452_v21, -inf  ;;  %v5485_v17 = vmul.f32 %v14788_v32, %v13044_v3  ;;  %v14794_v21 = vld [vmem:[#allocation59_spill] sm:$0xff]  ;;  %v14795_v1 = vld [vmem:[#allocation236_spill] sm:$0xff] }
 0x5cf   :  { %v5785_v37 = vmax.f32 %v5783_v40, %v5784_v35  ;;  %v5640_v45 = vsel %vm5505_vm0, %v5437_v63, -inf  ;;  %v5676_v47 = vmax.f32 %v5674_v4, %v5675_v5  ;;  %v5712_v12 = vsel %vm5505_vm0, %v5468_v30, -inf  ;;  %v14796_v63 = vld [vmem:[#allocation227_spill] sm:$0xff]  ;;  %v14797_v30 = vld [vmem:[#allocation252_spill] sm:$0xff] }
 0x5d0   :  { %v5501_v15 = vmul.f32 %v14789_v44, %v13187_v62  ;;  %v5606_v14 = vmax.f32 %v13529_v9, %v13355_v29  ;;  %v5677_v60 = vsel %vm5505_vm0, %v5453_v41, -inf  ;;  %v5713_v51 = vmax.f32 %v5711_v6, %v5712_v12  ;;  %v14793_v9 = vld [vmem:[#allocation210_spill] sm:$0xff]  ;;  %v14800_v41 = vld [vmem:[#allocation268_spill] sm:$0xff] }
 0x5d1   :  { %v5749_v22 = vsel %vm5505_vm0, %v5484_v28, -inf  ;;  %v5438_v3 = vmul.f32 %v14790_v27, %v14575_v50  ;;  %v5714_v43 = vsel %vm5505_vm0, %v5469_v23, -inf  ;;  %v5786_v39 = vsel %vm5505_vm0, %v5500_v59, -inf  ;;  %v14802_v23 = vld [vmem:[#allocation273_spill] sm:$0xff]  ;;  %v14803_v5 = vld [vmem:[#allocation200_spill] sm:$0xff] }
 0x5d2   :  { %v5750_v33 = vmax.f32 %v5748_v19, %v5749_v22  ;;  %v5641_v26 = vmax.f32 %v5639_v57, %v5640_v45  ;;  %v5454_v62 = vmul.f32 %v14792_v53, %v14791_v34  ;;  %v5751_v10 = vsel %vm5505_vm0, %v5485_v17, -inf  ;;  %v14806_v22 = vld [vmem:[#allocation63_spill] sm:$0xff] }
 0x5d3   :  { %v5787_v29 = vmax.f32 %v5785_v37, %v5786_v39  ;;  %v5439_v38 = vmul.f32 %v14793_v9, %v14576_v48  ;;  %v5678_v25 = vmax.f32 %v5676_v47, %v5677_v60  ;;  %v5470_v40 = vmul.f32 %v14795_v1, %v14794_v21  ;;  %v14804_v47 = vld [vmem:[#allocation222_spill] sm:$0xff]  ;;  %v14812_v9 = vld [vmem:[#allocation95_spill] sm:$0xff] }
 0x5d4   :  { %v5788_v50 = vsel %vm5505_vm0, %v5501_v15, -inf  ;;  %v5607_v54 = vsel %vm5505_vm0, %v5423_v2, -inf  ;;  %v5455_v4 = vmul.f32 %v14796_v63, %v14579_v11  ;;  %v5715_v0 = vmax.f32 %v5713_v51, %v5714_v43  ;;  %v14801_v2 = vld [vmem:[#allocation259_spill] sm:$0xff]  ;;  %v14805_v60 = vld [vmem:[#allocation238_spill] sm:$0xff] }
 0x5d5   :  { %v5486_v35 = vmul.f32 %v14797_v30, %v13050_v7  ;;  %v5642_v18 = vsel %vm5505_vm0, %v5438_v3, -inf  ;;  %v5471_v48 = vmul.f32 %v14799_v52, %v14798_v31  ;;  %v5752_v13 = vmax.f32 %v5750_v33, %v5751_v10  ;;  %v14807_v3 = vld [vmem:[#allocation62_spill] sm:$0xff] }
 0x5d6   :  { %v5502_v6 = vmul.f32 %v14800_v41, %v13199_v20  ;;  %v5643_v58 = vmax.f32 %v5641_v26, %v5642_v18  ;;  %v5679_v28 = vsel %vm5505_vm0, %v5454_v62, -inf  ;;  %v5487_v55 = vmul.f32 %v14801_v2, %v13038_v36  ;;  %v14808_v39 = vld [vmem:[#allocation50_spill] sm:$0xff] }
 0x5d7   :  { %v5789_v11 = vmax.f32 %v5787_v29, %v5788_v50  ;;  %v5644_v16 = vsel %vm5505_vm0, %v5439_v38, -inf  ;;  %v5680_v56 = vmax.f32 %v5678_v25, %v5679_v28  ;;  %v5716_v7 = vsel %vm5505_vm0, %v5470_v40, -inf  ;;  %v14811_v10 = vld [vmem:[#allocation270_spill] sm:$0xff] }
 0x5d8   :  { %v5503_v19 = vmul.f32 %v14802_v23, %v13211_v49  ;;  %v5608_v46 = vmax.f32 %v5606_v14, %v5607_v54  ;;  %v5681_v59 = vsel %vm5505_vm0, %v5455_v4, -inf  ;;  %v5717_v57 = vmax.f32 %v5715_v0, %v5716_v7 }
 0x5d9   :  { %v5753_v20 = vsel %vm5505_vm0, %v5486_v35, -inf  ;;  %v5440_v32 = vmul.f32 %v14803_v5, %v14581_v42  ;;  %v5718_v36 = vsel %vm5505_vm0, %v5471_v48, -inf  ;;  %v5790_v37 = vsel %vm5505_vm0, %v5502_v6, -inf }
 0x5da   :  { %v5754_v17 = vmax.f32 %v5752_v13, %v5753_v20  ;;  %v5645_v45 = vmax.f32 %v5643_v58, %v5644_v16  ;;  %v5456_v12 = vmul.f32 %v14804_v47, %v14578_v24  ;;  %v5755_v49 = vsel %vm5505_vm0, %v5487_v55, -inf  ;;  %v14809_v24 = vld [vmem:[#allocation254_spill] sm:$0xff] }
 0x5db   :  { %v5791_v44 = vmax.f32 %v5789_v11, %v5790_v37  ;;  %v5572_v15 = vsel %vm5505_vm0, %v13338_v8, -inf  ;;  %v5682_v14 = vmax.f32 %v5680_v56, %v5681_v59  ;;  %v5472_v51 = vmul.f32 %v14805_v60, %v14577_v61  ;;  %v14810_v8 = vld [vmem:[#allocation111_spill] sm:$0xff] }
 0x5dc   :  { %v5792_v42 = vsel %vm5505_vm0, %v5503_v19, -inf  ;;  %v5573_v27 = vmax.f32 %v14806_v22, %v5572_v15  ;;  %v5609_v43 = vsel %vm5505_vm0, %v14807_v3, -inf  ;;  %v5719_v33 = vmax.f32 %v5717_v57, %v5718_v36  ;;  %v14813_v61 = vld [vmem:[#allocation87_spill] sm:$0xff] }
 0x5dd   :  { %v5488_v26 = vmul.f32 %v14809_v24, %v14808_v39  ;;  %v5610_v34 = vmax.f32 %v5608_v46, %v5609_v43  ;;  %v5646_v53 = vsel %vm5505_vm0, %v5440_v32, -inf  ;;  %v5756_v62 = vmax.f32 %v5754_v17, %v5755_v49 }
 0x5de   :  { %v5504_v29 = vmul.f32 %v14811_v10, %v14810_v8  ;;  %v5536_v38 = vmax.f32 %v14813_v61, %v14812_v9  ;;  %v5647_v25 = vmax.f32 %v5645_v45, %v5646_v53  ;;  %v5683_v21 = vsel %vm5505_vm0, %v5456_v12, -inf }
 0x5df   :  { %v5793_v1 = vmax.f32 %v5791_v44, %v5792_v42  ;;  %v5684_v40 = vmax.f32 %v5682_v14, %v5683_v21  ;;  %v5720_v50 = vsel %vm5505_vm0, %v5472_v51, -inf  ;;  %v5574_v54 = vrot.slane %v5573_v27, 4 }
 0x5e0   :  { %v5721_v63 = vmax.f32 %v5719_v33, %v5720_v50  ;;  %v5757_v4 = vsel %vm5505_vm0, %v5488_v26, -inf  ;;  %v5611_v0 = vrot.slane %v5610_v34, 4  ;;  %v5794_v35 = vsel %vm5505_vm0, %v5504_v29, -inf  ;;  %v7671_v50 = vld [vmem:[%s13644_s6] ss:$0 sm:$0xff] }
 0x5e1   :  { %v5758_v30 = vmax.f32 %v5756_v62, %v5757_v4  ;;  %v5537_v18 = vrot.slane %v5536_v38, 4  ;;  %v5648_v31 = vrot.slane %v5647_v25, 4  ;;  %v5795_v52 = vmax.f32 %v5793_v1, %v5794_v35 }
 0x5e2   :  { %v5685_v48 = vrot.slane %v5684_v40, 4  ;;  %v5575_v13 = vmax.f32 %v5573_v27, %v5574_v54  ;;  %v5722_v41 = vrot.slane %v5721_v63, 4  ;;  %v5612_v6 = vmax.f32 %v5610_v34, %v5611_v0 }
 0x5e3   :  { %v5759_v58 = vrot.slane %v5758_v30, 4  ;;  %v5538_v28 = vmax.f32 %v5536_v38, %v5537_v18  ;;  %v5649_v2 = vmax.f32 %v5647_v25, %v5648_v31  ;;  %v5796_v55 = vrot.slane %v5795_v52, 4 }
 0x5e4   :  { %v5686_v11 = vmax.f32 %v5684_v40, %v5685_v48  ;;  %v5576_v16 = vrot.slane %v5575_v13, 2  ;;  %v5723_v56 = vmax.f32 %v5721_v63, %v5722_v41  ;;  %v5613_v7 = vrot.slane %v5612_v6, 2 }
 0x5e5   :  { %v5760_v23 = vmax.f32 %v5758_v30, %v5759_v58  ;;  %v5539_v19 = vrot.slane %v5538_v28, 2  ;;  %v5650_v46 = vrot.slane %v5649_v2, 2  ;;  %v5797_v59 = vmax.f32 %v5795_v52, %v5796_v55 }
 0x5e6   :  { %v5687_v57 = vrot.slane %v5686_v11, 2  ;;  %v5577_v20 = vmax.f32 %v5575_v13, %v5576_v16  ;;  %v5724_v5 = vrot.slane %v5723_v56, 2  ;;  %v5614_v32 = vmax.f32 %v5612_v6, %v5613_v7 }
 0x5e7   :  { %v5761_v36 = vrot.slane %v5760_v23, 2  ;;  %v5540_v17 = vmax.f32 %v5538_v28, %v5539_v19  ;;  %v5651_v37 = vmax.f32 %v5649_v2, %v5650_v46  ;;  %v5798_v45 = vrot.slane %v5797_v59, 2 }
 0x5e8   :  { %v5688_v47 = vmax.f32 %v5686_v11, %v5687_v57  ;;  %v5578_v12 = vrot.slane %v5577_v20, 1  ;;  %v5725_v49 = vmax.f32 %v5723_v56, %v5724_v5  ;;  %v5615_v44 = vrot.slane %v5614_v32, 1 }
 0x5e9   :  { %v5762_v15 = vmax.f32 %v5760_v23, %v5761_v36  ;;  %v5541_v14 = vrot.slane %v5540_v17, 1  ;;  %v5652_v60 = vrot.slane %v5651_v37, 1  ;;  %v5799_v51 = vmax.f32 %v5797_v59, %v5798_v45 }
 0x5ea   :  { %v5689_v42 = vrot.slane %v5688_v47, 1  ;;  %v5579_v22 = vmax.f32 %v5577_v20, %v5578_v12  ;;  %v5726_v27 = vrot.slane %v5725_v49, 1  ;;  %v5616_v3 = vmax.f32 %v5614_v32, %v5615_v44 }
 0x5eb   :  { %v5763_v43 = vrot.slane %v5762_v15, 1  ;;  %v5542_v33 = vmax.f32 %v5540_v17, %v5541_v14  ;;  %v5653_v39 = vmax.f32 %v5651_v37, %v5652_v60  ;;  %v5800_v24 = vrot.slane %v5799_v51, 1 }
 0x5ec   :  { %v5690_v26 = vmax.f32 %v5688_v47, %v5689_v42  ;;  %v5727_v34 = vmax.f32 %v5725_v49, %v5726_v27 }
 0x5ed   :  { %v6747_v53 = vsel %vm6746_vm1, %v5579_v22, %v5542_v33  ;;  %v5764_v62 = vmax.f32 %v5762_v15, %v5763_v43  ;;  %v5801_v10 = vmax.f32 %v5799_v51, %v5800_v24 }
 0x5ee   :  { %v6749_v8 = vsel %vm6748_vm2, %v5616_v3, %v6747_v53 }
 0x5ef   :  { %v6751_v29 = vsel %vm6750_vm3, %v5653_v39, %v6749_v8 }
 0x5f0   :  { %v6753_v9 = vsel %vm6752_vm4, %v5690_v26, %v6751_v29 }
 0x5f1   :  { %v6755_v61 = vsel %vm6754_vm5, %v5727_v34, %v6753_v9 }
 0x5f2   :  { %v6757_v38 = vsel %vm6756_vm7, %v5764_v62, %v6755_v61 }
 0x5f3   :  { %v6759_v25 = vsel %vm6758_vm8, %v5801_v10, %v6757_v38 }
 0x60a   :  { %v6777_v21 = vpop.permute.xlu0 %6776 }
 0x60b   :  { %v6779_v1 = vsel %vm5505_vm0, %v6759_v25, %v6777_v21 }
 0x60c   :  { %v6780_v40 = vpack.c.bf16 %v6779_v1, %v6779_v1 }
 0x60e   :  { %8339 = vmatmul.mubr.msk.bf16.vlgmr.msra.gmra.mxu1 %vm6820_vm9, %v6780_v40 }
 0x6ce   :  { %v6858_v54 = vpop.f32.mrf.mxu1 }
 0x6cf   :  { %v6859_v63 = vadd.f32 %v7671_v50, %v6858_v54 }
 0x6d0   :  { %v8340_v4 = vpop.f32.mrf.mxu1 }
 0x6d1   :  { %6864 = vst [vmem:[#allocation2] sm:$0xff] %v6859_v63 }
 0x6d2   :  { %v6861_v0 = vpop.f32.mrf.mxu1 }
 0x6d3   :  { %8623 = shalt.err (!%p8620_p4)
}
 0x6d4   :  { %6874 = dma.vmem_to_hbm [thread:$0]  %s6872_s0, 128, %s13645_s7, [#allocation3]   ;;  %v8341_v30 = vpop.f32.mrf.mxu1 }
 0x6d5   :  { %8632 = dma.done.wait [#allocation3], 128  }
 0x6d6   :  { %8633 = vsyncadd [#allocation3], 4294967168 }
 0x6d7   :  { %6878 = vsyncpa [#allocation3], 1 }

</bundles_post_ra>
